<compile_context>
chip_gen: v6e
topology: v6e:2x2x1
jax: 0.10.0
libtpu: 0.0.40
codegen_flags: <defaults>
</compile_context>

<pallas_src>
import functools
import math

import jax
import jax.numpy as jnp
import numpy as np
from jax.experimental import pallas as pl
from jax.experimental.pallas import tpu as pltpu


# ----------------------------- shared math helpers -----------------------------

def _layernorm(x, gamma, beta, eps=1e-5):
    # x: (..., D); gamma/beta: (1, D).  f32 throughout (matches nn.LayerNorm).
    mean = jnp.mean(x, axis=-1, keepdims=True)
    var = jnp.mean(jnp.square(x - mean), axis=-1, keepdims=True)
    return (x - mean) * jax.lax.rsqrt(var + eps) * gamma + beta


# --------------------------------- kernel --------------------------------------

def _mha_tile(x_q, k_ref, v_ref, bias, wq_ref, bq_ref, wo_ref, bo_ref,
              num_heads, scale):
    """One query tile of multi-head attention against cached K/V.

    x_q   : (tq, D) queries (bf16 or f32).
    k_ref : (S_k, D) bf16 VMEM scratch holding cached K projection.
    v_ref : (S_k, D) bf16 VMEM scratch holding cached V projection.
    bias  : (tq or 1, S_k) f32 additive mask bias (0 where kept, -1e9 masked).
    Weights are bf16 refs, biases f32 refs.  Returns (tq, D) f32.
    """
    tq, D = x_q.shape
    s_k = k_ref.shape[0]
    d_k = D // num_heads
    bf16 = jnp.bfloat16
    f32 = jnp.float32

    # Q projection (bf16 operands, f32 accumulation); 1/sqrt(d_k) folded into q
    # (tq*D elements) instead of scaling every (tq, S_k) score tile.
    q = (jnp.dot(x_q.astype(bf16), wq_ref[...],
                 preferred_element_type=f32) + bq_ref[...]) * scale

    k_all = k_ref[...]                       # (S_k, D) bf16 cached K
    v_all = v_ref[...]                       # (S_k, D) bf16 cached V
    bias = jnp.broadcast_to(bias, (tq, s_k))  # hoisted out of the head loop

    out = jnp.zeros((tq, D), f32)
    # Per-head 2-D MXU dots; head recombination is fused into the output
    # projection (no concat, no (H,tq,d_k)->(tq,D) transpose/relayout).
    # TODO(synk): for long sequences use flash-style KV-block tiling (online
    #             softmax) and a head-tiled grid axis instead of this loop.
    for h in range(num_heads):
        lo = h * d_k
        qh = q[:, lo:lo + d_k].astype(bf16)                        # (tq, d_k)
        kh = k_all[:, lo:lo + d_k]                                 # (S_k, d_k)
        vh = v_all[:, lo:lo + d_k]                                 # (S_k, d_k)
        s = jax.lax.dot_general(qh, kh, (((1,), (1,)), ((), ())),
                                preferred_element_type=f32)        # (tq, S_k)
        s = s + bias                                               # additive mask
        m = jnp.max(s, axis=-1, keepdims=True)
        e = jnp.exp(s - m)
        l = jnp.sum(e, axis=-1, keepdims=True)
        # EUP reciprocal (approx) instead of a VALU divide; error << bf16 noise.
        p = (e * pl.reciprocal(l, approx=True)).astype(bf16)
        ctx = jnp.dot(p, vh, preferred_element_type=f32).astype(bf16)  # (tq, d_k)
        out = out + jnp.dot(ctx, wo_ref[lo:lo + d_k, :],
                            preferred_element_type=f32)
    return out + bo_ref[...]


def decoder_layer_kernel(tgt_ref, enc_ref, tbias_ref, sbias_ref, *refs,
                         num_heads):
    (wq1, bq1, wk1, bk1, wv1, bv1, wo1, bo1, g1, be1,
     wq2, bq2, wk2, bk2, wv2, bv2, wo2, bo2, g2, be2,
     w1, b1, w2, b2, g3, be3,
     out_ref, k1_sc, v1_sc, k2_sc, v2_sc) = refs

    tq, D = out_ref.shape
    d_k = D // num_heads
    scale = 1.0 / math.sqrt(d_k)
    bf16 = jnp.bfloat16
    f32 = jnp.float32

    qi = pl.program_id(1)
    row0 = pl.multiple_of(qi * tq, tq)

    # ---- per-batch K/V caches: computed once, on the first query tile ----
    # (qi is the inner, "arbitrary" grid axis; scratch persists across it.)
    @pl.when(qi == 0)
    def _():
        x_full = tgt_ref[...]          # (S_t, D) bf16  -> self-attn K/V source
        enc = enc_ref[...]             # (S_s, D) bf16  -> cross-attn K/V source
        k1_sc[...] = (jnp.dot(x_full, wk1[...], preferred_element_type=f32)
                      + bk1[...]).astype(bf16)
        v1_sc[...] = (jnp.dot(x_full, wv1[...], preferred_element_type=f32)
                      + bv1[...]).astype(bf16)
        k2_sc[...] = (jnp.dot(enc, wk2[...], preferred_element_type=f32)
                      + bk2[...]).astype(bf16)
        v2_sc[...] = (jnp.dot(enc, wv2[...], preferred_element_type=f32)
                      + bv2[...]).astype(bf16)

    x_q = tgt_ref[pl.ds(row0, tq), :]              # (tq, D) bf16 query rows
    x_q_f = x_q.astype(f32)                        # f32 for residual / LayerNorm

    tbias = tbias_ref[...].astype(f32)             # (tq, S_t)
    sbias = sbias_ref[...].astype(f32)             # (1, S_s)

    # --- masked self-attention + residual + LayerNorm 1 ---
    a1 = _mha_tile(x_q, k1_sc, v1_sc, tbias, wq1, bq1, wo1, bo1,
                   num_heads, scale)
    h1 = _layernorm(x_q_f + a1, g1[...], be1[...])

    # --- encoder-decoder cross-attention + residual + LayerNorm 2 ---
    a2 = _mha_tile(h1, k2_sc, v2_sc, sbias, wq2, bq2, wo2, bo2,
                   num_heads, scale)
    h2 = _layernorm(h1 + a2, g2[...], be2[...])

    # --- position-wise feed forward + residual + LayerNorm 3 ---
    ff = jnp.dot(h2.astype(bf16), w1[...], preferred_element_type=f32) + b1[...]
    ff = jnp.maximum(ff, 0.0)
    ff = jnp.dot(ff.astype(bf16), w2[...], preferred_element_type=f32) + b2[...]
    h3 = _layernorm(h2 + ff, g3[...], be3[...])

    out_ref[...] = h3.astype(out_ref.dtype)


# --------------------------------- wrapper --------------------------------------

_PARAM_ORDER = (
    "wq1", "bq1", "wk1", "bk1", "wv1", "bv1", "wo1", "bo1", "g1", "be1",
    "wq2", "bq2", "wk2", "bk2", "wv2", "bv2", "wo2", "bo2", "g2", "be2",
    "w1", "b1", "w2", "b2", "g3", "be3",
)
_BF16_WEIGHTS = ("wq1", "wk1", "wv1", "wo1", "wq2", "wk2", "wv2", "wo2",
                 "w1", "w2")


def decoder_layer(tgt, enc_output, src_mask, tgt_mask, params, num_heads,
                  tq=None):
    B, S_t, D = tgt.shape
    _, S_s, _ = enc_output.shape
    d_ff = params["w1"].shape[1]

    if tq is None:
        tq = min(256, S_t)          # bigger tiles amortize per-step overhead
    assert S_t % tq == 0 and tq % 8 == 0 and D % 128 == 0, (
        "lane-dense layout expected: D % 128 == 0, query tile multiple of 8")
    n_q = S_t // tq

    bf16 = jnp.bfloat16
    f32 = jnp.float32

    # Activations go bf16 at the kernel boundary (halves the two largest DMAs
    # and their VMEM residency); residual / LayerNorm math stays f32 in-kernel.
    tgt_in = tgt.astype(bf16)
    enc_in = enc_output.astype(bf16)

    # Masks -> additive bf16 biases (0 kept, -1e9 masked) == masked_fill(-1e9).
    # src_mask is NOT broadcast over S_t: it stays (B,1,1,S_s) in HBM and is
    # broadcast over queries inside the kernel.
    # TODO(synk): if tgt_mask is known-causal, generate it in-kernel from
    #             broadcasted_iota instead of DMAing a (tq,S_t) tile per step.
    tbias = jnp.where(jnp.broadcast_to(tgt_mask, (B, 1, S_t, S_t)) == 0,
                      -1.0e9, 0.0).astype(bf16)
    sbias = jnp.where(jnp.broadcast_to(src_mask, (B, 1, 1, S_s)) == 0,
                      -1.0e9, 0.0).astype(bf16)

    # Weight matrices to bf16 (MXU operands); biases / LayerNorm params stay f32.
    p = dict(params)
    for name in _BF16_WEIGHTS:
        p[name] = p[name].astype(bf16)
    ordered = [p[name] for name in _PARAM_ORDER]

    kernel = functools.partial(decoder_layer_kernel, num_heads=num_heads)

    # Chip-aware scoped-VMEM budget (v7x has only 64 MiB physical VMEM).
    try:
        vmem_cap = int(pltpu.get_tpu_info().vmem_capacity_bytes)
    except Exception:
        vmem_cap = 64 << 20
    param_bytes = sum(int(a.size) * a.dtype.itemsize for a in ordered)
    act_bytes = (2 * 2 * ((S_t + S_s) * D + tq * S_t + S_s)   # bf16 inputs x2 bufs
                 + 2 * 4 * tq * D                             # f32 output x2 bufs
                 + 2 * 2 * (S_t + S_s) * D                    # bf16 K/V scratch
                 + 4 * (3 * tq * max(S_t, S_s) + 10 * tq * D + 2 * tq * d_ff))
    vmem_limit = int(min(vmem_cap - (8 << 20),
                         max(32 << 20, 2 * param_bytes + act_bytes + (4 << 20))))

    out_shape = jax.ShapeDtypeStruct((B, S_t, D), tgt.dtype)

    def build(weight_mode):
        def const_spec(arr):
            nd = arr.ndim
            kw = {} if weight_mode is None else {"pipeline_mode": weight_mode}
            return pl.BlockSpec(tuple(arr.shape),
                                lambda b, qi, _nd=nd: (0,) * _nd, **kw)

        in_specs = [
            pl.BlockSpec((None, S_t, D), lambda b, qi: (b, 0, 0)),             # tgt (full seq)
            pl.BlockSpec((None, S_s, D), lambda b, qi: (b, 0, 0)),             # enc_output
            pl.BlockSpec((None, None, tq, S_t), lambda b, qi: (b, 0, qi, 0)),  # self-attn bias tile
            pl.BlockSpec((None, None, 1, S_s), lambda b, qi: (b, 0, 0, 0)),    # cross-attn bias
        ] + [const_spec(a) for a in ordered]

        out_specs = pl.BlockSpec((None, tq, D), lambda b, qi: (b, qi, 0))

        scratch = [
            pltpu.VMEM((S_t, D), bf16),   # self-attn K cache (per batch)
            pltpu.VMEM((S_t, D), bf16),   # self-attn V cache
            pltpu.VMEM((S_s, D), bf16),   # cross-attn K cache
            pltpu.VMEM((S_s, D), bf16),   # cross-attn V cache
        ]

        return pl.pallas_call(
            kernel,
            out_shape=out_shape,
            grid_spec=pltpu.PrefetchScalarGridSpec(
                num_scalar_prefetch=0,
                grid=(B, n_q),
                in_specs=in_specs,
                out_specs=out_specs,
                scratch_shapes=scratch,
            ),
            compiler_params=pltpu.CompilerParams(
                # Batch axis parallel (megacore sharding); the query-tile axis
                # carries the K/V scratch across iterations -> "arbitrary".
                dimension_semantics=("parallel", "arbitrary"),
                vmem_limit_bytes=vmem_limit,
            ),
        )

    args = (tgt_in, enc_in, tbias, sbias, *ordered)
    try:
        # Grid-invariant weights: single-buffered (halves their VMEM residency).
        out = build(pl.Buffered(1))(*args)
        return jax.block_until_ready(out)
    except Exception:
        # Fallback for jax versions without single-buffered pipeline_mode.
        return build(None)(*args)


# ------------------------------ pure-JAX reference ------------------------------

def _reference_mha(xq, xkv, mask, wq, bq, wk, bk, wv, bv, wo, bo, num_heads):
    """Mirrors the kernel numerics: bf16 matmul operands, f32 accumulation."""
    B, Sq, D = xq.shape
    Sk = xkv.shape[1]
    dk = D // num_heads
    bf = jnp.bfloat16
    f32 = jnp.float32

    def lin(x, w, b):
        return jnp.einsum("bsd,df->bsf", x.astype(bf), w.astype(bf),
                          preferred_element_type=f32) + b

    q = lin(xq, wq, bq) * (1.0 / math.sqrt(dk))
    k = lin(xkv, wk, bk)
    v = lin(xkv, wv, bv)
    q = q.reshape(B, Sq, num_heads, dk).transpose(0, 2, 1, 3)
    k = k.reshape(B, Sk, num_heads, dk).transpose(0, 2, 1, 3)
    v = v.reshape(B, Sk, num_heads, dk).transpose(0, 2, 1, 3)
    s = jnp.einsum("bhqd,bhkd->bhqk", q.astype(bf), k.astype(bf),
                   preferred_element_type=f32)
    s = jnp.where(mask == 0.0, -1.0e9, s)
    attn = jax.nn.softmax(s, axis=-1)
    ctx = jnp.einsum("bhqk,bhkd->bhqd", attn.astype(bf), v.astype(bf),
                     preferred_element_type=f32)
    ctx = ctx.transpose(0, 2, 1, 3).reshape(B, Sq, D)
    return jnp.einsum("bsd,df->bsf", ctx.astype(bf), wo.astype(bf),
                      preferred_element_type=f32) + bo


def reference_decoder_layer(tgt, enc_output, src_mask, tgt_mask, params,
                            num_heads):
    bf = jnp.bfloat16
    f32 = jnp.float32

    # Mirror the kernel's bf16 activation I/O at the boundary.
    tgt = tgt.astype(bf).astype(f32)
    enc_output = enc_output.astype(bf).astype(f32)

    a1 = _reference_mha(tgt, tgt, tgt_mask,
                        params["wq1"], params["bq1"], params["wk1"],
                        params["bk1"], params["wv1"], params["bv1"],
                        params["wo1"], params["bo1"], num_heads)
    h1 = _layernorm(tgt + a1, params["g1"], params["be1"])

    a2 = _reference_mha(h1, enc_output, src_mask,
                        params["wq2"], params["bq2"], params["wk2"],
                        params["bk2"], params["wv2"], params["bv2"],
                        params["wo2"], params["bo2"], num_heads)
    h2 = _layernorm(h1 + a2, params["g2"], params["be2"])

    ff = jnp.einsum("bsd,df->bsf", h2.astype(bf), params["w1"].astype(bf),
                    preferred_element_type=f32) + params["b1"]
    ff = jnp.maximum(ff, 0.0)
    ff = jnp.einsum("bsf,fd->bsd", ff.astype(bf), params["w2"].astype(bf),
                    preferred_element_type=f32) + params["b2"]
    return _layernorm(h2 + ff, params["g3"], params["be3"])


# ------------------------------------ main ---------------------------------------

if __name__ == "__main__":
    B, S_T, S_S, D, H, D_FF = 2, 8, 16, 128, 4, 256
    key = jax.random.PRNGKey(0)
    keys = jax.random.split(key, 16)

    def init_linear(k, fan_in, fan_out):
        kw, kb = jax.random.split(k)
        bound = 1.0 / math.sqrt(fan_in)
        w = jax.random.uniform(kw, (fan_in, fan_out), jnp.float32, -bound, bound)
        b = jax.random.uniform(kb, (1, fan_out), jnp.float32, -bound, bound)
        return w, b

    wq1, bq1 = init_linear(keys[0], D, D)
    wk1, bk1 = init_linear(keys[1], D, D)
    wv1, bv1 = init_linear(keys[2], D, D)
    wo1, bo1 = init_linear(keys[3], D, D)
    wq2, bq2 = init_linear(keys[4], D, D)
    wk2, bk2 = init_linear(keys[5], D, D)
    wv2, bv2 = init_linear(keys[6], D, D)
    wo2, bo2 = init_linear(keys[7], D, D)
    w1, b1 = init_linear(keys[8], D, D_FF)
    w2, b2 = init_linear(keys[9], D_FF, D)

    def ln_params(k):
        kg, kb = jax.random.split(k)
        g = 1.0 + 0.1 * jax.random.normal(kg, (1, D), jnp.float32)
        b = 0.1 * jax.random.normal(kb, (1, D), jnp.float32)
        return g, b

    g1, be1 = ln_params(keys[10])
    g2, be2 = ln_params(keys[11])
    g3, be3 = ln_params(keys[12])

    params = dict(
        wq1=wq1, bq1=bq1, wk1=wk1, bk1=bk1, wv1=wv1, bv1=bv1, wo1=wo1, bo1=bo1,
        g1=g1, be1=be1,
        wq2=wq2, bq2=bq2, wk2=wk2, bk2=bk2, wv2=wv2, bv2=bv2, wo2=wo2, bo2=bo2,
        g2=g2, be2=be2,
        w1=w1, b1=b1, w2=w2, b2=b2,
        g3=g3, be3=be3,
    )

    tgt = jax.random.normal(keys[13], (B, S_T, D), jnp.float32)
    enc_output = jax.random.normal(keys[14], (B, S_S, D), jnp.float32)

    # decoder self-attention: causal mask
    causal = jnp.tril(jnp.ones((S_T, S_T), jnp.float32))
    tgt_mask = jnp.broadcast_to(causal[None, None], (B, 1, S_T, S_T))

    # cross-attention: batch 1 masks out the last 3 encoder key positions
    src_mask_np = np.ones((B, 1, 1, S_S), np.float32)
    src_mask_np[1, 0, 0, -3:] = 0.0
    src_mask = jnp.asarray(src_mask_np)

    out = decoder_layer(tgt, enc_output, src_mask, tgt_mask, params,
                        num_heads=H)
    out = jax.block_until_ready(out)

    ref = reference_decoder_layer(tgt, enc_output, src_mask, tgt_mask, params,
                                  num_heads=H)
    np.testing.assert_allclose(np.asarray(out), np.asarray(ref),
                               rtol=3e-2, atol=3e-2)

    print("KERNEL_OK")
</pallas_src>

<mosaic_0001>
module attributes {stable_mosaic.version = 11 : i64} {
  func.func @decoder_layer_kernel(%arg0: i32, %arg1: i32, %arg2: memref<1x8x128xbf16, #tpu.memory_space<vmem>>, %arg3: memref<1x16x128xbf16, #tpu.memory_space<vmem>>, %arg4: memref<1x1x8x8xbf16, #tpu.memory_space<vmem>>, %arg5: memref<1x1x1x16xbf16, #tpu.memory_space<vmem>>, %arg6: memref<128x128xbf16, #tpu.memory_space<vmem>>, %arg7: memref<1x128xf32, #tpu.memory_space<vmem>>, %arg8: memref<128x128xbf16, #tpu.memory_space<vmem>>, %arg9: memref<1x128xf32, #tpu.memory_space<vmem>>, %arg10: memref<128x128xbf16, #tpu.memory_space<vmem>>, %arg11: memref<1x128xf32, #tpu.memory_space<vmem>>, %arg12: memref<128x128xbf16, #tpu.memory_space<vmem>>, %arg13: memref<1x128xf32, #tpu.memory_space<vmem>>, %arg14: memref<1x128xf32, #tpu.memory_space<vmem>>, %arg15: memref<1x128xf32, #tpu.memory_space<vmem>>, %arg16: memref<128x128xbf16, #tpu.memory_space<vmem>>, %arg17: memref<1x128xf32, #tpu.memory_space<vmem>>, %arg18: memref<128x128xbf16, #tpu.memory_space<vmem>>, %arg19: memref<1x128xf32, #tpu.memory_space<vmem>>, %arg20: memref<128x128xbf16, #tpu.memory_space<vmem>>, %arg21: memref<1x128xf32, #tpu.memory_space<vmem>>, %arg22: memref<128x128xbf16, #tpu.memory_space<vmem>>, %arg23: memref<1x128xf32, #tpu.memory_space<vmem>>, %arg24: memref<1x128xf32, #tpu.memory_space<vmem>>, %arg25: memref<1x128xf32, #tpu.memory_space<vmem>>, %arg26: memref<128x256xbf16, #tpu.memory_space<vmem>>, %arg27: memref<1x256xf32, #tpu.memory_space<vmem>>, %arg28: memref<256x128xbf16, #tpu.memory_space<vmem>>, %arg29: memref<1x128xf32, #tpu.memory_space<vmem>>, %arg30: memref<1x128xf32, #tpu.memory_space<vmem>>, %arg31: memref<1x128xf32, #tpu.memory_space<vmem>>, %arg32: memref<1x8x128xf32, #tpu.memory_space<vmem>>, %arg33: memref<8x128xbf16, #tpu.memory_space<vmem>>, %arg34: memref<8x128xbf16, #tpu.memory_space<vmem>>, %arg35: memref<16x128xbf16, #tpu.memory_space<vmem>>, %arg36: memref<16x128xbf16, #tpu.memory_space<vmem>>) attributes {dimension_semantics = [#tpu.dimension_semantics<parallel>, #tpu.dimension_semantics<arbitrary>], iteration_bounds = array<i64: 2, 1>, scalar_prefetch = 0 : i64, scratch_operands = 4 : i64, tpu.core_type = #tpu.core_type<tc>, window_params = [{transform_indices = @transform_0, window_bounds = array<i64: 1, 8, 128>}, {transform_indices = @transform_1, window_bounds = array<i64: 1, 16, 128>}, {transform_indices = @transform_2, window_bounds = array<i64: 1, 1, 8, 8>}, {transform_indices = @transform_3, window_bounds = array<i64: 1, 1, 1, 16>}, {pipeline_mode = #tpu.pipeline_mode<synchronous>, transform_indices = @transform_4, window_bounds = array<i64: 128, 128>}, {pipeline_mode = #tpu.pipeline_mode<synchronous>, transform_indices = @transform_5, window_bounds = array<i64: 1, 128>}, {pipeline_mode = #tpu.pipeline_mode<synchronous>, transform_indices = @transform_6, window_bounds = array<i64: 128, 128>}, {pipeline_mode = #tpu.pipeline_mode<synchronous>, transform_indices = @transform_7, window_bounds = array<i64: 1, 128>}, {pipeline_mode = #tpu.pipeline_mode<synchronous>, transform_indices = @transform_8, window_bounds = array<i64: 128, 128>}, {pipeline_mode = #tpu.pipeline_mode<synchronous>, transform_indices = @transform_9, window_bounds = array<i64: 1, 128>}, {pipeline_mode = #tpu.pipeline_mode<synchronous>, transform_indices = @transform_10, window_bounds = array<i64: 128, 128>}, {pipeline_mode = #tpu.pipeline_mode<synchronous>, transform_indices = @transform_11, window_bounds = array<i64: 1, 128>}, {pipeline_mode = #tpu.pipeline_mode<synchronous>, transform_indices = @transform_12, window_bounds = array<i64: 1, 128>}, {pipeline_mode = #tpu.pipeline_mode<synchronous>, transform_indices = @transform_13, window_bounds = array<i64: 1, 128>}, {pipeline_mode = #tpu.pipeline_mode<synchronous>, transform_indices = @transform_14, window_bounds = array<i64: 128, 128>}, {pipeline_mode = #tpu.pipeline_mode<synchronous>, transform_indices = @transform_15, window_bounds = array<i64: 1, 128>}, {pipeline_mode = #tpu.pipeline_mode<synchronous>, transform_indices = @transform_16, window_bounds = array<i64: 128, 128>}, {pipeline_mode = #tpu.pipeline_mode<synchronous>, transform_indices = @transform_17, window_bounds = array<i64: 1, 128>}, {pipeline_mode = #tpu.pipeline_mode<synchronous>, transform_indices = @transform_18, window_bounds = array<i64: 128, 128>}, {pipeline_mode = #tpu.pipeline_mode<synchronous>, transform_indices = @transform_19, window_bounds = array<i64: 1, 128>}, {pipeline_mode = #tpu.pipeline_mode<synchronous>, transform_indices = @transform_20, window_bounds = array<i64: 128, 128>}, {pipeline_mode = #tpu.pipeline_mode<synchronous>, transform_indices = @transform_21, window_bounds = array<i64: 1, 128>}, {pipeline_mode = #tpu.pipeline_mode<synchronous>, transform_indices = @transform_22, window_bounds = array<i64: 1, 128>}, {pipeline_mode = #tpu.pipeline_mode<synchronous>, transform_indices = @transform_23, window_bounds = array<i64: 1, 128>}, {pipeline_mode = #tpu.pipeline_mode<synchronous>, transform_indices = @transform_24, window_bounds = array<i64: 128, 256>}, {pipeline_mode = #tpu.pipeline_mode<synchronous>, transform_indices = @transform_25, window_bounds = array<i64: 1, 256>}, {pipeline_mode = #tpu.pipeline_mode<synchronous>, transform_indices = @transform_26, window_bounds = array<i64: 256, 128>}, {pipeline_mode = #tpu.pipeline_mode<synchronous>, transform_indices = @transform_27, window_bounds = array<i64: 1, 128>}, {pipeline_mode = #tpu.pipeline_mode<synchronous>, transform_indices = @transform_28, window_bounds = array<i64: 1, 128>}, {pipeline_mode = #tpu.pipeline_mode<synchronous>, transform_indices = @transform_29, window_bounds = array<i64: 1, 128>}, {transform_indices = @transform_30, window_bounds = array<i64: 1, 8, 128>}]} {
    %c8_i32 = arith.constant 8 : i32
    %0 = arith.muli %arg1, %c8_i32 : i32
    %1 = tpu.assume_multiple %0, 8 : i32
    %c0_i32 = arith.constant 0 : i32
    %2 = arith.cmpi eq, %arg1, %c0_i32 : i32
    %3 = arith.extui %2 : i1 to i32
    %c0_i32_0 = arith.constant 0 : i32
    %4 = arith.cmpi ne, %3, %c0_i32_0 : i32
    scf.if %4 {
      %c0_129 = arith.constant 0 : index
      %c0_130 = arith.constant 0 : index
      %c0_131 = arith.constant 0 : index
      %312 = vector.load %arg2[%c0_129, %c0_130, %c0_131] : memref<1x8x128xbf16, #tpu.memory_space<vmem>>, vector<1x8x128xbf16>
      %313 = vector.shape_cast %312 : vector<1x8x128xbf16> to vector<8x128xbf16>
      %c0_132 = arith.constant 0 : index
      %c0_133 = arith.constant 0 : index
      %c0_134 = arith.constant 0 : index
      %314 = vector.load %arg3[%c0_132, %c0_133, %c0_134] : memref<1x16x128xbf16, #tpu.memory_space<vmem>>, vector<1x16x128xbf16>
      %315 = vector.shape_cast %314 : vector<1x16x128xbf16> to vector<16x128xbf16>
      %c0_135 = arith.constant 0 : index
      %c0_136 = arith.constant 0 : index
      %316 = vector.load %arg8[%c0_135, %c0_136] : memref<128x128xbf16, #tpu.memory_space<vmem>>, vector<128x128xbf16>
      %cst_137 = arith.constant dense<0.000000e+00> : vector<8x128xf32>
      %317 = tpu.matmul %313, %316, %cst_137 {dimension_numbers = #tpu.dot_dimension_numbers<[1], [0], [0], [1], [0, 0, 1, 1], [], []>} : vector<8x128xbf16>, vector<128x128xbf16>, vector<8x128xf32> -> vector<8x128xf32>
      %c0_138 = arith.constant 0 : index
      %c0_139 = arith.constant 0 : index
      %318 = vector.load %arg9[%c0_138, %c0_139] : memref<1x128xf32, #tpu.memory_space<vmem>>, vector<1x128xf32>
      %319 = vector.broadcast %318 : vector<1x128xf32> to vector<8x128xf32>
      %320 = arith.addf %317, %319 : vector<8x128xf32>
      %321 = arith.truncf %320 : vector<8x128xf32> to vector<8x128xbf16>
      %c0_140 = arith.constant 0 : index
      %c0_141 = arith.constant 0 : index
      %322 = vector.load %arg33[%c0_140, %c0_141] : memref<8x128xbf16, #tpu.memory_space<vmem>>, vector<8x128xbf16>
      tpu.vector_store %arg33[%c0_140, %c0_141], %321 {strides = array<i32>} : memref<8x128xbf16, #tpu.memory_space<vmem>>, vector<8x128xbf16>,
      %c0_142 = arith.constant 0 : index
      %c0_143 = arith.constant 0 : index
      %323 = vector.load %arg10[%c0_142, %c0_143] : memref<128x128xbf16, #tpu.memory_space<vmem>>, vector<128x128xbf16>
      %cst_144 = arith.constant dense<0.000000e+00> : vector<8x128xf32>
      %324 = tpu.matmul %313, %323, %cst_144 {dimension_numbers = #tpu.dot_dimension_numbers<[1], [0], [0], [1], [0, 0, 1, 1], [], []>} : vector<8x128xbf16>, vector<128x128xbf16>, vector<8x128xf32> -> vector<8x128xf32>
      %c0_145 = arith.constant 0 : index
      %c0_146 = arith.constant 0 : index
      %325 = vector.load %arg11[%c0_145, %c0_146] : memref<1x128xf32, #tpu.memory_space<vmem>>, vector<1x128xf32>
      %326 = vector.broadcast %325 : vector<1x128xf32> to vector<8x128xf32>
      %327 = arith.addf %324, %326 : vector<8x128xf32>
      %328 = arith.truncf %327 : vector<8x128xf32> to vector<8x128xbf16>
      %c0_147 = arith.constant 0 : index
      %c0_148 = arith.constant 0 : index
      %329 = vector.load %arg34[%c0_147, %c0_148] : memref<8x128xbf16, #tpu.memory_space<vmem>>, vector<8x128xbf16>
      tpu.vector_store %arg34[%c0_147, %c0_148], %328 {strides = array<i32>} : memref<8x128xbf16, #tpu.memory_space<vmem>>, vector<8x128xbf16>,
      %c0_149 = arith.constant 0 : index
      %c0_150 = arith.constant 0 : index
      %330 = vector.load %arg18[%c0_149, %c0_150] : memref<128x128xbf16, #tpu.memory_space<vmem>>, vector<128x128xbf16>
      %cst_151 = arith.constant dense<0.000000e+00> : vector<16x128xf32>
      %331 = tpu.matmul %315, %330, %cst_151 {dimension_numbers = #tpu.dot_dimension_numbers<[1], [0], [0], [1], [0, 0, 1, 1], [], []>} : vector<16x128xbf16>, vector<128x128xbf16>, vector<16x128xf32> -> vector<16x128xf32>
      %c0_152 = arith.constant 0 : index
      %c0_153 = arith.constant 0 : index
      %332 = vector.load %arg19[%c0_152, %c0_153] : memref<1x128xf32, #tpu.memory_space<vmem>>, vector<1x128xf32>
      %333 = vector.broadcast %332 : vector<1x128xf32> to vector<16x128xf32>
      %334 = arith.addf %331, %333 : vector<16x128xf32>
      %335 = arith.truncf %334 : vector<16x128xf32> to vector<16x128xbf16>
      %c0_154 = arith.constant 0 : index
      %c0_155 = arith.constant 0 : index
      %336 = vector.load %arg35[%c0_154, %c0_155] : memref<16x128xbf16, #tpu.memory_space<vmem>>, vector<16x128xbf16>
      tpu.vector_store %arg35[%c0_154, %c0_155], %335 {strides = array<i32>} : memref<16x128xbf16, #tpu.memory_space<vmem>>, vector<16x128xbf16>,
      %c0_156 = arith.constant 0 : index
      %c0_157 = arith.constant 0 : index
      %337 = vector.load %arg20[%c0_156, %c0_157] : memref<128x128xbf16, #tpu.memory_space<vmem>>, vector<128x128xbf16>
      %cst_158 = arith.constant dense<0.000000e+00> : vector<16x128xf32>
      %338 = tpu.matmul %315, %337, %cst_158 {dimension_numbers = #tpu.dot_dimension_numbers<[1], [0], [0], [1], [0, 0, 1, 1], [], []>} : vector<16x128xbf16>, vector<128x128xbf16>, vector<16x128xf32> -> vector<16x128xf32>
      %c0_159 = arith.constant 0 : index
      %c0_160 = arith.constant 0 : index
      %339 = vector.load %arg21[%c0_159, %c0_160] : memref<1x128xf32, #tpu.memory_space<vmem>>, vector<1x128xf32>
      %340 = vector.broadcast %339 : vector<1x128xf32> to vector<16x128xf32>
      %341 = arith.addf %338, %340 : vector<16x128xf32>
      %342 = arith.truncf %341 : vector<16x128xf32> to vector<16x128xbf16>
      %c0_161 = arith.constant 0 : index
      %c0_162 = arith.constant 0 : index
      %343 = vector.load %arg36[%c0_161, %c0_162] : memref<16x128xbf16, #tpu.memory_space<vmem>>, vector<16x128xbf16>
      tpu.vector_store %arg36[%c0_161, %c0_162], %342 {strides = array<i32>} : memref<16x128xbf16, #tpu.memory_space<vmem>>, vector<16x128xbf16>,
    } else {
    }
    %c0 = arith.constant 0 : index
    %5 = arith.index_cast %1 : i32 to index
    %c0_1 = arith.constant 0 : index
    %6 = vector.load %arg2[%c0, %5, %c0_1] : memref<1x8x128xbf16, #tpu.memory_space<vmem>>, vector<1x8x128xbf16>
    %7 = vector.shape_cast %6 : vector<1x8x128xbf16> to vector<8x128xbf16>
    %8 = arith.extf %7 : vector<8x128xbf16> to vector<8x128xf32>
    %c0_2 = arith.constant 0 : index
    %c0_3 = arith.constant 0 : index
    %c0_4 = arith.constant 0 : index
    %c0_5 = arith.constant 0 : index
    %9 = vector.load %arg4[%c0_2, %c0_3, %c0_4, %c0_5] : memref<1x1x8x8xbf16, #tpu.memory_space<vmem>>, vector<1x1x8x8xbf16>
    %10 = vector.shape_cast %9 : vector<1x1x8x8xbf16> to vector<8x8xbf16>
    %11 = arith.extf %10 : vector<8x8xbf16> to vector<8x8xf32>
    %c0_6 = arith.constant 0 : index
    %c0_7 = arith.constant 0 : index
    %c0_8 = arith.constant 0 : index
    %c0_9 = arith.constant 0 : index
    %12 = vector.load %arg5[%c0_6, %c0_7, %c0_8, %c0_9] : memref<1x1x1x16xbf16, #tpu.memory_space<vmem>>, vector<1x1x1x16xbf16>
    %13 = vector.shape_cast %12 : vector<1x1x1x16xbf16> to vector<1x16xbf16>
    %14 = arith.extf %13 : vector<1x16xbf16> to vector<1x16xf32>
    %c0_10 = arith.constant 0 : index
    %c0_11 = arith.constant 0 : index
    %15 = vector.load %arg6[%c0_10, %c0_11] : memref<128x128xbf16, #tpu.memory_space<vmem>>, vector<128x128xbf16>
    %cst = arith.constant dense<0.000000e+00> : vector<8x128xf32>
    %16 = tpu.matmul %7, %15, %cst {dimension_numbers = #tpu.dot_dimension_numbers<[1], [0], [0], [1], [0, 0, 1, 1], [], []>} : vector<8x128xbf16>, vector<128x128xbf16>, vector<8x128xf32> -> vector<8x128xf32>
    %c0_12 = arith.constant 0 : index
    %c0_13 = arith.constant 0 : index
    %17 = vector.load %arg7[%c0_12, %c0_13] : memref<1x128xf32, #tpu.memory_space<vmem>>, vector<1x128xf32>
    %18 = vector.broadcast %17 : vector<1x128xf32> to vector<8x128xf32>
    %19 = arith.addf %16, %18 : vector<8x128xf32>
    %cst_14 = arith.constant 0.176776692 : f32
    %20 = vector.broadcast %cst_14 : f32 to vector<8x128xf32>
    %21 = arith.mulf %19, %20 : vector<8x128xf32>
    %c0_15 = arith.constant 0 : index
    %c0_16 = arith.constant 0 : index
    %22 = vector.load %arg33[%c0_15, %c0_16] : memref<8x128xbf16, #tpu.memory_space<vmem>>, vector<8x128xbf16>
    %c0_17 = arith.constant 0 : index
    %c0_18 = arith.constant 0 : index
    %23 = vector.load %arg34[%c0_17, %c0_18] : memref<8x128xbf16, #tpu.memory_space<vmem>>, vector<8x128xbf16>
    %cst_19 = arith.constant 0.000000e+00 : f32
    %24 = vector.broadcast %cst_19 : f32 to vector<8x128xf32>
    %25 = vector.extract_strided_slice %21 {offsets = [0, 0], sizes = [8, 32], strides = [1, 1]} : vector<8x128xf32> to vector<8x32xf32>
    %26 = arith.truncf %25 : vector<8x32xf32> to vector<8x32xbf16>
    %27 = vector.extract_strided_slice %22 {offsets = [0, 0], sizes = [8, 32], strides = [1, 1]} : vector<8x128xbf16> to vector<8x32xbf16>
    %28 = vector.extract_strided_slice %23 {offsets = [0, 0], sizes = [8, 32], strides = [1, 1]} : vector<8x128xbf16> to vector<8x32xbf16>
    %cst_20 = arith.constant dense<0.000000e+00> : vector<8x8xf32>
    %29 = tpu.matmul %26, %27, %cst_20 {dimension_numbers = #tpu.dot_dimension_numbers<[1], [1], [0], [0], [0, 0, 1, 0], [], []>} : vector<8x32xbf16>, vector<8x32xbf16>, vector<8x8xf32> -> vector<8x8xf32>
    %30 = arith.addf %29, %11 : vector<8x8xf32>
    %cst_21 = arith.constant dense<0xFF800000> : vector<8xf32>
    %31 = vector.multi_reduction <maximumf>, %30, %cst_21 [1] : vector<8x8xf32> to vector<8xf32>
    %32 = vector.shape_cast %31 : vector<8xf32> to vector<8x1xf32>
    %33 = vector.broadcast %32 : vector<8x1xf32> to vector<8x8xf32>
    %34 = arith.subf %30, %33 : vector<8x8xf32>
    %35 = math.exp %34 : vector<8x8xf32>
    %cst_22 = arith.constant dense<0.000000e+00> : vector<8xf32>
    %36 = vector.multi_reduction <add>, %35, %cst_22 [1] : vector<8x8xf32> to vector<8xf32>
    %37 = vector.shape_cast %36 : vector<8xf32> to vector<8x1xf32>
    %38 = tpu.reciprocal %37 {approx = true} : vector<8x1xf32> -> vector<8x1xf32>
    %39 = vector.broadcast %38 : vector<8x1xf32> to vector<8x8xf32>
    %40 = arith.mulf %35, %39 : vector<8x8xf32>
    %41 = arith.truncf %40 : vector<8x8xf32> to vector<8x8xbf16>
    %cst_23 = arith.constant dense<0.000000e+00> : vector<8x32xf32>
    %42 = tpu.matmul %41, %28, %cst_23 {dimension_numbers = #tpu.dot_dimension_numbers<[1], [0], [0], [1], [0, 0, 1, 1], [], []>} : vector<8x8xbf16>, vector<8x32xbf16>, vector<8x32xf32> -> vector<8x32xf32>
    %43 = arith.truncf %42 : vector<8x32xf32> to vector<8x32xbf16>
    %c0_24 = arith.constant 0 : index
    %c0_25 = arith.constant 0 : index
    %44 = vector.load %arg12[%c0_24, %c0_25] : memref<128x128xbf16, #tpu.memory_space<vmem>>, vector<32x128xbf16>
    %cst_26 = arith.constant dense<0.000000e+00> : vector<8x128xf32>
    %45 = tpu.matmul %43, %44, %cst_26 {dimension_numbers = #tpu.dot_dimension_numbers<[1], [0], [0], [1], [0, 0, 1, 1], [], []>} : vector<8x32xbf16>, vector<32x128xbf16>, vector<8x128xf32> -> vector<8x128xf32>
    %46 = arith.addf %24, %45 : vector<8x128xf32>
    %47 = vector.extract_strided_slice %21 {offsets = [0, 32], sizes = [8, 32], strides = [1, 1]} : vector<8x128xf32> to vector<8x32xf32>
    %48 = arith.truncf %47 : vector<8x32xf32> to vector<8x32xbf16>
    %49 = vector.extract_strided_slice %22 {offsets = [0, 32], sizes = [8, 32], strides = [1, 1]} : vector<8x128xbf16> to vector<8x32xbf16>
    %50 = vector.extract_strided_slice %23 {offsets = [0, 32], sizes = [8, 32], strides = [1, 1]} : vector<8x128xbf16> to vector<8x32xbf16>
    %cst_27 = arith.constant dense<0.000000e+00> : vector<8x8xf32>
    %51 = tpu.matmul %48, %49, %cst_27 {dimension_numbers = #tpu.dot_dimension_numbers<[1], [1], [0], [0], [0, 0, 1, 0], [], []>} : vector<8x32xbf16>, vector<8x32xbf16>, vector<8x8xf32> -> vector<8x8xf32>
    %52 = arith.addf %51, %11 : vector<8x8xf32>
    %cst_28 = arith.constant dense<0xFF800000> : vector<8xf32>
    %53 = vector.multi_reduction <maximumf>, %52, %cst_28 [1] : vector<8x8xf32> to vector<8xf32>
    %54 = vector.shape_cast %53 : vector<8xf32> to vector<8x1xf32>
    %55 = vector.broadcast %54 : vector<8x1xf32> to vector<8x8xf32>
    %56 = arith.subf %52, %55 : vector<8x8xf32>
    %57 = math.exp %56 : vector<8x8xf32>
    %cst_29 = arith.constant dense<0.000000e+00> : vector<8xf32>
    %58 = vector.multi_reduction <add>, %57, %cst_29 [1] : vector<8x8xf32> to vector<8xf32>
    %59 = vector.shape_cast %58 : vector<8xf32> to vector<8x1xf32>
    %60 = tpu.reciprocal %59 {approx = true} : vector<8x1xf32> -> vector<8x1xf32>
    %61 = vector.broadcast %60 : vector<8x1xf32> to vector<8x8xf32>
    %62 = arith.mulf %57, %61 : vector<8x8xf32>
    %63 = arith.truncf %62 : vector<8x8xf32> to vector<8x8xbf16>
    %cst_30 = arith.constant dense<0.000000e+00> : vector<8x32xf32>
    %64 = tpu.matmul %63, %50, %cst_30 {dimension_numbers = #tpu.dot_dimension_numbers<[1], [0], [0], [1], [0, 0, 1, 1], [], []>} : vector<8x8xbf16>, vector<8x32xbf16>, vector<8x32xf32> -> vector<8x32xf32>
    %65 = arith.truncf %64 : vector<8x32xf32> to vector<8x32xbf16>
    %c32 = arith.constant 32 : index
    %c0_31 = arith.constant 0 : index
    %66 = vector.load %arg12[%c32, %c0_31] : memref<128x128xbf16, #tpu.memory_space<vmem>>, vector<32x128xbf16>
    %cst_32 = arith.constant dense<0.000000e+00> : vector<8x128xf32>
    %67 = tpu.matmul %65, %66, %cst_32 {dimension_numbers = #tpu.dot_dimension_numbers<[1], [0], [0], [1], [0, 0, 1, 1], [], []>} : vector<8x32xbf16>, vector<32x128xbf16>, vector<8x128xf32> -> vector<8x128xf32>
    %68 = arith.addf %46, %67 : vector<8x128xf32>
    %69 = vector.extract_strided_slice %21 {offsets = [0, 64], sizes = [8, 32], strides = [1, 1]} : vector<8x128xf32> to vector<8x32xf32>
    %70 = arith.truncf %69 : vector<8x32xf32> to vector<8x32xbf16>
    %71 = vector.extract_strided_slice %22 {offsets = [0, 64], sizes = [8, 32], strides = [1, 1]} : vector<8x128xbf16> to vector<8x32xbf16>
    %72 = vector.extract_strided_slice %23 {offsets = [0, 64], sizes = [8, 32], strides = [1, 1]} : vector<8x128xbf16> to vector<8x32xbf16>
    %cst_33 = arith.constant dense<0.000000e+00> : vector<8x8xf32>
    %73 = tpu.matmul %70, %71, %cst_33 {dimension_numbers = #tpu.dot_dimension_numbers<[1], [1], [0], [0], [0, 0, 1, 0], [], []>} : vector<8x32xbf16>, vector<8x32xbf16>, vector<8x8xf32> -> vector<8x8xf32>
    %74 = arith.addf %73, %11 : vector<8x8xf32>
    %cst_34 = arith.constant dense<0xFF800000> : vector<8xf32>
    %75 = vector.multi_reduction <maximumf>, %74, %cst_34 [1] : vector<8x8xf32> to vector<8xf32>
    %76 = vector.shape_cast %75 : vector<8xf32> to vector<8x1xf32>
    %77 = vector.broadcast %76 : vector<8x1xf32> to vector<8x8xf32>
    %78 = arith.subf %74, %77 : vector<8x8xf32>
    %79 = math.exp %78 : vector<8x8xf32>
    %cst_35 = arith.constant dense<0.000000e+00> : vector<8xf32>
    %80 = vector.multi_reduction <add>, %79, %cst_35 [1] : vector<8x8xf32> to vector<8xf32>
    %81 = vector.shape_cast %80 : vector<8xf32> to vector<8x1xf32>
    %82 = tpu.reciprocal %81 {approx = true} : vector<8x1xf32> -> vector<8x1xf32>
    %83 = vector.broadcast %82 : vector<8x1xf32> to vector<8x8xf32>
    %84 = arith.mulf %79, %83 : vector<8x8xf32>
    %85 = arith.truncf %84 : vector<8x8xf32> to vector<8x8xbf16>
    %cst_36 = arith.constant dense<0.000000e+00> : vector<8x32xf32>
    %86 = tpu.matmul %85, %72, %cst_36 {dimension_numbers = #tpu.dot_dimension_numbers<[1], [0], [0], [1], [0, 0, 1, 1], [], []>} : vector<8x8xbf16>, vector<8x32xbf16>, vector<8x32xf32> -> vector<8x32xf32>
    %87 = arith.truncf %86 : vector<8x32xf32> to vector<8x32xbf16>
    %c64 = arith.constant 64 : index
    %c0_37 = arith.constant 0 : index
    %88 = vector.load %arg12[%c64, %c0_37] : memref<128x128xbf16, #tpu.memory_space<vmem>>, vector<32x128xbf16>
    %cst_38 = arith.constant dense<0.000000e+00> : vector<8x128xf32>
    %89 = tpu.matmul %87, %88, %cst_38 {dimension_numbers = #tpu.dot_dimension_numbers<[1], [0], [0], [1], [0, 0, 1, 1], [], []>} : vector<8x32xbf16>, vector<32x128xbf16>, vector<8x128xf32> -> vector<8x128xf32>
    %90 = arith.addf %68, %89 : vector<8x128xf32>
    %91 = vector.extract_strided_slice %21 {offsets = [0, 96], sizes = [8, 32], strides = [1, 1]} : vector<8x128xf32> to vector<8x32xf32>
    %92 = arith.truncf %91 : vector<8x32xf32> to vector<8x32xbf16>
    %93 = vector.extract_strided_slice %22 {offsets = [0, 96], sizes = [8, 32], strides = [1, 1]} : vector<8x128xbf16> to vector<8x32xbf16>
    %94 = vector.extract_strided_slice %23 {offsets = [0, 96], sizes = [8, 32], strides = [1, 1]} : vector<8x128xbf16> to vector<8x32xbf16>
    %cst_39 = arith.constant dense<0.000000e+00> : vector<8x8xf32>
    %95 = tpu.matmul %92, %93, %cst_39 {dimension_numbers = #tpu.dot_dimension_numbers<[1], [1], [0], [0], [0, 0, 1, 0], [], []>} : vector<8x32xbf16>, vector<8x32xbf16>, vector<8x8xf32> -> vector<8x8xf32>
    %96 = arith.addf %95, %11 : vector<8x8xf32>
    %cst_40 = arith.constant dense<0xFF800000> : vector<8xf32>
    %97 = vector.multi_reduction <maximumf>, %96, %cst_40 [1] : vector<8x8xf32> to vector<8xf32>
    %98 = vector.shape_cast %97 : vector<8xf32> to vector<8x1xf32>
    %99 = vector.broadcast %98 : vector<8x1xf32> to vector<8x8xf32>
    %100 = arith.subf %96, %99 : vector<8x8xf32>
    %101 = math.exp %100 : vector<8x8xf32>
    %cst_41 = arith.constant dense<0.000000e+00> : vector<8xf32>
    %102 = vector.multi_reduction <add>, %101, %cst_41 [1] : vector<8x8xf32> to vector<8xf32>
    %103 = vector.shape_cast %102 : vector<8xf32> to vector<8x1xf32>
    %104 = tpu.reciprocal %103 {approx = true} : vector<8x1xf32> -> vector<8x1xf32>
    %105 = vector.broadcast %104 : vector<8x1xf32> to vector<8x8xf32>
    %106 = arith.mulf %101, %105 : vector<8x8xf32>
    %107 = arith.truncf %106 : vector<8x8xf32> to vector<8x8xbf16>
    %cst_42 = arith.constant dense<0.000000e+00> : vector<8x32xf32>
    %108 = tpu.matmul %107, %94, %cst_42 {dimension_numbers = #tpu.dot_dimension_numbers<[1], [0], [0], [1], [0, 0, 1, 1], [], []>} : vector<8x8xbf16>, vector<8x32xbf16>, vector<8x32xf32> -> vector<8x32xf32>
    %109 = arith.truncf %108 : vector<8x32xf32> to vector<8x32xbf16>
    %c96 = arith.constant 96 : index
    %c0_43 = arith.constant 0 : index
    %110 = vector.load %arg12[%c96, %c0_43] : memref<128x128xbf16, #tpu.memory_space<vmem>>, vector<32x128xbf16>
    %cst_44 = arith.constant dense<0.000000e+00> : vector<8x128xf32>
    %111 = tpu.matmul %109, %110, %cst_44 {dimension_numbers = #tpu.dot_dimension_numbers<[1], [0], [0], [1], [0, 0, 1, 1], [], []>} : vector<8x32xbf16>, vector<32x128xbf16>, vector<8x128xf32> -> vector<8x128xf32>
    %112 = arith.addf %90, %111 : vector<8x128xf32>
    %c0_45 = arith.constant 0 : index
    %c0_46 = arith.constant 0 : index
    %113 = vector.load %arg13[%c0_45, %c0_46] : memref<1x128xf32, #tpu.memory_space<vmem>>, vector<1x128xf32>
    %114 = vector.broadcast %113 : vector<1x128xf32> to vector<8x128xf32>
    %115 = arith.addf %112, %114 : vector<8x128xf32>
    %116 = arith.addf %8, %115 : vector<8x128xf32>
    %c0_47 = arith.constant 0 : index
    %c0_48 = arith.constant 0 : index
    %117 = vector.load %arg14[%c0_47, %c0_48] : memref<1x128xf32, #tpu.memory_space<vmem>>, vector<1x128xf32>
    %c0_49 = arith.constant 0 : index
    %c0_50 = arith.constant 0 : index
    %118 = vector.load %arg15[%c0_49, %c0_50] : memref<1x128xf32, #tpu.memory_space<vmem>>, vector<1x128xf32>
    %cst_51 = arith.constant dense<0.000000e+00> : vector<8xf32>
    %119 = vector.multi_reduction <add>, %116, %cst_51 [1] : vector<8x128xf32> to vector<8xf32>
    %120 = vector.shape_cast %119 : vector<8xf32> to vector<8x1xf32>
    %cst_52 = arith.constant 1.280000e+02 : f32
    %121 = vector.broadcast %cst_52 : f32 to vector<8x1xf32>
    %122 = arith.divf %120, %121 : vector<8x1xf32>
    %123 = vector.broadcast %122 : vector<8x1xf32> to vector<8x128xf32>
    %124 = arith.subf %116, %123 : vector<8x128xf32>
    %125 = arith.mulf %124, %124 : vector<8x128xf32>
    %cst_53 = arith.constant dense<0.000000e+00> : vector<8xf32>
    %126 = vector.multi_reduction <add>, %125, %cst_53 [1] : vector<8x128xf32> to vector<8xf32>
    %127 = vector.shape_cast %126 : vector<8xf32> to vector<8x1xf32>
    %cst_54 = arith.constant 1.280000e+02 : f32
    %128 = vector.broadcast %cst_54 : f32 to vector<8x1xf32>
    %129 = arith.divf %127, %128 : vector<8x1xf32>
    %130 = vector.broadcast %122 : vector<8x1xf32> to vector<8x128xf32>
    %131 = arith.subf %116, %130 : vector<8x128xf32>
    %cst_55 = arith.constant 9.99999974E-6 : f32
    %132 = vector.broadcast %cst_55 : f32 to vector<8x1xf32>
    %133 = arith.addf %129, %132 : vector<8x1xf32>
    %134 = math.rsqrt %133 : vector<8x1xf32>
    %135 = vector.broadcast %134 : vector<8x1xf32> to vector<8x128xf32>
    %136 = arith.mulf %131, %135 : vector<8x128xf32>
    %137 = vector.broadcast %117 : vector<1x128xf32> to vector<8x128xf32>
    %138 = arith.mulf %136, %137 : vector<8x128xf32>
    %139 = vector.broadcast %118 : vector<1x128xf32> to vector<8x128xf32>
    %140 = arith.addf %138, %139 : vector<8x128xf32>
    %141 = arith.truncf %140 : vector<8x128xf32> to vector<8x128xbf16>
    %c0_56 = arith.constant 0 : index
    %c0_57 = arith.constant 0 : index
    %142 = vector.load %arg16[%c0_56, %c0_57] : memref<128x128xbf16, #tpu.memory_space<vmem>>, vector<128x128xbf16>
    %cst_58 = arith.constant dense<0.000000e+00> : vector<8x128xf32>
    %143 = tpu.matmul %141, %142, %cst_58 {dimension_numbers = #tpu.dot_dimension_numbers<[1], [0], [0], [1], [0, 0, 1, 1], [], []>} : vector<8x128xbf16>, vector<128x128xbf16>, vector<8x128xf32> -> vector<8x128xf32>
    %c0_59 = arith.constant 0 : index
    %c0_60 = arith.constant 0 : index
    %144 = vector.load %arg17[%c0_59, %c0_60] : memref<1x128xf32, #tpu.memory_space<vmem>>, vector<1x128xf32>
    %145 = vector.broadcast %144 : vector<1x128xf32> to vector<8x128xf32>
    %146 = arith.addf %143, %145 : vector<8x128xf32>
    %cst_61 = arith.constant 0.176776692 : f32
    %147 = vector.broadcast %cst_61 : f32 to vector<8x128xf32>
    %148 = arith.mulf %146, %147 : vector<8x128xf32>
    %c0_62 = arith.constant 0 : index
    %c0_63 = arith.constant 0 : index
    %149 = vector.load %arg35[%c0_62, %c0_63] : memref<16x128xbf16, #tpu.memory_space<vmem>>, vector<16x128xbf16>
    %c0_64 = arith.constant 0 : index
    %c0_65 = arith.constant 0 : index
    %150 = vector.load %arg36[%c0_64, %c0_65] : memref<16x128xbf16, #tpu.memory_space<vmem>>, vector<16x128xbf16>
    %151 = vector.shape_cast %14 : vector<1x16xf32> to vector<1x16xf32>
    %152 = vector.broadcast %151 : vector<1x16xf32> to vector<8x16xf32>
    %cst_66 = arith.constant 0.000000e+00 : f32
    %153 = vector.broadcast %cst_66 : f32 to vector<8x128xf32>
    %154 = vector.extract_strided_slice %148 {offsets = [0, 0], sizes = [8, 32], strides = [1, 1]} : vector<8x128xf32> to vector<8x32xf32>
    %155 = arith.truncf %154 : vector<8x32xf32> to vector<8x32xbf16>
    %156 = vector.extract_strided_slice %149 {offsets = [0, 0], sizes = [16, 32], strides = [1, 1]} : vector<16x128xbf16> to vector<16x32xbf16>
    %157 = vector.extract_strided_slice %150 {offsets = [0, 0], sizes = [16, 32], strides = [1, 1]} : vector<16x128xbf16> to vector<16x32xbf16>
    %cst_67 = arith.constant dense<0.000000e+00> : vector<8x16xf32>
    %158 = tpu.matmul %155, %156, %cst_67 {dimension_numbers = #tpu.dot_dimension_numbers<[1], [1], [0], [0], [0, 0, 1, 0], [], []>} : vector<8x32xbf16>, vector<16x32xbf16>, vector<8x16xf32> -> vector<8x16xf32>
    %159 = arith.addf %158, %152 : vector<8x16xf32>
    %cst_68 = arith.constant dense<0xFF800000> : vector<8xf32>
    %160 = vector.multi_reduction <maximumf>, %159, %cst_68 [1] : vector<8x16xf32> to vector<8xf32>
    %161 = vector.shape_cast %160 : vector<8xf32> to vector<8x1xf32>
    %162 = vector.broadcast %161 : vector<8x1xf32> to vector<8x16xf32>
    %163 = arith.subf %159, %162 : vector<8x16xf32>
    %164 = math.exp %163 : vector<8x16xf32>
    %cst_69 = arith.constant dense<0.000000e+00> : vector<8xf32>
    %165 = vector.multi_reduction <add>, %164, %cst_69 [1] : vector<8x16xf32> to vector<8xf32>
    %166 = vector.shape_cast %165 : vector<8xf32> to vector<8x1xf32>
    %167 = tpu.reciprocal %166 {approx = true} : vector<8x1xf32> -> vector<8x1xf32>
    %168 = vector.broadcast %167 : vector<8x1xf32> to vector<8x16xf32>
    %169 = arith.mulf %164, %168 : vector<8x16xf32>
    %170 = arith.truncf %169 : vector<8x16xf32> to vector<8x16xbf16>
    %cst_70 = arith.constant dense<0.000000e+00> : vector<8x32xf32>
    %171 = tpu.matmul %170, %157, %cst_70 {dimension_numbers = #tpu.dot_dimension_numbers<[1], [0], [0], [1], [0, 0, 1, 1], [], []>} : vector<8x16xbf16>, vector<16x32xbf16>, vector<8x32xf32> -> vector<8x32xf32>
    %172 = arith.truncf %171 : vector<8x32xf32> to vector<8x32xbf16>
    %c0_71 = arith.constant 0 : index
    %c0_72 = arith.constant 0 : index
    %173 = vector.load %arg22[%c0_71, %c0_72] : memref<128x128xbf16, #tpu.memory_space<vmem>>, vector<32x128xbf16>
    %cst_73 = arith.constant dense<0.000000e+00> : vector<8x128xf32>
    %174 = tpu.matmul %172, %173, %cst_73 {dimension_numbers = #tpu.dot_dimension_numbers<[1], [0], [0], [1], [0, 0, 1, 1], [], []>} : vector<8x32xbf16>, vector<32x128xbf16>, vector<8x128xf32> -> vector<8x128xf32>
    %175 = arith.addf %153, %174 : vector<8x128xf32>
    %176 = vector.extract_strided_slice %148 {offsets = [0, 32], sizes = [8, 32], strides = [1, 1]} : vector<8x128xf32> to vector<8x32xf32>
    %177 = arith.truncf %176 : vector<8x32xf32> to vector<8x32xbf16>
    %178 = vector.extract_strided_slice %149 {offsets = [0, 32], sizes = [16, 32], strides = [1, 1]} : vector<16x128xbf16> to vector<16x32xbf16>
    %179 = vector.extract_strided_slice %150 {offsets = [0, 32], sizes = [16, 32], strides = [1, 1]} : vector<16x128xbf16> to vector<16x32xbf16>
    %cst_74 = arith.constant dense<0.000000e+00> : vector<8x16xf32>
    %180 = tpu.matmul %177, %178, %cst_74 {dimension_numbers = #tpu.dot_dimension_numbers<[1], [1], [0], [0], [0, 0, 1, 0], [], []>} : vector<8x32xbf16>, vector<16x32xbf16>, vector<8x16xf32> -> vector<8x16xf32>
    %181 = arith.addf %180, %152 : vector<8x16xf32>
    %cst_75 = arith.constant dense<0xFF800000> : vector<8xf32>
    %182 = vector.multi_reduction <maximumf>, %181, %cst_75 [1] : vector<8x16xf32> to vector<8xf32>
    %183 = vector.shape_cast %182 : vector<8xf32> to vector<8x1xf32>
    %184 = vector.broadcast %183 : vector<8x1xf32> to vector<8x16xf32>
    %185 = arith.subf %181, %184 : vector<8x16xf32>
    %186 = math.exp %185 : vector<8x16xf32>
    %cst_76 = arith.constant dense<0.000000e+00> : vector<8xf32>
    %187 = vector.multi_reduction <add>, %186, %cst_76 [1] : vector<8x16xf32> to vector<8xf32>
    %188 = vector.shape_cast %187 : vector<8xf32> to vector<8x1xf32>
    %189 = tpu.reciprocal %188 {approx = true} : vector<8x1xf32> -> vector<8x1xf32>
    %190 = vector.broadcast %189 : vector<8x1xf32> to vector<8x16xf32>
    %191 = arith.mulf %186, %190 : vector<8x16xf32>
    %192 = arith.truncf %191 : vector<8x16xf32> to vector<8x16xbf16>
    %cst_77 = arith.constant dense<0.000000e+00> : vector<8x32xf32>
    %193 = tpu.matmul %192, %179, %cst_77 {dimension_numbers = #tpu.dot_dimension_numbers<[1], [0], [0], [1], [0, 0, 1, 1], [], []>} : vector<8x16xbf16>, vector<16x32xbf16>, vector<8x32xf32> -> vector<8x32xf32>
    %194 = arith.truncf %193 : vector<8x32xf32> to vector<8x32xbf16>
    %c32_78 = arith.constant 32 : index
    %c0_79 = arith.constant 0 : index
    %195 = vector.load %arg22[%c32_78, %c0_79] : memref<128x128xbf16, #tpu.memory_space<vmem>>, vector<32x128xbf16>
    %cst_80 = arith.constant dense<0.000000e+00> : vector<8x128xf32>
    %196 = tpu.matmul %194, %195, %cst_80 {dimension_numbers = #tpu.dot_dimension_numbers<[1], [0], [0], [1], [0, 0, 1, 1], [], []>} : vector<8x32xbf16>, vector<32x128xbf16>, vector<8x128xf32> -> vector<8x128xf32>
    %197 = arith.addf %175, %196 : vector<8x128xf32>
    %198 = vector.extract_strided_slice %148 {offsets = [0, 64], sizes = [8, 32], strides = [1, 1]} : vector<8x128xf32> to vector<8x32xf32>
    %199 = arith.truncf %198 : vector<8x32xf32> to vector<8x32xbf16>
    %200 = vector.extract_strided_slice %149 {offsets = [0, 64], sizes = [16, 32], strides = [1, 1]} : vector<16x128xbf16> to vector<16x32xbf16>
    %201 = vector.extract_strided_slice %150 {offsets = [0, 64], sizes = [16, 32], strides = [1, 1]} : vector<16x128xbf16> to vector<16x32xbf16>
    %cst_81 = arith.constant dense<0.000000e+00> : vector<8x16xf32>
    %202 = tpu.matmul %199, %200, %cst_81 {dimension_numbers = #tpu.dot_dimension_numbers<[1], [1], [0], [0], [0, 0, 1, 0], [], []>} : vector<8x32xbf16>, vector<16x32xbf16>, vector<8x16xf32> -> vector<8x16xf32>
    %203 = arith.addf %202, %152 : vector<8x16xf32>
    %cst_82 = arith.constant dense<0xFF800000> : vector<8xf32>
    %204 = vector.multi_reduction <maximumf>, %203, %cst_82 [1] : vector<8x16xf32> to vector<8xf32>
    %205 = vector.shape_cast %204 : vector<8xf32> to vector<8x1xf32>
    %206 = vector.broadcast %205 : vector<8x1xf32> to vector<8x16xf32>
    %207 = arith.subf %203, %206 : vector<8x16xf32>
    %208 = math.exp %207 : vector<8x16xf32>
    %cst_83 = arith.constant dense<0.000000e+00> : vector<8xf32>
    %209 = vector.multi_reduction <add>, %208, %cst_83 [1] : vector<8x16xf32> to vector<8xf32>
    %210 = vector.shape_cast %209 : vector<8xf32> to vector<8x1xf32>
    %211 = tpu.reciprocal %210 {approx = true} : vector<8x1xf32> -> vector<8x1xf32>
    %212 = vector.broadcast %211 : vector<8x1xf32> to vector<8x16xf32>
    %213 = arith.mulf %208, %212 : vector<8x16xf32>
    %214 = arith.truncf %213 : vector<8x16xf32> to vector<8x16xbf16>
    %cst_84 = arith.constant dense<0.000000e+00> : vector<8x32xf32>
    %215 = tpu.matmul %214, %201, %cst_84 {dimension_numbers = #tpu.dot_dimension_numbers<[1], [0], [0], [1], [0, 0, 1, 1], [], []>} : vector<8x16xbf16>, vector<16x32xbf16>, vector<8x32xf32> -> vector<8x32xf32>
    %216 = arith.truncf %215 : vector<8x32xf32> to vector<8x32xbf16>
    %c64_85 = arith.constant 64 : index
    %c0_86 = arith.constant 0 : index
    %217 = vector.load %arg22[%c64_85, %c0_86] : memref<128x128xbf16, #tpu.memory_space<vmem>>, vector<32x128xbf16>
    %cst_87 = arith.constant dense<0.000000e+00> : vector<8x128xf32>
    %218 = tpu.matmul %216, %217, %cst_87 {dimension_numbers = #tpu.dot_dimension_numbers<[1], [0], [0], [1], [0, 0, 1, 1], [], []>} : vector<8x32xbf16>, vector<32x128xbf16>, vector<8x128xf32> -> vector<8x128xf32>
    %219 = arith.addf %197, %218 : vector<8x128xf32>
    %220 = vector.extract_strided_slice %148 {offsets = [0, 96], sizes = [8, 32], strides = [1, 1]} : vector<8x128xf32> to vector<8x32xf32>
    %221 = arith.truncf %220 : vector<8x32xf32> to vector<8x32xbf16>
    %222 = vector.extract_strided_slice %149 {offsets = [0, 96], sizes = [16, 32], strides = [1, 1]} : vector<16x128xbf16> to vector<16x32xbf16>
    %223 = vector.extract_strided_slice %150 {offsets = [0, 96], sizes = [16, 32], strides = [1, 1]} : vector<16x128xbf16> to vector<16x32xbf16>
    %cst_88 = arith.constant dense<0.000000e+00> : vector<8x16xf32>
    %224 = tpu.matmul %221, %222, %cst_88 {dimension_numbers = #tpu.dot_dimension_numbers<[1], [1], [0], [0], [0, 0, 1, 0], [], []>} : vector<8x32xbf16>, vector<16x32xbf16>, vector<8x16xf32> -> vector<8x16xf32>
    %225 = arith.addf %224, %152 : vector<8x16xf32>
    %cst_89 = arith.constant dense<0xFF800000> : vector<8xf32>
    %226 = vector.multi_reduction <maximumf>, %225, %cst_89 [1] : vector<8x16xf32> to vector<8xf32>
    %227 = vector.shape_cast %226 : vector<8xf32> to vector<8x1xf32>
    %228 = vector.broadcast %227 : vector<8x1xf32> to vector<8x16xf32>
    %229 = arith.subf %225, %228 : vector<8x16xf32>
    %230 = math.exp %229 : vector<8x16xf32>
    %cst_90 = arith.constant dense<0.000000e+00> : vector<8xf32>
    %231 = vector.multi_reduction <add>, %230, %cst_90 [1] : vector<8x16xf32> to vector<8xf32>
    %232 = vector.shape_cast %231 : vector<8xf32> to vector<8x1xf32>
    %233 = tpu.reciprocal %232 {approx = true} : vector<8x1xf32> -> vector<8x1xf32>
    %234 = vector.broadcast %233 : vector<8x1xf32> to vector<8x16xf32>
    %235 = arith.mulf %230, %234 : vector<8x16xf32>
    %236 = arith.truncf %235 : vector<8x16xf32> to vector<8x16xbf16>
    %cst_91 = arith.constant dense<0.000000e+00> : vector<8x32xf32>
    %237 = tpu.matmul %236, %223, %cst_91 {dimension_numbers = #tpu.dot_dimension_numbers<[1], [0], [0], [1], [0, 0, 1, 1], [], []>} : vector<8x16xbf16>, vector<16x32xbf16>, vector<8x32xf32> -> vector<8x32xf32>
    %238 = arith.truncf %237 : vector<8x32xf32> to vector<8x32xbf16>
    %c96_92 = arith.constant 96 : index
    %c0_93 = arith.constant 0 : index
    %239 = vector.load %arg22[%c96_92, %c0_93] : memref<128x128xbf16, #tpu.memory_space<vmem>>, vector<32x128xbf16>
    %cst_94 = arith.constant dense<0.000000e+00> : vector<8x128xf32>
    %240 = tpu.matmul %238, %239, %cst_94 {dimension_numbers = #tpu.dot_dimension_numbers<[1], [0], [0], [1], [0, 0, 1, 1], [], []>} : vector<8x32xbf16>, vector<32x128xbf16>, vector<8x128xf32> -> vector<8x128xf32>
    %241 = arith.addf %219, %240 : vector<8x128xf32>
    %c0_95 = arith.constant 0 : index
    %c0_96 = arith.constant 0 : index
    %242 = vector.load %arg23[%c0_95, %c0_96] : memref<1x128xf32, #tpu.memory_space<vmem>>, vector<1x128xf32>
    %243 = vector.broadcast %242 : vector<1x128xf32> to vector<8x128xf32>
    %244 = arith.addf %241, %243 : vector<8x128xf32>
    %245 = arith.addf %140, %244 : vector<8x128xf32>
    %c0_97 = arith.constant 0 : index
    %c0_98 = arith.constant 0 : index
    %246 = vector.load %arg24[%c0_97, %c0_98] : memref<1x128xf32, #tpu.memory_space<vmem>>, vector<1x128xf32>
    %c0_99 = arith.constant 0 : index
    %c0_100 = arith.constant 0 : index
    %247 = vector.load %arg25[%c0_99, %c0_100] : memref<1x128xf32, #tpu.memory_space<vmem>>, vector<1x128xf32>
    %cst_101 = arith.constant dense<0.000000e+00> : vector<8xf32>
    %248 = vector.multi_reduction <add>, %245, %cst_101 [1] : vector<8x128xf32> to vector<8xf32>
    %249 = vector.shape_cast %248 : vector<8xf32> to vector<8x1xf32>
    %cst_102 = arith.constant 1.280000e+02 : f32
    %250 = vector.broadcast %cst_102 : f32 to vector<8x1xf32>
    %251 = arith.divf %249, %250 : vector<8x1xf32>
    %252 = vector.broadcast %251 : vector<8x1xf32> to vector<8x128xf32>
    %253 = arith.subf %245, %252 : vector<8x128xf32>
    %254 = arith.mulf %253, %253 : vector<8x128xf32>
    %cst_103 = arith.constant dense<0.000000e+00> : vector<8xf32>
    %255 = vector.multi_reduction <add>, %254, %cst_103 [1] : vector<8x128xf32> to vector<8xf32>
    %256 = vector.shape_cast %255 : vector<8xf32> to vector<8x1xf32>
    %cst_104 = arith.constant 1.280000e+02 : f32
    %257 = vector.broadcast %cst_104 : f32 to vector<8x1xf32>
    %258 = arith.divf %256, %257 : vector<8x1xf32>
    %259 = vector.broadcast %251 : vector<8x1xf32> to vector<8x128xf32>
    %260 = arith.subf %245, %259 : vector<8x128xf32>
    %cst_105 = arith.constant 9.99999974E-6 : f32
    %261 = vector.broadcast %cst_105 : f32 to vector<8x1xf32>
    %262 = arith.addf %258, %261 : vector<8x1xf32>
    %263 = math.rsqrt %262 : vector<8x1xf32>
    %264 = vector.broadcast %263 : vector<8x1xf32> to vector<8x128xf32>
    %265 = arith.mulf %260, %264 : vector<8x128xf32>
    %266 = vector.broadcast %246 : vector<1x128xf32> to vector<8x128xf32>
    %267 = arith.mulf %265, %266 : vector<8x128xf32>
    %268 = vector.broadcast %247 : vector<1x128xf32> to vector<8x128xf32>
    %269 = arith.addf %267, %268 : vector<8x128xf32>
    %270 = arith.truncf %269 : vector<8x128xf32> to vector<8x128xbf16>
    %c0_106 = arith.constant 0 : index
    %c0_107 = arith.constant 0 : index
    %271 = vector.load %arg26[%c0_106, %c0_107] : memref<128x256xbf16, #tpu.memory_space<vmem>>, vector<128x256xbf16>
    %cst_108 = arith.constant dense<0.000000e+00> : vector<8x256xf32>
    %272 = tpu.matmul %270, %271, %cst_108 {dimension_numbers = #tpu.dot_dimension_numbers<[1], [0], [0], [1], [0, 0, 1, 1], [], []>} : vector<8x128xbf16>, vector<128x256xbf16>, vector<8x256xf32> -> vector<8x256xf32>
    %c0_109 = arith.constant 0 : index
    %c0_110 = arith.constant 0 : index
    %273 = vector.load %arg27[%c0_109, %c0_110] : memref<1x256xf32, #tpu.memory_space<vmem>>, vector<1x256xf32>
    %274 = vector.broadcast %273 : vector<1x256xf32> to vector<8x256xf32>
    %275 = arith.addf %272, %274 : vector<8x256xf32>
    %cst_111 = arith.constant 0.000000e+00 : f32
    %276 = vector.broadcast %cst_111 : f32 to vector<8x256xf32>
    %277 = arith.maximumf %275, %276 : vector<8x256xf32>
    %278 = arith.truncf %277 : vector<8x256xf32> to vector<8x256xbf16>
    %c0_112 = arith.constant 0 : index
    %c0_113 = arith.constant 0 : index
    %279 = vector.load %arg28[%c0_112, %c0_113] : memref<256x128xbf16, #tpu.memory_space<vmem>>, vector<256x128xbf16>
    %cst_114 = arith.constant dense<0.000000e+00> : vector<8x128xf32>
    %280 = tpu.matmul %278, %279, %cst_114 {dimension_numbers = #tpu.dot_dimension_numbers<[1], [0], [0], [1], [0, 0, 1, 1], [], []>} : vector<8x256xbf16>, vector<256x128xbf16>, vector<8x128xf32> -> vector<8x128xf32>
    %c0_115 = arith.constant 0 : index
    %c0_116 = arith.constant 0 : index
    %281 = vector.load %arg29[%c0_115, %c0_116] : memref<1x128xf32, #tpu.memory_space<vmem>>, vector<1x128xf32>
    %282 = vector.broadcast %281 : vector<1x128xf32> to vector<8x128xf32>
    %283 = arith.addf %280, %282 : vector<8x128xf32>
    %284 = arith.addf %269, %283 : vector<8x128xf32>
    %c0_117 = arith.constant 0 : index
    %c0_118 = arith.constant 0 : index
    %285 = vector.load %arg30[%c0_117, %c0_118] : memref<1x128xf32, #tpu.memory_space<vmem>>, vector<1x128xf32>
    %c0_119 = arith.constant 0 : index
    %c0_120 = arith.constant 0 : index
    %286 = vector.load %arg31[%c0_119, %c0_120] : memref<1x128xf32, #tpu.memory_space<vmem>>, vector<1x128xf32>
    %cst_121 = arith.constant dense<0.000000e+00> : vector<8xf32>
    %287 = vector.multi_reduction <add>, %284, %cst_121 [1] : vector<8x128xf32> to vector<8xf32>
    %288 = vector.shape_cast %287 : vector<8xf32> to vector<8x1xf32>
    %cst_122 = arith.constant 1.280000e+02 : f32
    %289 = vector.broadcast %cst_122 : f32 to vector<8x1xf32>
    %290 = arith.divf %288, %289 : vector<8x1xf32>
    %291 = vector.broadcast %290 : vector<8x1xf32> to vector<8x128xf32>
    %292 = arith.subf %284, %291 : vector<8x128xf32>
    %293 = arith.mulf %292, %292 : vector<8x128xf32>
    %cst_123 = arith.constant dense<0.000000e+00> : vector<8xf32>
    %294 = vector.multi_reduction <add>, %293, %cst_123 [1] : vector<8x128xf32> to vector<8xf32>
    %295 = vector.shape_cast %294 : vector<8xf32> to vector<8x1xf32>
    %cst_124 = arith.constant 1.280000e+02 : f32
    %296 = vector.broadcast %cst_124 : f32 to vector<8x1xf32>
    %297 = arith.divf %295, %296 : vector<8x1xf32>
    %298 = vector.broadcast %290 : vector<8x1xf32> to vector<8x128xf32>
    %299 = arith.subf %284, %298 : vector<8x128xf32>
    %cst_125 = arith.constant 9.99999974E-6 : f32
    %300 = vector.broadcast %cst_125 : f32 to vector<8x1xf32>
    %301 = arith.addf %297, %300 : vector<8x1xf32>
    %302 = math.rsqrt %301 : vector<8x1xf32>
    %303 = vector.broadcast %302 : vector<8x1xf32> to vector<8x128xf32>
    %304 = arith.mulf %299, %303 : vector<8x128xf32>
    %305 = vector.broadcast %285 : vector<1x128xf32> to vector<8x128xf32>
    %306 = arith.mulf %304, %305 : vector<8x128xf32>
    %307 = vector.broadcast %286 : vector<1x128xf32> to vector<8x128xf32>
    %308 = arith.addf %306, %307 : vector<8x128xf32>
    %c0_126 = arith.constant 0 : index
    %c0_127 = arith.constant 0 : index
    %c0_128 = arith.constant 0 : index
    %309 = vector.load %arg32[%c0_126, %c0_127, %c0_128] : memref<1x8x128xf32, #tpu.memory_space<vmem>>, vector<1x8x128xf32>
    %310 = vector.shape_cast %309 : vector<1x8x128xf32> to vector<8x128xf32>
    %311 = vector.shape_cast %308 : vector<8x128xf32> to vector<1x8x128xf32>
    tpu.vector_store %arg32[%c0_126, %c0_127, %c0_128], %311 {strides = array<i32>} : memref<1x8x128xf32, #tpu.memory_space<vmem>>, vector<1x8x128xf32>,
    return
  }
  func.func @transform_0(%arg0: i32, %arg1: i32) -> (i32, i32, i32) {
    %c0_i32 = arith.constant 0 : i32
    %c0_i32_0 = arith.constant 0 : i32
    %c0_i32_1 = arith.constant 0 : i32
    return %arg0, %c0_i32, %c0_i32_0 : i32, i32, i32
  }
  func.func @transform_1(%arg0: i32, %arg1: i32) -> (i32, i32, i32) {
    %c0_i32 = arith.constant 0 : i32
    %c0_i32_0 = arith.constant 0 : i32
    %c0_i32_1 = arith.constant 0 : i32
    return %arg0, %c0_i32, %c0_i32_0 : i32, i32, i32
  }
  func.func @transform_2(%arg0: i32, %arg1: i32) -> (i32, i32, i32, i32) {
    %c0_i32 = arith.constant 0 : i32
    %c0_i32_0 = arith.constant 0 : i32
    %c0_i32_1 = arith.constant 0 : i32
    return %arg0, %c0_i32, %arg1, %c0_i32_0 : i32, i32, i32, i32
  }
  func.func @transform_3(%arg0: i32, %arg1: i32) -> (i32, i32, i32, i32) {
    %c0_i32 = arith.constant 0 : i32
    %c0_i32_0 = arith.constant 0 : i32
    %c0_i32_1 = arith.constant 0 : i32
    %c0_i32_2 = arith.constant 0 : i32
    return %arg0, %c0_i32, %c0_i32_0, %c0_i32_1 : i32, i32, i32, i32
  }
  func.func @transform_4(%arg0: i32, %arg1: i32) -> (i32, i32) {
    %c0_i32 = arith.constant 0 : i32
    %c0_i32_0 = arith.constant 0 : i32
    %c0_i32_1 = arith.constant 0 : i32
    return %c0_i32, %c0_i32_0 : i32, i32
  }
  func.func @transform_5(%arg0: i32, %arg1: i32) -> (i32, i32) {
    %c0_i32 = arith.constant 0 : i32
    %c0_i32_0 = arith.constant 0 : i32
    %c0_i32_1 = arith.constant 0 : i32
    return %c0_i32, %c0_i32_0 : i32, i32
  }
  func.func @transform_6(%arg0: i32, %arg1: i32) -> (i32, i32) {
    %c0_i32 = arith.constant 0 : i32
    %c0_i32_0 = arith.constant 0 : i32
    %c0_i32_1 = arith.constant 0 : i32
    return %c0_i32, %c0_i32_0 : i32, i32
  }
  func.func @transform_7(%arg0: i32, %arg1: i32) -> (i32, i32) {
    %c0_i32 = arith.constant 0 : i32
    %c0_i32_0 = arith.constant 0 : i32
    %c0_i32_1 = arith.constant 0 : i32
    return %c0_i32, %c0_i32_0 : i32, i32
  }
  func.func @transform_8(%arg0: i32, %arg1: i32) -> (i32, i32) {
    %c0_i32 = arith.constant 0 : i32
    %c0_i32_0 = arith.constant 0 : i32
    %c0_i32_1 = arith.constant 0 : i32
    return %c0_i32, %c0_i32_0 : i32, i32
  }
  func.func @transform_9(%arg0: i32, %arg1: i32) -> (i32, i32) {
    %c0_i32 = arith.constant 0 : i32
    %c0_i32_0 = arith.constant 0 : i32
    %c0_i32_1 = arith.constant 0 : i32
    return %c0_i32, %c0_i32_0 : i32, i32
  }
  func.func @transform_10(%arg0: i32, %arg1: i32) -> (i32, i32) {
    %c0_i32 = arith.constant 0 : i32
    %c0_i32_0 = arith.constant 0 : i32
    %c0_i32_1 = arith.constant 0 : i32
    return %c0_i32, %c0_i32_0 : i32, i32
  }
  func.func @transform_11(%arg0: i32, %arg1: i32) -> (i32, i32) {
    %c0_i32 = arith.constant 0 : i32
    %c0_i32_0 = arith.constant 0 : i32
    %c0_i32_1 = arith.constant 0 : i32
    return %c0_i32, %c0_i32_0 : i32, i32
  }
  func.func @transform_12(%arg0: i32, %arg1: i32) -> (i32, i32) {
    %c0_i32 = arith.constant 0 : i32
    %c0_i32_0 = arith.constant 0 : i32
    %c0_i32_1 = arith.constant 0 : i32
    return %c0_i32, %c0_i32_0 : i32, i32
  }
  func.func @transform_13(%arg0: i32, %arg1: i32) -> (i32, i32) {
    %c0_i32 = arith.constant 0 : i32
    %c0_i32_0 = arith.constant 0 : i32
    %c0_i32_1 = arith.constant 0 : i32
    return %c0_i32, %c0_i32_0 : i32, i32
  }
  func.func @transform_14(%arg0: i32, %arg1: i32) -> (i32, i32) {
    %c0_i32 = arith.constant 0 : i32
    %c0_i32_0 = arith.constant 0 : i32
    %c0_i32_1 = arith.constant 0 : i32
    return %c0_i32, %c0_i32_0 : i32, i32
  }
  func.func @transform_15(%arg0: i32, %arg1: i32) -> (i32, i32) {
    %c0_i32 = arith.constant 0 : i32
    %c0_i32_0 = arith.constant 0 : i32
    %c0_i32_1 = arith.constant 0 : i32
    return %c0_i32, %c0_i32_0 : i32, i32
  }
  func.func @transform_16(%arg0: i32, %arg1: i32) -> (i32, i32) {
    %c0_i32 = arith.constant 0 : i32
    %c0_i32_0 = arith.constant 0 : i32
    %c0_i32_1 = arith.constant 0 : i32
    return %c0_i32, %c0_i32_0 : i32, i32
  }
  func.func @transform_17(%arg0: i32, %arg1: i32) -> (i32, i32) {
    %c0_i32 = arith.constant 0 : i32
    %c0_i32_0 = arith.constant 0 : i32
    %c0_i32_1 = arith.constant 0 : i32
    return %c0_i32, %c0_i32_0 : i32, i32
  }
  func.func @transform_18(%arg0: i32, %arg1: i32) -> (i32, i32) {
    %c0_i32 = arith.constant 0 : i32
    %c0_i32_0 = arith.constant 0 : i32
    %c0_i32_1 = arith.constant 0 : i32
    return %c0_i32, %c0_i32_0 : i32, i32
  }
  func.func @transform_19(%arg0: i32, %arg1: i32) -> (i32, i32) {
    %c0_i32 = arith.constant 0 : i32
    %c0_i32_0 = arith.constant 0 : i32
    %c0_i32_1 = arith.constant 0 : i32
    return %c0_i32, %c0_i32_0 : i32, i32
  }
  func.func @transform_20(%arg0: i32, %arg1: i32) -> (i32, i32) {
    %c0_i32 = arith.constant 0 : i32
    %c0_i32_0 = arith.constant 0 : i32
    %c0_i32_1 = arith.constant 0 : i32
    return %c0_i32, %c0_i32_0 : i32, i32
  }
  func.func @transform_21(%arg0: i32, %arg1: i32) -> (i32, i32) {
    %c0_i32 = arith.constant 0 : i32
    %c0_i32_0 = arith.constant 0 : i32
    %c0_i32_1 = arith.constant 0 : i32
    return %c0_i32, %c0_i32_0 : i32, i32
  }
  func.func @transform_22(%arg0: i32, %arg1: i32) -> (i32, i32) {
    %c0_i32 = arith.constant 0 : i32
    %c0_i32_0 = arith.constant 0 : i32
    %c0_i32_1 = arith.constant 0 : i32
    return %c0_i32, %c0_i32_0 : i32, i32
  }
  func.func @transform_23(%arg0: i32, %arg1: i32) -> (i32, i32) {
    %c0_i32 = arith.constant 0 : i32
    %c0_i32_0 = arith.constant 0 : i32
    %c0_i32_1 = arith.constant 0 : i32
    return %c0_i32, %c0_i32_0 : i32, i32
  }
  func.func @transform_24(%arg0: i32, %arg1: i32) -> (i32, i32) {
    %c0_i32 = arith.constant 0 : i32
    %c0_i32_0 = arith.constant 0 : i32
    %c0_i32_1 = arith.constant 0 : i32
    return %c0_i32, %c0_i32_0 : i32, i32
  }
  func.func @transform_25(%arg0: i32, %arg1: i32) -> (i32, i32) {
    %c0_i32 = arith.constant 0 : i32
    %c0_i32_0 = arith.constant 0 : i32
    %c0_i32_1 = arith.constant 0 : i32
    return %c0_i32, %c0_i32_0 : i32, i32
  }
  func.func @transform_26(%arg0: i32, %arg1: i32) -> (i32, i32) {
    %c0_i32 = arith.constant 0 : i32
    %c0_i32_0 = arith.constant 0 : i32
    %c0_i32_1 = arith.constant 0 : i32
    return %c0_i32, %c0_i32_0 : i32, i32
  }
  func.func @transform_27(%arg0: i32, %arg1: i32) -> (i32, i32) {
    %c0_i32 = arith.constant 0 : i32
    %c0_i32_0 = arith.constant 0 : i32
    %c0_i32_1 = arith.constant 0 : i32
    return %c0_i32, %c0_i32_0 : i32, i32
  }
  func.func @transform_28(%arg0: i32, %arg1: i32) -> (i32, i32) {
    %c0_i32 = arith.constant 0 : i32
    %c0_i32_0 = arith.constant 0 : i32
    %c0_i32_1 = arith.constant 0 : i32
    return %c0_i32, %c0_i32_0 : i32, i32
  }
  func.func @transform_29(%arg0: i32, %arg1: i32) -> (i32, i32) {
    %c0_i32 = arith.constant 0 : i32
    %c0_i32_0 = arith.constant 0 : i32
    %c0_i32_1 = arith.constant 0 : i32
    return %c0_i32, %c0_i32_0 : i32, i32
  }
  func.func @transform_30(%arg0: i32, %arg1: i32) -> (i32, i32, i32) {
    %c0_i32 = arith.constant 0 : i32
    %c0_i32_0 = arith.constant 0 : i32
    return %arg0, %arg1, %c0_i32 : i32, i32, i32
  }
}

module attributes {stable_mosaic.version = 11 : i64} {
  func.func @decoder_layer_kernel(%arg0: i32, %arg1: i32, %arg2: memref<1x8x128xbf16, #tpu.memory_space<vmem>>, %arg3: memref<1x16x128xbf16, #tpu.memory_space<vmem>>, %arg4: memref<1x1x8x8xbf16, #tpu.memory_space<vmem>>, %arg5: memref<1x1x1x16xbf16, #tpu.memory_space<vmem>>, %arg6: memref<128x128xbf16, #tpu.memory_space<vmem>>, %arg7: memref<1x128xf32, #tpu.memory_space<vmem>>, %arg8: memref<128x128xbf16, #tpu.memory_space<vmem>>, %arg9: memref<1x128xf32, #tpu.memory_space<vmem>>, %arg10: memref<128x128xbf16, #tpu.memory_space<vmem>>, %arg11: memref<1x128xf32, #tpu.memory_space<vmem>>, %arg12: memref<128x128xbf16, #tpu.memory_space<vmem>>, %arg13: memref<1x128xf32, #tpu.memory_space<vmem>>, %arg14: memref<1x128xf32, #tpu.memory_space<vmem>>, %arg15: memref<1x128xf32, #tpu.memory_space<vmem>>, %arg16: memref<128x128xbf16, #tpu.memory_space<vmem>>, %arg17: memref<1x128xf32, #tpu.memory_space<vmem>>, %arg18: memref<128x128xbf16, #tpu.memory_space<vmem>>, %arg19: memref<1x128xf32, #tpu.memory_space<vmem>>, %arg20: memref<128x128xbf16, #tpu.memory_space<vmem>>, %arg21: memref<1x128xf32, #tpu.memory_space<vmem>>, %arg22: memref<128x128xbf16, #tpu.memory_space<vmem>>, %arg23: memref<1x128xf32, #tpu.memory_space<vmem>>, %arg24: memref<1x128xf32, #tpu.memory_space<vmem>>, %arg25: memref<1x128xf32, #tpu.memory_space<vmem>>, %arg26: memref<128x256xbf16, #tpu.memory_space<vmem>>, %arg27: memref<1x256xf32, #tpu.memory_space<vmem>>, %arg28: memref<256x128xbf16, #tpu.memory_space<vmem>>, %arg29: memref<1x128xf32, #tpu.memory_space<vmem>>, %arg30: memref<1x128xf32, #tpu.memory_space<vmem>>, %arg31: memref<1x128xf32, #tpu.memory_space<vmem>>, %arg32: memref<1x8x128xf32, #tpu.memory_space<vmem>>, %arg33: memref<8x128xbf16, #tpu.memory_space<vmem>>, %arg34: memref<8x128xbf16, #tpu.memory_space<vmem>>, %arg35: memref<16x128xbf16, #tpu.memory_space<vmem>>, %arg36: memref<16x128xbf16, #tpu.memory_space<vmem>>) attributes {dimension_semantics = [#tpu.dimension_semantics<parallel>, #tpu.dimension_semantics<arbitrary>], iteration_bounds = array<i64: 2, 1>, scalar_prefetch = 0 : i64, scratch_operands = 4 : i64, tpu.core_type = #tpu.core_type<tc>, window_params = [{transform_indices = @transform_0, window_bounds = array<i64: 1, 8, 128>}, {transform_indices = @transform_1, window_bounds = array<i64: 1, 16, 128>}, {transform_indices = @transform_2, window_bounds = array<i64: 1, 1, 8, 8>}, {transform_indices = @transform_3, window_bounds = array<i64: 1, 1, 1, 16>}, {pipeline_mode = #tpu.pipeline_mode<synchronous>, transform_indices = @transform_4, window_bounds = array<i64: 128, 128>}, {pipeline_mode = #tpu.pipeline_mode<synchronous>, transform_indices = @transform_5, window_bounds = array<i64: 1, 128>}, {pipeline_mode = #tpu.pipeline_mode<synchronous>, transform_indices = @transform_6, window_bounds = array<i64: 128, 128>}, {pipeline_mode = #tpu.pipeline_mode<synchronous>, transform_indices = @transform_7, window_bounds = array<i64: 1, 128>}, {pipeline_mode = #tpu.pipeline_mode<synchronous>, transform_indices = @transform_8, window_bounds = array<i64: 128, 128>}, {pipeline_mode = #tpu.pipeline_mode<synchronous>, transform_indices = @transform_9, window_bounds = array<i64: 1, 128>}, {pipeline_mode = #tpu.pipeline_mode<synchronous>, transform_indices = @transform_10, window_bounds = array<i64: 128, 128>}, {pipeline_mode = #tpu.pipeline_mode<synchronous>, transform_indices = @transform_11, window_bounds = array<i64: 1, 128>}, {pipeline_mode = #tpu.pipeline_mode<synchronous>, transform_indices = @transform_12, window_bounds = array<i64: 1, 128>}, {pipeline_mode = #tpu.pipeline_mode<synchronous>, transform_indices = @transform_13, window_bounds = array<i64: 1, 128>}, {pipeline_mode = #tpu.pipeline_mode<synchronous>, transform_indices = @transform_14, window_bounds = array<i64: 128, 128>}, {pipeline_mode = #tpu.pipeline_mode<synchronous>, transform_indices = @transform_15, window_bounds = array<i64: 1, 128>}, {pipeline_mode = #tpu.pipeline_mode<synchronous>, transform_indices = @transform_16, window_bounds = array<i64: 128, 128>}, {pipeline_mode = #tpu.pipeline_mode<synchronous>, transform_indices = @transform_17, window_bounds = array<i64: 1, 128>}, {pipeline_mode = #tpu.pipeline_mode<synchronous>, transform_indices = @transform_18, window_bounds = array<i64: 128, 128>}, {pipeline_mode = #tpu.pipeline_mode<synchronous>, transform_indices = @transform_19, window_bounds = array<i64: 1, 128>}, {pipeline_mode = #tpu.pipeline_mode<synchronous>, transform_indices = @transform_20, window_bounds = array<i64: 128, 128>}, {pipeline_mode = #tpu.pipeline_mode<synchronous>, transform_indices = @transform_21, window_bounds = array<i64: 1, 128>}, {pipeline_mode = #tpu.pipeline_mode<synchronous>, transform_indices = @transform_22, window_bounds = array<i64: 1, 128>}, {pipeline_mode = #tpu.pipeline_mode<synchronous>, transform_indices = @transform_23, window_bounds = array<i64: 1, 128>}, {pipeline_mode = #tpu.pipeline_mode<synchronous>, transform_indices = @transform_24, window_bounds = array<i64: 128, 256>}, {pipeline_mode = #tpu.pipeline_mode<synchronous>, transform_indices = @transform_25, window_bounds = array<i64: 1, 256>}, {pipeline_mode = #tpu.pipeline_mode<synchronous>, transform_indices = @transform_26, window_bounds = array<i64: 256, 128>}, {pipeline_mode = #tpu.pipeline_mode<synchronous>, transform_indices = @transform_27, window_bounds = array<i64: 1, 128>}, {pipeline_mode = #tpu.pipeline_mode<synchronous>, transform_indices = @transform_28, window_bounds = array<i64: 1, 128>}, {pipeline_mode = #tpu.pipeline_mode<synchronous>, transform_indices = @transform_29, window_bounds = array<i64: 1, 128>}, {transform_indices = @transform_30, window_bounds = array<i64: 1, 8, 128>}]} {
    %c8_i32 = arith.constant 8 : i32
    %0 = arith.muli %arg1, %c8_i32 : i32
    %1 = tpu.assume_multiple %0, 8 : i32
    %c0_i32 = arith.constant 0 : i32
    %2 = arith.cmpi eq, %arg1, %c0_i32 : i32
    %3 = arith.extui %2 : i1 to i32
    %c0_i32_0 = arith.constant 0 : i32
    %4 = arith.cmpi ne, %3, %c0_i32_0 : i32
    scf.if %4 {
      %c0_129 = arith.constant 0 : index
      %c0_130 = arith.constant 0 : index
      %c0_131 = arith.constant 0 : index
      %312 = vector.load %arg2[%c0_129, %c0_130, %c0_131] : memref<1x8x128xbf16, #tpu.memory_space<vmem>>, vector<1x8x128xbf16>
      %313 = vector.shape_cast %312 : vector<1x8x128xbf16> to vector<8x128xbf16>
      %c0_132 = arith.constant 0 : index
      %c0_133 = arith.constant 0 : index
      %c0_134 = arith.constant 0 : index
      %314 = vector.load %arg3[%c0_132, %c0_133, %c0_134] : memref<1x16x128xbf16, #tpu.memory_space<vmem>>, vector<1x16x128xbf16>
      %315 = vector.shape_cast %314 : vector<1x16x128xbf16> to vector<16x128xbf16>
      %c0_135 = arith.constant 0 : index
      %c0_136 = arith.constant 0 : index
      %316 = vector.load %arg8[%c0_135, %c0_136] : memref<128x128xbf16, #tpu.memory_space<vmem>>, vector<128x128xbf16>
      %cst_137 = arith.constant dense<0.000000e+00> : vector<8x128xf32>
      %317 = tpu.matmul %313, %316, %cst_137 {dimension_numbers = #tpu.dot_dimension_numbers<[1], [0], [0], [1], [0, 0, 1, 1], [], []>} : vector<8x128xbf16>, vector<128x128xbf16>, vector<8x128xf32> -> vector<8x128xf32>
      %c0_138 = arith.constant 0 : index
      %c0_139 = arith.constant 0 : index
      %318 = vector.load %arg9[%c0_138, %c0_139] : memref<1x128xf32, #tpu.memory_space<vmem>>, vector<1x128xf32>
      %319 = vector.broadcast %318 : vector<1x128xf32> to vector<8x128xf32>
      %320 = arith.addf %317, %319 : vector<8x128xf32>
      %321 = arith.truncf %320 : vector<8x128xf32> to vector<8x128xbf16>
      %c0_140 = arith.constant 0 : index
      %c0_141 = arith.constant 0 : index
      %322 = vector.load %arg33[%c0_140, %c0_141] : memref<8x128xbf16, #tpu.memory_space<vmem>>, vector<8x128xbf16>
      tpu.vector_store %arg33[%c0_140, %c0_141], %321 {strides = array<i32>} : memref<8x128xbf16, #tpu.memory_space<vmem>>, vector<8x128xbf16>,
      %c0_142 = arith.constant 0 : index
      %c0_143 = arith.constant 0 : index
      %323 = vector.load %arg10[%c0_142, %c0_143] : memref<128x128xbf16, #tpu.memory_space<vmem>>, vector<128x128xbf16>
      %cst_144 = arith.constant dense<0.000000e+00> : vector<8x128xf32>
      %324 = tpu.matmul %313, %323, %cst_144 {dimension_numbers = #tpu.dot_dimension_numbers<[1], [0], [0], [1], [0, 0, 1, 1], [], []>} : vector<8x128xbf16>, vector<128x128xbf16>, vector<8x128xf32> -> vector<8x128xf32>
      %c0_145 = arith.constant 0 : index
      %c0_146 = arith.constant 0 : index
      %325 = vector.load %arg11[%c0_145, %c0_146] : memref<1x128xf32, #tpu.memory_space<vmem>>, vector<1x128xf32>
      %326 = vector.broadcast %325 : vector<1x128xf32> to vector<8x128xf32>
      %327 = arith.addf %324, %326 : vector<8x128xf32>
      %328 = arith.truncf %327 : vector<8x128xf32> to vector<8x128xbf16>
      %c0_147 = arith.constant 0 : index
      %c0_148 = arith.constant 0 : index
      %329 = vector.load %arg34[%c0_147, %c0_148] : memref<8x128xbf16, #tpu.memory_space<vmem>>, vector<8x128xbf16>
      tpu.vector_store %arg34[%c0_147, %c0_148], %328 {strides = array<i32>} : memref<8x128xbf16, #tpu.memory_space<vmem>>, vector<8x128xbf16>,
      %c0_149 = arith.constant 0 : index
      %c0_150 = arith.constant 0 : index
      %330 = vector.load %arg18[%c0_149, %c0_150] : memref<128x128xbf16, #tpu.memory_space<vmem>>, vector<128x128xbf16>
      %cst_151 = arith.constant dense<0.000000e+00> : vector<16x128xf32>
      %331 = tpu.matmul %315, %330, %cst_151 {dimension_numbers = #tpu.dot_dimension_numbers<[1], [0], [0], [1], [0, 0, 1, 1], [], []>} : vector<16x128xbf16>, vector<128x128xbf16>, vector<16x128xf32> -> vector<16x128xf32>
      %c0_152 = arith.constant 0 : index
      %c0_153 = arith.constant 0 : index
      %332 = vector.load %arg19[%c0_152, %c0_153] : memref<1x128xf32, #tpu.memory_space<vmem>>, vector<1x128xf32>
      %333 = vector.broadcast %332 : vector<1x128xf32> to vector<16x128xf32>
      %334 = arith.addf %331, %333 : vector<16x128xf32>
      %335 = arith.truncf %334 : vector<16x128xf32> to vector<16x128xbf16>
      %c0_154 = arith.constant 0 : index
      %c0_155 = arith.constant 0 : index
      %336 = vector.load %arg35[%c0_154, %c0_155] : memref<16x128xbf16, #tpu.memory_space<vmem>>, vector<16x128xbf16>
      tpu.vector_store %arg35[%c0_154, %c0_155], %335 {strides = array<i32>} : memref<16x128xbf16, #tpu.memory_space<vmem>>, vector<16x128xbf16>,
      %c0_156 = arith.constant 0 : index
      %c0_157 = arith.constant 0 : index
      %337 = vector.load %arg20[%c0_156, %c0_157] : memref<128x128xbf16, #tpu.memory_space<vmem>>, vector<128x128xbf16>
      %cst_158 = arith.constant dense<0.000000e+00> : vector<16x128xf32>
      %338 = tpu.matmul %315, %337, %cst_158 {dimension_numbers = #tpu.dot_dimension_numbers<[1], [0], [0], [1], [0, 0, 1, 1], [], []>} : vector<16x128xbf16>, vector<128x128xbf16>, vector<16x128xf32> -> vector<16x128xf32>
      %c0_159 = arith.constant 0 : index
      %c0_160 = arith.constant 0 : index
      %339 = vector.load %arg21[%c0_159, %c0_160] : memref<1x128xf32, #tpu.memory_space<vmem>>, vector<1x128xf32>
      %340 = vector.broadcast %339 : vector<1x128xf32> to vector<16x128xf32>
      %341 = arith.addf %338, %340 : vector<16x128xf32>
      %342 = arith.truncf %341 : vector<16x128xf32> to vector<16x128xbf16>
      %c0_161 = arith.constant 0 : index
      %c0_162 = arith.constant 0 : index
      %343 = vector.load %arg36[%c0_161, %c0_162] : memref<16x128xbf16, #tpu.memory_space<vmem>>, vector<16x128xbf16>
      tpu.vector_store %arg36[%c0_161, %c0_162], %342 {strides = array<i32>} : memref<16x128xbf16, #tpu.memory_space<vmem>>, vector<16x128xbf16>,
    } else {
    }
    %c0 = arith.constant 0 : index
    %5 = arith.index_cast %1 : i32 to index
    %c0_1 = arith.constant 0 : index
    %6 = vector.load %arg2[%c0, %5, %c0_1] : memref<1x8x128xbf16, #tpu.memory_space<vmem>>, vector<1x8x128xbf16>
    %7 = vector.shape_cast %6 : vector<1x8x128xbf16> to vector<8x128xbf16>
    %8 = arith.extf %7 : vector<8x128xbf16> to vector<8x128xf32>
    %c0_2 = arith.constant 0 : index
    %c0_3 = arith.constant 0 : index
    %c0_4 = arith.constant 0 : index
    %c0_5 = arith.constant 0 : index
    %9 = vector.load %arg4[%c0_2, %c0_3, %c0_4, %c0_5] : memref<1x1x8x8xbf16, #tpu.memory_space<vmem>>, vector<1x1x8x8xbf16>
    %10 = vector.shape_cast %9 : vector<1x1x8x8xbf16> to vector<8x8xbf16>
    %11 = arith.extf %10 : vector<8x8xbf16> to vector<8x8xf32>
    %c0_6 = arith.constant 0 : index
    %c0_7 = arith.constant 0 : index
    %c0_8 = arith.constant 0 : index
    %c0_9 = arith.constant 0 : index
    %12 = vector.load %arg5[%c0_6, %c0_7, %c0_8, %c0_9] : memref<1x1x1x16xbf16, #tpu.memory_space<vmem>>, vector<1x1x1x16xbf16>
    %13 = vector.shape_cast %12 : vector<1x1x1x16xbf16> to vector<1x16xbf16>
    %14 = arith.extf %13 : vector<1x16xbf16> to vector<1x16xf32>
    %c0_10 = arith.constant 0 : index
    %c0_11 = arith.constant 0 : index
    %15 = vector.load %arg6[%c0_10, %c0_11] : memref<128x128xbf16, #tpu.memory_space<vmem>>, vector<128x128xbf16>
    %cst = arith.constant dense<0.000000e+00> : vector<8x128xf32>
    %16 = tpu.matmul %7, %15, %cst {dimension_numbers = #tpu.dot_dimension_numbers<[1], [0], [0], [1], [0, 0, 1, 1], [], []>} : vector<8x128xbf16>, vector<128x128xbf16>, vector<8x128xf32> -> vector<8x128xf32>
    %c0_12 = arith.constant 0 : index
    %c0_13 = arith.constant 0 : index
    %17 = vector.load %arg7[%c0_12, %c0_13] : memref<1x128xf32, #tpu.memory_space<vmem>>, vector<1x128xf32>
    %18 = vector.broadcast %17 : vector<1x128xf32> to vector<8x128xf32>
    %19 = arith.addf %16, %18 : vector<8x128xf32>
    %cst_14 = arith.constant 0.176776692 : f32
    %20 = vector.broadcast %cst_14 : f32 to vector<8x128xf32>
    %21 = arith.mulf %19, %20 : vector<8x128xf32>
    %c0_15 = arith.constant 0 : index
    %c0_16 = arith.constant 0 : index
    %22 = vector.load %arg33[%c0_15, %c0_16] : memref<8x128xbf16, #tpu.memory_space<vmem>>, vector<8x128xbf16>
    %c0_17 = arith.constant 0 : index
    %c0_18 = arith.constant 0 : index
    %23 = vector.load %arg34[%c0_17, %c0_18] : memref<8x128xbf16, #tpu.memory_space<vmem>>, vector<8x128xbf16>
    %cst_19 = arith.constant 0.000000e+00 : f32
    %24 = vector.broadcast %cst_19 : f32 to vector<8x128xf32>
    %25 = vector.extract_strided_slice %21 {offsets = [0, 0], sizes = [8, 32], strides = [1, 1]} : vector<8x128xf32> to vector<8x32xf32>
    %26 = arith.truncf %25 : vector<8x32xf32> to vector<8x32xbf16>
    %27 = vector.extract_strided_slice %22 {offsets = [0, 0], sizes = [8, 32], strides = [1, 1]} : vector<8x128xbf16> to vector<8x32xbf16>
    %28 = vector.extract_strided_slice %23 {offsets = [0, 0], sizes = [8, 32], strides = [1, 1]} : vector<8x128xbf16> to vector<8x32xbf16>
    %cst_20 = arith.constant dense<0.000000e+00> : vector<8x8xf32>
    %29 = tpu.matmul %26, %27, %cst_20 {dimension_numbers = #tpu.dot_dimension_numbers<[1], [1], [0], [0], [0, 0, 1, 0], [], []>} : vector<8x32xbf16>, vector<8x32xbf16>, vector<8x8xf32> -> vector<8x8xf32>
    %30 = arith.addf %29, %11 : vector<8x8xf32>
    %cst_21 = arith.constant dense<0xFF800000> : vector<8xf32>
    %31 = vector.multi_reduction <maximumf>, %30, %cst_21 [1] : vector<8x8xf32> to vector<8xf32>
    %32 = vector.shape_cast %31 : vector<8xf32> to vector<8x1xf32>
    %33 = vector.broadcast %32 : vector<8x1xf32> to vector<8x8xf32>
    %34 = arith.subf %30, %33 : vector<8x8xf32>
    %35 = math.exp %34 : vector<8x8xf32>
    %cst_22 = arith.constant dense<0.000000e+00> : vector<8xf32>
    %36 = vector.multi_reduction <add>, %35, %cst_22 [1] : vector<8x8xf32> to vector<8xf32>
    %37 = vector.shape_cast %36 : vector<8xf32> to vector<8x1xf32>
    %38 = tpu.reciprocal %37 {approx = true} : vector<8x1xf32> -> vector<8x1xf32>
    %39 = vector.broadcast %38 : vector<8x1xf32> to vector<8x8xf32>
    %40 = arith.mulf %35, %39 : vector<8x8xf32>
    %41 = arith.truncf %40 : vector<8x8xf32> to vector<8x8xbf16>
    %cst_23 = arith.constant dense<0.000000e+00> : vector<8x32xf32>
    %42 = tpu.matmul %41, %28, %cst_23 {dimension_numbers = #tpu.dot_dimension_numbers<[1], [0], [0], [1], [0, 0, 1, 1], [], []>} : vector<8x8xbf16>, vector<8x32xbf16>, vector<8x32xf32> -> vector<8x32xf32>
    %43 = arith.truncf %42 : vector<8x32xf32> to vector<8x32xbf16>
    %c0_24 = arith.constant 0 : index
    %c0_25 = arith.constant 0 : index
    %44 = vector.load %arg12[%c0_24, %c0_25] : memref<128x128xbf16, #tpu.memory_space<vmem>>, vector<32x128xbf16>
    %cst_26 = arith.constant dense<0.000000e+00> : vector<8x128xf32>
    %45 = tpu.matmul %43, %44, %cst_26 {dimension_numbers = #tpu.dot_dimension_numbers<[1], [0], [0], [1], [0, 0, 1, 1], [], []>} : vector<8x32xbf16>, vector<32x128xbf16>, vector<8x128xf32> -> vector<8x128xf32>
    %46 = arith.addf %24, %45 : vector<8x128xf32>
    %47 = vector.extract_strided_slice %21 {offsets = [0, 32], sizes = [8, 32], strides = [1, 1]} : vector<8x128xf32> to vector<8x32xf32>
    %48 = arith.truncf %47 : vector<8x32xf32> to vector<8x32xbf16>
    %49 = vector.extract_strided_slice %22 {offsets = [0, 32], sizes = [8, 32], strides = [1, 1]} : vector<8x128xbf16> to vector<8x32xbf16>
    %50 = vector.extract_strided_slice %23 {offsets = [0, 32], sizes = [8, 32], strides = [1, 1]} : vector<8x128xbf16> to vector<8x32xbf16>
    %cst_27 = arith.constant dense<0.000000e+00> : vector<8x8xf32>
    %51 = tpu.matmul %48, %49, %cst_27 {dimension_numbers = #tpu.dot_dimension_numbers<[1], [1], [0], [0], [0, 0, 1, 0], [], []>} : vector<8x32xbf16>, vector<8x32xbf16>, vector<8x8xf32> -> vector<8x8xf32>
    %52 = arith.addf %51, %11 : vector<8x8xf32>
    %cst_28 = arith.constant dense<0xFF800000> : vector<8xf32>
    %53 = vector.multi_reduction <maximumf>, %52, %cst_28 [1] : vector<8x8xf32> to vector<8xf32>
    %54 = vector.shape_cast %53 : vector<8xf32> to vector<8x1xf32>
    %55 = vector.broadcast %54 : vector<8x1xf32> to vector<8x8xf32>
    %56 = arith.subf %52, %55 : vector<8x8xf32>
    %57 = math.exp %56 : vector<8x8xf32>
    %cst_29 = arith.constant dense<0.000000e+00> : vector<8xf32>
    %58 = vector.multi_reduction <add>, %57, %cst_29 [1] : vector<8x8xf32> to vector<8xf32>
    %59 = vector.shape_cast %58 : vector<8xf32> to vector<8x1xf32>
    %60 = tpu.reciprocal %59 {approx = true} : vector<8x1xf32> -> vector<8x1xf32>
    %61 = vector.broadcast %60 : vector<8x1xf32> to vector<8x8xf32>
    %62 = arith.mulf %57, %61 : vector<8x8xf32>
    %63 = arith.truncf %62 : vector<8x8xf32> to vector<8x8xbf16>
    %cst_30 = arith.constant dense<0.000000e+00> : vector<8x32xf32>
    %64 = tpu.matmul %63, %50, %cst_30 {dimension_numbers = #tpu.dot_dimension_numbers<[1], [0], [0], [1], [0, 0, 1, 1], [], []>} : vector<8x8xbf16>, vector<8x32xbf16>, vector<8x32xf32> -> vector<8x32xf32>
    %65 = arith.truncf %64 : vector<8x32xf32> to vector<8x32xbf16>
    %c32 = arith.constant 32 : index
    %c0_31 = arith.constant 0 : index
    %66 = vector.load %arg12[%c32, %c0_31] : memref<128x128xbf16, #tpu.memory_space<vmem>>, vector<32x128xbf16>
    %cst_32 = arith.constant dense<0.000000e+00> : vector<8x128xf32>
    %67 = tpu.matmul %65, %66, %cst_32 {dimension_numbers = #tpu.dot_dimension_numbers<[1], [0], [0], [1], [0, 0, 1, 1], [], []>} : vector<8x32xbf16>, vector<32x128xbf16>, vector<8x128xf32> -> vector<8x128xf32>
    %68 = arith.addf %46, %67 : vector<8x128xf32>
    %69 = vector.extract_strided_slice %21 {offsets = [0, 64], sizes = [8, 32], strides = [1, 1]} : vector<8x128xf32> to vector<8x32xf32>
    %70 = arith.truncf %69 : vector<8x32xf32> to vector<8x32xbf16>
    %71 = vector.extract_strided_slice %22 {offsets = [0, 64], sizes = [8, 32], strides = [1, 1]} : vector<8x128xbf16> to vector<8x32xbf16>
    %72 = vector.extract_strided_slice %23 {offsets = [0, 64], sizes = [8, 32], strides = [1, 1]} : vector<8x128xbf16> to vector<8x32xbf16>
    %cst_33 = arith.constant dense<0.000000e+00> : vector<8x8xf32>
    %73 = tpu.matmul %70, %71, %cst_33 {dimension_numbers = #tpu.dot_dimension_numbers<[1], [1], [0], [0], [0, 0, 1, 0], [], []>} : vector<8x32xbf16>, vector<8x32xbf16>, vector<8x8xf32> -> vector<8x8xf32>
    %74 = arith.addf %73, %11 : vector<8x8xf32>
    %cst_34 = arith.constant dense<0xFF800000> : vector<8xf32>
    %75 = vector.multi_reduction <maximumf>, %74, %cst_34 [1] : vector<8x8xf32> to vector<8xf32>
    %76 = vector.shape_cast %75 : vector<8xf32> to vector<8x1xf32>
    %77 = vector.broadcast %76 : vector<8x1xf32> to vector<8x8xf32>
    %78 = arith.subf %74, %77 : vector<8x8xf32>
    %79 = math.exp %78 : vector<8x8xf32>
    %cst_35 = arith.constant dense<0.000000e+00> : vector<8xf32>
    %80 = vector.multi_reduction <add>, %79, %cst_35 [1] : vector<8x8xf32> to vector<8xf32>
    %81 = vector.shape_cast %80 : vector<8xf32> to vector<8x1xf32>
    %82 = tpu.reciprocal %81 {approx = true} : vector<8x1xf32> -> vector<8x1xf32>
    %83 = vector.broadcast %82 : vector<8x1xf32> to vector<8x8xf32>
    %84 = arith.mulf %79, %83 : vector<8x8xf32>
    %85 = arith.truncf %84 : vector<8x8xf32> to vector<8x8xbf16>
    %cst_36 = arith.constant dense<0.000000e+00> : vector<8x32xf32>
    %86 = tpu.matmul %85, %72, %cst_36 {dimension_numbers = #tpu.dot_dimension_numbers<[1], [0], [0], [1], [0, 0, 1, 1], [], []>} : vector<8x8xbf16>, vector<8x32xbf16>, vector<8x32xf32> -> vector<8x32xf32>
    %87 = arith.truncf %86 : vector<8x32xf32> to vector<8x32xbf16>
    %c64 = arith.constant 64 : index
    %c0_37 = arith.constant 0 : index
    %88 = vector.load %arg12[%c64, %c0_37] : memref<128x128xbf16, #tpu.memory_space<vmem>>, vector<32x128xbf16>
    %cst_38 = arith.constant dense<0.000000e+00> : vector<8x128xf32>
    %89 = tpu.matmul %87, %88, %cst_38 {dimension_numbers = #tpu.dot_dimension_numbers<[1], [0], [0], [1], [0, 0, 1, 1], [], []>} : vector<8x32xbf16>, vector<32x128xbf16>, vector<8x128xf32> -> vector<8x128xf32>
    %90 = arith.addf %68, %89 : vector<8x128xf32>
    %91 = vector.extract_strided_slice %21 {offsets = [0, 96], sizes = [8, 32], strides = [1, 1]} : vector<8x128xf32> to vector<8x32xf32>
    %92 = arith.truncf %91 : vector<8x32xf32> to vector<8x32xbf16>
    %93 = vector.extract_strided_slice %22 {offsets = [0, 96], sizes = [8, 32], strides = [1, 1]} : vector<8x128xbf16> to vector<8x32xbf16>
    %94 = vector.extract_strided_slice %23 {offsets = [0, 96], sizes = [8, 32], strides = [1, 1]} : vector<8x128xbf16> to vector<8x32xbf16>
    %cst_39 = arith.constant dense<0.000000e+00> : vector<8x8xf32>
    %95 = tpu.matmul %92, %93, %cst_39 {dimension_numbers = #tpu.dot_dimension_numbers<[1], [1], [0], [0], [0, 0, 1, 0], [], []>} : vector<8x32xbf16>, vector<8x32xbf16>, vector<8x8xf32> -> vector<8x8xf32>
    %96 = arith.addf %95, %11 : vector<8x8xf32>
    %cst_40 = arith.constant dense<0xFF800000> : vector<8xf32>
    %97 = vector.multi_reduction <maximumf>, %96, %cst_40 [1] : vector<8x8xf32> to vector<8xf32>
    %98 = vector.shape_cast %97 : vector<8xf32> to vector<8x1xf32>
    %99 = vector.broadcast %98 : vector<8x1xf32> to vector<8x8xf32>
    %100 = arith.subf %96, %99 : vector<8x8xf32>
    %101 = math.exp %100 : vector<8x8xf32>
    %cst_41 = arith.constant dense<0.000000e+00> : vector<8xf32>
    %102 = vector.multi_reduction <add>, %101, %cst_41 [1] : vector<8x8xf32> to vector<8xf32>
    %103 = vector.shape_cast %102 : vector<8xf32> to vector<8x1xf32>
    %104 = tpu.reciprocal %103 {approx = true} : vector<8x1xf32> -> vector<8x1xf32>
    %105 = vector.broadcast %104 : vector<8x1xf32> to vector<8x8xf32>
    %106 = arith.mulf %101, %105 : vector<8x8xf32>
    %107 = arith.truncf %106 : vector<8x8xf32> to vector<8x8xbf16>
    %cst_42 = arith.constant dense<0.000000e+00> : vector<8x32xf32>
    %108 = tpu.matmul %107, %94, %cst_42 {dimension_numbers = #tpu.dot_dimension_numbers<[1], [0], [0], [1], [0, 0, 1, 1], [], []>} : vector<8x8xbf16>, vector<8x32xbf16>, vector<8x32xf32> -> vector<8x32xf32>
    %109 = arith.truncf %108 : vector<8x32xf32> to vector<8x32xbf16>
    %c96 = arith.constant 96 : index
    %c0_43 = arith.constant 0 : index
    %110 = vector.load %arg12[%c96, %c0_43] : memref<128x128xbf16, #tpu.memory_space<vmem>>, vector<32x128xbf16>
    %cst_44 = arith.constant dense<0.000000e+00> : vector<8x128xf32>
    %111 = tpu.matmul %109, %110, %cst_44 {dimension_numbers = #tpu.dot_dimension_numbers<[1], [0], [0], [1], [0, 0, 1, 1], [], []>} : vector<8x32xbf16>, vector<32x128xbf16>, vector<8x128xf32> -> vector<8x128xf32>
    %112 = arith.addf %90, %111 : vector<8x128xf32>
    %c0_45 = arith.constant 0 : index
    %c0_46 = arith.constant 0 : index
    %113 = vector.load %arg13[%c0_45, %c0_46] : memref<1x128xf32, #tpu.memory_space<vmem>>, vector<1x128xf32>
    %114 = vector.broadcast %113 : vector<1x128xf32> to vector<8x128xf32>
    %115 = arith.addf %112, %114 : vector<8x128xf32>
    %116 = arith.addf %8, %115 : vector<8x128xf32>
    %c0_47 = arith.constant 0 : index
    %c0_48 = arith.constant 0 : index
    %117 = vector.load %arg14[%c0_47, %c0_48] : memref<1x128xf32, #tpu.memory_space<vmem>>, vector<1x128xf32>
    %c0_49 = arith.constant 0 : index
    %c0_50 = arith.constant 0 : index
    %118 = vector.load %arg15[%c0_49, %c0_50] : memref<1x128xf32, #tpu.memory_space<vmem>>, vector<1x128xf32>
    %cst_51 = arith.constant dense<0.000000e+00> : vector<8xf32>
    %119 = vector.multi_reduction <add>, %116, %cst_51 [1] : vector<8x128xf32> to vector<8xf32>
    %120 = vector.shape_cast %119 : vector<8xf32> to vector<8x1xf32>
    %cst_52 = arith.constant 1.280000e+02 : f32
    %121 = vector.broadcast %cst_52 : f32 to vector<8x1xf32>
    %122 = arith.divf %120, %121 : vector<8x1xf32>
    %123 = vector.broadcast %122 : vector<8x1xf32> to vector<8x128xf32>
    %124 = arith.subf %116, %123 : vector<8x128xf32>
    %125 = arith.mulf %124, %124 : vector<8x128xf32>
    %cst_53 = arith.constant dense<0.000000e+00> : vector<8xf32>
    %126 = vector.multi_reduction <add>, %125, %cst_53 [1] : vector<8x128xf32> to vector<8xf32>
    %127 = vector.shape_cast %126 : vector<8xf32> to vector<8x1xf32>
    %cst_54 = arith.constant 1.280000e+02 : f32
    %128 = vector.broadcast %cst_54 : f32 to vector<8x1xf32>
    %129 = arith.divf %127, %128 : vector<8x1xf32>
    %130 = vector.broadcast %122 : vector<8x1xf32> to vector<8x128xf32>
    %131 = arith.subf %116, %130 : vector<8x128xf32>
    %cst_55 = arith.constant 9.99999974E-6 : f32
    %132 = vector.broadcast %cst_55 : f32 to vector<8x1xf32>
    %133 = arith.addf %129, %132 : vector<8x1xf32>
    %134 = math.rsqrt %133 : vector<8x1xf32>
    %135 = vector.broadcast %134 : vector<8x1xf32> to vector<8x128xf32>
    %136 = arith.mulf %131, %135 : vector<8x128xf32>
    %137 = vector.broadcast %117 : vector<1x128xf32> to vector<8x128xf32>
    %138 = arith.mulf %136, %137 : vector<8x128xf32>
    %139 = vector.broadcast %118 : vector<1x128xf32> to vector<8x128xf32>
    %140 = arith.addf %138, %139 : vector<8x128xf32>
    %141 = arith.truncf %140 : vector<8x128xf32> to vector<8x128xbf16>
    %c0_56 = arith.constant 0 : index
    %c0_57 = arith.constant 0 : index
    %142 = vector.load %arg16[%c0_56, %c0_57] : memref<128x128xbf16, #tpu.memory_space<vmem>>, vector<128x128xbf16>
    %cst_58 = arith.constant dense<0.000000e+00> : vector<8x128xf32>
    %143 = tpu.matmul %141, %142, %cst_58 {dimension_numbers = #tpu.dot_dimension_numbers<[1], [0], [0], [1], [0, 0, 1, 1], [], []>} : vector<8x128xbf16>, vector<128x128xbf16>, vector<8x128xf32> -> vector<8x128xf32>
    %c0_59 = arith.constant 0 : index
    %c0_60 = arith.constant 0 : index
    %144 = vector.load %arg17[%c0_59, %c0_60] : memref<1x128xf32, #tpu.memory_space<vmem>>, vector<1x128xf32>
    %145 = vector.broadcast %144 : vector<1x128xf32> to vector<8x128xf32>
    %146 = arith.addf %143, %145 : vector<8x128xf32>
    %cst_61 = arith.constant 0.176776692 : f32
    %147 = vector.broadcast %cst_61 : f32 to vector<8x128xf32>
    %148 = arith.mulf %146, %147 : vector<8x128xf32>
    %c0_62 = arith.constant 0 : index
    %c0_63 = arith.constant 0 : index
    %149 = vector.load %arg35[%c0_62, %c0_63] : memref<16x128xbf16, #tpu.memory_space<vmem>>, vector<16x128xbf16>
    %c0_64 = arith.constant 0 : index
    %c0_65 = arith.constant 0 : index
    %150 = vector.load %arg36[%c0_64, %c0_65] : memref<16x128xbf16, #tpu.memory_space<vmem>>, vector<16x128xbf16>
    %151 = vector.shape_cast %14 : vector<1x16xf32> to vector<1x16xf32>
    %152 = vector.broadcast %151 : vector<1x16xf32> to vector<8x16xf32>
    %cst_66 = arith.constant 0.000000e+00 : f32
    %153 = vector.broadcast %cst_66 : f32 to vector<8x128xf32>
    %154 = vector.extract_strided_slice %148 {offsets = [0, 0], sizes = [8, 32], strides = [1, 1]} : vector<8x128xf32> to vector<8x32xf32>
    %155 = arith.truncf %154 : vector<8x32xf32> to vector<8x32xbf16>
    %156 = vector.extract_strided_slice %149 {offsets = [0, 0], sizes = [16, 32], strides = [1, 1]} : vector<16x128xbf16> to vector<16x32xbf16>
    %157 = vector.extract_strided_slice %150 {offsets = [0, 0], sizes = [16, 32], strides = [1, 1]} : vector<16x128xbf16> to vector<16x32xbf16>
    %cst_67 = arith.constant dense<0.000000e+00> : vector<8x16xf32>
    %158 = tpu.matmul %155, %156, %cst_67 {dimension_numbers = #tpu.dot_dimension_numbers<[1], [1], [0], [0], [0, 0, 1, 0], [], []>} : vector<8x32xbf16>, vector<16x32xbf16>, vector<8x16xf32> -> vector<8x16xf32>
    %159 = arith.addf %158, %152 : vector<8x16xf32>
    %cst_68 = arith.constant dense<0xFF800000> : vector<8xf32>
    %160 = vector.multi_reduction <maximumf>, %159, %cst_68 [1] : vector<8x16xf32> to vector<8xf32>
    %161 = vector.shape_cast %160 : vector<8xf32> to vector<8x1xf32>
    %162 = vector.broadcast %161 : vector<8x1xf32> to vector<8x16xf32>
    %163 = arith.subf %159, %162 : vector<8x16xf32>
    %164 = math.exp %163 : vector<8x16xf32>
    %cst_69 = arith.constant dense<0.000000e+00> : vector<8xf32>
    %165 = vector.multi_reduction <add>, %164, %cst_69 [1] : vector<8x16xf32> to vector<8xf32>
    %166 = vector.shape_cast %165 : vector<8xf32> to vector<8x1xf32>
    %167 = tpu.reciprocal %166 {approx = true} : vector<8x1xf32> -> vector<8x1xf32>
    %168 = vector.broadcast %167 : vector<8x1xf32> to vector<8x16xf32>
    %169 = arith.mulf %164, %168 : vector<8x16xf32>
    %170 = arith.truncf %169 : vector<8x16xf32> to vector<8x16xbf16>
    %cst_70 = arith.constant dense<0.000000e+00> : vector<8x32xf32>
    %171 = tpu.matmul %170, %157, %cst_70 {dimension_numbers = #tpu.dot_dimension_numbers<[1], [0], [0], [1], [0, 0, 1, 1], [], []>} : vector<8x16xbf16>, vector<16x32xbf16>, vector<8x32xf32> -> vector<8x32xf32>
    %172 = arith.truncf %171 : vector<8x32xf32> to vector<8x32xbf16>
    %c0_71 = arith.constant 0 : index
    %c0_72 = arith.constant 0 : index
    %173 = vector.load %arg22[%c0_71, %c0_72] : memref<128x128xbf16, #tpu.memory_space<vmem>>, vector<32x128xbf16>
    %cst_73 = arith.constant dense<0.000000e+00> : vector<8x128xf32>
    %174 = tpu.matmul %172, %173, %cst_73 {dimension_numbers = #tpu.dot_dimension_numbers<[1], [0], [0], [1], [0, 0, 1, 1], [], []>} : vector<8x32xbf16>, vector<32x128xbf16>, vector<8x128xf32> -> vector<8x128xf32>
    %175 = arith.addf %153, %174 : vector<8x128xf32>
    %176 = vector.extract_strided_slice %148 {offsets = [0, 32], sizes = [8, 32], strides = [1, 1]} : vector<8x128xf32> to vector<8x32xf32>
    %177 = arith.truncf %176 : vector<8x32xf32> to vector<8x32xbf16>
    %178 = vector.extract_strided_slice %149 {offsets = [0, 32], sizes = [16, 32], strides = [1, 1]} : vector<16x128xbf16> to vector<16x32xbf16>
    %179 = vector.extract_strided_slice %150 {offsets = [0, 32], sizes = [16, 32], strides = [1, 1]} : vector<16x128xbf16> to vector<16x32xbf16>
    %cst_74 = arith.constant dense<0.000000e+00> : vector<8x16xf32>
    %180 = tpu.matmul %177, %178, %cst_74 {dimension_numbers = #tpu.dot_dimension_numbers<[1], [1], [0], [0], [0, 0, 1, 0], [], []>} : vector<8x32xbf16>, vector<16x32xbf16>, vector<8x16xf32> -> vector<8x16xf32>
    %181 = arith.addf %180, %152 : vector<8x16xf32>
    %cst_75 = arith.constant dense<0xFF800000> : vector<8xf32>
    %182 = vector.multi_reduction <maximumf>, %181, %cst_75 [1] : vector<8x16xf32> to vector<8xf32>
    %183 = vector.shape_cast %182 : vector<8xf32> to vector<8x1xf32>
    %184 = vector.broadcast %183 : vector<8x1xf32> to vector<8x16xf32>
    %185 = arith.subf %181, %184 : vector<8x16xf32>
    %186 = math.exp %185 : vector<8x16xf32>
    %cst_76 = arith.constant dense<0.000000e+00> : vector<8xf32>
    %187 = vector.multi_reduction <add>, %186, %cst_76 [1] : vector<8x16xf32> to vector<8xf32>
    %188 = vector.shape_cast %187 : vector<8xf32> to vector<8x1xf32>
    %189 = tpu.reciprocal %188 {approx = true} : vector<8x1xf32> -> vector<8x1xf32>
    %190 = vector.broadcast %189 : vector<8x1xf32> to vector<8x16xf32>
    %191 = arith.mulf %186, %190 : vector<8x16xf32>
    %192 = arith.truncf %191 : vector<8x16xf32> to vector<8x16xbf16>
    %cst_77 = arith.constant dense<0.000000e+00> : vector<8x32xf32>
    %193 = tpu.matmul %192, %179, %cst_77 {dimension_numbers = #tpu.dot_dimension_numbers<[1], [0], [0], [1], [0, 0, 1, 1], [], []>} : vector<8x16xbf16>, vector<16x32xbf16>, vector<8x32xf32> -> vector<8x32xf32>
    %194 = arith.truncf %193 : vector<8x32xf32> to vector<8x32xbf16>
    %c32_78 = arith.constant 32 : index
    %c0_79 = arith.constant 0 : index
    %195 = vector.load %arg22[%c32_78, %c0_79] : memref<128x128xbf16, #tpu.memory_space<vmem>>, vector<32x128xbf16>
    %cst_80 = arith.constant dense<0.000000e+00> : vector<8x128xf32>
    %196 = tpu.matmul %194, %195, %cst_80 {dimension_numbers = #tpu.dot_dimension_numbers<[1], [0], [0], [1], [0, 0, 1, 1], [], []>} : vector<8x32xbf16>, vector<32x128xbf16>, vector<8x128xf32> -> vector<8x128xf32>
    %197 = arith.addf %175, %196 : vector<8x128xf32>
    %198 = vector.extract_strided_slice %148 {offsets = [0, 64], sizes = [8, 32], strides = [1, 1]} : vector<8x128xf32> to vector<8x32xf32>
    %199 = arith.truncf %198 : vector<8x32xf32> to vector<8x32xbf16>
    %200 = vector.extract_strided_slice %149 {offsets = [0, 64], sizes = [16, 32], strides = [1, 1]} : vector<16x128xbf16> to vector<16x32xbf16>
    %201 = vector.extract_strided_slice %150 {offsets = [0, 64], sizes = [16, 32], strides = [1, 1]} : vector<16x128xbf16> to vector<16x32xbf16>
    %cst_81 = arith.constant dense<0.000000e+00> : vector<8x16xf32>
    %202 = tpu.matmul %199, %200, %cst_81 {dimension_numbers = #tpu.dot_dimension_numbers<[1], [1], [0], [0], [0, 0, 1, 0], [], []>} : vector<8x32xbf16>, vector<16x32xbf16>, vector<8x16xf32> -> vector<8x16xf32>
    %203 = arith.addf %202, %152 : vector<8x16xf32>
    %cst_82 = arith.constant dense<0xFF800000> : vector<8xf32>
    %204 = vector.multi_reduction <maximumf>, %203, %cst_82 [1] : vector<8x16xf32> to vector<8xf32>
    %205 = vector.shape_cast %204 : vector<8xf32> to vector<8x1xf32>
    %206 = vector.broadcast %205 : vector<8x1xf32> to vector<8x16xf32>
    %207 = arith.subf %203, %206 : vector<8x16xf32>
    %208 = math.exp %207 : vector<8x16xf32>
    %cst_83 = arith.constant dense<0.000000e+00> : vector<8xf32>
    %209 = vector.multi_reduction <add>, %208, %cst_83 [1] : vector<8x16xf32> to vector<8xf32>
    %210 = vector.shape_cast %209 : vector<8xf32> to vector<8x1xf32>
    %211 = tpu.reciprocal %210 {approx = true} : vector<8x1xf32> -> vector<8x1xf32>
    %212 = vector.broadcast %211 : vector<8x1xf32> to vector<8x16xf32>
    %213 = arith.mulf %208, %212 : vector<8x16xf32>
    %214 = arith.truncf %213 : vector<8x16xf32> to vector<8x16xbf16>
    %cst_84 = arith.constant dense<0.000000e+00> : vector<8x32xf32>
    %215 = tpu.matmul %214, %201, %cst_84 {dimension_numbers = #tpu.dot_dimension_numbers<[1], [0], [0], [1], [0, 0, 1, 1], [], []>} : vector<8x16xbf16>, vector<16x32xbf16>, vector<8x32xf32> -> vector<8x32xf32>
    %216 = arith.truncf %215 : vector<8x32xf32> to vector<8x32xbf16>
    %c64_85 = arith.constant 64 : index
    %c0_86 = arith.constant 0 : index
    %217 = vector.load %arg22[%c64_85, %c0_86] : memref<128x128xbf16, #tpu.memory_space<vmem>>, vector<32x128xbf16>
    %cst_87 = arith.constant dense<0.000000e+00> : vector<8x128xf32>
    %218 = tpu.matmul %216, %217, %cst_87 {dimension_numbers = #tpu.dot_dimension_numbers<[1], [0], [0], [1], [0, 0, 1, 1], [], []>} : vector<8x32xbf16>, vector<32x128xbf16>, vector<8x128xf32> -> vector<8x128xf32>
    %219 = arith.addf %197, %218 : vector<8x128xf32>
    %220 = vector.extract_strided_slice %148 {offsets = [0, 96], sizes = [8, 32], strides = [1, 1]} : vector<8x128xf32> to vector<8x32xf32>
    %221 = arith.truncf %220 : vector<8x32xf32> to vector<8x32xbf16>
    %222 = vector.extract_strided_slice %149 {offsets = [0, 96], sizes = [16, 32], strides = [1, 1]} : vector<16x128xbf16> to vector<16x32xbf16>
    %223 = vector.extract_strided_slice %150 {offsets = [0, 96], sizes = [16, 32], strides = [1, 1]} : vector<16x128xbf16> to vector<16x32xbf16>
    %cst_88 = arith.constant dense<0.000000e+00> : vector<8x16xf32>
    %224 = tpu.matmul %221, %222, %cst_88 {dimension_numbers = #tpu.dot_dimension_numbers<[1], [1], [0], [0], [0, 0, 1, 0], [], []>} : vector<8x32xbf16>, vector<16x32xbf16>, vector<8x16xf32> -> vector<8x16xf32>
    %225 = arith.addf %224, %152 : vector<8x16xf32>
    %cst_89 = arith.constant dense<0xFF800000> : vector<8xf32>
    %226 = vector.multi_reduction <maximumf>, %225, %cst_89 [1] : vector<8x16xf32> to vector<8xf32>
    %227 = vector.shape_cast %226 : vector<8xf32> to vector<8x1xf32>
    %228 = vector.broadcast %227 : vector<8x1xf32> to vector<8x16xf32>
    %229 = arith.subf %225, %228 : vector<8x16xf32>
    %230 = math.exp %229 : vector<8x16xf32>
    %cst_90 = arith.constant dense<0.000000e+00> : vector<8xf32>
    %231 = vector.multi_reduction <add>, %230, %cst_90 [1] : vector<8x16xf32> to vector<8xf32>
    %232 = vector.shape_cast %231 : vector<8xf32> to vector<8x1xf32>
    %233 = tpu.reciprocal %232 {approx = true} : vector<8x1xf32> -> vector<8x1xf32>
    %234 = vector.broadcast %233 : vector<8x1xf32> to vector<8x16xf32>
    %235 = arith.mulf %230, %234 : vector<8x16xf32>
    %236 = arith.truncf %235 : vector<8x16xf32> to vector<8x16xbf16>
    %cst_91 = arith.constant dense<0.000000e+00> : vector<8x32xf32>
    %237 = tpu.matmul %236, %223, %cst_91 {dimension_numbers = #tpu.dot_dimension_numbers<[1], [0], [0], [1], [0, 0, 1, 1], [], []>} : vector<8x16xbf16>, vector<16x32xbf16>, vector<8x32xf32> -> vector<8x32xf32>
    %238 = arith.truncf %237 : vector<8x32xf32> to vector<8x32xbf16>
    %c96_92 = arith.constant 96 : index
    %c0_93 = arith.constant 0 : index
    %239 = vector.load %arg22[%c96_92, %c0_93] : memref<128x128xbf16, #tpu.memory_space<vmem>>, vector<32x128xbf16>
    %cst_94 = arith.constant dense<0.000000e+00> : vector<8x128xf32>
    %240 = tpu.matmul %238, %239, %cst_94 {dimension_numbers = #tpu.dot_dimension_numbers<[1], [0], [0], [1], [0, 0, 1, 1], [], []>} : vector<8x32xbf16>, vector<32x128xbf16>, vector<8x128xf32> -> vector<8x128xf32>
    %241 = arith.addf %219, %240 : vector<8x128xf32>
    %c0_95 = arith.constant 0 : index
    %c0_96 = arith.constant 0 : index
    %242 = vector.load %arg23[%c0_95, %c0_96] : memref<1x128xf32, #tpu.memory_space<vmem>>, vector<1x128xf32>
    %243 = vector.broadcast %242 : vector<1x128xf32> to vector<8x128xf32>
    %244 = arith.addf %241, %243 : vector<8x128xf32>
    %245 = arith.addf %140, %244 : vector<8x128xf32>
    %c0_97 = arith.constant 0 : index
    %c0_98 = arith.constant 0 : index
    %246 = vector.load %arg24[%c0_97, %c0_98] : memref<1x128xf32, #tpu.memory_space<vmem>>, vector<1x128xf32>
    %c0_99 = arith.constant 0 : index
    %c0_100 = arith.constant 0 : index
    %247 = vector.load %arg25[%c0_99, %c0_100] : memref<1x128xf32, #tpu.memory_space<vmem>>, vector<1x128xf32>
    %cst_101 = arith.constant dense<0.000000e+00> : vector<8xf32>
    %248 = vector.multi_reduction <add>, %245, %cst_101 [1] : vector<8x128xf32> to vector<8xf32>
    %249 = vector.shape_cast %248 : vector<8xf32> to vector<8x1xf32>
    %cst_102 = arith.constant 1.280000e+02 : f32
    %250 = vector.broadcast %cst_102 : f32 to vector<8x1xf32>
    %251 = arith.divf %249, %250 : vector<8x1xf32>
    %252 = vector.broadcast %251 : vector<8x1xf32> to vector<8x128xf32>
    %253 = arith.subf %245, %252 : vector<8x128xf32>
    %254 = arith.mulf %253, %253 : vector<8x128xf32>
    %cst_103 = arith.constant dense<0.000000e+00> : vector<8xf32>
    %255 = vector.multi_reduction <add>, %254, %cst_103 [1] : vector<8x128xf32> to vector<8xf32>
    %256 = vector.shape_cast %255 : vector<8xf32> to vector<8x1xf32>
    %cst_104 = arith.constant 1.280000e+02 : f32
    %257 = vector.broadcast %cst_104 : f32 to vector<8x1xf32>
    %258 = arith.divf %256, %257 : vector<8x1xf32>
    %259 = vector.broadcast %251 : vector<8x1xf32> to vector<8x128xf32>
    %260 = arith.subf %245, %259 : vector<8x128xf32>
    %cst_105 = arith.constant 9.99999974E-6 : f32
    %261 = vector.broadcast %cst_105 : f32 to vector<8x1xf32>
    %262 = arith.addf %258, %261 : vector<8x1xf32>
    %263 = math.rsqrt %262 : vector<8x1xf32>
    %264 = vector.broadcast %263 : vector<8x1xf32> to vector<8x128xf32>
    %265 = arith.mulf %260, %264 : vector<8x128xf32>
    %266 = vector.broadcast %246 : vector<1x128xf32> to vector<8x128xf32>
    %267 = arith.mulf %265, %266 : vector<8x128xf32>
    %268 = vector.broadcast %247 : vector<1x128xf32> to vector<8x128xf32>
    %269 = arith.addf %267, %268 : vector<8x128xf32>
    %270 = arith.truncf %269 : vector<8x128xf32> to vector<8x128xbf16>
    %c0_106 = arith.constant 0 : index
    %c0_107 = arith.constant 0 : index
    %271 = vector.load %arg26[%c0_106, %c0_107] : memref<128x256xbf16, #tpu.memory_space<vmem>>, vector<128x256xbf16>
    %cst_108 = arith.constant dense<0.000000e+00> : vector<8x256xf32>
    %272 = tpu.matmul %270, %271, %cst_108 {dimension_numbers = #tpu.dot_dimension_numbers<[1], [0], [0], [1], [0, 0, 1, 1], [], []>} : vector<8x128xbf16>, vector<128x256xbf16>, vector<8x256xf32> -> vector<8x256xf32>
    %c0_109 = arith.constant 0 : index
    %c0_110 = arith.constant 0 : index
    %273 = vector.load %arg27[%c0_109, %c0_110] : memref<1x256xf32, #tpu.memory_space<vmem>>, vector<1x256xf32>
    %274 = vector.broadcast %273 : vector<1x256xf32> to vector<8x256xf32>
    %275 = arith.addf %272, %274 : vector<8x256xf32>
    %cst_111 = arith.constant 0.000000e+00 : f32
    %276 = vector.broadcast %cst_111 : f32 to vector<8x256xf32>
    %277 = arith.maximumf %275, %276 : vector<8x256xf32>
    %278 = arith.truncf %277 : vector<8x256xf32> to vector<8x256xbf16>
    %c0_112 = arith.constant 0 : index
    %c0_113 = arith.constant 0 : index
    %279 = vector.load %arg28[%c0_112, %c0_113] : memref<256x128xbf16, #tpu.memory_space<vmem>>, vector<256x128xbf16>
    %cst_114 = arith.constant dense<0.000000e+00> : vector<8x128xf32>
    %280 = tpu.matmul %278, %279, %cst_114 {dimension_numbers = #tpu.dot_dimension_numbers<[1], [0], [0], [1], [0, 0, 1, 1], [], []>} : vector<8x256xbf16>, vector<256x128xbf16>, vector<8x128xf32> -> vector<8x128xf32>
    %c0_115 = arith.constant 0 : index
    %c0_116 = arith.constant 0 : index
    %281 = vector.load %arg29[%c0_115, %c0_116] : memref<1x128xf32, #tpu.memory_space<vmem>>, vector<1x128xf32>
    %282 = vector.broadcast %281 : vector<1x128xf32> to vector<8x128xf32>
    %283 = arith.addf %280, %282 : vector<8x128xf32>
    %284 = arith.addf %269, %283 : vector<8x128xf32>
    %c0_117 = arith.constant 0 : index
    %c0_118 = arith.constant 0 : index
    %285 = vector.load %arg30[%c0_117, %c0_118] : memref<1x128xf32, #tpu.memory_space<vmem>>, vector<1x128xf32>
    %c0_119 = arith.constant 0 : index
    %c0_120 = arith.constant 0 : index
    %286 = vector.load %arg31[%c0_119, %c0_120] : memref<1x128xf32, #tpu.memory_space<vmem>>, vector<1x128xf32>
    %cst_121 = arith.constant dense<0.000000e+00> : vector<8xf32>
    %287 = vector.multi_reduction <add>, %284, %cst_121 [1] : vector<8x128xf32> to vector<8xf32>
    %288 = vector.shape_cast %287 : vector<8xf32> to vector<8x1xf32>
    %cst_122 = arith.constant 1.280000e+02 : f32
    %289 = vector.broadcast %cst_122 : f32 to vector<8x1xf32>
    %290 = arith.divf %288, %289 : vector<8x1xf32>
    %291 = vector.broadcast %290 : vector<8x1xf32> to vector<8x128xf32>
    %292 = arith.subf %284, %291 : vector<8x128xf32>
    %293 = arith.mulf %292, %292 : vector<8x128xf32>
    %cst_123 = arith.constant dense<0.000000e+00> : vector<8xf32>
    %294 = vector.multi_reduction <add>, %293, %cst_123 [1] : vector<8x128xf32> to vector<8xf32>
    %295 = vector.shape_cast %294 : vector<8xf32> to vector<8x1xf32>
    %cst_124 = arith.constant 1.280000e+02 : f32
    %296 = vector.broadcast %cst_124 : f32 to vector<8x1xf32>
    %297 = arith.divf %295, %296 : vector<8x1xf32>
    %298 = vector.broadcast %290 : vector<8x1xf32> to vector<8x128xf32>
    %299 = arith.subf %284, %298 : vector<8x128xf32>
    %cst_125 = arith.constant 9.99999974E-6 : f32
    %300 = vector.broadcast %cst_125 : f32 to vector<8x1xf32>
    %301 = arith.addf %297, %300 : vector<8x1xf32>
    %302 = math.rsqrt %301 : vector<8x1xf32>
    %303 = vector.broadcast %302 : vector<8x1xf32> to vector<8x128xf32>
    %304 = arith.mulf %299, %303 : vector<8x128xf32>
    %305 = vector.broadcast %285 : vector<1x128xf32> to vector<8x128xf32>
    %306 = arith.mulf %304, %305 : vector<8x128xf32>
    %307 = vector.broadcast %286 : vector<1x128xf32> to vector<8x128xf32>
    %308 = arith.addf %306, %307 : vector<8x128xf32>
    %c0_126 = arith.constant 0 : index
    %c0_127 = arith.constant 0 : index
    %c0_128 = arith.constant 0 : index
    %309 = vector.load %arg32[%c0_126, %c0_127, %c0_128] : memref<1x8x128xf32, #tpu.memory_space<vmem>>, vector<1x8x128xf32>
    %310 = vector.shape_cast %309 : vector<1x8x128xf32> to vector<8x128xf32>
    %311 = vector.shape_cast %308 : vector<8x128xf32> to vector<1x8x128xf32>
    tpu.vector_store %arg32[%c0_126, %c0_127, %c0_128], %311 {strides = array<i32>} : memref<1x8x128xf32, #tpu.memory_space<vmem>>, vector<1x8x128xf32>,
    return
  }
  func.func @transform_0(%arg0: i32, %arg1: i32) -> (i32, i32, i32) {
    %c0_i32 = arith.constant 0 : i32
    %c0_i32_0 = arith.constant 0 : i32
    %c0_i32_1 = arith.constant 0 : i32
    return %arg0, %c0_i32, %c0_i32_0 : i32, i32, i32
  }
  func.func @transform_1(%arg0: i32, %arg1: i32) -> (i32, i32, i32) {
    %c0_i32 = arith.constant 0 : i32
    %c0_i32_0 = arith.constant 0 : i32
    %c0_i32_1 = arith.constant 0 : i32
    return %arg0, %c0_i32, %c0_i32_0 : i32, i32, i32
  }
  func.func @transform_2(%arg0: i32, %arg1: i32) -> (i32, i32, i32, i32) {
    %c0_i32 = arith.constant 0 : i32
    %c0_i32_0 = arith.constant 0 : i32
    %c0_i32_1 = arith.constant 0 : i32
    return %arg0, %c0_i32, %arg1, %c0_i32_0 : i32, i32, i32, i32
  }
  func.func @transform_3(%arg0: i32, %arg1: i32) -> (i32, i32, i32, i32) {
    %c0_i32 = arith.constant 0 : i32
    %c0_i32_0 = arith.constant 0 : i32
    %c0_i32_1 = arith.constant 0 : i32
    %c0_i32_2 = arith.constant 0 : i32
    return %arg0, %c0_i32, %c0_i32_0, %c0_i32_1 : i32, i32, i32, i32
  }
  func.func @transform_4(%arg0: i32, %arg1: i32) -> (i32, i32) {
    %c0_i32 = arith.constant 0 : i32
    %c0_i32_0 = arith.constant 0 : i32
    %c0_i32_1 = arith.constant 0 : i32
    return %c0_i32, %c0_i32_0 : i32, i32
  }
  func.func @transform_5(%arg0: i32, %arg1: i32) -> (i32, i32) {
    %c0_i32 = arith.constant 0 : i32
    %c0_i32_0 = arith.constant 0 : i32
    %c0_i32_1 = arith.constant 0 : i32
    return %c0_i32, %c0_i32_0 : i32, i32
  }
  func.func @transform_6(%arg0: i32, %arg1: i32) -> (i32, i32) {
    %c0_i32 = arith.constant 0 : i32
    %c0_i32_0 = arith.constant 0 : i32
    %c0_i32_1 = arith.constant 0 : i32
    return %c0_i32, %c0_i32_0 : i32, i32
  }
  func.func @transform_7(%arg0: i32, %arg1: i32) -> (i32, i32) {
    %c0_i32 = arith.constant 0 : i32
    %c0_i32_0 = arith.constant 0 : i32
    %c0_i32_1 = arith.constant 0 : i32
    return %c0_i32, %c0_i32_0 : i32, i32
  }
  func.func @transform_8(%arg0: i32, %arg1: i32) -> (i32, i32) {
    %c0_i32 = arith.constant 0 : i32
    %c0_i32_0 = arith.constant 0 : i32
    %c0_i32_1 = arith.constant 0 : i32
    return %c0_i32, %c0_i32_0 : i32, i32
  }
  func.func @transform_9(%arg0: i32, %arg1: i32) -> (i32, i32) {
    %c0_i32 = arith.constant 0 : i32
    %c0_i32_0 = arith.constant 0 : i32
    %c0_i32_1 = arith.constant 0 : i32
    return %c0_i32, %c0_i32_0 : i32, i32
  }
  func.func @transform_10(%arg0: i32, %arg1: i32) -> (i32, i32) {
    %c0_i32 = arith.constant 0 : i32
    %c0_i32_0 = arith.constant 0 : i32
    %c0_i32_1 = arith.constant 0 : i32
    return %c0_i32, %c0_i32_0 : i32, i32
  }
  func.func @transform_11(%arg0: i32, %arg1: i32) -> (i32, i32) {
    %c0_i32 = arith.constant 0 : i32
    %c0_i32_0 = arith.constant 0 : i32
    %c0_i32_1 = arith.constant 0 : i32
    return %c0_i32, %c0_i32_0 : i32, i32
  }
  func.func @transform_12(%arg0: i32, %arg1: i32) -> (i32, i32) {
    %c0_i32 = arith.constant 0 : i32
    %c0_i32_0 = arith.constant 0 : i32
    %c0_i32_1 = arith.constant 0 : i32
    return %c0_i32, %c0_i32_0 : i32, i32
  }
  func.func @transform_13(%arg0: i32, %arg1: i32) -> (i32, i32) {
    %c0_i32 = arith.constant 0 : i32
    %c0_i32_0 = arith.constant 0 : i32
    %c0_i32_1 = arith.constant 0 : i32
    return %c0_i32, %c0_i32_0 : i32, i32
  }
  func.func @transform_14(%arg0: i32, %arg1: i32) -> (i32, i32) {
    %c0_i32 = arith.constant 0 : i32
    %c0_i32_0 = arith.constant 0 : i32
    %c0_i32_1 = arith.constant 0 : i32
    return %c0_i32, %c0_i32_0 : i32, i32
  }
  func.func @transform_15(%arg0: i32, %arg1: i32) -> (i32, i32) {
    %c0_i32 = arith.constant 0 : i32
    %c0_i32_0 = arith.constant 0 : i32
    %c0_i32_1 = arith.constant 0 : i32
    return %c0_i32, %c0_i32_0 : i32, i32
  }
  func.func @transform_16(%arg0: i32, %arg1: i32) -> (i32, i32) {
    %c0_i32 = arith.constant 0 : i32
    %c0_i32_0 = arith.constant 0 : i32
    %c0_i32_1 = arith.constant 0 : i32
    return %c0_i32, %c0_i32_0 : i32, i32
  }
  func.func @transform_17(%arg0: i32, %arg1: i32) -> (i32, i32) {
    %c0_i32 = arith.constant 0 : i32
    %c0_i32_0 = arith.constant 0 : i32
    %c0_i32_1 = arith.constant 0 : i32
    return %c0_i32, %c0_i32_0 : i32, i32
  }
  func.func @transform_18(%arg0: i32, %arg1: i32) -> (i32, i32) {
    %c0_i32 = arith.constant 0 : i32
    %c0_i32_0 = arith.constant 0 : i32
    %c0_i32_1 = arith.constant 0 : i32
    return %c0_i32, %c0_i32_0 : i32, i32
  }
  func.func @transform_19(%arg0: i32, %arg1: i32) -> (i32, i32) {
    %c0_i32 = arith.constant 0 : i32
    %c0_i32_0 = arith.constant 0 : i32
    %c0_i32_1 = arith.constant 0 : i32
    return %c0_i32, %c0_i32_0 : i32, i32
  }
  func.func @transform_20(%arg0: i32, %arg1: i32) -> (i32, i32) {
    %c0_i32 = arith.constant 0 : i32
    %c0_i32_0 = arith.constant 0 : i32
    %c0_i32_1 = arith.constant 0 : i32
    return %c0_i32, %c0_i32_0 : i32, i32
  }
  func.func @transform_21(%arg0: i32, %arg1: i32) -> (i32, i32) {
    %c0_i32 = arith.constant 0 : i32
    %c0_i32_0 = arith.constant 0 : i32
    %c0_i32_1 = arith.constant 0 : i32
    return %c0_i32, %c0_i32_0 : i32, i32
  }
  func.func @transform_22(%arg0: i32, %arg1: i32) -> (i32, i32) {
    %c0_i32 = arith.constant 0 : i32
    %c0_i32_0 = arith.constant 0 : i32
    %c0_i32_1 = arith.constant 0 : i32
    return %c0_i32, %c0_i32_0 : i32, i32
  }
  func.func @transform_23(%arg0: i32, %arg1: i32) -> (i32, i32) {
    %c0_i32 = arith.constant 0 : i32
    %c0_i32_0 = arith.constant 0 : i32
    %c0_i32_1 = arith.constant 0 : i32
    return %c0_i32, %c0_i32_0 : i32, i32
  }
  func.func @transform_24(%arg0: i32, %arg1: i32) -> (i32, i32) {
    %c0_i32 = arith.constant 0 : i32
    %c0_i32_0 = arith.constant 0 : i32
    %c0_i32_1 = arith.constant 0 : i32
    return %c0_i32, %c0_i32_0 : i32, i32
  }
  func.func @transform_25(%arg0: i32, %arg1: i32) -> (i32, i32) {
    %c0_i32 = arith.constant 0 : i32
    %c0_i32_0 = arith.constant 0 : i32
    %c0_i32_1 = arith.constant 0 : i32
    return %c0_i32, %c0_i32_0 : i32, i32
  }
  func.func @transform_26(%arg0: i32, %arg1: i32) -> (i32, i32) {
    %c0_i32 = arith.constant 0 : i32
    %c0_i32_0 = arith.constant 0 : i32
    %c0_i32_1 = arith.constant 0 : i32
    return %c0_i32, %c0_i32_0 : i32, i32
  }
  func.func @transform_27(%arg0: i32, %arg1: i32) -> (i32, i32) {
    %c0_i32 = arith.constant 0 : i32
    %c0_i32_0 = arith.constant 0 : i32
    %c0_i32_1 = arith.constant 0 : i32
    return %c0_i32, %c0_i32_0 : i32, i32
  }
  func.func @transform_28(%arg0: i32, %arg1: i32) -> (i32, i32) {
    %c0_i32 = arith.constant 0 : i32
    %c0_i32_0 = arith.constant 0 : i32
    %c0_i32_1 = arith.constant 0 : i32
    return %c0_i32, %c0_i32_0 : i32, i32
  }
  func.func @transform_29(%arg0: i32, %arg1: i32) -> (i32, i32) {
    %c0_i32 = arith.constant 0 : i32
    %c0_i32_0 = arith.constant 0 : i32
    %c0_i32_1 = arith.constant 0 : i32
    return %c0_i32, %c0_i32_0 : i32, i32
  }
  func.func @transform_30(%arg0: i32, %arg1: i32) -> (i32, i32, i32) {
    %c0_i32 = arith.constant 0 : i32
    %c0_i32_0 = arith.constant 0 : i32
    return %arg0, %arg1, %c0_i32 : i32, i32, i32
  }
}

</mosaic_0001>

<bundles_post_ra>
// kernel: tpu_custom_call.1
= control target key start
LH: loop header
LB: loop body
LE: loop exit
PB: predicated region body
PF: predicated region fallthrough
CT: control target
= control target key end

     0   :  { %s5420_s6 = smov 1   ;;  %s5421_s10 = smov 2   ;;  %s6259_s0 = inlined_call_operand.smem [shape: u32[31], index: -1, kind: input, shape index: {}] }
   0x1   :  { %s5482_s5 = sld [smem:[%s6259_s0]]   ;;  %s5422_s14 = smov 3  }
   0x2   :  { %s5487_s9 = sld [smem:[%s6259_s0 + %s5420_s6]]   ;;  %s5423_s18 = smov 4  }
   0x3   :  { %s5492_s13 = sld [smem:[%s6259_s0 + %s5421_s10]]   ;;  %s5424_s22 = smov 5  }
   0x4   :  { %s5497_s17 = sld [smem:[%s6259_s0 + %s5422_s14]]   ;;  %s5425_s26 = smov 6  }
   0x5   :  { %s5502_s21 = sld [smem:[%s6259_s0 + %s5423_s18]]   ;;  %s5426_s30 = smov 7  }
   0x6   :  { %s5507_s25 = sld [smem:[%s6259_s0 + %s5424_s22]]   ;;  %s5427_s4 = smov 8  }
   0x7   :  { %s5512_s29 = sld [smem:[%s6259_s0 + %s5425_s26]]   ;;  %s5428_s10 = smov 9  }
   0x8   :  { %6286 = sst [smem:[#allocation36_spill]] %s5487_s9  ;;  %s5429_s15 = smov 10  }
   0x9   :  { %s5517_s3 = sld [smem:[%s6259_s0 + %s5426_s30]]   ;;  %s5430_s20 = smov 11  }
   0xa   :  { %6287 = sst [smem:[#allocation37_spill]] %s5497_s17  ;;  %s5431_s26 = smov 12  }
   0xb   :  { %6288 = sst [smem:[#allocation38_spill]] %s5502_s21  ;;  %s5432_s1 = smov 13  }
   0xc   :  { %6289 = sst [smem:[#allocation39_spill]] %s5507_s25  ;;  %s5433_s7 = smov 14  }
   0xd   :  { %s5522_s8 = sld [smem:[%s6259_s0 + %s5427_s4]]   ;;  %s5435_s22 = smov 16  }
   0xe   :  { %s5527_s14 = sld [smem:[%s6259_s0 + %s5428_s10]]   ;;  %s5436_s28 = smov 17  }
   0xf   :  { %s5532_s19 = sld [smem:[%s6259_s0 + %s5429_s15]]   ;;  %s5434_s15 = smov 15  }
  0x10   :  { %s5537_s24 = sld [smem:[%s6259_s0 + %s5430_s20]]  }
  0x11   :  { %s5542_s30 = sld [smem:[%s6259_s0 + %s5431_s26]]  }
  0x12   :  { %s5547_s6 = sld [smem:[%s6259_s0 + %s5432_s1]]  }
  0x13   :  { %6290 = sst [smem:[#allocation40_spill]] %s5522_s8 }
  0x14   :  { %6291 = sst [smem:[#allocation41_spill]] %s5527_s14 }
  0x15   :  { %s5552_s12 = sld [smem:[%s6259_s0 + %s5433_s7]]   ;;  %s5437_s7 = smov 18  }
  0x16   :  { %6292 = sst [smem:[#allocation42_spill]] %s5537_s24 }
  0x17   :  { %6293 = sst [smem:[#allocation43_spill]] %s5542_s30 }
  0x18   :  { %6294 = sst [smem:[#allocation44_spill]] %s5547_s6 }
  0x19   :  { %s5557_s20 = sld [smem:[%s6259_s0 + %s5434_s15]]   ;;  %s5438_s15 = smov 19  }
  0x1a   :  { %s5562_s27 = sld [smem:[%s6259_s0 + %s5435_s22]]   ;;  %s5439_s22 = smov 20  }
  0x1b   :  { %6295 = sst [smem:[#allocation45_spill]] %s5552_s12 }
  0x1c   :  { %s5567_s4 = sld [smem:[%s6259_s0 + %s5436_s28]]   ;;  %s5440_s28 = smov 21  }
  0x1d   :  { %s5572_s17 = sld [smem:[%s6259_s0 + %s5437_s7]]   ;;  %s5441_s7 = smov 22  }
  0x1e   :  { %s5582_s6 = sld [smem:[%s6259_s0 + %s5439_s22]]   ;;  %s5443_s22 = smov 24  }
  0x1f   :  { %6296 = sst [smem:[#allocation46_spill]] %s5557_s20 }
  0x20   :  { %s5577_s20 = sld [smem:[%s6259_s0 + %s5438_s15]]   ;;  %s5442_s15 = smov 23  }
  0x21   :  { %s5587_s30 = sld [smem:[%s6259_s0 + %s5440_s28]]   ;;  %s5444_s28 = smov 25  }
  0x22   :  { %6297 = sst [smem:[#allocation47_spill]] %s5567_s4 }
  0x23   :  { %6298 = sst [smem:[#allocation48_spill]] %s5572_s17 }
  0x24   :  { %s5592_s24 = sld [smem:[%s6259_s0 + %s5441_s7]]   ;;  %s5445_s7 = smov 26  }
  0x25   :  { %s5602_s25 = sld [smem:[%s6259_s0 + %s5443_s22]]   ;;  %s5447_s22 = smov 28  }
  0x26   :  { %6299 = sst [smem:[#allocation49_spill]] %s5577_s20 }
  0x27   :  { %6300 = sst [smem:[#allocation50_spill]] %s5587_s30 }
  0x28   :  { %s5597_s20 = sld [smem:[%s6259_s0 + %s5442_s15]]   ;;  %s5446_s15 = smov 27  }
  0x29   :  { %s5607_s30 = sld [smem:[%s6259_s0 + %s5444_s28]]   ;;  %s5448_s28 = smov 29  }
  0x2a   :  { %6301 = sst [smem:[#allocation51_spill]] %s5592_s24 }
  0x2b   :  { %6303 = sst [smem:[#allocation53_spill]] %s5602_s25 }
  0x2c   :  { %s5612_s24 = sld [smem:[%s6259_s0 + %s5445_s7]]   ;;  %s5449_s7 = smov 30  }
  0x2d   :  { %s5622_s14 = sld [smem:[%s6259_s0 + %s5447_s22]]  }
  0x2e   :  { %6302 = sst [smem:[#allocation52_spill]] %s5597_s20 }
  0x2f   :  { %6304 = sst [smem:[#allocation54_spill]] %s5607_s30 }
  0x30   :  { %s5617_s20 = sld [smem:[%s6259_s0 + %s5446_s15]]  }
  0x31   :  { %s5627_s30 = sld [smem:[%s6259_s0 + %s5448_s28]]  }
  0x32   :  { %s5632_s4 = sld [smem:[%s6259_s0 + %s5449_s7]]  }
  0x33   :  { %6306 = sst [smem:[#allocation56_spill]] %s5622_s14 }
  0x36   :  { %6305 = sst [smem:[#allocation55_spill]] %s5617_s20 }
  0x37   :  { %6307 = sst [smem:[#allocation57_spill]] %s5627_s30 }
  0x38   :  { %6308 = sst [smem:[#allocation58_spill]] %s5632_s4 }
  0x39   :  { %66 = vsyncpa [#allocation7], 0 }
  0x3a   :  { %68 = vsyncpa [#allocation7 + $0x1], 0 }
  0x3b   :  { %69 = vsyncpa [#allocation10], 0 }
  0x3c   :  { %71 = vsyncpa [#allocation10 + $0x1], 0 }
  0x3d   :  { %72 = vsyncpa [#allocation13], 0 }
  0x3e   :  { %73 = vsyncpa [#allocation16], 0 }
  0x3f   :  { %74 = vsyncpa [#allocation19], 0 }
  0x40   :  { %75 = vsyncpa [#allocation22], 0 }
  0x41   :  { %76 = vsyncpa [#allocation25], 0 }
  0x42   :  { %77 = vsyncpa [#allocation8], 0 }
  0x43   :  { %79 = vsyncpa [#allocation8 + $0x1], 0  ;;  %s5634_s15 = smov 0   ;;  %s5636_s16 = smov 0  }
  0x44   :  { %s5638_s18 = smov 0   ;;  %s5640_s22 = smov 0  }
  0x45   :  { %s5642_s0 = smov 0   ;;  %s5644_s23 = smov 0  }
  0x46 LB: > { %s6309_s9 = sld [smem:[#allocation36_spill]]  ;;  %s5665_s26 = sadd.s32 4294967295, %s5418_s23   ;;  %s5398_s15 = sphi %s5634_s15, %s6377_s15   ;;  %s5418_s23 = sphi %s5644_s23, %s85_s23   ;;  %s5414_s0 = sphi %s5642_s0, %s6380_s0   ;;  %s5410_s22 = sphi %s5640_s22, %s6379_s22   ;;  %s5406_s18 = sphi %s5638_s18, %s6375_s18   ;;  %s5402_s16 = sphi %s5636_s16, %s6378_s16  }
  0x47   : > { %6310 = sst [smem:[#allocation59_spill]] %s5398_s15  ;;  %p4001_p0 = scmp.ge.s32.totalorder %s5418_s23, 1 }
  0x48   : > { %6311 = sst [smem:[#allocation60_spill]] %s5406_s18  ;;  %p6261_p1 = scmp.eq.s32.totalorder %s5665_s26, 0 }
  0x49   : > { %6312 = sst [smem:[#allocation61_spill]] %s5418_s23  ;;  %p782_p2 = scmp.lt.s32.totalorder %s5418_s23, 3 }
  0x4a   : > { %s5450_s1 = smov [#allocation12]   ;;  %s5451_s10 = smov [#allocation15]  }
  0x4b   : > { %p5670_p3 = pnand %p4001_p0, %p782_p2  ;;  %s794_s2 = sshll.u32 %s5450_s1, 4  ;;  %s795_s2 = int_to_ptr.vmem [resolvable:$true] %s794_s2 }
  0x4c   : > { %s826_s11 = sshll.u32 %s5451_s10, 4  ;;  %s5452_s4 = smov [#allocation18]   ;;  %s827_s11 = int_to_ptr.vmem [resolvable:$true] %s826_s11 }
  0x4d   : > { %s6313_s28 = scalar_select %p5670_p3, 1, 0 }
  0x4e   : > { %p4658_p4 = pneg %p5670_p3  ;;  %s864_s30 = sshll.u32 %s5452_s4, 4  ;;  %s865_s30 = int_to_ptr.vmem [resolvable:$true] %s864_s30 }
  0x4f   : > { %s4981_s1 = scalar_lea.vmem %s795_s2, 1024  ;;  %p4989_p11 = scmp.lt.s32.totalorder %s795_s2, %s795_s2 }
  0x50   : > { %p5679_p6 = pnand %p4658_p4, %p6261_p1  ;;  %p4982_p8 = scmp.ne.s32.totalorder %s795_s2, %s4981_s1 }
  0x51   : > { %p4990_p12 = scmp.lt.s32.totalorder %s4981_s1, %s4981_s1 }
  0x52   : > { %s6314_s7 = scalar_select %p5679_p6, 1, 0 }
  0x53   : > { %p5685_p7 = pneg %p5679_p6  ;;  %p4991_p13 = por %p4990_p12, %p4989_p11 }
  0x55   : > { %s6315_s14 = scalar_select %p5685_p7, 1, 0 }
  0x56   : > { %p4984_p9 = pnand %p4982_p8, %p5685_p7 }
  0x58   : > { %p4985_p10 = pneg %p4984_p9 }
  0x5a   : > { %p4992_p0 = pnand %p4991_p13, %p4985_p10 }
  0x5c   : > { %4995 = shalt.err (!%p4992_p0)
}
  0x5d   : > { %s6263_s10 = smov 64   ;;  %s6316_s21 = sld [smem:[#allocation38_spill]] }
  0x5e   : > { %s6265_s4 = smov 4   ;;  %s5007_s20 = scalar_lea.vmem %s827_s11, 1024 }
  0x5f   : > { %p5008_p2 = scmp.ne.s32.totalorder %s827_s11, %s5007_s20  ;;  %p5015_p9 = scmp.lt.s32.totalorder %s827_s11, %s827_s11 }
  0x60   : > { %p5016_p5 = scmp.lt.s32.totalorder %s5007_s20, %s5007_s20 }
  0x61   : > { %p5010_p4 = pnand %p5008_p2, %p5685_p7 }
  0x62   : > { %p5017_p11 = por %p5016_p5, %p5015_p9 }
  0x63   : > { %4661 = dma.hbm_to_vmem [thread:$0]  (!%p5679_p6), %s6316_s21, 1024, %s795_s2, [#allocation13], %s6263_s10, %s6263_s10, %s6265_s4  }
  0x64   : > { %p5011_p8 = pneg %p5010_p4 }
  0x66   : > { %p5018_p10 = pnand %p5017_p11, %p5011_p8 }
  0x68   : > { %5021 = shalt.err (!%p5018_p10)
}
  0x69   : > { %s6317_s8 = sld [smem:[#allocation40_spill]]  ;;  %s5033_s2 = scalar_lea.vmem %s865_s30, 1024 }
  0x6a   : > { %p5034_p12 = scmp.ne.s32.totalorder %s865_s30, %s5033_s2  ;;  %p5041_p2 = scmp.lt.s32.totalorder %s865_s30, %s865_s30 }
  0x6b   : > { %p5042_p4 = scmp.lt.s32.totalorder %s5033_s2, %s5033_s2 }
  0x6c   : > { %p5036_p13 = pnand %p5034_p12, %p5685_p7 }
  0x6d   : > { %p5043_p1 = por %p5042_p4, %p5041_p2 }
  0x6e   : > { %p5037_p0 = pneg %p5036_p13 }
  0x6f   : > { %4667 = dma.hbm_to_vmem [thread:$0]  (!%p5679_p6), %s6317_s8, 1024, %s827_s11, [#allocation16], %s6263_s10, %s6263_s10, %s6265_s4  }
  0x70   : > { %p5044_p5 = pnand %p5043_p1, %p5037_p0 }
  0x72   : > { %5047 = shalt.err (!%p5044_p5)
}
  0x73   : > { %s6318_s12 = sld [smem:[#allocation45_spill]]  ;;  %s5455_s20 = smov [#allocation21]  }
  0x74   : > { %s896_s11 = sshll.u32 %s5455_s20, 4  ;;  %s5456_s1 = smov [#allocation24]   ;;  %s897_s11 = int_to_ptr.vmem [resolvable:$true] %s896_s11 }
  0x75   : > { %s934_s8 = sshll.u32 %s5456_s1, 4  ;;  %s5059_s21 = scalar_lea.vmem %s897_s11, 1024  ;;  %s935_s8 = int_to_ptr.vmem [resolvable:$true] %s934_s8 }
  0x76   : > { %p5060_p8 = scmp.ne.s32.totalorder %s897_s11, %s5059_s21  ;;  %p5067_p1 = scmp.lt.s32.totalorder %s897_s11, %s897_s11 }
  0x77   : > { %p5068_p10 = scmp.lt.s32.totalorder %s5059_s21, %s5059_s21 }
  0x78   : > { %p5062_p9 = pnand %p5060_p8, %p5685_p7 }
  0x79   : > { %4673 = dma.hbm_to_vmem [thread:$0]  (!%p5679_p6), %s6318_s12, 1024, %s865_s30, [#allocation19], %s6263_s10, %s6263_s10, %s6265_s4  }
  0x7a   : > { %p5063_p11 = pneg %p5062_p9  ;;  %p5069_p12 = por %p5068_p10, %p5067_p1 }
  0x7c   : > { %p5070_p13 = pnand %p5069_p12, %p5063_p11 }
  0x7e   : > { %5073 = shalt.err (!%p5070_p13)
}
  0x7f   : > { %s6319_s17 = sld [smem:[#allocation48_spill]]  ;;  %s5085_s30 = scalar_lea.vmem %s935_s8, 2048 }
  0x80   : > { %p5086_p0 = scmp.ne.s32.totalorder %s935_s8, %s5085_s30  ;;  %p5093_p5 = scmp.lt.s32.totalorder %s935_s8, %s935_s8 }
  0x81   : > { %p5094_p8 = scmp.lt.s32.totalorder %s5085_s30, %s5085_s30 }
  0x82   : > { %p5088_p2 = pnand %p5086_p0, %p5685_p7 }
  0x83   : > { %p5095_p9 = por %p5094_p8, %p5093_p5 }
  0x84   : > { %p5089_p4 = pneg %p5088_p2 }
  0x85   : > { %4679 = dma.hbm_to_vmem [thread:$0]  (!%p5679_p6), %s6319_s17, 1024, %s897_s11, [#allocation22], %s6263_s10, %s6263_s10, %s6265_s4  }
  0x86   : > { %p5096_p1 = pnand %p5095_p9, %p5089_p4 }
  0x88   : > { %5099 = shalt.err (!%p5096_p1)
}
  0x89   : > { %s5457_s21 = smov 128   ;;  %s6320_s25 = sld [smem:[#allocation53_spill]] }
  0x8a   : > { %s5458_s2 = smov 8   ;;  %s4000_s20 = sadd.s32 4294967294, %s5418_s23  }
  0x8b   : > { %s97_s11 = sadd.s32 1, %s5414_s0  ;;  %s104_s1 = sadd.s32 1, %s5406_s18 }
  0x8c   : > { %p99_p11 = scmp.ge.s32.totalorder %s97_s11, 2  ;;  %p111_p10 = scmp.ne.s32.totalorder %s5406_s18, %s5402_s16 }
  0x8d   : > { %p112_p12 = scmp.eq.s32.totalorder %s5418_s23, 0  ;;  %p117_p13 = scmp.ne.s32.totalorder %s5402_s16, %s5398_s15 }
  0x8e   : > { %s6382_s11 = smov (%p99_p11, %s97_s11), 0  ;;  %p6322_p2 = scmp.eq.s32.totalorder %s5665_s26, 0 }
  0x8f   : > { %4685 = dma.hbm_to_vmem [thread:$0]  (!%p5679_p6), %s6320_s25, 2048, %s935_s8, [#allocation25], %s5457_s21, %s5457_s21, %s5458_s2  }
  0x90   : > { %6321 = sst [smem:[#allocation62_spill]] %s6382_s11  ;;  %p113_p0 = por %p112_p12, %p111_p10 }
  0x91   : > { %p5738_p4 = por %p6322_p2, %p117_p13  ;;  %s101_s8 = ssub.s32 %s5414_s0, %s6382_s11 }
  0x92   : > { %p769_p5 = scmp.eq.s32.totalorder %s5665_s26, 1  ;;  %p102_p8 = scmp.eq.s32.totalorder %s101_s8, 0 }
  0x93   : > { %s6323_s30 = scalar_select %p5738_p4, 1, 0 }
  0x94   : > { %p775_p9 = scmp.eq.s32.totalorder %s4000_s20, 1  ;;  %p5745_p1 = por %p769_p5, %p111_p10 }
  0x95   : > { %p4713_p3 = scmp.lt.s32.totalorder %s5418_s23, 2  ;;  %s5758_s4 = sand.u32 1, %s5406_s18  }
  0x96   : > { %s6324_s21 = scalar_select %p5745_p1, 1, 0 }
  0x97   : > { %s5751_s2 = scalar_select %p102_p8, %s5406_s18, %s104_s1  }
  0x98   : > { %6325 = sst [smem:[#allocation63_spill]] %s6324_s21  ;;  %p5753_p11 = por %p775_p9, %p117_p13 }
  0x99   : > { %6326 = sst [smem:[#allocation64_spill]] %s5751_s2  ;;  %p5760_p12 = pnand %p4713_p3, %p113_p0 }
  0x9a   : > { %s6327_s10 = scalar_select %p5753_p11, 1, 0 }
  0x9b   : > { %s6329_s12 = scalar_select %p5760_p12, 1, 0 }
  0x9c   : > { %6328 = sst [smem:[#allocation65_spill]] %s6327_s10  ;;  %s991_s20 = sand.u32 1, %s5418_s23  }
  0x9d   : > { %s4015_s8 = sshll.u32 %s5758_s4, 3  ;;  %s4183_s17 = sshll.u32 %s5414_s0, 7 }
  0x9e   : > { %s995_s25 = scalar_lea.vmem [#allocation9], %s4015_s8  ;;  %s5768_s11 = scalar_lea.hbm %s6309_s9, %s4183_s17 }
  0x9f   : > { %s1002_s1 = sshll.u32 %s995_s25, 4  ;;  %s5772_s2 = scalar_lea.sflag [#allocation10], %s991_s20  ;;  %s5770_s1 = int_to_ptr.vmem [resolvable:$true] %s1002_s1 }
  0xa0   : > { %s5100_s18 = scalar_lea.hbm %s5768_s11, 128  ;;  %p5778_p10 = pneg %p5760_p12 }
  0xa1   : > { %p5101_p3 = scmp.ne.s32.totalorder %s5768_s11, %s5100_s18  ;;  %s5105_s17 = scalar_lea.hbm %s6309_s9, 256 }
  0xa2   : > { %s6330_s10 = scalar_select %p5778_p10, 1, 0 }
  0xa3   : > { %p5103_p13 = pnand %p5778_p10, %p5101_p3  ;;  %p5106_p2 = scmp.lt.s32.totalorder %s5768_s11, %s6309_s9 }
  0xa4   : > { %p5107_p5 = scmp.lt.s32.totalorder %s5105_s17, %s5100_s18 }
  0xa5   : > { %p5104_p0 = pneg %p5103_p13 }
  0xa6   : > { %p5108_p8 = por %p5107_p5, %p5106_p2 }
  0xa8   : > { %p5109_p9 = pnand %p5108_p8, %p5104_p0 }
  0xaa   : > { %5112 = shalt.err (!%p5109_p9)
}
  0xab   : > { %s5113_s25 = scalar_lea.vmem %s5770_s1, 128  ;;  %s5459_s20 = smov [#allocation9]  }
  0xac   : > { %p5114_p11 = scmp.ne.s32.totalorder %s5770_s1, %s5113_s25  ;;  %s5118_s8 = sshll.u32 %s5459_s20, 4  ;;  %s5119_s8 = int_to_ptr.vmem [resolvable:$false] %s5118_s8 }
  0xad   : > { %s5120_s23 = scalar_lea.vmem %s5119_s8, 256  ;;  %p5121_p3 = scmp.lt.s32.totalorder %s5770_s1, %s5119_s8 }
  0xae   : > { %p5116_p1 = pnand %p5114_p11, %p5778_p10  ;;  %p5122_p13 = scmp.lt.s32.totalorder %s5120_s23, %s5113_s25 }
  0xb0   : > { %p5117_p4 = pneg %p5116_p1  ;;  %p5123_p6 = por %p5122_p13, %p5121_p3 }
  0xb2   : > { %p5124_p7 = pnand %p5123_p6, %p5117_p4 }
  0xb4   : > { %5127 = shalt.err (!%p5124_p7)
}
  0xb5   : > { %s6331_s18 = smov 4   ;;  %s6332_s17 = smov 64  }
  0xb6   : > { %4695 = dma.hbm_to_vmem [thread:$0]  (!%p5760_p12), %s5768_s11, 128, %s5770_s1, %s5772_s2, %s6332_s17, %s6332_s17, %s6331_s18  }
  0xb7   : > { %s5460_s9 = smov [#allocation14]   ;;  %s5461_s20 = smov [#allocation17]  }
  0xb8   : > { %s810_s15 = sshll.u32 %s5460_s9, 4  ;;  %s842_s21 = sshll.u32 %s5461_s20, 4  ;;  %s811_s15 = int_to_ptr.vmem [resolvable:$true] %s810_s15  ;;  %s843_s21 = int_to_ptr.vmem [resolvable:$true] %s842_s21 }
  0xb9   : > { %s5139_s23 = scalar_lea.vmem %s811_s15, 1024  ;;  %p6333_p6 = scmp.ne.s32.totalorder %s6315_s14, 0 }
  0xba   : > { %p5140_p1 = scmp.ne.s32.totalorder %s811_s15, %s5139_s23  ;;  %p5147_p11 = scmp.lt.s32.totalorder %s811_s15, %s811_s15 }
  0xbb   : > { %p5148_p0 = scmp.lt.s32.totalorder %s5139_s23, %s5139_s23 }
  0xbc   : > { %p5142_p7 = pnand %p5140_p1, %p6333_p6 }
  0xbd   : > { %p5149_p2 = por %p5148_p0, %p5147_p11 }
  0xbe   : > { %p5143_p4 = pneg %p5142_p7 }
  0xc0   : > { %p5150_p5 = pnand %p5149_p2, %p5143_p4 }
  0xc2   : > { %5153 = shalt.err (!%p5150_p5)
}
  0xc3   : > { %p6334_p8 = scmp.ne.s32.totalorder %s6314_s7, 0  ;;  %s5165_s9 = scalar_lea.vmem %s843_s21, 1024 }
  0xc4   : > { %p5166_p9 = scmp.ne.s32.totalorder %s843_s21, %s5165_s9  ;;  %p5173_p1 = scmp.lt.s32.totalorder %s843_s21, %s843_s21 }
  0xc5   : > { %4664 = dma.hbm_to_vmem [thread:$0]  (!%p6334_p8), %s5512_s29, 1024, %s811_s15, [#allocation13], %s6332_s17, %s6332_s17, %s6331_s18  }
  0xc6   : > { %p5168_p3 = pnand %p5166_p9, %p6333_p6  ;;  %p5174_p7 = scmp.lt.s32.totalorder %s5165_s9, %s5165_s9 }
  0xc8   : > { %p5169_p13 = pneg %p5168_p3  ;;  %p5175_p12 = por %p5174_p7, %p5173_p1 }
  0xca   : > { %p5176_p10 = pnand %p5175_p12, %p5169_p13 }
  0xcc   : > { %5179 = shalt.err (!%p5176_p10)
}
  0xcd   : > { %4670 = dma.hbm_to_vmem [thread:$0]  (!%p6334_p8), %s5532_s19, 1024, %s843_s21, [#allocation16], %s6332_s17, %s6332_s17, %s6331_s18  }
  0xce   : > { %s5462_s11 = smov [#allocation20]   ;;  %s5463_s1 = smov [#allocation23]  }
  0xcf   : > { %s880_s15 = sshll.u32 %s5462_s11, 4  ;;  %s912_s25 = sshll.u32 %s5463_s1, 4  ;;  %s881_s15 = int_to_ptr.vmem [resolvable:$true] %s880_s15  ;;  %s913_s25 = int_to_ptr.vmem [resolvable:$true] %s912_s25 }
  0xd0   : > { %s5191_s8 = scalar_lea.vmem %s881_s15, 1024  ;;  %p5199_p10 = scmp.lt.s32.totalorder %s881_s15, %s881_s15 }
  0xd1   : > { %p5192_p4 = scmp.ne.s32.totalorder %s881_s15, %s5191_s8  ;;  %p5200_p0 = scmp.lt.s32.totalorder %s5191_s8, %s5191_s8 }
  0xd3   : > { %p5194_p11 = pnand %p5192_p4, %p6333_p6  ;;  %p5201_p2 = por %p5200_p0, %p5199_p10 }
  0xd5   : > { %p5195_p12 = pneg %p5194_p11 }
  0xd7   : > { %p5202_p5 = pnand %p5201_p2, %p5195_p12 }
  0xd9   : > { %5205 = shalt.err (!%p5202_p5)
}
  0xda   : > { %4676 = dma.hbm_to_vmem [thread:$0]  (!%p6334_p8), %s5562_s27, 1024, %s881_s15, [#allocation19], %s6332_s17, %s6332_s17, %s6331_s18  }
  0xdb   : > { %s5217_s21 = scalar_lea.vmem %s913_s25, 1024  ;;  %p5225_p1 = scmp.lt.s32.totalorder %s913_s25, %s913_s25 }
  0xdc   : > { %p5218_p9 = scmp.ne.s32.totalorder %s913_s25, %s5217_s21  ;;  %p5226_p7 = scmp.lt.s32.totalorder %s5217_s21, %s5217_s21 }
  0xde   : > { %p5220_p3 = pnand %p5218_p9, %p6333_p6  ;;  %p5227_p4 = por %p5226_p7, %p5225_p1 }
  0xe0   : > { %p5221_p13 = pneg %p5220_p3 }
  0xe2   : > { %p5228_p11 = pnand %p5227_p4, %p5221_p13 }
  0xe4   : > { %5231 = shalt.err (!%p5228_p11)
}
  0xe5   : > { %4682 = dma.hbm_to_vmem [thread:$0]  (!%p6334_p8), %s5582_s6, 1024, %s913_s25, [#allocation22], %s6332_s17, %s6332_s17, %s6331_s18  }
  0xe6   : > { %s5464_s20 = smov [#allocation26]   ;;  %s4013_s9 = sshll.u32 %s5758_s4, 2 }
  0xe7   : > { %s950_s23 = sshll.u32 %s5464_s20, 4  ;;  %s951_s23 = int_to_ptr.vmem [resolvable:$true] %s950_s23 }
  0xe8   : > { %s5243_s11 = scalar_lea.vmem %s951_s23, 2048  ;;  %p5251_p2 = scmp.lt.s32.totalorder %s951_s23, %s951_s23 }
  0xe9   : > { %p5244_p12 = scmp.ne.s32.totalorder %s951_s23, %s5243_s11  ;;  %p5252_p5 = scmp.lt.s32.totalorder %s5243_s11, %s5243_s11 }
  0xeb   : > { %p5246_p10 = pnand %p5244_p12, %p6333_p6  ;;  %p5253_p9 = por %p5252_p5, %p5251_p2 }
  0xed   : > { %p5247_p0 = pneg %p5246_p10 }
  0xef   : > { %p5254_p3 = pnand %p5253_p9, %p5247_p0 }
  0xf1   : > { %5257 = shalt.err (!%p5254_p3)
}
  0xf2   : > { %4688 = dma.hbm_to_vmem [thread:$0]  (!%p6334_p8), %s5612_s24, 2048, %s951_s23, [#allocation25], %s6332_s17, %s6332_s17, %s6331_s18  }
  0xf3   : > { %s4014_s14 = sshll.u32 %s5414_s0, 6  ;;  %s977_s15 = scalar_lea.vmem [#allocation6], %s4013_s9 }
  0xf4   : > { %s984_s1 = sshll.u32 %s977_s15, 4  ;;  %s982_s25 = scalar_lea.hbm %s5482_s5, %s4014_s14  ;;  %s985_s1 = int_to_ptr.vmem [resolvable:$true] %s984_s1 }
  0xf5   : > { %s974_s7 = scalar_lea.sflag [#allocation7], %s5758_s4  ;;  %s5258_s8 = scalar_lea.hbm %s982_s25, 64 }
  0xf6   : > { %p5259_p6 = scmp.ne.s32.totalorder %s982_s25, %s5258_s8  ;;  %p6335_p13 = scmp.ne.s32.totalorder %s6330_s10, 0 }
  0xf7   : > { %s5263_s21 = scalar_lea.hbm %s5482_s5, 128  ;;  %p5264_p4 = scmp.lt.s32.totalorder %s982_s25, %s5482_s5 }
  0xf8   : > { %p5261_p1 = pnand %p5259_p6, %p6335_p13  ;;  %p5265_p11 = scmp.lt.s32.totalorder %s5263_s21, %s5258_s8 }
  0xfa   : > { %p5262_p7 = pneg %p5261_p1  ;;  %p5266_p12 = por %p5265_p11, %p5264_p4 }
  0xfc   : > { %p5267_p10 = pnand %p5266_p12, %p5262_p7 }
  0xfe   : > { %5270 = shalt.err (!%p5267_p10)
}
  0xff   : > { %s5271_s18 = scalar_lea.vmem %s985_s1, 64  ;;  %s5465_s17 = smov [#allocation6]  }
 0x100   : > { %p5272_p8 = scmp.ne.s32.totalorder %s985_s1, %s5271_s18  ;;  %s5276_s20 = sshll.u32 %s5465_s17, 4  ;;  %s5277_s20 = int_to_ptr.vmem [resolvable:$false] %s5276_s20 }
 0x101   : > { %s5278_s23 = scalar_lea.vmem %s5277_s20, 128  ;;  %p5279_p5 = scmp.lt.s32.totalorder %s985_s1, %s5277_s20 }
 0x102   : > { %p5274_p0 = pnand %p5272_p8, %p6335_p13  ;;  %p5280_p9 = scmp.lt.s32.totalorder %s5278_s23, %s5271_s18 }
 0x104   : > { %p5275_p2 = pneg %p5274_p0  ;;  %p5281_p3 = por %p5280_p9, %p5279_p5 }
 0x106   : > { %p5282_p6 = pnand %p5281_p3, %p5275_p2 }
 0x108   : > { %5285 = shalt.err (!%p5282_p6)
}
 0x109   : > { %p6336_p1 = scmp.ne.s32.totalorder %s6329_s12, 0  ;;  %s1022_s11 = scalar_lea.hbm %s5492_s13, %s4014_s14 }
 0x10a   : > { %s1016_s15 = scalar_lea.vmem [#allocation11], %s4013_s9  ;;  %s5286_s21 = scalar_lea.hbm %s1022_s11, 64 }
 0x10b   : > { %4692 = dma.hbm_to_vmem [thread:$0]  (!%p6336_p1), %s982_s25, 64, %s985_s1, %s974_s7  }
 0x10c   : > { %s1024_s8 = sshll.u32 %s1016_s15, 4  ;;  %p5287_p7 = scmp.ne.s32.totalorder %s1022_s11, %s5286_s21  ;;  %s1025_s8 = int_to_ptr.vmem [resolvable:$true] %s1024_s8 }
 0x10d   : > { %s5291_s18 = scalar_lea.hbm %s5492_s13, 128  ;;  %p5292_p12 = scmp.lt.s32.totalorder %s1022_s11, %s5492_s13 }
 0x10e   : > { %p5289_p4 = pnand %p5287_p7, %p6335_p13  ;;  %p5293_p10 = scmp.lt.s32.totalorder %s5291_s18, %s5286_s21 }
 0x110   : > { %p5290_p11 = pneg %p5289_p4  ;;  %p5294_p8 = por %p5293_p10, %p5292_p12 }
 0x112   : > { %p5295_p0 = pnand %p5294_p8, %p5290_p11 }
 0x114   : > { %5298 = shalt.err (!%p5295_p0)
}
 0x115   : > { %s5299_s17 = scalar_lea.vmem %s1025_s8, 64  ;;  %s5466_s4 = smov [#allocation11]  }
 0x116   : > { %p5300_p2 = scmp.ne.s32.totalorder %s1025_s8, %s5299_s17  ;;  %s5304_s9 = sshll.u32 %s5466_s4, 4  ;;  %s5305_s9 = int_to_ptr.vmem [resolvable:$false] %s5304_s9 }
 0x117   : > { %s5306_s14 = scalar_lea.vmem %s5305_s9, 128  ;;  %p5307_p3 = scmp.lt.s32.totalorder %s1025_s8, %s5305_s9 }
 0x118   : > { %p5302_p5 = pnand %p5300_p2, %p6335_p13  ;;  %p5308_p6 = scmp.lt.s32.totalorder %s5306_s14, %s5299_s17 }
 0x11a   : > { %p5303_p9 = pneg %p5302_p5  ;;  %p5309_p7 = por %p5308_p6, %p5307_p3 }
 0x11c   : > { %p5310_p4 = pnand %p5309_p7, %p5303_p9 }
 0x11e   : > { %5313 = shalt.err (!%p5310_p4)
}
 0x11f   : > { %4698 = dma.hbm_to_vmem [thread:$0]  (!%p6336_p1), %s1022_s11, 64, %s1025_s8, %s5772_s2  }
 0x120   : > { %p6337_p11 = scmp.ne.s32.totalorder %s6313_s28, 0 }
 0x121   : > { %s5873_s10 = sand.u32 (!%p6337_p11), 1, %s5402_s16   ;;  %p6338_p13 = scmp.ne.s32.totalorder (!%p6337_p11), %s6323_s30, 0 }
 0x122   : > { %1039 = sbr.rel (%p6337_p11) target bundleno = 7446 (0x1d16), region = 140  ;;  %s4021_s1 = sshll.u32 (!%p6337_p11), %s5873_s10, 2 }
 0x123   : > { %s1042_s25 = scalar_lea.sflag (!%p6337_p11), [#allocation7], %s5873_s10  ;;  %s5877_s7 = scalar_lea.vmem (!%p6337_p11), [#allocation6], %s4021_s1 }
 0x127   : > { %5365 = dma.done.wait (%p6338_p13), %s1042_s25, 64  }
 0x128   : > { %5367 = vsyncadd (%p6338_p13), %s1042_s25, 4294967232  ;;  %s1050_s12 = sand.u32 1, %s5665_s26   ;;  %s4022_s28 = sshll.u32 %s5873_s10, 3 }
 0x129   : > { %s1051_s2 = scalar_lea.sflag [#allocation10], %s1050_s12  ;;  %s5887_s20 = scalar_lea.vmem [#allocation9], %s4022_s28 }
 0x12a   : > { %5369 = dma.done.wait (%p6338_p13), %s1051_s2, 192  }
 0x12b   : > { %5371 = vsyncadd (%p6338_p13), %s1051_s2, 4294967104  ;;  %s5893_s23 = scalar_lea.vmem [#allocation11], %s4021_s1  ;;  %p6339_p1 = scmp.eq.s32.totalorder %s5665_s26, 0 }
 0x12d   : > { %5373 = dma.done.wait (%p6339_p1), [#allocation13], 2048   ;;  %p6340_p12 = pmov %p6339_p1 }
 0x12e   : > { %p6341_p10 = pmov %p6339_p1 }
 0x12f   : > { %5375 = vsyncadd (%p6340_p12), [#allocation13], 4294965248 }
 0x130   : > { %5377 = dma.done.wait (%p6341_p10), [#allocation16], 2048   ;;  %p6342_p8 = pmov %p6339_p1 }
 0x131   : > { %p6343_p0 = pmov %p6339_p1 }
 0x132   : > { %5379 = vsyncadd (%p6342_p8), [#allocation16], 4294965248 }
 0x133   : > { %5381 = dma.done.wait (%p6343_p0), [#allocation19], 2048   ;;  %p6344_p2 = pmov %p6343_p0 }
 0x134   : > { %p6345_p5 = pmov %p6343_p0 }
 0x135   : > { %5383 = vsyncadd (%p6344_p2), [#allocation19], 4294965248 }
 0x136   : > { %5385 = dma.done.wait (%p6345_p5), [#allocation22], 2048   ;;  %p6346_p9 = pmov %p6343_p0 }
 0x137   : > { %p6347_p3 = pmov %p6343_p0 }
 0x138   : > { %5387 = vsyncadd (%p6346_p9), [#allocation22], 4294965248 }
 0x139   : > { %5389 = dma.done.wait (%p6347_p3), [#allocation25], 4096   ;;  %p6348_p6 = pmov %p6343_p0 }
 0x13a   : > { %v5467_v0 = vmov 0.0   ;;  %vm5468_vm0 = vmmov 0   ;;  %v4823_v1 = vld [vmem:[#allocation14 + $0x38] sm:$0xff]   ;;  %v4824_v2 = vld [vmem:[#allocation14 + $0x30] sm:$0xff]   ;;  %v4825_v3 = vld [vmem:[#allocation14 + $0x28] sm:$0xff]   ;;  %s6349_s26 = sld [smem:[#allocation47_spill]] }
 0x13b   : > { %5391 = vsyncadd (%p6348_p6), [#allocation25], 4294963200  ;;  %4330 = vmatprep.subr.bf16.mxu0 %v5467_v0  ;;  %4346 = vmatprep.mubr.msk.bf16.mxu0 %vm5468_vm0, %v5467_v0  ;;  %v4826_v4 = vld [vmem:[#allocation14 + $0x20] sm:$0xff]   ;;  %v4827_v5 = vld [vmem:[#allocation14 + $0x18] sm:$0xff]   ;;  %vm1806_vm1 = vcmask 261120   ;;  %s6350_s30 = sld [smem:[#allocation41_spill]] }
 0x13c   : > { %4350 = vmatprep.subr.bf16.mxu1 %v5467_v0  ;;  %4366 = vmatprep.mubr.msk.bf16.mxu1 %vm5468_vm0, %v5467_v0  ;;  %v4828_v6 = vld [vmem:[#allocation14 + $0x10] sm:$0xff]   ;;  %v4829_v7 = vld [vmem:[#allocation14 + $0x8] sm:$0xff]   ;;  %v4830_v8 = vld [vmem:[#allocation14] sm:$0xff]   ;;  %s5469_s11 = smov 96   ;;  %s6351_s15 = sld [smem:[#allocation39_spill]]  ;;  %vm1869_vm2 = vcmask 1043456  }
 0x13d   : > { %4331 = vmatpush3.bf16.msra.mxu0 %v4823_v1  ;;  %v4848_v9 = vld [vmem:[#allocation15 + $0x38] sm:$0xff]   ;;  %v4849_v10 = vld [vmem:[#allocation15 + $0x30] sm:$0xff]   ;;  %v1202_v11 = vld [vmem:[%s5877_s7] sm:$0xf]  ;;  %s6352_s8 = sld [smem:[#allocation49_spill]]  ;;  %vm1853_vm3 = vcmask 64512  }
 0x13e   : > { %4332 = vmatprep.subr.bf16.mxu0 %v5467_v0  ;;  %4351 = vmatpush3.bf16.msra.mxu1 %v4848_v9  ;;  %v4831_v12 = vld [vmem:[#allocation20 + $0x38] sm:$0xff]   ;;  %v4850_v13 = vld [vmem:[#allocation15 + $0x28] sm:$0xff]   ;;  %v4832_v14 = vld [vmem:[#allocation20 + $0x30] sm:$0xff]   ;;  %s5470_s21 = smov 64   ;;  %s5471_s18 = smov 32   ;;  %vm2702_vm4 = vcmask 130048  }
 0x13f   : > { %4352 = vmatprep.subr.bf16.mxu1 %v5467_v0  ;;  %v4851_v15 = vld [vmem:[#allocation15 + $0x20] sm:$0xff]   ;;  %v4833_v16 = vld [vmem:[#allocation20 + $0x28] sm:$0xff]   ;;  %v4852_v17 = vld [vmem:[#allocation15 + $0x18] sm:$0xff]   ;;  %s6353_s17 = sld [smem:[#allocation42_spill]]  ;;  %p1193_p7 = scmp.lt.s32.totalorder %s5410_s22, 1 }
 0x140   : > { %v4834_v18 = vld [vmem:[#allocation20 + $0x20] sm:$0xff]   ;;  %v4853_v19 = vld [vmem:[#allocation15 + $0x10] sm:$0xff]   ;;  %v4835_v20 = vld [vmem:[#allocation20 + $0x18] sm:$0xff]   ;;  %s6354_s4 = sld [smem:[#allocation43_spill]] }
 0x141   : > { %4333 = vmatpush3.bf16.msra.mxu0 %v4824_v2  ;;  %v4854_v21 = vld [vmem:[#allocation15 + $0x8] sm:$0xff]   ;;  %v4836_v22 = vld [vmem:[#allocation20 + $0x10] sm:$0xff]   ;;  %v4855_v23 = vld [vmem:[#allocation15] sm:$0xff]   ;;  %s6355_s9 = sld [smem:[#allocation44_spill]] }
 0x142   : > { %4334 = vmatprep.subr.bf16.mxu0 %v5467_v0  ;;  %4353 = vmatpush3.bf16.msra.mxu1 %v4849_v10  ;;  %v4837_v24 = vld [vmem:[#allocation20 + $0x8] sm:$0xff]   ;;  %v4856_v25 = vld [vmem:[#allocation21 + $0x38] sm:$0xff]   ;;  %v4838_v26 = vld [vmem:[#allocation20] sm:$0xff]   ;;  %s6356_s14 = sld [smem:[#allocation46_spill]] }
 0x143   : > { %4354 = vmatprep.subr.bf16.mxu1 %v5467_v0  ;;  %v4857_v27 = vld [vmem:[#allocation21 + $0x30] sm:$0xff]   ;;  %v4840_v29 = vld [vmem:[#allocation12 + $0x38] sm:$0xff]   ;;  %v4858_v30 = vld [vmem:[#allocation21 + $0x28] sm:$0xff]   ;;  %s6357_s1 = sld [smem:[#allocation37_spill]] }
 0x144   : > { %v4839_v28 = vld [vmem:[%s5887_s20] sm:$0xff]   ;;  %v4859_v32 = vld [vmem:[#allocation21 + $0x20] sm:$0xff]   ;;  %v4860_v34 = vld [vmem:[#allocation21 + $0x18] sm:$0xff]   ;;  %s1194_s25 = scalar_select %p1193_p7, %s5410_s22, 1 }
 0x145   : > { %4335 = vmatpush3.bf16.msra.mxu0 %v4825_v3  ;;  %v4841_v31 = vld [vmem:[#allocation12 + $0x30] sm:$0xff]   ;;  %v4842_v33 = vld [vmem:[#allocation12 + $0x28] sm:$0xff]   ;;  %v4843_v35 = vld [vmem:[#allocation12 + $0x20] sm:$0xff]   ;;  %s6358_s12 = sld [smem:[#allocation50_spill]] }
 0x146   : > { %4336 = vmatprep.subr.bf16.mxu0 %v5467_v0  ;;  %4355 = vmatpush3.bf16.msra.mxu1 %v4850_v13  ;;  %v4844_v36 = vld [vmem:[#allocation12 + $0x18] sm:$0xff]   ;;  %v4845_v37 = vld [vmem:[#allocation12 + $0x10] sm:$0xff]   ;;  %v4846_v38 = vld [vmem:[#allocation12 + $0x8] sm:$0xff]   ;;  %s6359_s2 = sld [smem:[#allocation51_spill]] }
 0x147   : > { %4356 = vmatprep.subr.bf16.mxu1 %v5467_v0  ;;  %v4847_v39 = vld [vmem:[#allocation12] sm:$0xff]   ;;  %v4861_v41 = vld [vmem:[#allocation21 + $0x10] sm:$0xff]   ;;  %v4862_v42 = vld [vmem:[#allocation21 + $0x8] sm:$0xff]   ;;  %s6360_s20 = sld [smem:[#allocation52_spill]] }
 0x148   : > { %v5966_v40 = vld [vmem:[%s5877_s7] sm:$0xf]  ;;  %v4035_v44 = vld [vmem:[%s5517_s3] ss:$0 sm:$0xff] }
 0x149   : > { %4337 = vmatpush3.bf16.msra.mxu0 %v4826_v4  ;;  %v4863_v43 = vld [vmem:[#allocation21] sm:$0xff]   ;;  %v4053_v55 = vld [vmem:[%s6349_s26] ss:$0 sm:$0xff]  ;;  %s1195_s7 = scalar_lea.vmem %s6357_s1, %s1194_s25  ;;  %s6362_s26 = sld [smem:[#allocation55_spill]] }
 0x14a   : > { %4338 = vmatprep.subr.bf16.mxu0 %v5467_v0  ;;  %4357 = vmatpush3.bf16.msra.mxu1 %v4851_v15  ;;  %v4044_v62 = vld [vmem:[%s6350_s30] ss:$0 sm:$0xff]  ;;  %s6363_s30 = sld [smem:[#allocation56_spill]]  ;;  %s5473_s25 = smov [#allocation27]  }
 0x14b   : > { %4358 = vmatprep.subr.bf16.mxu1 %v5467_v0 }
 0x14d   : > { %4339 = vmatpush3.bf16.msra.mxu0 %v4827_v5  ;;  %v4076_v5 = vld [vmem:[%s6351_s15] ss:$0 sm:$0xff]  ;;  %s6365_s15 = sld [smem:[#allocation58_spill]] }
 0x14e   : > { %4340 = vmatprep.subr.bf16.mxu0 %v5467_v0  ;;  %4359 = vmatpush3.bf16.msra.mxu1 %v4852_v17 }
 0x14f   : > { %4360 = vmatprep.subr.bf16.mxu1 %v5467_v0 }
 0x151   : > { %4341 = vmatpush3.bf16.msra.mxu0 %v4828_v6 }
 0x152   : > { %4342 = vmatprep.subr.bf16.mxu0 %v5467_v0  ;;  %4361 = vmatpush3.bf16.msra.mxu1 %v4853_v19 }
 0x153   : > { %4362 = vmatprep.subr.bf16.mxu1 %v5467_v0 }
 0x155   : > { %4343 = vmatpush3.bf16.msra.mxu0 %v4829_v7 }
 0x156   : > { %4344 = vmatprep.subr.bf16.mxu0 %v5467_v0  ;;  %4363 = vmatpush3.bf16.msra.mxu1 %v4854_v21 }
 0x157   : > { %4364 = vmatprep.subr.bf16.mxu1 %v5467_v0 }
 0x159   : > { %4345 = vmatpush3.bf16.msra.mxu0 %v4830_v8 }
 0x15a   : > { %4370 = vmatprep.subr.bf16.mxu0 %v5467_v0  ;;  %4365 = vmatpush3.bf16.msra.mxu1 %v4855_v23 }
 0x15b   : > { %4390 = vmatprep.subr.bf16.mxu1 %v5467_v0 }
 0x15c   : > { %4347 = vmatmul.mubr.bf16.vlgmr.msra.gmra.mxu0 %v1202_v11 }
 0x15d   : > { %4371 = vmatpush3.bf16.msra.mxu0 %v4831_v12  ;;  %4386 = vmatprep.mubr.msk.bf16.mxu0 %vm5468_vm0, %v5467_v0 }
 0x15e   : > { %4372 = vmatprep.subr.bf16.mxu0 %v5467_v0  ;;  %4367 = vmatmul.mubr.bf16.vlgmr.msra.gmra.mxu1 %v1202_v11 }
 0x15f   : > { %4391 = vmatpush3.bf16.msra.mxu1 %v4856_v25  ;;  %4406 = vmatprep.mubr.msk.bf16.mxu1 %vm5468_vm0, %v5467_v0 }
 0x160   : > { %4392 = vmatprep.subr.bf16.mxu1 %v5467_v0 }
 0x161   : > { %4373 = vmatpush3.bf16.msra.mxu0 %v4832_v14 }
 0x162   : > { %4374 = vmatprep.subr.bf16.mxu0 %v5467_v0 }
 0x163   : > { %4393 = vmatpush3.bf16.msra.mxu1 %v4857_v27 }
 0x164   : > { %4394 = vmatprep.subr.bf16.mxu1 %v5467_v0 }
 0x165   : > { %4375 = vmatpush3.bf16.msra.mxu0 %v4833_v16  ;;  %v4065_v16 = vld [vmem:[%s6352_s8] ss:$0 sm:$0xff]  ;;  %s6366_s8 = smov %s6365_s15 }
 0x166   : > { %4376 = vmatprep.subr.bf16.mxu0 %v5467_v0 }
 0x167   : > { %4395 = vmatpush3.bf16.msra.mxu1 %v4858_v30 }
 0x168   : > { %4396 = vmatprep.subr.bf16.mxu1 %v5467_v0 }
 0x169   : > { %4377 = vmatpush3.bf16.msra.mxu0 %v4834_v18 }
 0x16a   : > { %4378 = vmatprep.subr.bf16.mxu0 %v5467_v0 }
 0x16b   : > { %4397 = vmatpush3.bf16.msra.mxu1 %v4859_v32 }
 0x16c   : > { %4398 = vmatprep.subr.bf16.mxu1 %v5467_v0 }
 0x16d   : > { %4379 = vmatpush3.bf16.msra.mxu0 %v4835_v20 }
 0x16e   : > { %4380 = vmatprep.subr.bf16.mxu0 %v5467_v0 }
 0x16f   : > { %4399 = vmatpush3.bf16.msra.mxu1 %v4860_v34 }
 0x170   : > { %4400 = vmatprep.subr.bf16.mxu1 %v5467_v0 }
 0x171   : > { %4381 = vmatpush3.bf16.msra.mxu0 %v4836_v22 }
 0x172   : > { %4382 = vmatprep.subr.bf16.mxu0 %v5467_v0 }
 0x173   : > { %4401 = vmatpush3.bf16.msra.mxu1 %v4861_v41 }
 0x174   : > { %4402 = vmatprep.subr.bf16.mxu1 %v5467_v0 }
 0x175   : > { %4383 = vmatpush3.bf16.msra.mxu0 %v4837_v24  ;;  %v1687_v24 = vld [vmem:[%s5893_s23] sm:$0xf]  ;;  %s6361_s23 = sld [smem:[#allocation54_spill]] }
 0x176   : > { %4384 = vmatprep.subr.bf16.mxu0 %v5467_v0  ;;  %v5999_v25 = vunpack.c.l.bf16 %v1687_v24 }
 0x177   : > { %4403 = vmatpush3.bf16.msra.mxu1 %v4862_v42 }
 0x178   : > { %4404 = vmatprep.subr.bf16.mxu1 %v5467_v0 }
 0x179   : > { %4385 = vmatpush3.bf16.msra.mxu0 %v4838_v26 }
 0x17a   : > { %4410 = vmatprep.subr.bf16.mxu0 %v5467_v0 }
 0x17b   : > { %4405 = vmatpush3.bf16.msra.mxu1 %v4863_v43 }
 0x17c   : > { %4387 = vmatmul.mubr.bf16.vlgmr.msra.gmra.mxu0 %v4839_v28  ;;  %4430 = vmatprep.subr.bf16.mxu1 %v5467_v0 }
 0x17d   : > { %4411 = vmatpush3.bf16.msra.mxu0 %v4840_v29  ;;  %4426 = vmatprep.mubr.msk.bf16.mxu0 %vm5468_vm0, %v5467_v0 }
 0x17e   : > { %4412 = vmatprep.subr.bf16.mxu0 %v5467_v0  ;;  %4407 = vmatmul.mubr.bf16.vlgmr.msra.gmra.mxu1 %v4839_v28 }
 0x17f   : > { %4432 = vmatprep.mubr.msk.bf16.mxu1 %vm5468_vm0, %v5467_v0 }
 0x181   : > { %4413 = vmatpush3.bf16.msra.mxu0 %v4841_v31 }
 0x182   : > { %4414 = vmatprep.subr.bf16.mxu0 %v5467_v0 }
 0x185   : > { %4415 = vmatpush3.bf16.msra.mxu0 %v4842_v33 }
 0x186   : > { %4416 = vmatprep.subr.bf16.mxu0 %v5467_v0 }
 0x189   : > { %4417 = vmatpush3.bf16.msra.mxu0 %v4843_v35 }
 0x18a   : > { %4418 = vmatprep.subr.bf16.mxu0 %v5467_v0 }
 0x18d   : > { %4419 = vmatpush3.bf16.msra.mxu0 %v4844_v36 }
 0x18e   : > { %4420 = vmatprep.subr.bf16.mxu0 %v5467_v0 }
 0x191   : > { %4421 = vmatpush3.bf16.msra.mxu0 %v4845_v37 }
 0x192   : > { %4422 = vmatprep.subr.bf16.mxu0 %v5467_v0 }
 0x195   : > { %4423 = vmatpush3.bf16.msra.mxu0 %v4846_v38 }
 0x196   : > { %4424 = vmatprep.subr.bf16.mxu0 %v5467_v0 }
 0x199   : > { %4425 = vmatpush3.bf16.msra.mxu0 %v4847_v39 }
 0x19a   : > { %4454 = vmatprep.subr.bf16.mxu0 %v5467_v0 }
 0x19c   : > { %4427 = vmatmul.mubr.bf16.vlgmr.msra.gmra.mxu0 %v5966_v40 }
 0x19d   : > { %4458 = vmatprep.mubr.msk.bf16.mxu0 %vm5468_vm0, %v5467_v0 }
 0x21c   : > { %v1310_v45 = vpop.f32.mrf.mxu0 }
 0x21d   : > { %v1311_v46 = vadd.f32 %v4035_v44, %v1310_v45 }
 0x21e   : > { %v4348_v47 = vpop.f32.mrf.mxu0  ;;  %v1423_v63 = vpop.f32.mrf.mxu1 }
 0x21f   : > { %v1316_v48 = vpack.c.bf16 %v1311_v46, %v1311_v46  ;;  %v1424_v1 = vadd.f32 %v4044_v62, %v1423_v63 }
 0x220   : > { %v1313_v49 = vpop.f32.mrf.mxu0  ;;  %v4368_v2 = vpop.f32.mrf.mxu1 }
 0x221   : > { %1317 = vst [vmem:[#allocation2] sm:$0xf] %v1316_v48  ;;  %v1429_v3 = vpack.c.bf16 %v1424_v1, %v1424_v1  ;;  %v4868_v1 = vld [vmem:[#allocation17 + $0x18] sm:$0xff]   ;;  %v4869_v2 = vld [vmem:[#allocation17 + $0x10] sm:$0xff]  }
 0x222   : > { %v4349_v50 = vpop.f32.mrf.mxu0  ;;  %v1426_v4 = vpop.f32.mrf.mxu1  ;;  %4455 = vmatpush3.bf16.msra.mxu0 %v4868_v1 }
 0x223   : > { %1430 = vst [vmem:[#allocation3] sm:$0xf] %v1429_v3  ;;  %4456 = vmatprep.subr.bf16.mxu0 %v5467_v0 }
 0x224   : > { %v4369_v6 = vpop.f32.mrf.mxu1 }
 0x225   : > { %v4866_v6 = vld [vmem:[#allocation17 + $0x8] sm:$0xff]  }
 0x226   : > { %4457 = vmatpush3.bf16.msra.mxu0 %v4869_v2 }
 0x227   : > { %4470 = vmatprep.subr.bf16.mxu0 %v5467_v0 }
 0x228   : > { %v1803_v51 = vld [vmem:[#allocation2] sm:$0xf] }
 0x229   : > { %v1811_v52 = vsel %vm1806_vm1, %v1803_v51, 0  ;;  %v5979_v53 = vcombine.low %v1803_v51, %v1803_v51 }
 0x22a   : > { %4431 = vmatpush3.bf16.xpose.msra.mxu1 %v1811_v52  ;;  %v1804_v13 = vld [vmem:[#allocation3] sm:$0xf] }
 0x22b   : > { %1924 = vrot.lane.b32.xlu1 %v5979_v53, %s5469_s11  ;;  %4436 = vmatprep.subr.bf16.mxu1 %v5467_v0  ;;  %v1871_v15 = vsel %vm1869_vm2, %v1804_v13, 0 }
 0x23c   : > { %v1542_v54 = vpop.f32.mrf.mxu0 }
 0x23d   : > { %v1543_v58 = vadd.f32 %v4053_v55, %v1542_v54 }
 0x23e   : > { %v4388_v56 = vpop.f32.mrf.mxu0  ;;  %v1664_v17 = vpop.f32.mrf.mxu1 }
 0x23f   : > { %v1665_v19 = vadd.f32 %v4065_v16, %v1664_v17  ;;  %v6014_v56 = vcombine.low %v1804_v13, %v1804_v13 }
 0x240   : > { %v1545_v57 = vpop.f32.mrf.mxu0  ;;  %v4408_v18 = vpop.f32.mrf.mxu1 }
 0x241   : > { %v1546_v59 = vadd.f32 %v4053_v55, %v1545_v57 }
 0x242   : > { %v4389_v60 = vpop.f32.mrf.mxu0  ;;  %v1667_v20 = vpop.f32.mrf.mxu1 }
 0x243   : > { %v4191_v61 = vpack.c.bf16 %v1546_v59, %v1543_v58  ;;  %v1668_v21 = vadd.f32 %v4065_v16, %v1667_v20 }
 0x244   : > { %v4409_v22 = vpop.f32.mrf.mxu1 }
 0x245   : > { %4192 = vst [vmem:[#allocation4] sm:$0xff] %v4191_v61   ;;  %v4196_v23 = vpack.c.bf16 %v1668_v21, %v1665_v19 }
 0x247   : > { %4197 = vst [vmem:[#allocation5] sm:$0xff] %v4196_v23  }
 0x25c   : > { %v1796_v7 = vpop.f32.mrf.mxu0 }
 0x25d   : > { %v1797_v8 = vadd.f32 %v4076_v5, %v1796_v7 }
 0x25e   : > { %v4428_v9 = vpop.f32.mrf.mxu0 }
 0x25f   : > { %v1802_v10 = vmul.f32 0.17677669, %v1797_v8  ;;  %v4867_v8 = vld [vmem:[#allocation17] sm:$0xff]  }
 0x260   : > { %v1799_v11 = vpop.f32.mrf.mxu0 }
 0x261   : > { %v5987_v12 = vpack.c.bf16 %v1802_v10, %v1802_v10 }
 0x262   : > { %v4429_v14 = vpop.f32.mrf.mxu0 }
 0x263   : > { %1919 = vrot.lane.b32.xlu1 %v5987_v12, %s5469_s11  ;;  %4433 = vmatmul.mubr.msk.bf16.vlgmr.msra.gmra.mxu1 %vm1806_vm1, %v5987_v12 }
 0x264   : > { %4437 = vmatpush3.bf16.msra.mxu1 %v1871_v15  ;;  %4438 = vmatprep.mubr.msk.bf16.mxu1 %vm5468_vm0, %v5467_v0 }
 0x265   : > { %4442 = vmatprep.subr.bf16.mxu1 %v5467_v0 }
 0x29d   : > { %v1925_v41 = vpop.permute.xlu1 %1924 }
 0x29e   : > { %v1930_v43 = vsel %vm1806_vm1, %v1925_v41, 0 }
 0x2d5   : > { %v1920_v44 = vpop.permute.xlu1 %1919 }
 0x323   : > { %v1847_v26 = vpop.f32.mrf.mxu1 }
 0x324   : > { %v1848_v27 = vadd.f32 %v1847_v26, %v5999_v25 }
 0x325   : > { %v4434_v28 = vpop.f32.mrf.mxu1 }
 0x326   : > { %v1854_v29 = vsel %vm1853_vm3, %v1848_v27, -inf }
 0x327   : > { %1855 = vmax.xlane.f32.xlu0 %v1854_v29  ;;  %v1850_v30 = vpop.f32.mrf.mxu1 }
 0x329   : > { %v4435_v31 = vpop.f32.mrf.mxu1 }
 0x3b0   : > { %v1856_v32 = vpop.xlane.xlu0 %1855 }
 0x3b1   : > { %v1857_v33 = vsub.f32 %v1848_v27, %v1856_v32 }
 0x3b3   : > { %v1858_v34 = vmul.f32 1.442695, %v1857_v33 }
 0x3b5   : > { %4932 = vpow2.f32 %v1858_v34 }
 0x3c2   : > { %v4933_v35 = vpop.eup %4932 }
 0x3c3   : > { %v1860_v36 = vsel %vm1853_vm3, %v4933_v35, 0.0 }
 0x3c4   : > { %1861 = vadd.xlane.f32.xlu0 %v1860_v36 }
 0x44d   : > { %v1862_v37 = vpop.xlane.xlu0 %1861 }
 0x44e   : > { %4934 = vrcp.f32 %v1862_v37 }
 0x45b   : > { %v4935_v38 = vpop.eup %4934 }
 0x45c   : > { %v1864_v39 = vmul.f32 %v4935_v38, %v4933_v35 }
 0x45e   : > { %v1865_v42 = vpack.c.bf16 %v1864_v39, %v1864_v39 }
 0x460   : > { %4439 = vmatmul.mubr.msk.bf16.vlgmr.msra.gmra.mxu1 %vm1853_vm3, %v1865_v42  ;;  %v4870_v42 = vld [vmem:[#allocation17 + $0x28] sm:$0xff]  }
 0x461   : > { %4443 = vmatpush3.bf16.xpose.msra.mxu1 %v1930_v43  ;;  %4444 = vmatprep.mubr.msk.bf16.mxu1 %vm5468_vm0, %v5467_v0 }
 0x462   : > { %4448 = vmatprep.subr.bf16.mxu1 %v5467_v0 }
 0x468   : > { %4445 = vmatmul.mubr.msk.bf16.vlgmr.msra.gmra.mxu1 %vm1806_vm1, %v1920_v44 }
 0x469   : > { %4450 = vmatprep.mubr.msk.bf16.mxu1 %vm5468_vm0, %v5467_v0 }
 0x520   : > { %v1907_v45 = vpop.f32.mrf.mxu1 }
 0x521   : > { %v1913_v10 = vpack.c.bf16 %v1907_v45, %v1907_v45 }
 0x522   : > { %v4440_v46 = vpop.f32.mrf.mxu1 }
 0x524   : > { %v1910_v47 = vpop.f32.mrf.mxu1 }
 0x526   : > { %v4441_v48 = vpop.f32.mrf.mxu1 }
 0x528   : > { %v1966_v49 = vpop.f32.mrf.mxu1 }
 0x529   : > { %v1967_v50 = vadd.f32 %v1966_v49, %v5999_v25 }
 0x52a   : > { %v4446_v51 = vpop.f32.mrf.mxu1 }
 0x52b   : > { %v1972_v52 = vsel %vm1853_vm3, %v1967_v50, -inf }
 0x52c   : > { %1973 = vmax.xlane.f32.xlu0 %v1972_v52  ;;  %v1969_v54 = vpop.f32.mrf.mxu1 }
 0x52e   : > { %v4447_v55 = vpop.f32.mrf.mxu1 }
 0x542   : > { %1987 = vrot.lane.b32.xlu0 %v6014_v56, %s5469_s11 }
 0x546   : > { %2152 = vrot.lane.b32.xlu0 %v5979_v53, %s5470_s21 }
 0x54a   : > { %2150 = vrot.lane.b32.xlu0 %v5987_v12, %s5470_s21 }
 0x5b5   : > { %v1974_v57 = vpop.xlane.xlu0 %1973 }
 0x5b6   : > { %v1975_v58 = vsub.f32 %v1967_v50, %v1974_v57 }
 0x5b8   : > { %v1976_v59 = vmul.f32 1.442695, %v1975_v58 }
 0x5b9   : > { %v1988_v60 = vpop.permute.xlu0 %1987 }
 0x5ba   : > { %4936 = vpow2.f32 %v1976_v59  ;;  %v1993_v61 = vsel %vm1869_vm2, %v1988_v60, 0 }
 0x5bb   : > { %4449 = vmatpush3.bf16.msra.mxu1 %v1993_v61 }
 0x5bc   : > { %4462 = vmatprep.subr.bf16.mxu1 %v5467_v0 }
 0x5bd   : > { %v2153_v13 = vpop.permute.xlu0 %2152 }
 0x5be   : > { %v2158_v17 = vsel %vm1806_vm1, %v2153_v13, 0 }
 0x5c1   : > { %v2151_v21 = vpop.permute.xlu0 %2150 }
 0x5c7   : > { %v4937_v62 = vpop.eup %4936 }
 0x5c8   : > { %v1978_v63 = vsel %vm1853_vm3, %v4937_v62, 0.0 }
 0x5c9   : > { %1979 = vadd.xlane.f32.xlu1 %v1978_v63 }
 0x5da   : > { %2212 = vrot.lane.b32.xlu1 %v6014_v56, %s5470_s21 }
 0x652   : > { %v1980_v3 = vpop.xlane.xlu1 %1979 }
 0x653   : > { %4938 = vrcp.f32 %v1980_v3 }
 0x656   : > { %v2213_v9 = vpop.permute.xlu1 %2212 }
 0x657   : > { %v2218_v11 = vsel %vm1869_vm2, %v2213_v9, 0 }
 0x660   : > { %v4939_v4 = vpop.eup %4938 }
 0x661   : > { %v1982_v5 = vmul.f32 %v4939_v4, %v4937_v62 }
 0x663   : > { %v1983_v7 = vpack.c.bf16 %v1982_v5, %v1982_v5 }
 0x665   : > { %4451 = vmatmul.mubr.msk.bf16.vlgmr.msra.gmra.mxu1 %vm1853_vm3, %v1983_v7 }
 0x666   : > { %4463 = vmatpush3.bf16.msra.mxu1 %v4866_v6  ;;  %4466 = vmatprep.mubr.msk.bf16.mxu1 %vm5468_vm0, %v5467_v0 }
 0x667   : > { %4464 = vmatprep.subr.bf16.mxu1 %v5467_v0 }
 0x66a   : > { %4465 = vmatpush3.bf16.msra.mxu1 %v4867_v8  ;;  %v4872_v8 = vld [vmem:[#allocation17 + $0x38] sm:$0xff]  }
 0x66b   : > { %4476 = vmatprep.subr.bf16.mxu1 %v5467_v0 }
 0x66d   : > { %4467 = vmatmul.mubr.msk.bf16.vlgmr.msra.gmra.mxu1 %vm1806_vm1, %v1913_v10  ;;  %v4873_v10 = vld [vmem:[#allocation17 + $0x30] sm:$0xff]  }
 0x66e   : > { %4477 = vmatpush3.bf16.msra.mxu1 %v2218_v11  ;;  %4478 = vmatprep.mubr.msk.bf16.mxu1 %vm5468_vm0, %v5467_v0 }
 0x66f   : > { %4490 = vmatprep.subr.bf16.mxu1 %v5467_v0 }
 0x725   : > { %v2029_v14 = vpop.f32.mrf.mxu1 }
 0x726   : > { %v2035_v15 = vpack.c.bf16 %v2029_v14, %v2029_v14 }
 0x727   : > { %v4452_v16 = vpop.f32.mrf.mxu1 }
 0x728   : > { %4459 = vmatmul.mubr.msk.bf16.vlgmr.msra.gmra.mxu0 %vm1806_vm1, %v2035_v15 }
 0x729   : > { %4471 = vmatpush3.bf16.xpose.msra.mxu0 %v2158_v17  ;;  %v2032_v18 = vpop.f32.mrf.mxu1  ;;  %4472 = vmatprep.mubr.msk.bf16.mxu0 %vm5468_vm0, %v5467_v0  ;;  %v6085_v17 = vld [vmem:[#allocation4] sm:$0xff]  }
 0x72a   : > { %4482 = vmatprep.subr.bf16.mxu0 %v5467_v0 }
 0x72b   : > { %v4453_v19 = vpop.f32.mrf.mxu1 }
 0x72d   : > { %v6044_v20 = vpop.f32.mrf.mxu1 }
 0x72f   : > { %v4468_v22 = vpop.f32.mrf.mxu1 }
 0x730   : > { %4473 = vmatmul.mubr.msk.bf16.vlgmr.msra.gmra.mxu0 %vm1806_vm1, %v2151_v21  ;;  %v2660_v21 = vsel %vm1806_vm1, %v6085_v17, 0 }
 0x731   : > { %v2147_v23 = vpop.f32.mrf.mxu1  ;;  %4486 = vmatprep.mubr.msk.bf16.mxu0 %vm5468_vm0, %v5467_v0  ;;  %4483 = vmatpush3.bf16.msra.mxu0 %v4870_v42  ;;  %v4879_v42 = vld [vmem:[#allocation18 + $0x18] sm:$0xff]  }
 0x732   : > { %4484 = vmatprep.subr.bf16.mxu0 %v5467_v0 }
 0x733   : > { %v4469_v24 = vpop.f32.mrf.mxu1 }
 0x7e8   : > { %v6049_v26 = vpop.f32.mrf.mxu0 }
 0x7e9   : > { %v2145_v5 = vadd.f32 %v6044_v20, %v6049_v26  ;;  %v4107_v26 = vld [vmem:[%s6353_s17] ss:$0 sm:$0xff]  ;;  %s1192_s17 = scalar_lea.vmem [#allocation27], %s4022_s28 }
 0x7ea   : > { %v4460_v27 = vpop.f32.mrf.mxu0 }
 0x7ec   : > { %v2092_v28 = vpop.f32.mrf.mxu0 }
 0x7ed   : > { %v1686_v28 = vunpack.c.l.bf16 %v5966_v40  ;;  %v4877_v40 = vld [vmem:[#allocation18 + $0x28] sm:$0xff]  }
 0x7ee   : > { %v4461_v29 = vpop.f32.mrf.mxu0 }
 0x7f0   : > { %v2194_v30 = vpop.f32.mrf.mxu0 }
 0x7f1   : > { %v2195_v31 = vadd.f32 %v2194_v30, %v5999_v25 }
 0x7f2   : > { %v4474_v32 = vpop.f32.mrf.mxu0 }
 0x7f3   : > { %v2200_v33 = vsel %vm1853_vm3, %v2195_v31, -inf }
 0x7f4   : > { %2201 = vmax.xlane.f32.xlu0 %v2200_v33  ;;  %v2197_v34 = vpop.f32.mrf.mxu0 }
 0x7f5   : > { %v4875_v34 = vld [vmem:[#allocation18 + $0x38] sm:$0xff]  }
 0x7f6   : > { %v4475_v35 = vpop.f32.mrf.mxu0 }
 0x7f7   : > { %v4876_v35 = vld [vmem:[#allocation18 + $0x30] sm:$0xff]  }
 0x87d   : > { %v2202_v36 = vpop.xlane.xlu0 %2201 }
 0x87e   : > { %v2203_v37 = vsub.f32 %v2195_v31, %v2202_v36 }
 0x880   : > { %v2204_v38 = vmul.f32 1.442695, %v2203_v37 }
 0x882   : > { %4940 = vpow2.f32 %v2204_v38 }
 0x88f   : > { %v4941_v39 = vpop.eup %4940 }
 0x890   : > { %v2206_v41 = vsel %vm1853_vm3, %v4941_v39, 0.0 }
 0x891   : > { %2207 = vadd.xlane.f32.xlu1 %v2206_v41  ;;  %v4878_v41 = vld [vmem:[#allocation18 + $0x20] sm:$0xff]  }
 0x8a2   : > { %2323 = vrot.lane.b32.xlu1 %v5979_v53, %s5471_s18 }
 0x8a6   : > { %2321 = vrot.lane.b32.xlu1 %v5987_v12, %s5471_s18  ;;  %v4871_v12 = vld [vmem:[#allocation17 + $0x20] sm:$0xff]  }
 0x8a7   : > { %4485 = vmatpush3.bf16.msra.mxu0 %v4871_v12  ;;  %v4108_v12 = vld [vmem:[%s6354_s4] ss:$0 sm:$0xff]  ;;  %s3740_s4 = sshll.u32 %s1192_s17, 4  ;;  %s3741_s4 = int_to_ptr.vmem [resolvable:$true] %s3740_s4 }
 0x8a8   : > { %4496 = vmatprep.subr.bf16.mxu0 %v5467_v0  ;;  %s5314_s1 = scalar_lea.vmem %s3741_s4, 128 }
 0x8a9   : > { %p5315_p4 = scmp.ne.s32.totalorder %s3741_s4, %s5314_s1 }
 0x91a   : > { %v2208_v43 = vpop.xlane.xlu1 %2207 }
 0x91b   : > { %4942 = vrcp.f32 %v2208_v43  ;;  %v4880_v43 = vld [vmem:[#allocation18 + $0x10] sm:$0xff]  }
 0x91e   : > { %v2324_v46 = vpop.permute.xlu1 %2323 }
 0x91f   : > { %v2329_v48 = vsel %vm1806_vm1, %v2324_v46, 0 }
 0x922   : > { %v2322_v53 = vpop.permute.xlu1 %2321 }
 0x928   : > { %v4943_v44 = vpop.eup %4942 }
 0x929   : > { %v2210_v45 = vmul.f32 %v4943_v44, %v4941_v39  ;;  %v4881_v44 = vld [vmem:[#allocation18 + $0x8] sm:$0xff]  }
 0x92b   : > { %v2211_v47 = vpack.c.bf16 %v2210_v45, %v2210_v45  ;;  %v4882_v45 = vld [vmem:[#allocation18] sm:$0xff]  }
 0x92d   : > { %4479 = vmatmul.mubr.msk.bf16.vlgmr.msra.gmra.mxu1 %vm1853_vm3, %v2211_v47 }
 0x92e   : > { %4491 = vmatpush3.bf16.xpose.msra.mxu1 %v2329_v48  ;;  %4492 = vmatprep.mubr.msk.bf16.mxu1 %vm5468_vm0, %v5467_v0 }
 0x92f   : > { %4502 = vmatprep.subr.bf16.mxu1 %v5467_v0 }
 0x935   : > { %4493 = vmatmul.mubr.msk.bf16.vlgmr.msra.gmra.mxu1 %vm1806_vm1, %v2322_v53 }
 0x936   : > { %4506 = vmatprep.mubr.msk.bf16.mxu1 %vm5468_vm0, %v5467_v0  ;;  %4503 = vmatpush3.bf16.msra.mxu1 %v4872_v8 }
 0x937   : > { %4504 = vmatprep.subr.bf16.mxu1 %v5467_v0 }
 0x93a   : > { %4505 = vmatpush3.bf16.msra.mxu1 %v4873_v10 }
 0x93b   : > { %4530 = vmatprep.subr.bf16.mxu1 %v5467_v0 }
 0x9ed   : > { %v2254_v49 = vpop.f32.mrf.mxu1 }
 0x9ee   : > { %v2260_v50 = vpack.c.bf16 %v2254_v49, %v2254_v49 }
 0x9ef   : > { %v4480_v51 = vpop.f32.mrf.mxu1 }
 0x9f0   : > { %4487 = vmatmul.mubr.msk.bf16.vlgmr.msra.gmra.mxu0 %vm1806_vm1, %v2260_v50  ;;  %v4109_v50 = vld [vmem:[%s6355_s9] ss:$0 sm:$0xff] }
 0x9f1   : > { %v2257_v52 = vpop.f32.mrf.mxu1  ;;  %4498 = vmatprep.mubr.msk.bf16.mxu0 %vm5468_vm0, %v5467_v0 }
 0x9f3   : > { %v4481_v54 = vpop.f32.mrf.mxu1 }
 0x9f5   : > { %v2365_v55 = vpop.f32.mrf.mxu1 }
 0x9f6   : > { %v2366_v57 = vadd.f32 %v2365_v55, %v5999_v25  ;;  %v4110_v55 = vld [vmem:[%s6356_s14] ss:$0 sm:$0xff]  ;;  %s3726_s14 = scalar_lea.sflag [#allocation8], %s5873_s10 }
 0x9f7   : > { %v4494_v58 = vpop.f32.mrf.mxu1 }
 0x9f8   : > { %v2371_v59 = vsel %vm1853_vm3, %v2366_v57, -inf }
 0x9f9   : > { %2372 = vmax.xlane.f32.xlu0 %v2371_v59  ;;  %v2368_v60 = vpop.f32.mrf.mxu1 }
 0x9fb   : > { %v4495_v61 = vpop.f32.mrf.mxu1 }
 0xa0f   : > { %2383 = vrot.lane.b32.xlu0 %v6014_v56, %s5471_s18 }
 0xa82   : > { %v2373_v62 = vpop.xlane.xlu0 %2372 }
 0xa83   : > { %v2374_v63 = vsub.f32 %v2366_v57, %v2373_v62 }
 0xa85   : > { %v2375_v1 = vmul.f32 1.442695, %v2374_v63 }
 0xa86   : > { %v2384_v2 = vpop.permute.xlu0 %2383 }
 0xa87   : > { %4944 = vpow2.f32 %v2375_v1  ;;  %v2389_v3 = vsel %vm1869_vm2, %v2384_v2, 0  ;;  %v6114_v1 = vld [vmem:[#allocation5] sm:$0xff]   ;;  %v2646_v2 = vlaneseq }
 0xa88   : > { %4497 = vmatpush3.bf16.msra.mxu0 %v2389_v3 }
 0xa89   : > { %4510 = vmatprep.subr.bf16.mxu0 %v5467_v0  ;;  %v6127_v3 = vshrl.u32 %v2646_v2, 7 }
 0xa94   : > { %v4945_v25 = vpop.eup %4944 }
 0xa95   : > { %v2377_v4 = vsel %vm1853_vm3, %v4945_v25, 0.0 }
 0xa96   : > { %2378 = vadd.xlane.f32.xlu1 %v2377_v4 }
 0xab0   : > { %v2314_v6 = vpop.f32.mrf.mxu0 }
 0xab1   : > { %v2320_v7 = vadd.f32 %v2314_v6, %v2145_v5  ;;  %v2648_v5 = vsub.s32 0, %v6127_v3 }
 0xab2   : > { %v4488_v56 = vpop.f32.mrf.mxu0 }
 0xab4   : > { %v2317_v9 = vpop.f32.mrf.mxu0 }
 0xab6   : > { %v4489_v11 = vpop.f32.mrf.mxu0 }
 0xb1f   : > { %v2379_v13 = vpop.xlane.xlu1 %2378 }
 0xb20   : > { %4946 = vrcp.f32 %v2379_v13 }
 0xb2d   : > { %v4947_v14 = vpop.eup %4946 }
 0xb2e   : > { %v2381_v15 = vmul.f32 %v4947_v14, %v4945_v25  ;;  %v1689_v25 = vld [vmem:[%s1195_s7] sm:$0x1]  ;;  %s5318_s7 = sshll.u32 %s5473_s25, 4  ;;  %s5319_s7 = int_to_ptr.vmem [resolvable:$false] %s5318_s7 }
 0xb2f   : > { %v1690_v4 = vunpack.c.l.bf16 %v1689_v25  ;;  %p5321_p12 = scmp.lt.s32.totalorder %s3741_s4, %s5319_s7 }
 0xb30   : > { %v2382_v16 = vpack.c.bf16 %v2381_v15, %v2381_v15 }
 0xb31   : > { %v6132_v6 = vrot.slane %v1690_v4, %v2648_v5 }
 0xb32   : > { %4499 = vmatmul.mubr.msk.bf16.vlgmr.msra.gmra.mxu0 %vm1853_vm3, %v2382_v16 }
 0xb33   : > { %4526 = vmatprep.mubr.msk.bf16.mxu0 %vm5468_vm0, %v5467_v0  ;;  %4511 = vmatpush3.bf16.msra.mxu0 %v4875_v34 }
 0xb34   : > { %4512 = vmatprep.subr.bf16.mxu0 %v5467_v0 }
 0xb37   : > { %4513 = vmatpush3.bf16.msra.mxu0 %v4876_v35 }
 0xb38   : > { %4514 = vmatprep.subr.bf16.mxu0 %v5467_v0 }
 0xb3b   : > { %4515 = vmatpush3.bf16.msra.mxu0 %v4877_v40 }
 0xb3c   : > { %4516 = vmatprep.subr.bf16.mxu0 %v5467_v0 }
 0xb3f   : > { %4517 = vmatpush3.bf16.msra.mxu0 %v4878_v41 }
 0xb40   : > { %4518 = vmatprep.subr.bf16.mxu0 %v5467_v0 }
 0xb43   : > { %4519 = vmatpush3.bf16.msra.mxu0 %v4879_v42 }
 0xb44   : > { %4520 = vmatprep.subr.bf16.mxu0 %v5467_v0 }
 0xb47   : > { %4521 = vmatpush3.bf16.msra.mxu0 %v4880_v43  ;;  %v4886_v43 = vld [vmem:[#allocation23 + $0x18] sm:$0xff]  }
 0xb48   : > { %4522 = vmatprep.subr.bf16.mxu0 %v5467_v0 }
 0xb4b   : > { %4523 = vmatpush3.bf16.msra.mxu0 %v4881_v44  ;;  %v4887_v44 = vld [vmem:[#allocation23 + $0x10] sm:$0xff]  }
 0xb4c   : > { %4524 = vmatprep.subr.bf16.mxu0 %v5467_v0 }
 0xb4f   : > { %4525 = vmatpush3.bf16.msra.mxu0 %v4882_v45 }
 0xb50   : > { %4554 = vmatprep.subr.bf16.mxu0 %v5467_v0 }
 0xbf2   : > { %v2425_v18 = vpop.f32.mrf.mxu0 }
 0xbf3   : > { %v2431_v19 = vpack.c.bf16 %v2425_v18, %v2425_v18 }
 0xbf4   : > { %v4500_v20 = vpop.f32.mrf.mxu0 }
 0xbf5   : > { %4507 = vmatmul.mubr.msk.bf16.vlgmr.msra.gmra.mxu1 %vm1806_vm1, %v2431_v19 }
 0xbf6   : > { %4531 = vmatpush3.bf16.xpose.msra.mxu1 %v2660_v21  ;;  %v2428_v22 = vpop.f32.mrf.mxu0  ;;  %4532 = vmatprep.mubr.msk.bf16.mxu1 %vm5468_vm0, %v5467_v0 }
 0xbf7   : > { %4536 = vmatprep.subr.bf16.mxu1 %v5467_v0 }
 0xbf8   : > { %v4501_v23 = vpop.f32.mrf.mxu0 }
 0xcb5   : > { %v2485_v24 = vpop.f32.mrf.mxu1 }
 0xcb6   : > { %v2491_v27 = vadd.f32 %v2485_v24, %v2320_v7 }
 0xcb7   : > { %v4508_v29 = vpop.f32.mrf.mxu1 }
 0xcb8   : > { %v2499_v30 = vadd.f32 %v4107_v26, %v2491_v27 }
 0xcb9   : > { %v2488_v31 = vpop.f32.mrf.mxu1 }
 0xcba   : > { %v2500_v32 = vadd.f32 %v2499_v30, %v1686_v28 }
 0xcbb   : > { %v4509_v33 = vpop.f32.mrf.mxu1 }
 0xcbc   : > { %2503 = vadd.xlane.f32.xlu0 %v2500_v32 }
 0xd45   : > { %v2504_v36 = vpop.xlane.xlu0 %2503 }
 0xd46   : > { %v2506_v37 = vmul.f32 0.0078125, %v2504_v36 }
 0xd48   : > { %v2507_v38 = vsub.f32 %v2500_v32, %v2506_v37 }
 0xd4a   : > { %v2508_v39 = vmul.f32 %v2507_v38, %v2507_v38 }
 0xd4c   : > { %2509 = vadd.xlane.f32.xlu1 %v2508_v39 }
 0xdd5   : > { %v2510_v46 = vpop.xlane.xlu1 %2509 }
 0xdd6   : > { %v2511_v47 = vmul.f32 0.0078125, %v2510_v46 }
 0xdd8   : > { %v2512_v48 = vadd.f32 1e-05, %v2511_v47 }
 0xdda   : > { %4948 = vrsqrt.f32 %v2512_v48  ;;  %v4884_v48 = vld [vmem:[#allocation23 + $0x8] sm:$0xff]  }
 0xde7   : > { %v4949_v53 = vpop.eup %4948 }
 0xde8   : > { %v2514_v49 = vmul.f32 %v4949_v53, %v2507_v38 }
 0xdea   : > { %v2521_v51 = vmul.f32 %v4108_v12, %v2514_v49  ;;  %v4885_v12 = vld [vmem:[#allocation23] sm:$0xff]  }
 0xdec   : > { %v6105_v52 = vadd.f32 %v4109_v50, %v2521_v51 }
 0xdee   : > { %v2529_v54 = vpack.c.bf16 %v6105_v52, %v6105_v52 }
 0xdf0   : > { %4527 = vmatmul.mubr.bf16.vlgmr.msra.gmra.mxu0 %v2529_v54 }
 0xdf1   : > { %4558 = vmatprep.mubr.msk.bf16.mxu0 %vm5468_vm0, %v5467_v0  ;;  %4555 = vmatpush3.bf16.msra.mxu0 %v4886_v43 }
 0xdf2   : > { %4556 = vmatprep.subr.bf16.mxu0 %v5467_v0 }
 0xdf5   : > { %4557 = vmatpush3.bf16.msra.mxu0 %v4887_v44 }
 0xdf6   : > { %4570 = vmatprep.subr.bf16.mxu0 %v5467_v0 }
 0xeb0   : > { %v2635_v57 = vpop.f32.mrf.mxu0 }
 0xeb1   : > { %v2636_v58 = vadd.f32 %v4110_v55, %v2635_v57 }
 0xeb2   : > { %v4528_v59 = vpop.f32.mrf.mxu0 }
 0xeb3   : > { %v2641_v60 = vmul.f32 0.17677669, %v2636_v58 }
 0xeb4   : > { %v2638_v61 = vpop.f32.mrf.mxu0 }
 0xeb5   : > { %v6112_v62 = vpack.c.bf16 %v2641_v60, %v2641_v60 }
 0xeb6   : > { %v4529_v63 = vpop.f32.mrf.mxu0 }
 0xeb7   : > { %2770 = vrot.lane.b32.xlu0 %v6112_v62, %s5469_s11  ;;  %4533 = vmatmul.mubr.msk.bf16.vlgmr.msra.gmra.mxu1 %vm1806_vm1, %v6112_v62 }
 0xeb8   : > { %4537 = vmatpush3.bf16.msra.mxu1 %v6114_v1  ;;  %4538 = vmatprep.mubr.msk.bf16.mxu1 %vm5468_vm0, %v5467_v0 }
 0xeb9   : > { %4542 = vmatprep.subr.bf16.mxu1 %v5467_v0 }
 0xf29   : > { %v2771_v26 = vpop.permute.xlu0 %2770 }
 0xf77   : > { %v2696_v7 = vpop.f32.mrf.mxu1 }
 0xf78   : > { %v2697_v56 = vadd.f32 %v2696_v7, %v6132_v6 }
 0xf79   : > { %v4534_v8 = vpop.f32.mrf.mxu1 }
 0xf7a   : > { %v2703_v9 = vsel %vm2702_vm4, %v2697_v56, -inf }
 0xf7b   : > { %2704 = vmax.xlane.f32.xlu1 %v2703_v9  ;;  %v2699_v10 = vpop.f32.mrf.mxu1 }
 0xf7d   : > { %v4535_v11 = vpop.f32.mrf.mxu1 }
0x1004   : > { %v2705_v13 = vpop.xlane.xlu1 %2704 }
0x1005   : > { %v2706_v14 = vsub.f32 %v2697_v56, %v2705_v13 }
0x1007   : > { %v2707_v15 = vmul.f32 1.442695, %v2706_v14 }
0x1009   : > { %4950 = vpow2.f32 %v2707_v15 }
0x1016   : > { %v4951_v16 = vpop.eup %4950 }
0x1017   : > { %v2709_v18 = vsel %vm2702_vm4, %v4951_v16, 0.0 }
0x1018   : > { %2710 = vadd.xlane.f32.xlu1 %v2709_v18 }
0x1029   : > { %2772 = vrot.lane.b32.xlu1 %v6085_v17, %s5469_s11 }
0x10a1   : > { %v2711_v19 = vpop.xlane.xlu1 %2710 }
0x10a2   : > { %4952 = vrcp.f32 %v2711_v19 }
0x10a5   : > { %v2773_v22 = vpop.permute.xlu1 %2772 }
0x10a6   : > { %v2778_v24 = vsel %vm1806_vm1, %v2773_v22, 0 }
0x10af   : > { %v4953_v20 = vpop.eup %4952 }
0x10b0   : > { %v2713_v21 = vmul.f32 %v4953_v20, %v4951_v16 }
0x10b2   : > { %v2714_v23 = vpack.c.bf16 %v2713_v21, %v2713_v21 }
0x10b4   : > { %4539 = vmatmul.mubr.msk.bf16.vlgmr.msra.gmra.mxu1 %vm2702_vm4, %v2714_v23  ;;  %v4888_v23 = vld [vmem:[#allocation23 + $0x28] sm:$0xff]  }
0x10b5   : > { %4543 = vmatpush3.bf16.xpose.msra.mxu1 %v2778_v24  ;;  %4544 = vmatprep.mubr.msk.bf16.mxu1 %vm5468_vm0, %v5467_v0 }
0x10b6   : > { %4548 = vmatprep.subr.bf16.mxu1 %v5467_v0 }
0x10bc   : > { %4545 = vmatmul.mubr.msk.bf16.vlgmr.msra.gmra.mxu1 %vm1806_vm1, %v2771_v26 }
0x10bd   : > { %4550 = vmatprep.mubr.msk.bf16.mxu1 %vm5468_vm0, %v5467_v0 }
0x1174   : > { %v2758_v27 = vpop.f32.mrf.mxu1 }
0x1175   : > { %v2764_v49 = vpack.c.bf16 %v2758_v27, %v2758_v27 }
0x1176   : > { %v4540_v28 = vpop.f32.mrf.mxu1 }
0x1178   : > { %v2761_v29 = vpop.f32.mrf.mxu1 }
0x117a   : > { %v4541_v30 = vpop.f32.mrf.mxu1 }
0x117b   : > { %v4889_v30 = vld [vmem:[#allocation23 + $0x20] sm:$0xff]  }
0x117c   : > { %v2814_v31 = vpop.f32.mrf.mxu1 }
0x117d   : > { %v2815_v32 = vadd.f32 %v2814_v31, %v6132_v6 }
0x117e   : > { %v4546_v33 = vpop.f32.mrf.mxu1 }
0x117f   : > { %v2820_v34 = vsel %vm2702_vm4, %v2815_v32, -inf }
0x1180   : > { %2821 = vmax.xlane.f32.xlu1 %v2820_v34  ;;  %v2817_v35 = vpop.f32.mrf.mxu1 }
0x1182   : > { %v4547_v36 = vpop.f32.mrf.mxu1 }
0x1191   : > { %2832 = vrot.lane.b32.xlu1 %v6114_v1, %s5469_s11  ;;  %s6364_s11 = sld [smem:[#allocation57_spill]] }
0x1195   : > { %2993 = vrot.lane.b32.xlu1 %v6112_v62, %s5470_s21 }
0x1209   : > { %v2822_v37 = vpop.xlane.xlu1 %2821 }
0x120a   : > { %v2823_v38 = vsub.f32 %v2815_v32, %v2822_v37 }
0x120c   : > { %v2824_v39 = vmul.f32 1.442695, %v2823_v38 }
0x120d   : > { %v2833_v40 = vpop.permute.xlu1 %2832 }
0x120e   : > { %4954 = vpow2.f32 %v2824_v39  ;;  %4549 = vmatpush3.bf16.msra.mxu1 %v2833_v40 }
0x120f   : > { %4562 = vmatprep.subr.bf16.mxu1 %v5467_v0 }
0x1211   : > { %v2994_v61 = vpop.permute.xlu1 %2993 }
0x121b   : > { %v4955_v41 = vpop.eup %4954 }
0x121c   : > { %v2826_v42 = vsel %vm2702_vm4, %v4955_v41, 0.0 }
0x121d   : > { %2827 = vadd.xlane.f32.xlu0 %v2826_v42 }
0x1233   : > { %2995 = vrot.lane.b32.xlu0 %v6085_v17, %s5470_s21 }
0x12a6   : > { %v2828_v45 = vpop.xlane.xlu0 %2827 }
0x12a7   : > { %4956 = vrcp.f32 %v2828_v45 }
0x12aa   : > { %v2996_v50 = vpop.permute.xlu0 %2995 }
0x12ab   : > { %v3001_v57 = vsel %vm1806_vm1, %v2996_v50, 0 }
0x12b4   : > { %v4957_v46 = vpop.eup %4956 }
0x12b5   : > { %v2830_v47 = vmul.f32 %v4957_v46, %v4955_v41 }
0x12b7   : > { %v2831_v53 = vpack.c.bf16 %v2830_v47, %v2830_v47 }
0x12b9   : > { %4551 = vmatmul.mubr.msk.bf16.vlgmr.msra.gmra.mxu1 %vm2702_vm4, %v2831_v53 }
0x12ba   : > { %4563 = vmatpush3.bf16.msra.mxu1 %v4884_v48  ;;  %4566 = vmatprep.mubr.msk.bf16.mxu1 %vm5468_vm0, %v5467_v0 }
0x12bb   : > { %4564 = vmatprep.subr.bf16.mxu1 %v5467_v0 }
0x12be   : > { %4565 = vmatpush3.bf16.msra.mxu1 %v4885_v12 }
0x12bf   : > { %4576 = vmatprep.subr.bf16.mxu1 %v5467_v0 }
0x12c1   : > { %4567 = vmatmul.mubr.msk.bf16.vlgmr.msra.gmra.mxu1 %vm1806_vm1, %v2764_v49  ;;  %v4890_v49 = vld [vmem:[#allocation23 + $0x38] sm:$0xff]  }
0x12c2   : > { %4578 = vmatprep.mubr.msk.bf16.mxu1 %vm5468_vm0, %v5467_v0 }
0x1379   : > { %v2872_v51 = vpop.f32.mrf.mxu1 }
0x137a   : > { %v2878_v54 = vpack.c.bf16 %v2872_v51, %v2872_v51 }
0x137b   : > { %v4552_v55 = vpop.f32.mrf.mxu1 }
0x137c   : > { %4559 = vmatmul.mubr.msk.bf16.vlgmr.msra.gmra.mxu0 %vm1806_vm1, %v2878_v54 }
0x137d   : > { %4571 = vmatpush3.bf16.xpose.msra.mxu0 %v3001_v57  ;;  %v2875_v58 = vpop.f32.mrf.mxu1  ;;  %4572 = vmatprep.mubr.msk.bf16.mxu0 %vm5468_vm0, %v5467_v0 }
0x137e   : > { %4582 = vmatprep.subr.bf16.mxu0 %v5467_v0 }
0x137f   : > { %v4553_v59 = vpop.f32.mrf.mxu1 }
0x1381   : > { %v6172_v60 = vpop.f32.mrf.mxu1 }
0x1383   : > { %v4568_v63 = vpop.f32.mrf.mxu1 }
0x1384   : > { %4573 = vmatmul.mubr.msk.bf16.vlgmr.msra.gmra.mxu0 %vm1806_vm1, %v2994_v61 }
0x1385   : > { %v2990_v2 = vpop.f32.mrf.mxu1  ;;  %4586 = vmatprep.mubr.msk.bf16.mxu0 %vm5468_vm0, %v5467_v0  ;;  %4583 = vmatpush3.bf16.msra.mxu0 %v4888_v23  ;;  %v4903_v23 = vld [vmem:[#allocation24 + $0x44] ss:$8 sps:$4 sm:$0xff]  }
0x1386   : > { %4584 = vmatprep.subr.bf16.mxu0 %v5467_v0 }
0x1387   : > { %v4569_v25 = vpop.f32.mrf.mxu1 }
0x1389   : > { %4585 = vmatpush3.bf16.msra.mxu0 %v4889_v30  ;;  %v4915_v30 = vld [vmem:[#allocation24 + $0x4] ss:$8 sps:$4 sm:$0xff]  }
0x138a   : > { %4596 = vmatprep.subr.bf16.mxu0 %v5467_v0 }
0x143c   : > { %v6177_v4 = vpop.f32.mrf.mxu0 }
0x143e   : > { %v4560_v7 = vpop.f32.mrf.mxu0 }
0x1440   : > { %v2935_v56 = vpop.f32.mrf.mxu0 }
0x1442   : > { %v4561_v8 = vpop.f32.mrf.mxu0 }
0x1444   : > { %v3037_v9 = vpop.f32.mrf.mxu0 }
0x1445   : > { %v3038_v10 = vadd.f32 %v3037_v9, %v6132_v6 }
0x1446   : > { %v4574_v11 = vpop.f32.mrf.mxu0 }
0x1447   : > { %v3043_v13 = vsel %vm2702_vm4, %v3038_v10, -inf  ;;  %v4892_v11 = vld [vmem:[#allocation24 + $0x70] ss:$8 sps:$4 sm:$0xff]  }
0x1448   : > { %3044 = vmax.xlane.f32.xlu1 %v3043_v13  ;;  %v3040_v14 = vpop.f32.mrf.mxu0  ;;  %v4894_v13 = vld [vmem:[#allocation24 + $0x74] ss:$8 sps:$4 sm:$0xff]  }
0x1449   : > { %v4897_v14 = vld [vmem:[#allocation24 + $0x64] ss:$8 sps:$4 sm:$0xff]  }
0x144a   : > { %v4575_v15 = vpop.f32.mrf.mxu0 }
0x144b   : > { %v4895_v15 = vld [vmem:[#allocation24 + $0x60] ss:$8 sps:$4 sm:$0xff]  }
0x1459   : > { %3055 = vrot.lane.b32.xlu1 %v6114_v1, %s5470_s21  ;;  %s6367_s21 = sld [smem:[#allocation63_spill]] }
0x145d   : > { %3162 = vrot.lane.b32.xlu1 %v6112_v62, %s5471_s18 }
0x145f   : > { %p6368_p11 = scmp.ne.s32.totalorder %s6367_s21, 0 }
0x1461   : > { %p5316_p13 = pnand %p5315_p4, %p6368_p11 }
0x1463   : > { %p5317_p1 = pneg %p5316_p13 }
0x14d1   : > { %v3045_v16 = vpop.xlane.xlu1 %3044 }
0x14d2   : > { %v3046_v18 = vsub.f32 %v3038_v10, %v3045_v16 }
0x14d4   : > { %v3047_v19 = vmul.f32 1.442695, %v3046_v18 }
0x14d5   : > { %v3056_v20 = vpop.permute.xlu1 %3055 }
0x14d6   : > { %4958 = vpow2.f32 %v3047_v19  ;;  %4577 = vmatpush3.bf16.msra.mxu1 %v3056_v20 }
0x14d7   : > { %4590 = vmatprep.subr.bf16.mxu1 %v5467_v0 }
0x14e3   : > { %v4959_v21 = vpop.eup %4958 }
0x14e4   : > { %v3049_v22 = vsel %vm2702_vm4, %v4959_v21, 0.0 }
0x14e5   : > { %3050 = vadd.xlane.f32.xlu0 %v3049_v22  ;;  %v4898_v22 = vld [vmem:[#allocation24 + $0x50] ss:$8 sps:$4 sm:$0xff]  }
0x14fb   : > { %3164 = vrot.lane.b32.xlu0 %v6085_v17, %s5471_s18  ;;  %v3163_v17 = vpop.permute.xlu1 %3162 }
0x156e   : > { %v3051_v62 = vpop.xlane.xlu0 %3050 }
0x156f   : > { %4960 = vrcp.f32 %v3051_v62  ;;  %v4906_v62 = vld [vmem:[#allocation24 + $0x34] ss:$8 sps:$4 sm:$0xff]  }
0x1572   : > { %v3165_v27 = vpop.permute.xlu0 %3164 }
0x1573   : > { %v3170_v29 = vsel %vm1806_vm1, %v3165_v27, 0  ;;  %v4909_v27 = vld [vmem:[#allocation24 + $0x24] ss:$8 sps:$4 sm:$0xff]  }
0x157c   : > { %v4961_v24 = vpop.eup %4960 }
0x157d   : > { %v3053_v26 = vmul.f32 %v4961_v24, %v4959_v21  ;;  %v4900_v21 = vld [vmem:[#allocation24 + $0x54] ss:$8 sps:$4 sm:$0xff]   ;;  %v4904_v24 = vld [vmem:[#allocation24 + $0x30] ss:$8 sps:$4 sm:$0xff]  }
0x157f   : > { %v3054_v28 = vpack.c.bf16 %v3053_v26, %v3053_v26  ;;  %v5472_v26 = vmov 0  }
0x1581   : > { %4579 = vmatmul.mubr.msk.bf16.vlgmr.msra.gmra.mxu1 %vm2702_vm4, %v3054_v28  ;;  %v4907_v28 = vld [vmem:[#allocation24 + $0x20] ss:$8 sps:$4 sm:$0xff]  }
0x1582   : > { %4591 = vmatpush3.bf16.xpose.msra.mxu1 %v3170_v29  ;;  %4592 = vmatprep.mubr.msk.bf16.mxu1 %vm5468_vm0, %v5467_v0  ;;  %v4912_v29 = vld [vmem:[#allocation24 + $0x14] ss:$8 sps:$4 sm:$0xff]  }
0x1583   : > { %4602 = vmatprep.subr.bf16.mxu1 %v5467_v0 }
0x1589   : > { %4593 = vmatmul.mubr.msk.bf16.vlgmr.msra.gmra.mxu1 %vm1806_vm1, %v3163_v17  ;;  %v4910_v17 = vld [vmem:[#allocation24 + $0x10] ss:$8 sps:$4 sm:$0xff]  }
0x158a   : > { %4606 = vmatprep.mubr.msk.bf16.mxu1 %vm5468_vm0, %v5467_v0  ;;  %4603 = vmatpush3.bf16.msra.mxu1 %v4890_v49 }
0x158b   : > { %4604 = vmatprep.subr.bf16.mxu1 %v5467_v0 }
0x1641   : > { %v3095_v31 = vpop.f32.mrf.mxu1 }
0x1642   : > { %v3101_v32 = vpack.c.bf16 %v3095_v31, %v3095_v31  ;;  %v4913_v31 = vld [vmem:[#allocation24] ss:$8 sps:$4 sm:$0xff]  }
0x1643   : > { %v4580_v33 = vpop.f32.mrf.mxu1 }
0x1644   : > { %4587 = vmatmul.mubr.msk.bf16.vlgmr.msra.gmra.mxu0 %vm1806_vm1, %v3101_v32  ;;  %v4916_v32 = vld [vmem:[#allocation26 + $0x78] sm:$0xff]  }
0x1645   : > { %v3098_v34 = vpop.f32.mrf.mxu1  ;;  %4598 = vmatprep.mubr.msk.bf16.mxu0 %vm5468_vm0, %v5467_v0  ;;  %v4917_v33 = vld [vmem:[#allocation26 + $0x38] sm:$0xff]  }
0x1646   : > { %v4918_v34 = vld [vmem:[#allocation26 + $0x70] sm:$0xff]  }
0x1647   : > { %v4581_v35 = vpop.f32.mrf.mxu1 }
0x1648   : > { %v4919_v35 = vld [vmem:[#allocation26 + $0x30] sm:$0xff]  }
0x1649   : > { %v3206_v36 = vpop.f32.mrf.mxu1 }
0x164a   : > { %v3207_v37 = vadd.f32 %v3206_v36, %v6132_v6  ;;  %v2988_v6 = vadd.f32 %v6172_v60, %v6177_v4  ;;  %v4141_v4 = vld [vmem:[%s6358_s12] ss:$0 sm:$0xff]  ;;  %s5320_s12 = scalar_lea.vmem %s5319_s7, 256 }
0x164b   : > { %v4594_v38 = vpop.f32.mrf.mxu1  ;;  %v4920_v36 = vld [vmem:[#allocation26 + $0x68] sm:$0xff]   ;;  %p5322_p10 = scmp.lt.s32.totalorder %s5320_s12, %s5314_s1 }
0x164c   : > { %v3212_v39 = vsel %vm2702_vm4, %v3207_v37, -inf  ;;  %v4922_v38 = vld [vmem:[#allocation26 + $0x60] sm:$0xff]  }
0x164d   : > { %3213 = vmax.xlane.f32.xlu1 %v3212_v39  ;;  %v3209_v40 = vpop.f32.mrf.mxu1  ;;  %v4923_v39 = vld [vmem:[#allocation26 + $0x20] sm:$0xff]   ;;  %p5323_p8 = por %p5322_p10, %p5321_p12 }
0x164e   : > { %v4924_v40 = vld [vmem:[#allocation26 + $0x58] sm:$0xff]  }
0x164f   : > { %v4595_v41 = vpop.f32.mrf.mxu1  ;;  %p5324_p0 = pnand %p5323_p8, %p5317_p1 }
0x1650   : > { %v4925_v41 = vld [vmem:[#allocation26 + $0x18] sm:$0xff]  }
0x165e   : > { %3224 = vrot.lane.b32.xlu1 %v6114_v1, %s5471_s18  ;;  %v4891_v1 = vld [vmem:[#allocation23 + $0x30] sm:$0xff]   ;;  %s4180_s18 = sshll.u32 %s5410_s22, 7 }
0x165f   : > { %4605 = vmatpush3.bf16.msra.mxu1 %v4891_v1  ;;  %v4928_v1 = vld [vmem:[#allocation26 + $0x48] sm:$0xff]   ;;  %s3738_s9 = scalar_lea.hbm %s6365_s15, %s4180_s18 }
0x1660   : > { %4308 = vmatprep.subr.bf16.mxu1 %v4916_v32 }
0x16d6   : > { %v3214_v42 = vpop.xlane.xlu1 %3213 }
0x16d7   : > { %v3215_v43 = vsub.f32 %v3207_v37, %v3214_v42  ;;  %v4921_v37 = vld [vmem:[#allocation26 + $0x28] sm:$0xff]   ;;  %v4926_v42 = vld [vmem:[#allocation26 + $0x50] sm:$0xff]  }
0x16d9   : > { %v3216_v44 = vmul.f32 1.442695, %v3215_v43  ;;  %v4927_v43 = vld [vmem:[#allocation26 + $0x10] sm:$0xff]  }
0x16da   : > { %v3225_v45 = vpop.permute.xlu1 %3224 }
0x16db   : > { %4962 = vpow2.f32 %v3216_v44  ;;  %4597 = vmatpush3.bf16.msra.mxu0 %v3225_v45 }
0x16dc   : > { %3476 = vmatprep.subr.bf16.mxu0 %v4894_v13 }
0x16e8   : > { %v4963_v46 = vpop.eup %4962 }
0x16e9   : > { %v3218_v47 = vsel %vm2702_vm4, %v4963_v46, 0.0 }
0x16ea   : > { %3219 = vadd.xlane.f32.xlu0 %v3218_v47 }
0x1704   : > { %v3155_v48 = vpop.f32.mrf.mxu0 }
0x1705   : > { %v3161_v53 = vadd.f32 %v3155_v48, %v2988_v6  ;;  %v4142_v6 = vld [vmem:[%s6359_s2] ss:$0 sm:$0xff] }
0x1706   : > { %v4588_v12 = vpop.f32.mrf.mxu0 }
0x1708   : > { %v3158_v50 = vpop.f32.mrf.mxu0 }
0x170a   : > { %v4589_v51 = vpop.f32.mrf.mxu0 }
0x170b   : > { %v4929_v51 = vld [vmem:[#allocation26 + $0x8] sm:$0xff]  }
0x1773   : > { %v3220_v54 = vpop.xlane.xlu0 %3219 }
0x1774   : > { %4964 = vrcp.f32 %v3220_v54  ;;  %v4930_v54 = vld [vmem:[#allocation26 + $0x40] sm:$0xff]  }
0x1781   : > { %v4965_v55 = vpop.eup %4964 }
0x1782   : > { %v3222_v57 = vmul.f32 %v4965_v55, %v4963_v46  ;;  %v4931_v55 = vld [vmem:[#allocation26] sm:$0xff]  }
0x1784   : > { %v3223_v58 = vpack.c.bf16 %v3222_v57, %v3222_v57  ;;  %v3384_v57 = vld [vmem:[%s6361_s23] sm:$0x3] }
0x1786   : > { %4599 = vmatmul.mubr.msk.bf16.vlgmr.msra.gmra.mxu0 %vm2702_vm4, %v3223_v58  ;;  %v3392_v58 = vsub.s32 1, %v6127_v3 }
0x1787   : > { %3477 = vmatpush1.bf16.msra.mxu0 %v4892_v11  ;;  %3508 = vmatprep.mubr.bf16.mxu0 %v5472_v26  ;;  %v4160_v11 = vld [vmem:[%s6362_s26] ss:$0 sm:$0xff] }
0x1788   : > { %3478 = vmatprep.subr.bf16.mxu0 %v4897_v14 }
0x178b   : > { %3479 = vmatpush1.bf16.msra.mxu0 %v4895_v15 }
0x178c   : > { %3480 = vmatprep.subr.bf16.mxu0 %v4900_v21 }
0x178f   : > { %3481 = vmatpush1.bf16.msra.mxu0 %v4898_v22 }
0x1790   : > { %3482 = vmatprep.subr.bf16.mxu0 %v4903_v23 }
0x1846   : > { %v3264_v59 = vpop.f32.mrf.mxu0 }
0x1847   : > { %v3270_v60 = vpack.c.bf16 %v3264_v59, %v3264_v59  ;;  %v3389_v59 = vrot.slane %v3384_v57, %v2648_v5 }
0x1848   : > { %v4600_v61 = vpop.f32.mrf.mxu0 }
0x1849   : > { %4607 = vmatmul.mubr.msk.bf16.vlgmr.msra.gmra.mxu1 %vm1806_vm1, %v3270_v60  ;;  %v3393_v60 = vrot.slane %v3384_v57, %v3392_v58 }
0x184a   : > { %v3267_v63 = vpop.f32.mrf.mxu0  ;;  %4309 = vmatpush3.bf16.msra.mxu1 %v4917_v33 }
0x184b   : > { %4310 = vmatprep.subr.bf16.mxu1 %v4918_v34 }
0x184c   : > { %v4601_v2 = vpop.f32.mrf.mxu0 }
0x184e   : > { %4311 = vmatpush3.bf16.msra.mxu1 %v4919_v35 }
0x184f   : > { %4312 = vmatprep.subr.bf16.mxu1 %v4920_v36 }
0x1852   : > { %4313 = vmatpush3.bf16.msra.mxu1 %v4921_v37 }
0x1853   : > { %4314 = vmatprep.subr.bf16.mxu1 %v4922_v38 }
0x1856   : > { %4315 = vmatpush3.bf16.msra.mxu1 %v4923_v39 }
0x1857   : > { %4316 = vmatprep.subr.bf16.mxu1 %v4924_v40 }
0x185a   : > { %4317 = vmatpush3.bf16.msra.mxu1 %v4925_v41 }
0x185b   : > { %4318 = vmatprep.subr.bf16.mxu1 %v4926_v42 }
0x185e   : > { %4319 = vmatpush3.bf16.msra.mxu1 %v4927_v43 }
0x185f   : > { %4320 = vmatprep.subr.bf16.mxu1 %v4928_v1 }
0x1862   : > { %4321 = vmatpush3.bf16.msra.mxu1 %v4929_v51 }
0x1863   : > { %4322 = vmatprep.subr.bf16.mxu1 %v4930_v54 }
0x1866   : > { %4323 = vmatpush3.bf16.msra.mxu1 %v4931_v55 }
0x1909   : > { %v3324_v25 = vpop.f32.mrf.mxu1 }
0x190a   : > { %v3330_v0 = vadd.f32 %v3324_v25, %v3161_v53  ;;  %v4143_v53 = vld [vmem:[%s6360_s20] ss:$0 sm:$0xff] }
0x190b   : > { %v4608_v7 = vpop.f32.mrf.mxu1 }
0x190c   : > { %v3338_v56 = vadd.f32 %v4141_v4, %v3330_v0 }
0x190d   : > { %v3327_v8 = vpop.f32.mrf.mxu1 }
0x190e   : > { %v3339_v9 = vadd.f32 %v3338_v56, %v6105_v52  ;;  %v4901_v52 = vld [vmem:[#allocation24 + $0x40] ss:$8 sps:$4 sm:$0xff]  }
0x190f   : > { %v4609_v10 = vpop.f32.mrf.mxu1  ;;  %3483 = vmatpush1.bf16.msra.mxu0 %v4901_v52 }
0x1910   : > { %3342 = vadd.xlane.f32.xlu0 %v3339_v9  ;;  %3484 = vmatprep.subr.bf16.mxu0 %v4906_v62 }
0x1913   : > { %3485 = vmatpush1.bf16.msra.mxu0 %v4904_v24  ;;  %v4177_v24 = vld [vmem:[%s6363_s30] ss:$0 sm:$0xff] }
0x1914   : > { %3486 = vmatprep.subr.bf16.mxu0 %v4909_v27  ;;  %v4178_v27 = vld [vmem:[%s6364_s11] ss:$0 sm:$0xff] }
0x1917   : > { %3487 = vmatpush1.bf16.msra.mxu0 %v4907_v28 }
0x1918   : > { %3488 = vmatprep.subr.bf16.mxu0 %v4912_v29 }
0x191b   : > { %3489 = vmatpush1.bf16.msra.mxu0 %v4910_v17 }
0x191c   : > { %3490 = vmatprep.subr.bf16.mxu0 %v4915_v30 }
0x191f   : > { %3491 = vmatpush1.bf16.msra.mxu0 %v4913_v31 }
0x1999   : > { %v3343_v16 = vpop.xlane.xlu0 %3342 }
0x199a   : > { %v3344_v18 = vmul.f32 0.0078125, %v3343_v16 }
0x199c   : > { %v3345_v19 = vsub.f32 %v3339_v9, %v3344_v18 }
0x199e   : > { %v3346_v20 = vmul.f32 %v3345_v19, %v3345_v19 }
0x19a0   : > { %3347 = vadd.xlane.f32.xlu0 %v3346_v20 }
0x1a29   : > { %v3348_v44 = vpop.xlane.xlu0 %3347 }
0x1a2a   : > { %v3349_v45 = vmul.f32 0.0078125, %v3348_v44 }
0x1a2c   : > { %v3350_v46 = vadd.f32 1e-05, %v3349_v45 }
0x1a2e   : > { %4966 = vrsqrt.f32 %v3350_v46 }
0x1a3b   : > { %v4967_v47 = vpop.eup %4966 }
0x1a3c   : > { %v3352_v48 = vmul.f32 %v4967_v47, %v3345_v19 }
0x1a3e   : > { %v3359_v12 = vmul.f32 %v4142_v6, %v3352_v48 }
0x1a40   : > { %v3366_v49 = vadd.f32 %v4143_v53, %v3359_v12 }
0x1a42   : > { %v3367_v50 = vpack.c.bf16 %v3366_v49, %v3366_v49 }
0x1a44   : > { %3509 = vmatmul.mubr.bf16.vlgmr.msra.gmra.mxu0 %v3367_v50 }
0x1b04   : > { %v3510_v61 = vpop.f32.mrf.mxu0 }
0x1b05   : > { %v3511_v63 = vadd.f32 %v3510_v61, %v3389_v59 }
0x1b06   : > { %v3512_v2 = vpop.f32.mrf.mxu0 }
0x1b07   : > { %v3513_v25 = vadd.f32 %v3512_v2, %v3393_v60  ;;  %v3517_v4 = vmax.f32 %v3511_v63, 0.0 }
0x1b08   : > { %v3514_v0 = vpop.f32.mrf.mxu0 }
0x1b09   : > { %v3518_v7 = vmax.f32 %v3513_v25, 0.0  ;;  %v3519_v9 = vpack.c.bf16 %v3517_v4, %v3517_v4 }
0x1b0a   : > { %v3515_v56 = vpop.f32.mrf.mxu0 }
0x1b0b   : > { %v3520_v8 = vpack.c.bf16 %v3518_v7, %v3518_v7 }
0x1b0d   : > { %3688 = vmatprep.mubr.bf16.mxu1 %v3520_v8 }
0x1b0e   : > { %3689 = vmatmul.mubr.bf16.vlgmr.msra.gmra.mxu1 %v3519_v9 }
0x1bce   : > { %v4324_v10 = vpop.f32.mrf.mxu1 }
0x1bd0   : > { %v4325_v13 = vpop.f32.mrf.mxu1 }
0x1bd1   : > { %v4326_v14 = vadd.f32 %v4325_v13, %v4324_v10 }
0x1bd2   : > { %v4327_v3 = vpop.f32.mrf.mxu1 }
0x1bd3   : > { %v3691_v5 = vadd.f32 %v4326_v14, %v4160_v11 }
0x1bd4   : > { %v4328_v15 = vpop.f32.mrf.mxu1 }
0x1bd5   : > { %v3696_v16 = vadd.f32 %v3691_v5, %v3366_v49 }
0x1bd7   : > { %3699 = vadd.xlane.f32.xlu0 %v3696_v16 }
0x1c60   : > { %v3700_v18 = vpop.xlane.xlu0 %3699 }
0x1c61   : > { %v3701_v19 = vmul.f32 0.0078125, %v3700_v18 }
0x1c63   : > { %v3702_v20 = vsub.f32 %v3696_v16, %v3701_v19 }
0x1c65   : > { %v3703_v21 = vmul.f32 %v3702_v20, %v3702_v20 }
0x1c67   : > { %3704 = vadd.xlane.f32.xlu0 %v3703_v21 }
0x1cf0   : > { %v3705_v22 = vpop.xlane.xlu0 %3704 }
0x1cf1   : > { %v3706_v52 = vmul.f32 0.0078125, %v3705_v22 }
0x1cf3   : > { %v3707_v23 = vadd.f32 1e-05, %v3706_v52 }
0x1cf5   : > { %4968 = vrsqrt.f32 %v3707_v23 }
0x1d02   : > { %v4969_v62 = vpop.eup %4968 }
0x1d03   : > { %v3709_v26 = vmul.f32 %v4969_v62, %v3702_v20 }
0x1d05   : > { %v3716_v28 = vmul.f32 %v4177_v24, %v3709_v26 }
0x1d07   : > { %v3723_v29 = vadd.f32 %v4178_v27, %v3716_v28 }
0x1d09   : > { %3724 = vst [vmem:[%s1192_s17] sm:$0xff] %v3723_v29 }
0x1d0a   : > { %5327 = shalt.err (!%p5324_p0)
}
0x1d0b   : > { %s5328_s22 = scalar_lea.hbm %s3738_s9, 128  ;;  %s5332_s10 = scalar_lea.hbm %s6366_s8, 256 }
0x1d0c   : > { %p5329_p2 = scmp.ne.s32.totalorder %s3738_s9, %s5328_s22  ;;  %p5333_p3 = scmp.lt.s32.totalorder %s3738_s9, %s6366_s8 }
0x1d0d   : > { %p5334_p6 = scmp.lt.s32.totalorder %s5332_s10, %s5328_s22 }
0x1d0e   : > { %p5330_p5 = pnand %p5329_p2, %p6368_p11 }
0x1d0f   : > { %p5335_p7 = por %p5334_p6, %p5333_p3 }
0x1d10   : > { %p5331_p9 = pneg %p5330_p5 }
0x1d12   : > { %p5336_p4 = pnand %p5335_p7, %p5331_p9 }
0x1d14   : > { %5339 = shalt.err (!%p5336_p4)
}
0x1d15   : > { %4656 = dma.vmem_to_hbm [thread:$0]  (%p6368_p11), %s3741_s4, 128, %s3738_s9, %s3726_s14  }
0x1d16 PF: > { %s6369_s28 = sld [smem:[#allocation59_spill]] }
0x1d17   : > { %s6370_s2 = sld [smem:[#allocation65_spill]] }
0x1d18   : > { %s6371_s20 = sld [smem:[#allocation61_spill]] }
0x1d1c   : > { %s3752_s23 = sand.u32 1, %s6369_s28  }
0x1d1d   : > { %p6372_p13 = scmp.ne.s32.totalorder %s6370_s2, 0  ;;  %s3753_s26 = scalar_lea.sflag [#allocation8], %s3752_s23 }
0x1d1e   : > { %p6373_p1 = scmp.ge.s32.totalorder %s6371_s20, 2 }
0x1d20   : > { %p4700_p12 = pnand %p6373_p1, %p6372_p13 }
0x1d22   : > { %p4701_p10 = pneg %p4700_p12 }
0x1d24   : > { %5393 = dma.done.wait (%p4701_p10), %s3753_s26, 128  }
0x1d25   : > { %5395 = vsyncadd (%p4701_p10), %s3753_s26, 4294967168  ;;  %s85_s23 = sadd.s32 1, %s6371_s20   ;;  %s6374_s30 = sld [smem:[#allocation60_spill]] }
0x1d26   : > { %p82_p8 = scmp.ge.s32.totalorder %s85_s23, 4   ;;  %s6375_s18 = sld [smem:[#allocation64_spill]] }
0x1d27   : > { %s6376_s11 = sld [smem:[#allocation62_spill]]  ;;  %s6377_s15 = smov %s5402_s16 }
0x1d28   : > { %s6379_s22 = smov %s5414_s0 }
0x1d29   :  { %84 = sbr.rel (!%p82_p8) target bundleno = 70 (0x46), region = 287 }
0x1d2b   : > { %s6378_s16 = smov %s6374_s30 }
0x1d2d   : > { %s6380_s0 = smov %s6376_s11 }
0x1d2e   :  { %3758 = vsyncpa [#allocation7], 1 }
0x1d2f   :  { %3760 = vsyncpa [#allocation7 + $0x1], 1 }
0x1d30   :  { %3761 = vsyncpa [#allocation10], 1 }
0x1d31   :  { %3763 = vsyncpa [#allocation10 + $0x1], 1 }
0x1d32   :  { %3764 = vsyncpa [#allocation13], 1 }
0x1d33   :  { %3765 = vsyncpa [#allocation16], 1 }
0x1d34   :  { %3766 = vsyncpa [#allocation19], 1 }
0x1d35   :  { %3767 = vsyncpa [#allocation22], 1 }
0x1d36   :  { %3768 = vsyncpa [#allocation25], 1 }
0x1d37   :  { %3769 = vsyncpa [#allocation8], 1 }
0x1d38   :  { %3771 = vsyncpa [#allocation8 + $0x1], 1 }

// kernel: tpu_custom_call.1
= control target key start
LH: loop header
LB: loop body
LE: loop exit
PB: predicated region body
PF: predicated region fallthrough
CT: control target
= control target key end

     0   :  { %s5420_s6 = smov 1   ;;  %s5421_s10 = smov 2   ;;  %s6259_s0 = inlined_call_operand.smem [shape: u32[31], index: -1, kind: input, shape index: {}] }
   0x1   :  { %s5482_s5 = sld [smem:[%s6259_s0]]   ;;  %s5422_s14 = smov 3  }
   0x2   :  { %s5487_s9 = sld [smem:[%s6259_s0 + %s5420_s6]]   ;;  %s5423_s18 = smov 4  }
   0x3   :  { %s5492_s13 = sld [smem:[%s6259_s0 + %s5421_s10]]   ;;  %s5424_s22 = smov 5  }
   0x4   :  { %s5497_s17 = sld [smem:[%s6259_s0 + %s5422_s14]]   ;;  %s5425_s26 = smov 6  }
   0x5   :  { %s5502_s21 = sld [smem:[%s6259_s0 + %s5423_s18]]   ;;  %s5426_s30 = smov 7  }
   0x6   :  { %s5507_s25 = sld [smem:[%s6259_s0 + %s5424_s22]]   ;;  %s5427_s4 = smov 8  }
   0x7   :  { %s5512_s29 = sld [smem:[%s6259_s0 + %s5425_s26]]   ;;  %s5428_s10 = smov 9  }
   0x8   :  { %6286 = sst [smem:[#allocation36_spill]] %s5487_s9  ;;  %s5429_s15 = smov 10  }
   0x9   :  { %s5517_s3 = sld [smem:[%s6259_s0 + %s5426_s30]]   ;;  %s5430_s20 = smov 11  }
   0xa   :  { %6287 = sst [smem:[#allocation37_spill]] %s5497_s17  ;;  %s5431_s26 = smov 12  }
   0xb   :  { %6288 = sst [smem:[#allocation38_spill]] %s5502_s21  ;;  %s5432_s1 = smov 13  }
   0xc   :  { %6289 = sst [smem:[#allocation39_spill]] %s5507_s25  ;;  %s5433_s7 = smov 14  }
   0xd   :  { %s5522_s8 = sld [smem:[%s6259_s0 + %s5427_s4]]   ;;  %s5435_s22 = smov 16  }
   0xe   :  { %s5527_s14 = sld [smem:[%s6259_s0 + %s5428_s10]]   ;;  %s5436_s28 = smov 17  }
   0xf   :  { %s5532_s19 = sld [smem:[%s6259_s0 + %s5429_s15]]   ;;  %s5434_s15 = smov 15  }
  0x10   :  { %s5537_s24 = sld [smem:[%s6259_s0 + %s5430_s20]]  }
  0x11   :  { %s5542_s30 = sld [smem:[%s6259_s0 + %s5431_s26]]  }
  0x12   :  { %s5547_s6 = sld [smem:[%s6259_s0 + %s5432_s1]]  }
  0x13   :  { %6290 = sst [smem:[#allocation40_spill]] %s5522_s8 }
  0x14   :  { %6291 = sst [smem:[#allocation41_spill]] %s5527_s14 }
  0x15   :  { %s5552_s12 = sld [smem:[%s6259_s0 + %s5433_s7]]   ;;  %s5437_s7 = smov 18  }
  0x16   :  { %6292 = sst [smem:[#allocation42_spill]] %s5537_s24 }
  0x17   :  { %6293 = sst [smem:[#allocation43_spill]] %s5542_s30 }
  0x18   :  { %6294 = sst [smem:[#allocation44_spill]] %s5547_s6 }
  0x19   :  { %s5557_s20 = sld [smem:[%s6259_s0 + %s5434_s15]]   ;;  %s5438_s15 = smov 19  }
  0x1a   :  { %s5562_s27 = sld [smem:[%s6259_s0 + %s5435_s22]]   ;;  %s5439_s22 = smov 20  }
  0x1b   :  { %6295 = sst [smem:[#allocation45_spill]] %s5552_s12 }
  0x1c   :  { %s5567_s4 = sld [smem:[%s6259_s0 + %s5436_s28]]   ;;  %s5440_s28 = smov 21  }
  0x1d   :  { %s5572_s17 = sld [smem:[%s6259_s0 + %s5437_s7]]   ;;  %s5441_s7 = smov 22  }
  0x1e   :  { %s5582_s6 = sld [smem:[%s6259_s0 + %s5439_s22]]   ;;  %s5443_s22 = smov 24  }
  0x1f   :  { %6296 = sst [smem:[#allocation46_spill]] %s5557_s20 }
  0x20   :  { %s5577_s20 = sld [smem:[%s6259_s0 + %s5438_s15]]   ;;  %s5442_s15 = smov 23  }
  0x21   :  { %s5587_s30 = sld [smem:[%s6259_s0 + %s5440_s28]]   ;;  %s5444_s28 = smov 25  }
  0x22   :  { %6297 = sst [smem:[#allocation47_spill]] %s5567_s4 }
  0x23   :  { %6298 = sst [smem:[#allocation48_spill]] %s5572_s17 }
  0x24   :  { %s5592_s24 = sld [smem:[%s6259_s0 + %s5441_s7]]   ;;  %s5445_s7 = smov 26  }
  0x25   :  { %s5602_s25 = sld [smem:[%s6259_s0 + %s5443_s22]]   ;;  %s5447_s22 = smov 28  }
  0x26   :  { %6299 = sst [smem:[#allocation49_spill]] %s5577_s20 }
  0x27   :  { %6300 = sst [smem:[#allocation50_spill]] %s5587_s30 }
  0x28   :  { %s5597_s20 = sld [smem:[%s6259_s0 + %s5442_s15]]   ;;  %s5446_s15 = smov 27  }
  0x29   :  { %s5607_s30 = sld [smem:[%s6259_s0 + %s5444_s28]]   ;;  %s5448_s28 = smov 29  }
  0x2a   :  { %6301 = sst [smem:[#allocation51_spill]] %s5592_s24 }
  0x2b   :  { %6303 = sst [smem:[#allocation53_spill]] %s5602_s25 }
  0x2c   :  { %s5612_s24 = sld [smem:[%s6259_s0 + %s5445_s7]]   ;;  %s5449_s7 = smov 30  }
  0x2d   :  { %s5622_s14 = sld [smem:[%s6259_s0 + %s5447_s22]]  }
  0x2e   :  { %6302 = sst [smem:[#allocation52_spill]] %s5597_s20 }
  0x2f   :  { %6304 = sst [smem:[#allocation54_spill]] %s5607_s30 }
  0x30   :  { %s5617_s20 = sld [smem:[%s6259_s0 + %s5446_s15]]  }
  0x31   :  { %s5627_s30 = sld [smem:[%s6259_s0 + %s5448_s28]]  }
  0x32   :  { %s5632_s4 = sld [smem:[%s6259_s0 + %s5449_s7]]  }
  0x33   :  { %6306 = sst [smem:[#allocation56_spill]] %s5622_s14 }
  0x36   :  { %6305 = sst [smem:[#allocation55_spill]] %s5617_s20 }
  0x37   :  { %6307 = sst [smem:[#allocation57_spill]] %s5627_s30 }
  0x38   :  { %6308 = sst [smem:[#allocation58_spill]] %s5632_s4 }
  0x39   :  { %66 = vsyncpa [#allocation7], 0 }
  0x3a   :  { %68 = vsyncpa [#allocation7 + $0x1], 0 }
  0x3b   :  { %69 = vsyncpa [#allocation10], 0 }
  0x3c   :  { %71 = vsyncpa [#allocation10 + $0x1], 0 }
  0x3d   :  { %72 = vsyncpa [#allocation13], 0 }
  0x3e   :  { %73 = vsyncpa [#allocation16], 0 }
  0x3f   :  { %74 = vsyncpa [#allocation19], 0 }
  0x40   :  { %75 = vsyncpa [#allocation22], 0 }
  0x41   :  { %76 = vsyncpa [#allocation25], 0 }
  0x42   :  { %77 = vsyncpa [#allocation8], 0 }
  0x43   :  { %79 = vsyncpa [#allocation8 + $0x1], 0  ;;  %s5634_s15 = smov 0   ;;  %s5636_s16 = smov 0  }
  0x44   :  { %s5638_s18 = smov 0   ;;  %s5640_s22 = smov 0  }
  0x45   :  { %s5642_s0 = smov 0   ;;  %s5644_s23 = smov 0  }
  0x46 LB: > { %s6309_s9 = sld [smem:[#allocation36_spill]]  ;;  %s5665_s26 = sadd.s32 4294967295, %s5418_s23   ;;  %s5398_s15 = sphi %s5634_s15, %s6377_s15   ;;  %s5418_s23 = sphi %s5644_s23, %s85_s23   ;;  %s5414_s0 = sphi %s5642_s0, %s6380_s0   ;;  %s5410_s22 = sphi %s5640_s22, %s6379_s22   ;;  %s5406_s18 = sphi %s5638_s18, %s6375_s18   ;;  %s5402_s16 = sphi %s5636_s16, %s6378_s16  }
  0x47   : > { %6310 = sst [smem:[#allocation59_spill]] %s5398_s15  ;;  %p4001_p0 = scmp.ge.s32.totalorder %s5418_s23, 1 }
  0x48   : > { %6311 = sst [smem:[#allocation60_spill]] %s5406_s18  ;;  %p6261_p1 = scmp.eq.s32.totalorder %s5665_s26, 0 }
  0x49   : > { %6312 = sst [smem:[#allocation61_spill]] %s5418_s23  ;;  %p782_p2 = scmp.lt.s32.totalorder %s5418_s23, 3 }
  0x4a   : > { %s5450_s1 = smov [#allocation12]   ;;  %s5451_s10 = smov [#allocation15]  }
  0x4b   : > { %p5670_p3 = pnand %p4001_p0, %p782_p2  ;;  %s794_s2 = sshll.u32 %s5450_s1, 4  ;;  %s795_s2 = int_to_ptr.vmem [resolvable:$true] %s794_s2 }
  0x4c   : > { %s826_s11 = sshll.u32 %s5451_s10, 4  ;;  %s5452_s4 = smov [#allocation18]   ;;  %s827_s11 = int_to_ptr.vmem [resolvable:$true] %s826_s11 }
  0x4d   : > { %s6313_s28 = scalar_select %p5670_p3, 1, 0 }
  0x4e   : > { %p4658_p4 = pneg %p5670_p3  ;;  %s864_s30 = sshll.u32 %s5452_s4, 4  ;;  %s865_s30 = int_to_ptr.vmem [resolvable:$true] %s864_s30 }
  0x4f   : > { %s4981_s1 = scalar_lea.vmem %s795_s2, 1024  ;;  %p4989_p11 = scmp.lt.s32.totalorder %s795_s2, %s795_s2 }
  0x50   : > { %p5679_p6 = pnand %p4658_p4, %p6261_p1  ;;  %p4982_p8 = scmp.ne.s32.totalorder %s795_s2, %s4981_s1 }
  0x51   : > { %p4990_p12 = scmp.lt.s32.totalorder %s4981_s1, %s4981_s1 }
  0x52   : > { %s6314_s7 = scalar_select %p5679_p6, 1, 0 }
  0x53   : > { %p5685_p7 = pneg %p5679_p6  ;;  %p4991_p13 = por %p4990_p12, %p4989_p11 }
  0x55   : > { %s6315_s14 = scalar_select %p5685_p7, 1, 0 }
  0x56   : > { %p4984_p9 = pnand %p4982_p8, %p5685_p7 }
  0x58   : > { %p4985_p10 = pneg %p4984_p9 }
  0x5a   : > { %p4992_p0 = pnand %p4991_p13, %p4985_p10 }
  0x5c   : > { %4995 = shalt.err (!%p4992_p0)
}
  0x5d   : > { %s6263_s10 = smov 64   ;;  %s6316_s21 = sld [smem:[#allocation38_spill]] }
  0x5e   : > { %s6265_s4 = smov 4   ;;  %s5007_s20 = scalar_lea.vmem %s827_s11, 1024 }
  0x5f   : > { %p5008_p2 = scmp.ne.s32.totalorder %s827_s11, %s5007_s20  ;;  %p5015_p9 = scmp.lt.s32.totalorder %s827_s11, %s827_s11 }
  0x60   : > { %p5016_p5 = scmp.lt.s32.totalorder %s5007_s20, %s5007_s20 }
  0x61   : > { %p5010_p4 = pnand %p5008_p2, %p5685_p7 }
  0x62   : > { %p5017_p11 = por %p5016_p5, %p5015_p9 }
  0x63   : > { %4661 = dma.hbm_to_vmem [thread:$0]  (!%p5679_p6), %s6316_s21, 1024, %s795_s2, [#allocation13], %s6263_s10, %s6263_s10, %s6265_s4  }
  0x64   : > { %p5011_p8 = pneg %p5010_p4 }
  0x66   : > { %p5018_p10 = pnand %p5017_p11, %p5011_p8 }
  0x68   : > { %5021 = shalt.err (!%p5018_p10)
}
  0x69   : > { %s6317_s8 = sld [smem:[#allocation40_spill]]  ;;  %s5033_s2 = scalar_lea.vmem %s865_s30, 1024 }
  0x6a   : > { %p5034_p12 = scmp.ne.s32.totalorder %s865_s30, %s5033_s2  ;;  %p5041_p2 = scmp.lt.s32.totalorder %s865_s30, %s865_s30 }
  0x6b   : > { %p5042_p4 = scmp.lt.s32.totalorder %s5033_s2, %s5033_s2 }
  0x6c   : > { %p5036_p13 = pnand %p5034_p12, %p5685_p7 }
  0x6d   : > { %p5043_p1 = por %p5042_p4, %p5041_p2 }
  0x6e   : > { %p5037_p0 = pneg %p5036_p13 }
  0x6f   : > { %4667 = dma.hbm_to_vmem [thread:$0]  (!%p5679_p6), %s6317_s8, 1024, %s827_s11, [#allocation16], %s6263_s10, %s6263_s10, %s6265_s4  }
  0x70   : > { %p5044_p5 = pnand %p5043_p1, %p5037_p0 }
  0x72   : > { %5047 = shalt.err (!%p5044_p5)
}
  0x73   : > { %s6318_s12 = sld [smem:[#allocation45_spill]]  ;;  %s5455_s20 = smov [#allocation21]  }
  0x74   : > { %s896_s11 = sshll.u32 %s5455_s20, 4  ;;  %s5456_s1 = smov [#allocation24]   ;;  %s897_s11 = int_to_ptr.vmem [resolvable:$true] %s896_s11 }
  0x75   : > { %s934_s8 = sshll.u32 %s5456_s1, 4  ;;  %s5059_s21 = scalar_lea.vmem %s897_s11, 1024  ;;  %s935_s8 = int_to_ptr.vmem [resolvable:$true] %s934_s8 }
  0x76   : > { %p5060_p8 = scmp.ne.s32.totalorder %s897_s11, %s5059_s21  ;;  %p5067_p1 = scmp.lt.s32.totalorder %s897_s11, %s897_s11 }
  0x77   : > { %p5068_p10 = scmp.lt.s32.totalorder %s5059_s21, %s5059_s21 }
  0x78   : > { %p5062_p9 = pnand %p5060_p8, %p5685_p7 }
  0x79   : > { %4673 = dma.hbm_to_vmem [thread:$0]  (!%p5679_p6), %s6318_s12, 1024, %s865_s30, [#allocation19], %s6263_s10, %s6263_s10, %s6265_s4  }
  0x7a   : > { %p5063_p11 = pneg %p5062_p9  ;;  %p5069_p12 = por %p5068_p10, %p5067_p1 }
  0x7c   : > { %p5070_p13 = pnand %p5069_p12, %p5063_p11 }
  0x7e   : > { %5073 = shalt.err (!%p5070_p13)
}
  0x7f   : > { %s6319_s17 = sld [smem:[#allocation48_spill]]  ;;  %s5085_s30 = scalar_lea.vmem %s935_s8, 2048 }
  0x80   : > { %p5086_p0 = scmp.ne.s32.totalorder %s935_s8, %s5085_s30  ;;  %p5093_p5 = scmp.lt.s32.totalorder %s935_s8, %s935_s8 }
  0x81   : > { %p5094_p8 = scmp.lt.s32.totalorder %s5085_s30, %s5085_s30 }
  0x82   : > { %p5088_p2 = pnand %p5086_p0, %p5685_p7 }
  0x83   : > { %p5095_p9 = por %p5094_p8, %p5093_p5 }
  0x84   : > { %p5089_p4 = pneg %p5088_p2 }
  0x85   : > { %4679 = dma.hbm_to_vmem [thread:$0]  (!%p5679_p6), %s6319_s17, 1024, %s897_s11, [#allocation22], %s6263_s10, %s6263_s10, %s6265_s4  }
  0x86   : > { %p5096_p1 = pnand %p5095_p9, %p5089_p4 }
  0x88   : > { %5099 = shalt.err (!%p5096_p1)
}
  0x89   : > { %s5457_s21 = smov 128   ;;  %s6320_s25 = sld [smem:[#allocation53_spill]] }
  0x8a   : > { %s5458_s2 = smov 8   ;;  %s4000_s20 = sadd.s32 4294967294, %s5418_s23  }
  0x8b   : > { %s97_s11 = sadd.s32 1, %s5414_s0  ;;  %s104_s1 = sadd.s32 1, %s5406_s18 }
  0x8c   : > { %p99_p11 = scmp.ge.s32.totalorder %s97_s11, 2  ;;  %p111_p10 = scmp.ne.s32.totalorder %s5406_s18, %s5402_s16 }
  0x8d   : > { %p112_p12 = scmp.eq.s32.totalorder %s5418_s23, 0  ;;  %p117_p13 = scmp.ne.s32.totalorder %s5402_s16, %s5398_s15 }
  0x8e   : > { %s6382_s11 = smov (%p99_p11, %s97_s11), 0  ;;  %p6322_p2 = scmp.eq.s32.totalorder %s5665_s26, 0 }
  0x8f   : > { %4685 = dma.hbm_to_vmem [thread:$0]  (!%p5679_p6), %s6320_s25, 2048, %s935_s8, [#allocation25], %s5457_s21, %s5457_s21, %s5458_s2  }
  0x90   : > { %6321 = sst [smem:[#allocation62_spill]] %s6382_s11  ;;  %p113_p0 = por %p112_p12, %p111_p10 }
  0x91   : > { %p5738_p4 = por %p6322_p2, %p117_p13  ;;  %s101_s8 = ssub.s32 %s5414_s0, %s6382_s11 }
  0x92   : > { %p769_p5 = scmp.eq.s32.totalorder %s5665_s26, 1  ;;  %p102_p8 = scmp.eq.s32.totalorder %s101_s8, 0 }
  0x93   : > { %s6323_s30 = scalar_select %p5738_p4, 1, 0 }
  0x94   : > { %p775_p9 = scmp.eq.s32.totalorder %s4000_s20, 1  ;;  %p5745_p1 = por %p769_p5, %p111_p10 }
  0x95   : > { %p4713_p3 = scmp.lt.s32.totalorder %s5418_s23, 2  ;;  %s5758_s4 = sand.u32 1, %s5406_s18  }
  0x96   : > { %s6324_s21 = scalar_select %p5745_p1, 1, 0 }
  0x97   : > { %s5751_s2 = scalar_select %p102_p8, %s5406_s18, %s104_s1  }
  0x98   : > { %6325 = sst [smem:[#allocation63_spill]] %s6324_s21  ;;  %p5753_p11 = por %p775_p9, %p117_p13 }
  0x99   : > { %6326 = sst [smem:[#allocation64_spill]] %s5751_s2  ;;  %p5760_p12 = pnand %p4713_p3, %p113_p0 }
  0x9a   : > { %s6327_s10 = scalar_select %p5753_p11, 1, 0 }
  0x9b   : > { %s6329_s12 = scalar_select %p5760_p12, 1, 0 }
  0x9c   : > { %6328 = sst [smem:[#allocation65_spill]] %s6327_s10  ;;  %s991_s20 = sand.u32 1, %s5418_s23  }
  0x9d   : > { %s4015_s8 = sshll.u32 %s5758_s4, 3  ;;  %s4183_s17 = sshll.u32 %s5414_s0, 7 }
  0x9e   : > { %s995_s25 = scalar_lea.vmem [#allocation9], %s4015_s8  ;;  %s5768_s11 = scalar_lea.hbm %s6309_s9, %s4183_s17 }
  0x9f   : > { %s1002_s1 = sshll.u32 %s995_s25, 4  ;;  %s5772_s2 = scalar_lea.sflag [#allocation10], %s991_s20  ;;  %s5770_s1 = int_to_ptr.vmem [resolvable:$true] %s1002_s1 }
  0xa0   : > { %s5100_s18 = scalar_lea.hbm %s5768_s11, 128  ;;  %p5778_p10 = pneg %p5760_p12 }
  0xa1   : > { %p5101_p3 = scmp.ne.s32.totalorder %s5768_s11, %s5100_s18  ;;  %s5105_s17 = scalar_lea.hbm %s6309_s9, 256 }
  0xa2   : > { %s6330_s10 = scalar_select %p5778_p10, 1, 0 }
  0xa3   : > { %p5103_p13 = pnand %p5778_p10, %p5101_p3  ;;  %p5106_p2 = scmp.lt.s32.totalorder %s5768_s11, %s6309_s9 }
  0xa4   : > { %p5107_p5 = scmp.lt.s32.totalorder %s5105_s17, %s5100_s18 }
  0xa5   : > { %p5104_p0 = pneg %p5103_p13 }
  0xa6   : > { %p5108_p8 = por %p5107_p5, %p5106_p2 }
  0xa8   : > { %p5109_p9 = pnand %p5108_p8, %p5104_p0 }
  0xaa   : > { %5112 = shalt.err (!%p5109_p9)
}
  0xab   : > { %s5113_s25 = scalar_lea.vmem %s5770_s1, 128  ;;  %s5459_s20 = smov [#allocation9]  }
  0xac   : > { %p5114_p11 = scmp.ne.s32.totalorder %s5770_s1, %s5113_s25  ;;  %s5118_s8 = sshll.u32 %s5459_s20, 4  ;;  %s5119_s8 = int_to_ptr.vmem [resolvable:$false] %s5118_s8 }
  0xad   : > { %s5120_s23 = scalar_lea.vmem %s5119_s8, 256  ;;  %p5121_p3 = scmp.lt.s32.totalorder %s5770_s1, %s5119_s8 }
  0xae   : > { %p5116_p1 = pnand %p5114_p11, %p5778_p10  ;;  %p5122_p13 = scmp.lt.s32.totalorder %s5120_s23, %s5113_s25 }
  0xb0   : > { %p5117_p4 = pneg %p5116_p1  ;;  %p5123_p6 = por %p5122_p13, %p5121_p3 }
  0xb2   : > { %p5124_p7 = pnand %p5123_p6, %p5117_p4 }
  0xb4   : > { %5127 = shalt.err (!%p5124_p7)
}
  0xb5   : > { %s6331_s18 = smov 4   ;;  %s6332_s17 = smov 64  }
  0xb6   : > { %4695 = dma.hbm_to_vmem [thread:$0]  (!%p5760_p12), %s5768_s11, 128, %s5770_s1, %s5772_s2, %s6332_s17, %s6332_s17, %s6331_s18  }
  0xb7   : > { %s5460_s9 = smov [#allocation14]   ;;  %s5461_s20 = smov [#allocation17]  }
  0xb8   : > { %s810_s15 = sshll.u32 %s5460_s9, 4  ;;  %s842_s21 = sshll.u32 %s5461_s20, 4  ;;  %s811_s15 = int_to_ptr.vmem [resolvable:$true] %s810_s15  ;;  %s843_s21 = int_to_ptr.vmem [resolvable:$true] %s842_s21 }
  0xb9   : > { %s5139_s23 = scalar_lea.vmem %s811_s15, 1024  ;;  %p6333_p6 = scmp.ne.s32.totalorder %s6315_s14, 0 }
  0xba   : > { %p5140_p1 = scmp.ne.s32.totalorder %s811_s15, %s5139_s23  ;;  %p5147_p11 = scmp.lt.s32.totalorder %s811_s15, %s811_s15 }
  0xbb   : > { %p5148_p0 = scmp.lt.s32.totalorder %s5139_s23, %s5139_s23 }
  0xbc   : > { %p5142_p7 = pnand %p5140_p1, %p6333_p6 }
  0xbd   : > { %p5149_p2 = por %p5148_p0, %p5147_p11 }
  0xbe   : > { %p5143_p4 = pneg %p5142_p7 }
  0xc0   : > { %p5150_p5 = pnand %p5149_p2, %p5143_p4 }
  0xc2   : > { %5153 = shalt.err (!%p5150_p5)
}
  0xc3   : > { %p6334_p8 = scmp.ne.s32.totalorder %s6314_s7, 0  ;;  %s5165_s9 = scalar_lea.vmem %s843_s21, 1024 }
  0xc4   : > { %p5166_p9 = scmp.ne.s32.totalorder %s843_s21, %s5165_s9  ;;  %p5173_p1 = scmp.lt.s32.totalorder %s843_s21, %s843_s21 }
  0xc5   : > { %4664 = dma.hbm_to_vmem [thread:$0]  (!%p6334_p8), %s5512_s29, 1024, %s811_s15, [#allocation13], %s6332_s17, %s6332_s17, %s6331_s18  }
  0xc6   : > { %p5168_p3 = pnand %p5166_p9, %p6333_p6  ;;  %p5174_p7 = scmp.lt.s32.totalorder %s5165_s9, %s5165_s9 }
  0xc8   : > { %p5169_p13 = pneg %p5168_p3  ;;  %p5175_p12 = por %p5174_p7, %p5173_p1 }
  0xca   : > { %p5176_p10 = pnand %p5175_p12, %p5169_p13 }
  0xcc   : > { %5179 = shalt.err (!%p5176_p10)
}
  0xcd   : > { %4670 = dma.hbm_to_vmem [thread:$0]  (!%p6334_p8), %s5532_s19, 1024, %s843_s21, [#allocation16], %s6332_s17, %s6332_s17, %s6331_s18  }
  0xce   : > { %s5462_s11 = smov [#allocation20]   ;;  %s5463_s1 = smov [#allocation23]  }
  0xcf   : > { %s880_s15 = sshll.u32 %s5462_s11, 4  ;;  %s912_s25 = sshll.u32 %s5463_s1, 4  ;;  %s881_s15 = int_to_ptr.vmem [resolvable:$true] %s880_s15  ;;  %s913_s25 = int_to_ptr.vmem [resolvable:$true] %s912_s25 }
  0xd0   : > { %s5191_s8 = scalar_lea.vmem %s881_s15, 1024  ;;  %p5199_p10 = scmp.lt.s32.totalorder %s881_s15, %s881_s15 }
  0xd1   : > { %p5192_p4 = scmp.ne.s32.totalorder %s881_s15, %s5191_s8  ;;  %p5200_p0 = scmp.lt.s32.totalorder %s5191_s8, %s5191_s8 }
  0xd3   : > { %p5194_p11 = pnand %p5192_p4, %p6333_p6  ;;  %p5201_p2 = por %p5200_p0, %p5199_p10 }
  0xd5   : > { %p5195_p12 = pneg %p5194_p11 }
  0xd7   : > { %p5202_p5 = pnand %p5201_p2, %p5195_p12 }
  0xd9   : > { %5205 = shalt.err (!%p5202_p5)
}
  0xda   : > { %4676 = dma.hbm_to_vmem [thread:$0]  (!%p6334_p8), %s5562_s27, 1024, %s881_s15, [#allocation19], %s6332_s17, %s6332_s17, %s6331_s18  }
  0xdb   : > { %s5217_s21 = scalar_lea.vmem %s913_s25, 1024  ;;  %p5225_p1 = scmp.lt.s32.totalorder %s913_s25, %s913_s25 }
  0xdc   : > { %p5218_p9 = scmp.ne.s32.totalorder %s913_s25, %s5217_s21  ;;  %p5226_p7 = scmp.lt.s32.totalorder %s5217_s21, %s5217_s21 }
  0xde   : > { %p5220_p3 = pnand %p5218_p9, %p6333_p6  ;;  %p5227_p4 = por %p5226_p7, %p5225_p1 }
  0xe0   : > { %p5221_p13 = pneg %p5220_p3 }
  0xe2   : > { %p5228_p11 = pnand %p5227_p4, %p5221_p13 }
  0xe4   : > { %5231 = shalt.err (!%p5228_p11)
}
  0xe5   : > { %4682 = dma.hbm_to_vmem [thread:$0]  (!%p6334_p8), %s5582_s6, 1024, %s913_s25, [#allocation22], %s6332_s17, %s6332_s17, %s6331_s18  }
  0xe6   : > { %s5464_s20 = smov [#allocation26]   ;;  %s4013_s9 = sshll.u32 %s5758_s4, 2 }
  0xe7   : > { %s950_s23 = sshll.u32 %s5464_s20, 4  ;;  %s951_s23 = int_to_ptr.vmem [resolvable:$true] %s950_s23 }
  0xe8   : > { %s5243_s11 = scalar_lea.vmem %s951_s23, 2048  ;;  %p5251_p2 = scmp.lt.s32.totalorder %s951_s23, %s951_s23 }
  0xe9   : > { %p5244_p12 = scmp.ne.s32.totalorder %s951_s23, %s5243_s11  ;;  %p5252_p5 = scmp.lt.s32.totalorder %s5243_s11, %s5243_s11 }
  0xeb   : > { %p5246_p10 = pnand %p5244_p12, %p6333_p6  ;;  %p5253_p9 = por %p5252_p5, %p5251_p2 }
  0xed   : > { %p5247_p0 = pneg %p5246_p10 }
  0xef   : > { %p5254_p3 = pnand %p5253_p9, %p5247_p0 }
  0xf1   : > { %5257 = shalt.err (!%p5254_p3)
}
  0xf2   : > { %4688 = dma.hbm_to_vmem [thread:$0]  (!%p6334_p8), %s5612_s24, 2048, %s951_s23, [#allocation25], %s6332_s17, %s6332_s17, %s6331_s18  }
  0xf3   : > { %s4014_s14 = sshll.u32 %s5414_s0, 6  ;;  %s977_s15 = scalar_lea.vmem [#allocation6], %s4013_s9 }
  0xf4   : > { %s984_s1 = sshll.u32 %s977_s15, 4  ;;  %s982_s25 = scalar_lea.hbm %s5482_s5, %s4014_s14  ;;  %s985_s1 = int_to_ptr.vmem [resolvable:$true] %s984_s1 }
  0xf5   : > { %s974_s7 = scalar_lea.sflag [#allocation7], %s5758_s4  ;;  %s5258_s8 = scalar_lea.hbm %s982_s25, 64 }
  0xf6   : > { %p5259_p6 = scmp.ne.s32.totalorder %s982_s25, %s5258_s8  ;;  %p6335_p13 = scmp.ne.s32.totalorder %s6330_s10, 0 }
  0xf7   : > { %s5263_s21 = scalar_lea.hbm %s5482_s5, 128  ;;  %p5264_p4 = scmp.lt.s32.totalorder %s982_s25, %s5482_s5 }
  0xf8   : > { %p5261_p1 = pnand %p5259_p6, %p6335_p13  ;;  %p5265_p11 = scmp.lt.s32.totalorder %s5263_s21, %s5258_s8 }
  0xfa   : > { %p5262_p7 = pneg %p5261_p1  ;;  %p5266_p12 = por %p5265_p11, %p5264_p4 }
  0xfc   : > { %p5267_p10 = pnand %p5266_p12, %p5262_p7 }
  0xfe   : > { %5270 = shalt.err (!%p5267_p10)
}
  0xff   : > { %s5271_s18 = scalar_lea.vmem %s985_s1, 64  ;;  %s5465_s17 = smov [#allocation6]  }
 0x100   : > { %p5272_p8 = scmp.ne.s32.totalorder %s985_s1, %s5271_s18  ;;  %s5276_s20 = sshll.u32 %s5465_s17, 4  ;;  %s5277_s20 = int_to_ptr.vmem [resolvable:$false] %s5276_s20 }
 0x101   : > { %s5278_s23 = scalar_lea.vmem %s5277_s20, 128  ;;  %p5279_p5 = scmp.lt.s32.totalorder %s985_s1, %s5277_s20 }
 0x102   : > { %p5274_p0 = pnand %p5272_p8, %p6335_p13  ;;  %p5280_p9 = scmp.lt.s32.totalorder %s5278_s23, %s5271_s18 }
 0x104   : > { %p5275_p2 = pneg %p5274_p0  ;;  %p5281_p3 = por %p5280_p9, %p5279_p5 }
 0x106   : > { %p5282_p6 = pnand %p5281_p3, %p5275_p2 }
 0x108   : > { %5285 = shalt.err (!%p5282_p6)
}
 0x109   : > { %p6336_p1 = scmp.ne.s32.totalorder %s6329_s12, 0  ;;  %s1022_s11 = scalar_lea.hbm %s5492_s13, %s4014_s14 }
 0x10a   : > { %s1016_s15 = scalar_lea.vmem [#allocation11], %s4013_s9  ;;  %s5286_s21 = scalar_lea.hbm %s1022_s11, 64 }
 0x10b   : > { %4692 = dma.hbm_to_vmem [thread:$0]  (!%p6336_p1), %s982_s25, 64, %s985_s1, %s974_s7  }
 0x10c   : > { %s1024_s8 = sshll.u32 %s1016_s15, 4  ;;  %p5287_p7 = scmp.ne.s32.totalorder %s1022_s11, %s5286_s21  ;;  %s1025_s8 = int_to_ptr.vmem [resolvable:$true] %s1024_s8 }
 0x10d   : > { %s5291_s18 = scalar_lea.hbm %s5492_s13, 128  ;;  %p5292_p12 = scmp.lt.s32.totalorder %s1022_s11, %s5492_s13 }
 0x10e   : > { %p5289_p4 = pnand %p5287_p7, %p6335_p13  ;;  %p5293_p10 = scmp.lt.s32.totalorder %s5291_s18, %s5286_s21 }
 0x110   : > { %p5290_p11 = pneg %p5289_p4  ;;  %p5294_p8 = por %p5293_p10, %p5292_p12 }
 0x112   : > { %p5295_p0 = pnand %p5294_p8, %p5290_p11 }
 0x114   : > { %5298 = shalt.err (!%p5295_p0)
}
 0x115   : > { %s5299_s17 = scalar_lea.vmem %s1025_s8, 64  ;;  %s5466_s4 = smov [#allocation11]  }
 0x116   : > { %p5300_p2 = scmp.ne.s32.totalorder %s1025_s8, %s5299_s17  ;;  %s5304_s9 = sshll.u32 %s5466_s4, 4  ;;  %s5305_s9 = int_to_ptr.vmem [resolvable:$false] %s5304_s9 }
 0x117   : > { %s5306_s14 = scalar_lea.vmem %s5305_s9, 128  ;;  %p5307_p3 = scmp.lt.s32.totalorder %s1025_s8, %s5305_s9 }
 0x118   : > { %p5302_p5 = pnand %p5300_p2, %p6335_p13  ;;  %p5308_p6 = scmp.lt.s32.totalorder %s5306_s14, %s5299_s17 }
 0x11a   : > { %p5303_p9 = pneg %p5302_p5  ;;  %p5309_p7 = por %p5308_p6, %p5307_p3 }
 0x11c   : > { %p5310_p4 = pnand %p5309_p7, %p5303_p9 }
 0x11e   : > { %5313 = shalt.err (!%p5310_p4)
}
 0x11f   : > { %4698 = dma.hbm_to_vmem [thread:$0]  (!%p6336_p1), %s1022_s11, 64, %s1025_s8, %s5772_s2  }
 0x120   : > { %p6337_p11 = scmp.ne.s32.totalorder %s6313_s28, 0 }
 0x121   : > { %s5873_s10 = sand.u32 (!%p6337_p11), 1, %s5402_s16   ;;  %p6338_p13 = scmp.ne.s32.totalorder (!%p6337_p11), %s6323_s30, 0 }
 0x122   : > { %1039 = sbr.rel (%p6337_p11) target bundleno = 7446 (0x1d16), region = 140  ;;  %s4021_s1 = sshll.u32 (!%p6337_p11), %s5873_s10, 2 }
 0x123   : > { %s1042_s25 = scalar_lea.sflag (!%p6337_p11), [#allocation7], %s5873_s10  ;;  %s5877_s7 = scalar_lea.vmem (!%p6337_p11), [#allocation6], %s4021_s1 }
 0x127   : > { %5365 = dma.done.wait (%p6338_p13), %s1042_s25, 64  }
 0x128   : > { %5367 = vsyncadd (%p6338_p13), %s1042_s25, 4294967232  ;;  %s1050_s12 = sand.u32 1, %s5665_s26   ;;  %s4022_s28 = sshll.u32 %s5873_s10, 3 }
 0x129   : > { %s1051_s2 = scalar_lea.sflag [#allocation10], %s1050_s12  ;;  %s5887_s20 = scalar_lea.vmem [#allocation9], %s4022_s28 }
 0x12a   : > { %5369 = dma.done.wait (%p6338_p13), %s1051_s2, 192  }
 0x12b   : > { %5371 = vsyncadd (%p6338_p13), %s1051_s2, 4294967104  ;;  %s5893_s23 = scalar_lea.vmem [#allocation11], %s4021_s1  ;;  %p6339_p1 = scmp.eq.s32.totalorder %s5665_s26, 0 }
 0x12d   : > { %5373 = dma.done.wait (%p6339_p1), [#allocation13], 2048   ;;  %p6340_p12 = pmov %p6339_p1 }
 0x12e   : > { %p6341_p10 = pmov %p6339_p1 }
 0x12f   : > { %5375 = vsyncadd (%p6340_p12), [#allocation13], 4294965248 }
 0x130   : > { %5377 = dma.done.wait (%p6341_p10), [#allocation16], 2048   ;;  %p6342_p8 = pmov %p6339_p1 }
 0x131   : > { %p6343_p0 = pmov %p6339_p1 }
 0x132   : > { %5379 = vsyncadd (%p6342_p8), [#allocation16], 4294965248 }
 0x133   : > { %5381 = dma.done.wait (%p6343_p0), [#allocation19], 2048   ;;  %p6344_p2 = pmov %p6343_p0 }
 0x134   : > { %p6345_p5 = pmov %p6343_p0 }
 0x135   : > { %5383 = vsyncadd (%p6344_p2), [#allocation19], 4294965248 }
 0x136   : > { %5385 = dma.done.wait (%p6345_p5), [#allocation22], 2048   ;;  %p6346_p9 = pmov %p6343_p0 }
 0x137   : > { %p6347_p3 = pmov %p6343_p0 }
 0x138   : > { %5387 = vsyncadd (%p6346_p9), [#allocation22], 4294965248 }
 0x139   : > { %5389 = dma.done.wait (%p6347_p3), [#allocation25], 4096   ;;  %p6348_p6 = pmov %p6343_p0 }
 0x13a   : > { %v5467_v0 = vmov 0.0   ;;  %vm5468_vm0 = vmmov 0   ;;  %v4823_v1 = vld [vmem:[#allocation14 + $0x38] sm:$0xff]   ;;  %v4824_v2 = vld [vmem:[#allocation14 + $0x30] sm:$0xff]   ;;  %v4825_v3 = vld [vmem:[#allocation14 + $0x28] sm:$0xff]   ;;  %s6349_s26 = sld [smem:[#allocation47_spill]] }
 0x13b   : > { %5391 = vsyncadd (%p6348_p6), [#allocation25], 4294963200  ;;  %4330 = vmatprep.subr.bf16.mxu0 %v5467_v0  ;;  %4346 = vmatprep.mubr.msk.bf16.mxu0 %vm5468_vm0, %v5467_v0  ;;  %v4826_v4 = vld [vmem:[#allocation14 + $0x20] sm:$0xff]   ;;  %v4827_v5 = vld [vmem:[#allocation14 + $0x18] sm:$0xff]   ;;  %vm1806_vm1 = vcmask 261120   ;;  %s6350_s30 = sld [smem:[#allocation41_spill]] }
 0x13c   : > { %4350 = vmatprep.subr.bf16.mxu1 %v5467_v0  ;;  %4366 = vmatprep.mubr.msk.bf16.mxu1 %vm5468_vm0, %v5467_v0  ;;  %v4828_v6 = vld [vmem:[#allocation14 + $0x10] sm:$0xff]   ;;  %v4829_v7 = vld [vmem:[#allocation14 + $0x8] sm:$0xff]   ;;  %v4830_v8 = vld [vmem:[#allocation14] sm:$0xff]   ;;  %s5469_s11 = smov 96   ;;  %s6351_s15 = sld [smem:[#allocation39_spill]]  ;;  %vm1869_vm2 = vcmask 1043456  }
 0x13d   : > { %4331 = vmatpush3.bf16.msra.mxu0 %v4823_v1  ;;  %v4848_v9 = vld [vmem:[#allocation15 + $0x38] sm:$0xff]   ;;  %v4849_v10 = vld [vmem:[#allocation15 + $0x30] sm:$0xff]   ;;  %v1202_v11 = vld [vmem:[%s5877_s7] sm:$0xf]  ;;  %s6352_s8 = sld [smem:[#allocation49_spill]]  ;;  %vm1853_vm3 = vcmask 64512  }
 0x13e   : > { %4332 = vmatprep.subr.bf16.mxu0 %v5467_v0  ;;  %4351 = vmatpush3.bf16.msra.mxu1 %v4848_v9  ;;  %v4831_v12 = vld [vmem:[#allocation20 + $0x38] sm:$0xff]   ;;  %v4850_v13 = vld [vmem:[#allocation15 + $0x28] sm:$0xff]   ;;  %v4832_v14 = vld [vmem:[#allocation20 + $0x30] sm:$0xff]   ;;  %s5470_s21 = smov 64   ;;  %s5471_s18 = smov 32   ;;  %vm2702_vm4 = vcmask 130048  }
 0x13f   : > { %4352 = vmatprep.subr.bf16.mxu1 %v5467_v0  ;;  %v4851_v15 = vld [vmem:[#allocation15 + $0x20] sm:$0xff]   ;;  %v4833_v16 = vld [vmem:[#allocation20 + $0x28] sm:$0xff]   ;;  %v4852_v17 = vld [vmem:[#allocation15 + $0x18] sm:$0xff]   ;;  %s6353_s17 = sld [smem:[#allocation42_spill]]  ;;  %p1193_p7 = scmp.lt.s32.totalorder %s5410_s22, 1 }
 0x140   : > { %v4834_v18 = vld [vmem:[#allocation20 + $0x20] sm:$0xff]   ;;  %v4853_v19 = vld [vmem:[#allocation15 + $0x10] sm:$0xff]   ;;  %v4835_v20 = vld [vmem:[#allocation20 + $0x18] sm:$0xff]   ;;  %s6354_s4 = sld [smem:[#allocation43_spill]] }
 0x141   : > { %4333 = vmatpush3.bf16.msra.mxu0 %v4824_v2  ;;  %v4854_v21 = vld [vmem:[#allocation15 + $0x8] sm:$0xff]   ;;  %v4836_v22 = vld [vmem:[#allocation20 + $0x10] sm:$0xff]   ;;  %v4855_v23 = vld [vmem:[#allocation15] sm:$0xff]   ;;  %s6355_s9 = sld [smem:[#allocation44_spill]] }
 0x142   : > { %4334 = vmatprep.subr.bf16.mxu0 %v5467_v0  ;;  %4353 = vmatpush3.bf16.msra.mxu1 %v4849_v10  ;;  %v4837_v24 = vld [vmem:[#allocation20 + $0x8] sm:$0xff]   ;;  %v4856_v25 = vld [vmem:[#allocation21 + $0x38] sm:$0xff]   ;;  %v4838_v26 = vld [vmem:[#allocation20] sm:$0xff]   ;;  %s6356_s14 = sld [smem:[#allocation46_spill]] }
 0x143   : > { %4354 = vmatprep.subr.bf16.mxu1 %v5467_v0  ;;  %v4857_v27 = vld [vmem:[#allocation21 + $0x30] sm:$0xff]   ;;  %v4840_v29 = vld [vmem:[#allocation12 + $0x38] sm:$0xff]   ;;  %v4858_v30 = vld [vmem:[#allocation21 + $0x28] sm:$0xff]   ;;  %s6357_s1 = sld [smem:[#allocation37_spill]] }
 0x144   : > { %v4839_v28 = vld [vmem:[%s5887_s20] sm:$0xff]   ;;  %v4859_v32 = vld [vmem:[#allocation21 + $0x20] sm:$0xff]   ;;  %v4860_v34 = vld [vmem:[#allocation21 + $0x18] sm:$0xff]   ;;  %s1194_s25 = scalar_select %p1193_p7, %s5410_s22, 1 }
 0x145   : > { %4335 = vmatpush3.bf16.msra.mxu0 %v4825_v3  ;;  %v4841_v31 = vld [vmem:[#allocation12 + $0x30] sm:$0xff]   ;;  %v4842_v33 = vld [vmem:[#allocation12 + $0x28] sm:$0xff]   ;;  %v4843_v35 = vld [vmem:[#allocation12 + $0x20] sm:$0xff]   ;;  %s6358_s12 = sld [smem:[#allocation50_spill]] }
 0x146   : > { %4336 = vmatprep.subr.bf16.mxu0 %v5467_v0  ;;  %4355 = vmatpush3.bf16.msra.mxu1 %v4850_v13  ;;  %v4844_v36 = vld [vmem:[#allocation12 + $0x18] sm:$0xff]   ;;  %v4845_v37 = vld [vmem:[#allocation12 + $0x10] sm:$0xff]   ;;  %v4846_v38 = vld [vmem:[#allocation12 + $0x8] sm:$0xff]   ;;  %s6359_s2 = sld [smem:[#allocation51_spill]] }
 0x147   : > { %4356 = vmatprep.subr.bf16.mxu1 %v5467_v0  ;;  %v4847_v39 = vld [vmem:[#allocation12] sm:$0xff]   ;;  %v4861_v41 = vld [vmem:[#allocation21 + $0x10] sm:$0xff]   ;;  %v4862_v42 = vld [vmem:[#allocation21 + $0x8] sm:$0xff]   ;;  %s6360_s20 = sld [smem:[#allocation52_spill]] }
 0x148   : > { %v5966_v40 = vld [vmem:[%s5877_s7] sm:$0xf]  ;;  %v4035_v44 = vld [vmem:[%s5517_s3] ss:$0 sm:$0xff] }
 0x149   : > { %4337 = vmatpush3.bf16.msra.mxu0 %v4826_v4  ;;  %v4863_v43 = vld [vmem:[#allocation21] sm:$0xff]   ;;  %v4053_v55 = vld [vmem:[%s6349_s26] ss:$0 sm:$0xff]  ;;  %s1195_s7 = scalar_lea.vmem %s6357_s1, %s1194_s25  ;;  %s6362_s26 = sld [smem:[#allocation55_spill]] }
 0x14a   : > { %4338 = vmatprep.subr.bf16.mxu0 %v5467_v0  ;;  %4357 = vmatpush3.bf16.msra.mxu1 %v4851_v15  ;;  %v4044_v62 = vld [vmem:[%s6350_s30] ss:$0 sm:$0xff]  ;;  %s6363_s30 = sld [smem:[#allocation56_spill]]  ;;  %s5473_s25 = smov [#allocation27]  }
 0x14b   : > { %4358 = vmatprep.subr.bf16.mxu1 %v5467_v0 }
 0x14d   : > { %4339 = vmatpush3.bf16.msra.mxu0 %v4827_v5  ;;  %v4076_v5 = vld [vmem:[%s6351_s15] ss:$0 sm:$0xff]  ;;  %s6365_s15 = sld [smem:[#allocation58_spill]] }
 0x14e   : > { %4340 = vmatprep.subr.bf16.mxu0 %v5467_v0  ;;  %4359 = vmatpush3.bf16.msra.mxu1 %v4852_v17 }
 0x14f   : > { %4360 = vmatprep.subr.bf16.mxu1 %v5467_v0 }
 0x151   : > { %4341 = vmatpush3.bf16.msra.mxu0 %v4828_v6 }
 0x152   : > { %4342 = vmatprep.subr.bf16.mxu0 %v5467_v0  ;;  %4361 = vmatpush3.bf16.msra.mxu1 %v4853_v19 }
 0x153   : > { %4362 = vmatprep.subr.bf16.mxu1 %v5467_v0 }
 0x155   : > { %4343 = vmatpush3.bf16.msra.mxu0 %v4829_v7 }
 0x156   : > { %4344 = vmatprep.subr.bf16.mxu0 %v5467_v0  ;;  %4363 = vmatpush3.bf16.msra.mxu1 %v4854_v21 }
 0x157   : > { %4364 = vmatprep.subr.bf16.mxu1 %v5467_v0 }
 0x159   : > { %4345 = vmatpush3.bf16.msra.mxu0 %v4830_v8 }
 0x15a   : > { %4370 = vmatprep.subr.bf16.mxu0 %v5467_v0  ;;  %4365 = vmatpush3.bf16.msra.mxu1 %v4855_v23 }
 0x15b   : > { %4390 = vmatprep.subr.bf16.mxu1 %v5467_v0 }
 0x15c   : > { %4347 = vmatmul.mubr.bf16.vlgmr.msra.gmra.mxu0 %v1202_v11 }
 0x15d   : > { %4371 = vmatpush3.bf16.msra.mxu0 %v4831_v12  ;;  %4386 = vmatprep.mubr.msk.bf16.mxu0 %vm5468_vm0, %v5467_v0 }
 0x15e   : > { %4372 = vmatprep.subr.bf16.mxu0 %v5467_v0  ;;  %4367 = vmatmul.mubr.bf16.vlgmr.msra.gmra.mxu1 %v1202_v11 }
 0x15f   : > { %4391 = vmatpush3.bf16.msra.mxu1 %v4856_v25  ;;  %4406 = vmatprep.mubr.msk.bf16.mxu1 %vm5468_vm0, %v5467_v0 }
 0x160   : > { %4392 = vmatprep.subr.bf16.mxu1 %v5467_v0 }
 0x161   : > { %4373 = vmatpush3.bf16.msra.mxu0 %v4832_v14 }
 0x162   : > { %4374 = vmatprep.subr.bf16.mxu0 %v5467_v0 }
 0x163   : > { %4393 = vmatpush3.bf16.msra.mxu1 %v4857_v27 }
 0x164   : > { %4394 = vmatprep.subr.bf16.mxu1 %v5467_v0 }
 0x165   : > { %4375 = vmatpush3.bf16.msra.mxu0 %v4833_v16  ;;  %v4065_v16 = vld [vmem:[%s6352_s8] ss:$0 sm:$0xff]  ;;  %s6366_s8 = smov %s6365_s15 }
 0x166   : > { %4376 = vmatprep.subr.bf16.mxu0 %v5467_v0 }
 0x167   : > { %4395 = vmatpush3.bf16.msra.mxu1 %v4858_v30 }
 0x168   : > { %4396 = vmatprep.subr.bf16.mxu1 %v5467_v0 }
 0x169   : > { %4377 = vmatpush3.bf16.msra.mxu0 %v4834_v18 }
 0x16a   : > { %4378 = vmatprep.subr.bf16.mxu0 %v5467_v0 }
 0x16b   : > { %4397 = vmatpush3.bf16.msra.mxu1 %v4859_v32 }
 0x16c   : > { %4398 = vmatprep.subr.bf16.mxu1 %v5467_v0 }
 0x16d   : > { %4379 = vmatpush3.bf16.msra.mxu0 %v4835_v20 }
 0x16e   : > { %4380 = vmatprep.subr.bf16.mxu0 %v5467_v0 }
 0x16f   : > { %4399 = vmatpush3.bf16.msra.mxu1 %v4860_v34 }
 0x170   : > { %4400 = vmatprep.subr.bf16.mxu1 %v5467_v0 }
 0x171   : > { %4381 = vmatpush3.bf16.msra.mxu0 %v4836_v22 }
 0x172   : > { %4382 = vmatprep.subr.bf16.mxu0 %v5467_v0 }
 0x173   : > { %4401 = vmatpush3.bf16.msra.mxu1 %v4861_v41 }
 0x174   : > { %4402 = vmatprep.subr.bf16.mxu1 %v5467_v0 }
 0x175   : > { %4383 = vmatpush3.bf16.msra.mxu0 %v4837_v24  ;;  %v1687_v24 = vld [vmem:[%s5893_s23] sm:$0xf]  ;;  %s6361_s23 = sld [smem:[#allocation54_spill]] }
 0x176   : > { %4384 = vmatprep.subr.bf16.mxu0 %v5467_v0  ;;  %v5999_v25 = vunpack.c.l.bf16 %v1687_v24 }
 0x177   : > { %4403 = vmatpush3.bf16.msra.mxu1 %v4862_v42 }
 0x178   : > { %4404 = vmatprep.subr.bf16.mxu1 %v5467_v0 }
 0x179   : > { %4385 = vmatpush3.bf16.msra.mxu0 %v4838_v26 }
 0x17a   : > { %4410 = vmatprep.subr.bf16.mxu0 %v5467_v0 }
 0x17b   : > { %4405 = vmatpush3.bf16.msra.mxu1 %v4863_v43 }
 0x17c   : > { %4387 = vmatmul.mubr.bf16.vlgmr.msra.gmra.mxu0 %v4839_v28  ;;  %4430 = vmatprep.subr.bf16.mxu1 %v5467_v0 }
 0x17d   : > { %4411 = vmatpush3.bf16.msra.mxu0 %v4840_v29  ;;  %4426 = vmatprep.mubr.msk.bf16.mxu0 %vm5468_vm0, %v5467_v0 }
 0x17e   : > { %4412 = vmatprep.subr.bf16.mxu0 %v5467_v0  ;;  %4407 = vmatmul.mubr.bf16.vlgmr.msra.gmra.mxu1 %v4839_v28 }
 0x17f   : > { %4432 = vmatprep.mubr.msk.bf16.mxu1 %vm5468_vm0, %v5467_v0 }
 0x181   : > { %4413 = vmatpush3.bf16.msra.mxu0 %v4841_v31 }
 0x182   : > { %4414 = vmatprep.subr.bf16.mxu0 %v5467_v0 }
 0x185   : > { %4415 = vmatpush3.bf16.msra.mxu0 %v4842_v33 }
 0x186   : > { %4416 = vmatprep.subr.bf16.mxu0 %v5467_v0 }
 0x189   : > { %4417 = vmatpush3.bf16.msra.mxu0 %v4843_v35 }
 0x18a   : > { %4418 = vmatprep.subr.bf16.mxu0 %v5467_v0 }
 0x18d   : > { %4419 = vmatpush3.bf16.msra.mxu0 %v4844_v36 }
 0x18e   : > { %4420 = vmatprep.subr.bf16.mxu0 %v5467_v0 }
 0x191   : > { %4421 = vmatpush3.bf16.msra.mxu0 %v4845_v37 }
 0x192   : > { %4422 = vmatprep.subr.bf16.mxu0 %v5467_v0 }
 0x195   : > { %4423 = vmatpush3.bf16.msra.mxu0 %v4846_v38 }
 0x196   : > { %4424 = vmatprep.subr.bf16.mxu0 %v5467_v0 }
 0x199   : > { %4425 = vmatpush3.bf16.msra.mxu0 %v4847_v39 }
 0x19a   : > { %4454 = vmatprep.subr.bf16.mxu0 %v5467_v0 }
 0x19c   : > { %4427 = vmatmul.mubr.bf16.vlgmr.msra.gmra.mxu0 %v5966_v40 }
 0x19d   : > { %4458 = vmatprep.mubr.msk.bf16.mxu0 %vm5468_vm0, %v5467_v0 }
 0x21c   : > { %v1310_v45 = vpop.f32.mrf.mxu0 }
 0x21d   : > { %v1311_v46 = vadd.f32 %v4035_v44, %v1310_v45 }
 0x21e   : > { %v4348_v47 = vpop.f32.mrf.mxu0  ;;  %v1423_v63 = vpop.f32.mrf.mxu1 }
 0x21f   : > { %v1316_v48 = vpack.c.bf16 %v1311_v46, %v1311_v46  ;;  %v1424_v1 = vadd.f32 %v4044_v62, %v1423_v63 }
 0x220   : > { %v1313_v49 = vpop.f32.mrf.mxu0  ;;  %v4368_v2 = vpop.f32.mrf.mxu1 }
 0x221   : > { %1317 = vst [vmem:[#allocation2] sm:$0xf] %v1316_v48  ;;  %v1429_v3 = vpack.c.bf16 %v1424_v1, %v1424_v1  ;;  %v4868_v1 = vld [vmem:[#allocation17 + $0x18] sm:$0xff]   ;;  %v4869_v2 = vld [vmem:[#allocation17 + $0x10] sm:$0xff]  }
 0x222   : > { %v4349_v50 = vpop.f32.mrf.mxu0  ;;  %v1426_v4 = vpop.f32.mrf.mxu1  ;;  %4455 = vmatpush3.bf16.msra.mxu0 %v4868_v1 }
 0x223   : > { %1430 = vst [vmem:[#allocation3] sm:$0xf] %v1429_v3  ;;  %4456 = vmatprep.subr.bf16.mxu0 %v5467_v0 }
 0x224   : > { %v4369_v6 = vpop.f32.mrf.mxu1 }
 0x225   : > { %v4866_v6 = vld [vmem:[#allocation17 + $0x8] sm:$0xff]  }
 0x226   : > { %4457 = vmatpush3.bf16.msra.mxu0 %v4869_v2 }
 0x227   : > { %4470 = vmatprep.subr.bf16.mxu0 %v5467_v0 }
 0x228   : > { %v1803_v51 = vld [vmem:[#allocation2] sm:$0xf] }
 0x229   : > { %v1811_v52 = vsel %vm1806_vm1, %v1803_v51, 0  ;;  %v5979_v53 = vcombine.low %v1803_v51, %v1803_v51 }
 0x22a   : > { %4431 = vmatpush3.bf16.xpose.msra.mxu1 %v1811_v52  ;;  %v1804_v13 = vld [vmem:[#allocation3] sm:$0xf] }
 0x22b   : > { %1924 = vrot.lane.b32.xlu1 %v5979_v53, %s5469_s11  ;;  %4436 = vmatprep.subr.bf16.mxu1 %v5467_v0  ;;  %v1871_v15 = vsel %vm1869_vm2, %v1804_v13, 0 }
 0x23c   : > { %v1542_v54 = vpop.f32.mrf.mxu0 }
 0x23d   : > { %v1543_v58 = vadd.f32 %v4053_v55, %v1542_v54 }
 0x23e   : > { %v4388_v56 = vpop.f32.mrf.mxu0  ;;  %v1664_v17 = vpop.f32.mrf.mxu1 }
 0x23f   : > { %v1665_v19 = vadd.f32 %v4065_v16, %v1664_v17  ;;  %v6014_v56 = vcombine.low %v1804_v13, %v1804_v13 }
 0x240   : > { %v1545_v57 = vpop.f32.mrf.mxu0  ;;  %v4408_v18 = vpop.f32.mrf.mxu1 }
 0x241   : > { %v1546_v59 = vadd.f32 %v4053_v55, %v1545_v57 }
 0x242   : > { %v4389_v60 = vpop.f32.mrf.mxu0  ;;  %v1667_v20 = vpop.f32.mrf.mxu1 }
 0x243   : > { %v4191_v61 = vpack.c.bf16 %v1546_v59, %v1543_v58  ;;  %v1668_v21 = vadd.f32 %v4065_v16, %v1667_v20 }
 0x244   : > { %v4409_v22 = vpop.f32.mrf.mxu1 }
 0x245   : > { %4192 = vst [vmem:[#allocation4] sm:$0xff] %v4191_v61   ;;  %v4196_v23 = vpack.c.bf16 %v1668_v21, %v1665_v19 }
 0x247   : > { %4197 = vst [vmem:[#allocation5] sm:$0xff] %v4196_v23  }
 0x25c   : > { %v1796_v7 = vpop.f32.mrf.mxu0 }
 0x25d   : > { %v1797_v8 = vadd.f32 %v4076_v5, %v1796_v7 }
 0x25e   : > { %v4428_v9 = vpop.f32.mrf.mxu0 }
 0x25f   : > { %v1802_v10 = vmul.f32 0.17677669, %v1797_v8  ;;  %v4867_v8 = vld [vmem:[#allocation17] sm:$0xff]  }
 0x260   : > { %v1799_v11 = vpop.f32.mrf.mxu0 }
 0x261   : > { %v5987_v12 = vpack.c.bf16 %v1802_v10, %v1802_v10 }
 0x262   : > { %v4429_v14 = vpop.f32.mrf.mxu0 }
 0x263   : > { %1919 = vrot.lane.b32.xlu1 %v5987_v12, %s5469_s11  ;;  %4433 = vmatmul.mubr.msk.bf16.vlgmr.msra.gmra.mxu1 %vm1806_vm1, %v5987_v12 }
 0x264   : > { %4437 = vmatpush3.bf16.msra.mxu1 %v1871_v15  ;;  %4438 = vmatprep.mubr.msk.bf16.mxu1 %vm5468_vm0, %v5467_v0 }
 0x265   : > { %4442 = vmatprep.subr.bf16.mxu1 %v5467_v0 }
 0x29d   : > { %v1925_v41 = vpop.permute.xlu1 %1924 }
 0x29e   : > { %v1930_v43 = vsel %vm1806_vm1, %v1925_v41, 0 }
 0x2d5   : > { %v1920_v44 = vpop.permute.xlu1 %1919 }
 0x323   : > { %v1847_v26 = vpop.f32.mrf.mxu1 }
 0x324   : > { %v1848_v27 = vadd.f32 %v1847_v26, %v5999_v25 }
 0x325   : > { %v4434_v28 = vpop.f32.mrf.mxu1 }
 0x326   : > { %v1854_v29 = vsel %vm1853_vm3, %v1848_v27, -inf }
 0x327   : > { %1855 = vmax.xlane.f32.xlu0 %v1854_v29  ;;  %v1850_v30 = vpop.f32.mrf.mxu1 }
 0x329   : > { %v4435_v31 = vpop.f32.mrf.mxu1 }
 0x3b0   : > { %v1856_v32 = vpop.xlane.xlu0 %1855 }
 0x3b1   : > { %v1857_v33 = vsub.f32 %v1848_v27, %v1856_v32 }
 0x3b3   : > { %v1858_v34 = vmul.f32 1.442695, %v1857_v33 }
 0x3b5   : > { %4932 = vpow2.f32 %v1858_v34 }
 0x3c2   : > { %v4933_v35 = vpop.eup %4932 }
 0x3c3   : > { %v1860_v36 = vsel %vm1853_vm3, %v4933_v35, 0.0 }
 0x3c4   : > { %1861 = vadd.xlane.f32.xlu0 %v1860_v36 }
 0x44d   : > { %v1862_v37 = vpop.xlane.xlu0 %1861 }
 0x44e   : > { %4934 = vrcp.f32 %v1862_v37 }
 0x45b   : > { %v4935_v38 = vpop.eup %4934 }
 0x45c   : > { %v1864_v39 = vmul.f32 %v4935_v38, %v4933_v35 }
 0x45e   : > { %v1865_v42 = vpack.c.bf16 %v1864_v39, %v1864_v39 }
 0x460   : > { %4439 = vmatmul.mubr.msk.bf16.vlgmr.msra.gmra.mxu1 %vm1853_vm3, %v1865_v42  ;;  %v4870_v42 = vld [vmem:[#allocation17 + $0x28] sm:$0xff]  }
 0x461   : > { %4443 = vmatpush3.bf16.xpose.msra.mxu1 %v1930_v43  ;;  %4444 = vmatprep.mubr.msk.bf16.mxu1 %vm5468_vm0, %v5467_v0 }
 0x462   : > { %4448 = vmatprep.subr.bf16.mxu1 %v5467_v0 }
 0x468   : > { %4445 = vmatmul.mubr.msk.bf16.vlgmr.msra.gmra.mxu1 %vm1806_vm1, %v1920_v44 }
 0x469   : > { %4450 = vmatprep.mubr.msk.bf16.mxu1 %vm5468_vm0, %v5467_v0 }
 0x520   : > { %v1907_v45 = vpop.f32.mrf.mxu1 }
 0x521   : > { %v1913_v10 = vpack.c.bf16 %v1907_v45, %v1907_v45 }
 0x522   : > { %v4440_v46 = vpop.f32.mrf.mxu1 }
 0x524   : > { %v1910_v47 = vpop.f32.mrf.mxu1 }
 0x526   : > { %v4441_v48 = vpop.f32.mrf.mxu1 }
 0x528   : > { %v1966_v49 = vpop.f32.mrf.mxu1 }
 0x529   : > { %v1967_v50 = vadd.f32 %v1966_v49, %v5999_v25 }
 0x52a   : > { %v4446_v51 = vpop.f32.mrf.mxu1 }
 0x52b   : > { %v1972_v52 = vsel %vm1853_vm3, %v1967_v50, -inf }
 0x52c   : > { %1973 = vmax.xlane.f32.xlu0 %v1972_v52  ;;  %v1969_v54 = vpop.f32.mrf.mxu1 }
 0x52e   : > { %v4447_v55 = vpop.f32.mrf.mxu1 }
 0x542   : > { %1987 = vrot.lane.b32.xlu0 %v6014_v56, %s5469_s11 }
 0x546   : > { %2152 = vrot.lane.b32.xlu0 %v5979_v53, %s5470_s21 }
 0x54a   : > { %2150 = vrot.lane.b32.xlu0 %v5987_v12, %s5470_s21 }
 0x5b5   : > { %v1974_v57 = vpop.xlane.xlu0 %1973 }
 0x5b6   : > { %v1975_v58 = vsub.f32 %v1967_v50, %v1974_v57 }
 0x5b8   : > { %v1976_v59 = vmul.f32 1.442695, %v1975_v58 }
 0x5b9   : > { %v1988_v60 = vpop.permute.xlu0 %1987 }
 0x5ba   : > { %4936 = vpow2.f32 %v1976_v59  ;;  %v1993_v61 = vsel %vm1869_vm2, %v1988_v60, 0 }
 0x5bb   : > { %4449 = vmatpush3.bf16.msra.mxu1 %v1993_v61 }
 0x5bc   : > { %4462 = vmatprep.subr.bf16.mxu1 %v5467_v0 }
 0x5bd   : > { %v2153_v13 = vpop.permute.xlu0 %2152 }
 0x5be   : > { %v2158_v17 = vsel %vm1806_vm1, %v2153_v13, 0 }
 0x5c1   : > { %v2151_v21 = vpop.permute.xlu0 %2150 }
 0x5c7   : > { %v4937_v62 = vpop.eup %4936 }
 0x5c8   : > { %v1978_v63 = vsel %vm1853_vm3, %v4937_v62, 0.0 }
 0x5c9   : > { %1979 = vadd.xlane.f32.xlu1 %v1978_v63 }
 0x5da   : > { %2212 = vrot.lane.b32.xlu1 %v6014_v56, %s5470_s21 }
 0x652   : > { %v1980_v3 = vpop.xlane.xlu1 %1979 }
 0x653   : > { %4938 = vrcp.f32 %v1980_v3 }
 0x656   : > { %v2213_v9 = vpop.permute.xlu1 %2212 }
 0x657   : > { %v2218_v11 = vsel %vm1869_vm2, %v2213_v9, 0 }
 0x660   : > { %v4939_v4 = vpop.eup %4938 }
 0x661   : > { %v1982_v5 = vmul.f32 %v4939_v4, %v4937_v62 }
 0x663   : > { %v1983_v7 = vpack.c.bf16 %v1982_v5, %v1982_v5 }
 0x665   : > { %4451 = vmatmul.mubr.msk.bf16.vlgmr.msra.gmra.mxu1 %vm1853_vm3, %v1983_v7 }
 0x666   : > { %4463 = vmatpush3.bf16.msra.mxu1 %v4866_v6  ;;  %4466 = vmatprep.mubr.msk.bf16.mxu1 %vm5468_vm0, %v5467_v0 }
 0x667   : > { %4464 = vmatprep.subr.bf16.mxu1 %v5467_v0 }
 0x66a   : > { %4465 = vmatpush3.bf16.msra.mxu1 %v4867_v8  ;;  %v4872_v8 = vld [vmem:[#allocation17 + $0x38] sm:$0xff]  }
 0x66b   : > { %4476 = vmatprep.subr.bf16.mxu1 %v5467_v0 }
 0x66d   : > { %4467 = vmatmul.mubr.msk.bf16.vlgmr.msra.gmra.mxu1 %vm1806_vm1, %v1913_v10  ;;  %v4873_v10 = vld [vmem:[#allocation17 + $0x30] sm:$0xff]  }
 0x66e   : > { %4477 = vmatpush3.bf16.msra.mxu1 %v2218_v11  ;;  %4478 = vmatprep.mubr.msk.bf16.mxu1 %vm5468_vm0, %v5467_v0 }
 0x66f   : > { %4490 = vmatprep.subr.bf16.mxu1 %v5467_v0 }
 0x725   : > { %v2029_v14 = vpop.f32.mrf.mxu1 }
 0x726   : > { %v2035_v15 = vpack.c.bf16 %v2029_v14, %v2029_v14 }
 0x727   : > { %v4452_v16 = vpop.f32.mrf.mxu1 }
 0x728   : > { %4459 = vmatmul.mubr.msk.bf16.vlgmr.msra.gmra.mxu0 %vm1806_vm1, %v2035_v15 }
 0x729   : > { %4471 = vmatpush3.bf16.xpose.msra.mxu0 %v2158_v17  ;;  %v2032_v18 = vpop.f32.mrf.mxu1  ;;  %4472 = vmatprep.mubr.msk.bf16.mxu0 %vm5468_vm0, %v5467_v0  ;;  %v6085_v17 = vld [vmem:[#allocation4] sm:$0xff]  }
 0x72a   : > { %4482 = vmatprep.subr.bf16.mxu0 %v5467_v0 }
 0x72b   : > { %v4453_v19 = vpop.f32.mrf.mxu1 }
 0x72d   : > { %v6044_v20 = vpop.f32.mrf.mxu1 }
 0x72f   : > { %v4468_v22 = vpop.f32.mrf.mxu1 }
 0x730   : > { %4473 = vmatmul.mubr.msk.bf16.vlgmr.msra.gmra.mxu0 %vm1806_vm1, %v2151_v21  ;;  %v2660_v21 = vsel %vm1806_vm1, %v6085_v17, 0 }
 0x731   : > { %v2147_v23 = vpop.f32.mrf.mxu1  ;;  %4486 = vmatprep.mubr.msk.bf16.mxu0 %vm5468_vm0, %v5467_v0  ;;  %4483 = vmatpush3.bf16.msra.mxu0 %v4870_v42  ;;  %v4879_v42 = vld [vmem:[#allocation18 + $0x18] sm:$0xff]  }
 0x732   : > { %4484 = vmatprep.subr.bf16.mxu0 %v5467_v0 }
 0x733   : > { %v4469_v24 = vpop.f32.mrf.mxu1 }
 0x7e8   : > { %v6049_v26 = vpop.f32.mrf.mxu0 }
 0x7e9   : > { %v2145_v5 = vadd.f32 %v6044_v20, %v6049_v26  ;;  %v4107_v26 = vld [vmem:[%s6353_s17] ss:$0 sm:$0xff]  ;;  %s1192_s17 = scalar_lea.vmem [#allocation27], %s4022_s28 }
 0x7ea   : > { %v4460_v27 = vpop.f32.mrf.mxu0 }
 0x7ec   : > { %v2092_v28 = vpop.f32.mrf.mxu0 }
 0x7ed   : > { %v1686_v28 = vunpack.c.l.bf16 %v5966_v40  ;;  %v4877_v40 = vld [vmem:[#allocation18 + $0x28] sm:$0xff]  }
 0x7ee   : > { %v4461_v29 = vpop.f32.mrf.mxu0 }
 0x7f0   : > { %v2194_v30 = vpop.f32.mrf.mxu0 }
 0x7f1   : > { %v2195_v31 = vadd.f32 %v2194_v30, %v5999_v25 }
 0x7f2   : > { %v4474_v32 = vpop.f32.mrf.mxu0 }
 0x7f3   : > { %v2200_v33 = vsel %vm1853_vm3, %v2195_v31, -inf }
 0x7f4   : > { %2201 = vmax.xlane.f32.xlu0 %v2200_v33  ;;  %v2197_v34 = vpop.f32.mrf.mxu0 }
 0x7f5   : > { %v4875_v34 = vld [vmem:[#allocation18 + $0x38] sm:$0xff]  }
 0x7f6   : > { %v4475_v35 = vpop.f32.mrf.mxu0 }
 0x7f7   : > { %v4876_v35 = vld [vmem:[#allocation18 + $0x30] sm:$0xff]  }
 0x87d   : > { %v2202_v36 = vpop.xlane.xlu0 %2201 }
 0x87e   : > { %v2203_v37 = vsub.f32 %v2195_v31, %v2202_v36 }
 0x880   : > { %v2204_v38 = vmul.f32 1.442695, %v2203_v37 }
 0x882   : > { %4940 = vpow2.f32 %v2204_v38 }
 0x88f   : > { %v4941_v39 = vpop.eup %4940 }
 0x890   : > { %v2206_v41 = vsel %vm1853_vm3, %v4941_v39, 0.0 }
 0x891   : > { %2207 = vadd.xlane.f32.xlu1 %v2206_v41  ;;  %v4878_v41 = vld [vmem:[#allocation18 + $0x20] sm:$0xff]  }
 0x8a2   : > { %2323 = vrot.lane.b32.xlu1 %v5979_v53, %s5471_s18 }
 0x8a6   : > { %2321 = vrot.lane.b32.xlu1 %v5987_v12, %s5471_s18  ;;  %v4871_v12 = vld [vmem:[#allocation17 + $0x20] sm:$0xff]  }
 0x8a7   : > { %4485 = vmatpush3.bf16.msra.mxu0 %v4871_v12  ;;  %v4108_v12 = vld [vmem:[%s6354_s4] ss:$0 sm:$0xff]  ;;  %s3740_s4 = sshll.u32 %s1192_s17, 4  ;;  %s3741_s4 = int_to_ptr.vmem [resolvable:$true] %s3740_s4 }
 0x8a8   : > { %4496 = vmatprep.subr.bf16.mxu0 %v5467_v0  ;;  %s5314_s1 = scalar_lea.vmem %s3741_s4, 128 }
 0x8a9   : > { %p5315_p4 = scmp.ne.s32.totalorder %s3741_s4, %s5314_s1 }
 0x91a   : > { %v2208_v43 = vpop.xlane.xlu1 %2207 }
 0x91b   : > { %4942 = vrcp.f32 %v2208_v43  ;;  %v4880_v43 = vld [vmem:[#allocation18 + $0x10] sm:$0xff]  }
 0x91e   : > { %v2324_v46 = vpop.permute.xlu1 %2323 }
 0x91f   : > { %v2329_v48 = vsel %vm1806_vm1, %v2324_v46, 0 }
 0x922   : > { %v2322_v53 = vpop.permute.xlu1 %2321 }
 0x928   : > { %v4943_v44 = vpop.eup %4942 }
 0x929   : > { %v2210_v45 = vmul.f32 %v4943_v44, %v4941_v39  ;;  %v4881_v44 = vld [vmem:[#allocation18 + $0x8] sm:$0xff]  }
 0x92b   : > { %v2211_v47 = vpack.c.bf16 %v2210_v45, %v2210_v45  ;;  %v4882_v45 = vld [vmem:[#allocation18] sm:$0xff]  }
 0x92d   : > { %4479 = vmatmul.mubr.msk.bf16.vlgmr.msra.gmra.mxu1 %vm1853_vm3, %v2211_v47 }
 0x92e   : > { %4491 = vmatpush3.bf16.xpose.msra.mxu1 %v2329_v48  ;;  %4492 = vmatprep.mubr.msk.bf16.mxu1 %vm5468_vm0, %v5467_v0 }
 0x92f   : > { %4502 = vmatprep.subr.bf16.mxu1 %v5467_v0 }
 0x935   : > { %4493 = vmatmul.mubr.msk.bf16.vlgmr.msra.gmra.mxu1 %vm1806_vm1, %v2322_v53 }
 0x936   : > { %4506 = vmatprep.mubr.msk.bf16.mxu1 %vm5468_vm0, %v5467_v0  ;;  %4503 = vmatpush3.bf16.msra.mxu1 %v4872_v8 }
 0x937   : > { %4504 = vmatprep.subr.bf16.mxu1 %v5467_v0 }
 0x93a   : > { %4505 = vmatpush3.bf16.msra.mxu1 %v4873_v10 }
 0x93b   : > { %4530 = vmatprep.subr.bf16.mxu1 %v5467_v0 }
 0x9ed   : > { %v2254_v49 = vpop.f32.mrf.mxu1 }
 0x9ee   : > { %v2260_v50 = vpack.c.bf16 %v2254_v49, %v2254_v49 }
 0x9ef   : > { %v4480_v51 = vpop.f32.mrf.mxu1 }
 0x9f0   : > { %4487 = vmatmul.mubr.msk.bf16.vlgmr.msra.gmra.mxu0 %vm1806_vm1, %v2260_v50  ;;  %v4109_v50 = vld [vmem:[%s6355_s9] ss:$0 sm:$0xff] }
 0x9f1   : > { %v2257_v52 = vpop.f32.mrf.mxu1  ;;  %4498 = vmatprep.mubr.msk.bf16.mxu0 %vm5468_vm0, %v5467_v0 }
 0x9f3   : > { %v4481_v54 = vpop.f32.mrf.mxu1 }
 0x9f5   : > { %v2365_v55 = vpop.f32.mrf.mxu1 }
 0x9f6   : > { %v2366_v57 = vadd.f32 %v2365_v55, %v5999_v25  ;;  %v4110_v55 = vld [vmem:[%s6356_s14] ss:$0 sm:$0xff]  ;;  %s3726_s14 = scalar_lea.sflag [#allocation8], %s5873_s10 }
 0x9f7   : > { %v4494_v58 = vpop.f32.mrf.mxu1 }
 0x9f8   : > { %v2371_v59 = vsel %vm1853_vm3, %v2366_v57, -inf }
 0x9f9   : > { %2372 = vmax.xlane.f32.xlu0 %v2371_v59  ;;  %v2368_v60 = vpop.f32.mrf.mxu1 }
 0x9fb   : > { %v4495_v61 = vpop.f32.mrf.mxu1 }
 0xa0f   : > { %2383 = vrot.lane.b32.xlu0 %v6014_v56, %s5471_s18 }
 0xa82   : > { %v2373_v62 = vpop.xlane.xlu0 %2372 }
 0xa83   : > { %v2374_v63 = vsub.f32 %v2366_v57, %v2373_v62 }
 0xa85   : > { %v2375_v1 = vmul.f32 1.442695, %v2374_v63 }
 0xa86   : > { %v2384_v2 = vpop.permute.xlu0 %2383 }
 0xa87   : > { %4944 = vpow2.f32 %v2375_v1  ;;  %v2389_v3 = vsel %vm1869_vm2, %v2384_v2, 0  ;;  %v6114_v1 = vld [vmem:[#allocation5] sm:$0xff]   ;;  %v2646_v2 = vlaneseq }
 0xa88   : > { %4497 = vmatpush3.bf16.msra.mxu0 %v2389_v3 }
 0xa89   : > { %4510 = vmatprep.subr.bf16.mxu0 %v5467_v0  ;;  %v6127_v3 = vshrl.u32 %v2646_v2, 7 }
 0xa94   : > { %v4945_v25 = vpop.eup %4944 }
 0xa95   : > { %v2377_v4 = vsel %vm1853_vm3, %v4945_v25, 0.0 }
 0xa96   : > { %2378 = vadd.xlane.f32.xlu1 %v2377_v4 }
 0xab0   : > { %v2314_v6 = vpop.f32.mrf.mxu0 }
 0xab1   : > { %v2320_v7 = vadd.f32 %v2314_v6, %v2145_v5  ;;  %v2648_v5 = vsub.s32 0, %v6127_v3 }
 0xab2   : > { %v4488_v56 = vpop.f32.mrf.mxu0 }
 0xab4   : > { %v2317_v9 = vpop.f32.mrf.mxu0 }
 0xab6   : > { %v4489_v11 = vpop.f32.mrf.mxu0 }
 0xb1f   : > { %v2379_v13 = vpop.xlane.xlu1 %2378 }
 0xb20   : > { %4946 = vrcp.f32 %v2379_v13 }
 0xb2d   : > { %v4947_v14 = vpop.eup %4946 }
 0xb2e   : > { %v2381_v15 = vmul.f32 %v4947_v14, %v4945_v25  ;;  %v1689_v25 = vld [vmem:[%s1195_s7] sm:$0x1]  ;;  %s5318_s7 = sshll.u32 %s5473_s25, 4  ;;  %s5319_s7 = int_to_ptr.vmem [resolvable:$false] %s5318_s7 }
 0xb2f   : > { %v1690_v4 = vunpack.c.l.bf16 %v1689_v25  ;;  %p5321_p12 = scmp.lt.s32.totalorder %s3741_s4, %s5319_s7 }
 0xb30   : > { %v2382_v16 = vpack.c.bf16 %v2381_v15, %v2381_v15 }
 0xb31   : > { %v6132_v6 = vrot.slane %v1690_v4, %v2648_v5 }
 0xb32   : > { %4499 = vmatmul.mubr.msk.bf16.vlgmr.msra.gmra.mxu0 %vm1853_vm3, %v2382_v16 }
 0xb33   : > { %4526 = vmatprep.mubr.msk.bf16.mxu0 %vm5468_vm0, %v5467_v0  ;;  %4511 = vmatpush3.bf16.msra.mxu0 %v4875_v34 }
 0xb34   : > { %4512 = vmatprep.subr.bf16.mxu0 %v5467_v0 }
 0xb37   : > { %4513 = vmatpush3.bf16.msra.mxu0 %v4876_v35 }
 0xb38   : > { %4514 = vmatprep.subr.bf16.mxu0 %v5467_v0 }
 0xb3b   : > { %4515 = vmatpush3.bf16.msra.mxu0 %v4877_v40 }
 0xb3c   : > { %4516 = vmatprep.subr.bf16.mxu0 %v5467_v0 }
 0xb3f   : > { %4517 = vmatpush3.bf16.msra.mxu0 %v4878_v41 }
 0xb40   : > { %4518 = vmatprep.subr.bf16.mxu0 %v5467_v0 }
 0xb43   : > { %4519 = vmatpush3.bf16.msra.mxu0 %v4879_v42 }
 0xb44   : > { %4520 = vmatprep.subr.bf16.mxu0 %v5467_v0 }
 0xb47   : > { %4521 = vmatpush3.bf16.msra.mxu0 %v4880_v43  ;;  %v4886_v43 = vld [vmem:[#allocation23 + $0x18] sm:$0xff]  }
 0xb48   : > { %4522 = vmatprep.subr.bf16.mxu0 %v5467_v0 }
 0xb4b   : > { %4523 = vmatpush3.bf16.msra.mxu0 %v4881_v44  ;;  %v4887_v44 = vld [vmem:[#allocation23 + $0x10] sm:$0xff]  }
 0xb4c   : > { %4524 = vmatprep.subr.bf16.mxu0 %v5467_v0 }
 0xb4f   : > { %4525 = vmatpush3.bf16.msra.mxu0 %v4882_v45 }
 0xb50   : > { %4554 = vmatprep.subr.bf16.mxu0 %v5467_v0 }
 0xbf2   : > { %v2425_v18 = vpop.f32.mrf.mxu0 }
 0xbf3   : > { %v2431_v19 = vpack.c.bf16 %v2425_v18, %v2425_v18 }
 0xbf4   : > { %v4500_v20 = vpop.f32.mrf.mxu0 }
 0xbf5   : > { %4507 = vmatmul.mubr.msk.bf16.vlgmr.msra.gmra.mxu1 %vm1806_vm1, %v2431_v19 }
 0xbf6   : > { %4531 = vmatpush3.bf16.xpose.msra.mxu1 %v2660_v21  ;;  %v2428_v22 = vpop.f32.mrf.mxu0  ;;  %4532 = vmatprep.mubr.msk.bf16.mxu1 %vm5468_vm0, %v5467_v0 }
 0xbf7   : > { %4536 = vmatprep.subr.bf16.mxu1 %v5467_v0 }
 0xbf8   : > { %v4501_v23 = vpop.f32.mrf.mxu0 }
 0xcb5   : > { %v2485_v24 = vpop.f32.mrf.mxu1 }
 0xcb6   : > { %v2491_v27 = vadd.f32 %v2485_v24, %v2320_v7 }
 0xcb7   : > { %v4508_v29 = vpop.f32.mrf.mxu1 }
 0xcb8   : > { %v2499_v30 = vadd.f32 %v4107_v26, %v2491_v27 }
 0xcb9   : > { %v2488_v31 = vpop.f32.mrf.mxu1 }
 0xcba   : > { %v2500_v32 = vadd.f32 %v2499_v30, %v1686_v28 }
 0xcbb   : > { %v4509_v33 = vpop.f32.mrf.mxu1 }
 0xcbc   : > { %2503 = vadd.xlane.f32.xlu0 %v2500_v32 }
 0xd45   : > { %v2504_v36 = vpop.xlane.xlu0 %2503 }
 0xd46   : > { %v2506_v37 = vmul.f32 0.0078125, %v2504_v36 }
 0xd48   : > { %v2507_v38 = vsub.f32 %v2500_v32, %v2506_v37 }
 0xd4a   : > { %v2508_v39 = vmul.f32 %v2507_v38, %v2507_v38 }
 0xd4c   : > { %2509 = vadd.xlane.f32.xlu1 %v2508_v39 }
 0xdd5   : > { %v2510_v46 = vpop.xlane.xlu1 %2509 }
 0xdd6   : > { %v2511_v47 = vmul.f32 0.0078125, %v2510_v46 }
 0xdd8   : > { %v2512_v48 = vadd.f32 1e-05, %v2511_v47 }
 0xdda   : > { %4948 = vrsqrt.f32 %v2512_v48  ;;  %v4884_v48 = vld [vmem:[#allocation23 + $0x8] sm:$0xff]  }
 0xde7   : > { %v4949_v53 = vpop.eup %4948 }
 0xde8   : > { %v2514_v49 = vmul.f32 %v4949_v53, %v2507_v38 }
 0xdea   : > { %v2521_v51 = vmul.f32 %v4108_v12, %v2514_v49  ;;  %v4885_v12 = vld [vmem:[#allocation23] sm:$0xff]  }
 0xdec   : > { %v6105_v52 = vadd.f32 %v4109_v50, %v2521_v51 }
 0xdee   : > { %v2529_v54 = vpack.c.bf16 %v6105_v52, %v6105_v52 }
 0xdf0   : > { %4527 = vmatmul.mubr.bf16.vlgmr.msra.gmra.mxu0 %v2529_v54 }
 0xdf1   : > { %4558 = vmatprep.mubr.msk.bf16.mxu0 %vm5468_vm0, %v5467_v0  ;;  %4555 = vmatpush3.bf16.msra.mxu0 %v4886_v43 }
 0xdf2   : > { %4556 = vmatprep.subr.bf16.mxu0 %v5467_v0 }
 0xdf5   : > { %4557 = vmatpush3.bf16.msra.mxu0 %v4887_v44 }
 0xdf6   : > { %4570 = vmatprep.subr.bf16.mxu0 %v5467_v0 }
 0xeb0   : > { %v2635_v57 = vpop.f32.mrf.mxu0 }
 0xeb1   : > { %v2636_v58 = vadd.f32 %v4110_v55, %v2635_v57 }
 0xeb2   : > { %v4528_v59 = vpop.f32.mrf.mxu0 }
 0xeb3   : > { %v2641_v60 = vmul.f32 0.17677669, %v2636_v58 }
 0xeb4   : > { %v2638_v61 = vpop.f32.mrf.mxu0 }
 0xeb5   : > { %v6112_v62 = vpack.c.bf16 %v2641_v60, %v2641_v60 }
 0xeb6   : > { %v4529_v63 = vpop.f32.mrf.mxu0 }
 0xeb7   : > { %2770 = vrot.lane.b32.xlu0 %v6112_v62, %s5469_s11  ;;  %4533 = vmatmul.mubr.msk.bf16.vlgmr.msra.gmra.mxu1 %vm1806_vm1, %v6112_v62 }
 0xeb8   : > { %4537 = vmatpush3.bf16.msra.mxu1 %v6114_v1  ;;  %4538 = vmatprep.mubr.msk.bf16.mxu1 %vm5468_vm0, %v5467_v0 }
 0xeb9   : > { %4542 = vmatprep.subr.bf16.mxu1 %v5467_v0 }
 0xf29   : > { %v2771_v26 = vpop.permute.xlu0 %2770 }
 0xf77   : > { %v2696_v7 = vpop.f32.mrf.mxu1 }
 0xf78   : > { %v2697_v56 = vadd.f32 %v2696_v7, %v6132_v6 }
 0xf79   : > { %v4534_v8 = vpop.f32.mrf.mxu1 }
 0xf7a   : > { %v2703_v9 = vsel %vm2702_vm4, %v2697_v56, -inf }
 0xf7b   : > { %2704 = vmax.xlane.f32.xlu1 %v2703_v9  ;;  %v2699_v10 = vpop.f32.mrf.mxu1 }
 0xf7d   : > { %v4535_v11 = vpop.f32.mrf.mxu1 }
0x1004   : > { %v2705_v13 = vpop.xlane.xlu1 %2704 }
0x1005   : > { %v2706_v14 = vsub.f32 %v2697_v56, %v2705_v13 }
0x1007   : > { %v2707_v15 = vmul.f32 1.442695, %v2706_v14 }
0x1009   : > { %4950 = vpow2.f32 %v2707_v15 }
0x1016   : > { %v4951_v16 = vpop.eup %4950 }
0x1017   : > { %v2709_v18 = vsel %vm2702_vm4, %v4951_v16, 0.0 }
0x1018   : > { %2710 = vadd.xlane.f32.xlu1 %v2709_v18 }
0x1029   : > { %2772 = vrot.lane.b32.xlu1 %v6085_v17, %s5469_s11 }
0x10a1   : > { %v2711_v19 = vpop.xlane.xlu1 %2710 }
0x10a2   : > { %4952 = vrcp.f32 %v2711_v19 }
0x10a5   : > { %v2773_v22 = vpop.permute.xlu1 %2772 }
0x10a6   : > { %v2778_v24 = vsel %vm1806_vm1, %v2773_v22, 0 }
0x10af   : > { %v4953_v20 = vpop.eup %4952 }
0x10b0   : > { %v2713_v21 = vmul.f32 %v4953_v20, %v4951_v16 }
0x10b2   : > { %v2714_v23 = vpack.c.bf16 %v2713_v21, %v2713_v21 }
0x10b4   : > { %4539 = vmatmul.mubr.msk.bf16.vlgmr.msra.gmra.mxu1 %vm2702_vm4, %v2714_v23  ;;  %v4888_v23 = vld [vmem:[#allocation23 + $0x28] sm:$0xff]  }
0x10b5   : > { %4543 = vmatpush3.bf16.xpose.msra.mxu1 %v2778_v24  ;;  %4544 = vmatprep.mubr.msk.bf16.mxu1 %vm5468_vm0, %v5467_v0 }
0x10b6   : > { %4548 = vmatprep.subr.bf16.mxu1 %v5467_v0 }
0x10bc   : > { %4545 = vmatmul.mubr.msk.bf16.vlgmr.msra.gmra.mxu1 %vm1806_vm1, %v2771_v26 }
0x10bd   : > { %4550 = vmatprep.mubr.msk.bf16.mxu1 %vm5468_vm0, %v5467_v0 }
0x1174   : > { %v2758_v27 = vpop.f32.mrf.mxu1 }
0x1175   : > { %v2764_v49 = vpack.c.bf16 %v2758_v27, %v2758_v27 }
0x1176   : > { %v4540_v28 = vpop.f32.mrf.mxu1 }
0x1178   : > { %v2761_v29 = vpop.f32.mrf.mxu1 }
0x117a   : > { %v4541_v30 = vpop.f32.mrf.mxu1 }
0x117b   : > { %v4889_v30 = vld [vmem:[#allocation23 + $0x20] sm:$0xff]  }
0x117c   : > { %v2814_v31 = vpop.f32.mrf.mxu1 }
0x117d   : > { %v2815_v32 = vadd.f32 %v2814_v31, %v6132_v6 }
0x117e   : > { %v4546_v33 = vpop.f32.mrf.mxu1 }
0x117f   : > { %v2820_v34 = vsel %vm2702_vm4, %v2815_v32, -inf }
0x1180   : > { %2821 = vmax.xlane.f32.xlu1 %v2820_v34  ;;  %v2817_v35 = vpop.f32.mrf.mxu1 }
0x1182   : > { %v4547_v36 = vpop.f32.mrf.mxu1 }
0x1191   : > { %2832 = vrot.lane.b32.xlu1 %v6114_v1, %s5469_s11  ;;  %s6364_s11 = sld [smem:[#allocation57_spill]] }
0x1195   : > { %2993 = vrot.lane.b32.xlu1 %v6112_v62, %s5470_s21 }
0x1209   : > { %v2822_v37 = vpop.xlane.xlu1 %2821 }
0x120a   : > { %v2823_v38 = vsub.f32 %v2815_v32, %v2822_v37 }
0x120c   : > { %v2824_v39 = vmul.f32 1.442695, %v2823_v38 }
0x120d   : > { %v2833_v40 = vpop.permute.xlu1 %2832 }
0x120e   : > { %4954 = vpow2.f32 %v2824_v39  ;;  %4549 = vmatpush3.bf16.msra.mxu1 %v2833_v40 }
0x120f   : > { %4562 = vmatprep.subr.bf16.mxu1 %v5467_v0 }
0x1211   : > { %v2994_v61 = vpop.permute.xlu1 %2993 }
0x121b   : > { %v4955_v41 = vpop.eup %4954 }
0x121c   : > { %v2826_v42 = vsel %vm2702_vm4, %v4955_v41, 0.0 }
0x121d   : > { %2827 = vadd.xlane.f32.xlu0 %v2826_v42 }
0x1233   : > { %2995 = vrot.lane.b32.xlu0 %v6085_v17, %s5470_s21 }
0x12a6   : > { %v2828_v45 = vpop.xlane.xlu0 %2827 }
0x12a7   : > { %4956 = vrcp.f32 %v2828_v45 }
0x12aa   : > { %v2996_v50 = vpop.permute.xlu0 %2995 }
0x12ab   : > { %v3001_v57 = vsel %vm1806_vm1, %v2996_v50, 0 }
0x12b4   : > { %v4957_v46 = vpop.eup %4956 }
0x12b5   : > { %v2830_v47 = vmul.f32 %v4957_v46, %v4955_v41 }
0x12b7   : > { %v2831_v53 = vpack.c.bf16 %v2830_v47, %v2830_v47 }
0x12b9   : > { %4551 = vmatmul.mubr.msk.bf16.vlgmr.msra.gmra.mxu1 %vm2702_vm4, %v2831_v53 }
0x12ba   : > { %4563 = vmatpush3.bf16.msra.mxu1 %v4884_v48  ;;  %4566 = vmatprep.mubr.msk.bf16.mxu1 %vm5468_vm0, %v5467_v0 }
0x12bb   : > { %4564 = vmatprep.subr.bf16.mxu1 %v5467_v0 }
0x12be   : > { %4565 = vmatpush3.bf16.msra.mxu1 %v4885_v12 }
0x12bf   : > { %4576 = vmatprep.subr.bf16.mxu1 %v5467_v0 }
0x12c1   : > { %4567 = vmatmul.mubr.msk.bf16.vlgmr.msra.gmra.mxu1 %vm1806_vm1, %v2764_v49  ;;  %v4890_v49 = vld [vmem:[#allocation23 + $0x38] sm:$0xff]  }
0x12c2   : > { %4578 = vmatprep.mubr.msk.bf16.mxu1 %vm5468_vm0, %v5467_v0 }
0x1379   : > { %v2872_v51 = vpop.f32.mrf.mxu1 }
0x137a   : > { %v2878_v54 = vpack.c.bf16 %v2872_v51, %v2872_v51 }
0x137b   : > { %v4552_v55 = vpop.f32.mrf.mxu1 }
0x137c   : > { %4559 = vmatmul.mubr.msk.bf16.vlgmr.msra.gmra.mxu0 %vm1806_vm1, %v2878_v54 }
0x137d   : > { %4571 = vmatpush3.bf16.xpose.msra.mxu0 %v3001_v57  ;;  %v2875_v58 = vpop.f32.mrf.mxu1  ;;  %4572 = vmatprep.mubr.msk.bf16.mxu0 %vm5468_vm0, %v5467_v0 }
0x137e   : > { %4582 = vmatprep.subr.bf16.mxu0 %v5467_v0 }
0x137f   : > { %v4553_v59 = vpop.f32.mrf.mxu1 }
0x1381   : > { %v6172_v60 = vpop.f32.mrf.mxu1 }
0x1383   : > { %v4568_v63 = vpop.f32.mrf.mxu1 }
0x1384   : > { %4573 = vmatmul.mubr.msk.bf16.vlgmr.msra.gmra.mxu0 %vm1806_vm1, %v2994_v61 }
0x1385   : > { %v2990_v2 = vpop.f32.mrf.mxu1  ;;  %4586 = vmatprep.mubr.msk.bf16.mxu0 %vm5468_vm0, %v5467_v0  ;;  %4583 = vmatpush3.bf16.msra.mxu0 %v4888_v23  ;;  %v4903_v23 = vld [vmem:[#allocation24 + $0x44] ss:$8 sps:$4 sm:$0xff]  }
0x1386   : > { %4584 = vmatprep.subr.bf16.mxu0 %v5467_v0 }
0x1387   : > { %v4569_v25 = vpop.f32.mrf.mxu1 }
0x1389   : > { %4585 = vmatpush3.bf16.msra.mxu0 %v4889_v30  ;;  %v4915_v30 = vld [vmem:[#allocation24 + $0x4] ss:$8 sps:$4 sm:$0xff]  }
0x138a   : > { %4596 = vmatprep.subr.bf16.mxu0 %v5467_v0 }
0x143c   : > { %v6177_v4 = vpop.f32.mrf.mxu0 }
0x143e   : > { %v4560_v7 = vpop.f32.mrf.mxu0 }
0x1440   : > { %v2935_v56 = vpop.f32.mrf.mxu0 }
0x1442   : > { %v4561_v8 = vpop.f32.mrf.mxu0 }
0x1444   : > { %v3037_v9 = vpop.f32.mrf.mxu0 }
0x1445   : > { %v3038_v10 = vadd.f32 %v3037_v9, %v6132_v6 }
0x1446   : > { %v4574_v11 = vpop.f32.mrf.mxu0 }
0x1447   : > { %v3043_v13 = vsel %vm2702_vm4, %v3038_v10, -inf  ;;  %v4892_v11 = vld [vmem:[#allocation24 + $0x70] ss:$8 sps:$4 sm:$0xff]  }
0x1448   : > { %3044 = vmax.xlane.f32.xlu1 %v3043_v13  ;;  %v3040_v14 = vpop.f32.mrf.mxu0  ;;  %v4894_v13 = vld [vmem:[#allocation24 + $0x74] ss:$8 sps:$4 sm:$0xff]  }
0x1449   : > { %v4897_v14 = vld [vmem:[#allocation24 + $0x64] ss:$8 sps:$4 sm:$0xff]  }
0x144a   : > { %v4575_v15 = vpop.f32.mrf.mxu0 }
0x144b   : > { %v4895_v15 = vld [vmem:[#allocation24 + $0x60] ss:$8 sps:$4 sm:$0xff]  }
0x1459   : > { %3055 = vrot.lane.b32.xlu1 %v6114_v1, %s5470_s21  ;;  %s6367_s21 = sld [smem:[#allocation63_spill]] }
0x145d   : > { %3162 = vrot.lane.b32.xlu1 %v6112_v62, %s5471_s18 }
0x145f   : > { %p6368_p11 = scmp.ne.s32.totalorder %s6367_s21, 0 }
0x1461   : > { %p5316_p13 = pnand %p5315_p4, %p6368_p11 }
0x1463   : > { %p5317_p1 = pneg %p5316_p13 }
0x14d1   : > { %v3045_v16 = vpop.xlane.xlu1 %3044 }
0x14d2   : > { %v3046_v18 = vsub.f32 %v3038_v10, %v3045_v16 }
0x14d4   : > { %v3047_v19 = vmul.f32 1.442695, %v3046_v18 }
0x14d5   : > { %v3056_v20 = vpop.permute.xlu1 %3055 }
0x14d6   : > { %4958 = vpow2.f32 %v3047_v19  ;;  %4577 = vmatpush3.bf16.msra.mxu1 %v3056_v20 }
0x14d7   : > { %4590 = vmatprep.subr.bf16.mxu1 %v5467_v0 }
0x14e3   : > { %v4959_v21 = vpop.eup %4958 }
0x14e4   : > { %v3049_v22 = vsel %vm2702_vm4, %v4959_v21, 0.0 }
0x14e5   : > { %3050 = vadd.xlane.f32.xlu0 %v3049_v22  ;;  %v4898_v22 = vld [vmem:[#allocation24 + $0x50] ss:$8 sps:$4 sm:$0xff]  }
0x14fb   : > { %3164 = vrot.lane.b32.xlu0 %v6085_v17, %s5471_s18  ;;  %v3163_v17 = vpop.permute.xlu1 %3162 }
0x156e   : > { %v3051_v62 = vpop.xlane.xlu0 %3050 }
0x156f   : > { %4960 = vrcp.f32 %v3051_v62  ;;  %v4906_v62 = vld [vmem:[#allocation24 + $0x34] ss:$8 sps:$4 sm:$0xff]  }
0x1572   : > { %v3165_v27 = vpop.permute.xlu0 %3164 }
0x1573   : > { %v3170_v29 = vsel %vm1806_vm1, %v3165_v27, 0  ;;  %v4909_v27 = vld [vmem:[#allocation24 + $0x24] ss:$8 sps:$4 sm:$0xff]  }
0x157c   : > { %v4961_v24 = vpop.eup %4960 }
0x157d   : > { %v3053_v26 = vmul.f32 %v4961_v24, %v4959_v21  ;;  %v4900_v21 = vld [vmem:[#allocation24 + $0x54] ss:$8 sps:$4 sm:$0xff]   ;;  %v4904_v24 = vld [vmem:[#allocation24 + $0x30] ss:$8 sps:$4 sm:$0xff]  }
0x157f   : > { %v3054_v28 = vpack.c.bf16 %v3053_v26, %v3053_v26  ;;  %v5472_v26 = vmov 0  }
0x1581   : > { %4579 = vmatmul.mubr.msk.bf16.vlgmr.msra.gmra.mxu1 %vm2702_vm4, %v3054_v28  ;;  %v4907_v28 = vld [vmem:[#allocation24 + $0x20] ss:$8 sps:$4 sm:$0xff]  }
0x1582   : > { %4591 = vmatpush3.bf16.xpose.msra.mxu1 %v3170_v29  ;;  %4592 = vmatprep.mubr.msk.bf16.mxu1 %vm5468_vm0, %v5467_v0  ;;  %v4912_v29 = vld [vmem:[#allocation24 + $0x14] ss:$8 sps:$4 sm:$0xff]  }
0x1583   : > { %4602 = vmatprep.subr.bf16.mxu1 %v5467_v0 }
0x1589   : > { %4593 = vmatmul.mubr.msk.bf16.vlgmr.msra.gmra.mxu1 %vm1806_vm1, %v3163_v17  ;;  %v4910_v17 = vld [vmem:[#allocation24 + $0x10] ss:$8 sps:$4 sm:$0xff]  }
0x158a   : > { %4606 = vmatprep.mubr.msk.bf16.mxu1 %vm5468_vm0, %v5467_v0  ;;  %4603 = vmatpush3.bf16.msra.mxu1 %v4890_v49 }
0x158b   : > { %4604 = vmatprep.subr.bf16.mxu1 %v5467_v0 }
0x1641   : > { %v3095_v31 = vpop.f32.mrf.mxu1 }
0x1642   : > { %v3101_v32 = vpack.c.bf16 %v3095_v31, %v3095_v31  ;;  %v4913_v31 = vld [vmem:[#allocation24] ss:$8 sps:$4 sm:$0xff]  }
0x1643   : > { %v4580_v33 = vpop.f32.mrf.mxu1 }
0x1644   : > { %4587 = vmatmul.mubr.msk.bf16.vlgmr.msra.gmra.mxu0 %vm1806_vm1, %v3101_v32  ;;  %v4916_v32 = vld [vmem:[#allocation26 + $0x78] sm:$0xff]  }
0x1645   : > { %v3098_v34 = vpop.f32.mrf.mxu1  ;;  %4598 = vmatprep.mubr.msk.bf16.mxu0 %vm5468_vm0, %v5467_v0  ;;  %v4917_v33 = vld [vmem:[#allocation26 + $0x38] sm:$0xff]  }
0x1646   : > { %v4918_v34 = vld [vmem:[#allocation26 + $0x70] sm:$0xff]  }
0x1647   : > { %v4581_v35 = vpop.f32.mrf.mxu1 }
0x1648   : > { %v4919_v35 = vld [vmem:[#allocation26 + $0x30] sm:$0xff]  }
0x1649   : > { %v3206_v36 = vpop.f32.mrf.mxu1 }
0x164a   : > { %v3207_v37 = vadd.f32 %v3206_v36, %v6132_v6  ;;  %v2988_v6 = vadd.f32 %v6172_v60, %v6177_v4  ;;  %v4141_v4 = vld [vmem:[%s6358_s12] ss:$0 sm:$0xff]  ;;  %s5320_s12 = scalar_lea.vmem %s5319_s7, 256 }
0x164b   : > { %v4594_v38 = vpop.f32.mrf.mxu1  ;;  %v4920_v36 = vld [vmem:[#allocation26 + $0x68] sm:$0xff]   ;;  %p5322_p10 = scmp.lt.s32.totalorder %s5320_s12, %s5314_s1 }
0x164c   : > { %v3212_v39 = vsel %vm2702_vm4, %v3207_v37, -inf  ;;  %v4922_v38 = vld [vmem:[#allocation26 + $0x60] sm:$0xff]  }
0x164d   : > { %3213 = vmax.xlane.f32.xlu1 %v3212_v39  ;;  %v3209_v40 = vpop.f32.mrf.mxu1  ;;  %v4923_v39 = vld [vmem:[#allocation26 + $0x20] sm:$0xff]   ;;  %p5323_p8 = por %p5322_p10, %p5321_p12 }
0x164e   : > { %v4924_v40 = vld [vmem:[#allocation26 + $0x58] sm:$0xff]  }
0x164f   : > { %v4595_v41 = vpop.f32.mrf.mxu1  ;;  %p5324_p0 = pnand %p5323_p8, %p5317_p1 }
0x1650   : > { %v4925_v41 = vld [vmem:[#allocation26 + $0x18] sm:$0xff]  }
0x165e   : > { %3224 = vrot.lane.b32.xlu1 %v6114_v1, %s5471_s18  ;;  %v4891_v1 = vld [vmem:[#allocation23 + $0x30] sm:$0xff]   ;;  %s4180_s18 = sshll.u32 %s5410_s22, 7 }
0x165f   : > { %4605 = vmatpush3.bf16.msra.mxu1 %v4891_v1  ;;  %v4928_v1 = vld [vmem:[#allocation26 + $0x48] sm:$0xff]   ;;  %s3738_s9 = scalar_lea.hbm %s6365_s15, %s4180_s18 }
0x1660   : > { %4308 = vmatprep.subr.bf16.mxu1 %v4916_v32 }
0x16d6   : > { %v3214_v42 = vpop.xlane.xlu1 %3213 }
0x16d7   : > { %v3215_v43 = vsub.f32 %v3207_v37, %v3214_v42  ;;  %v4921_v37 = vld [vmem:[#allocation26 + $0x28] sm:$0xff]   ;;  %v4926_v42 = vld [vmem:[#allocation26 + $0x50] sm:$0xff]  }
0x16d9   : > { %v3216_v44 = vmul.f32 1.442695, %v3215_v43  ;;  %v4927_v43 = vld [vmem:[#allocation26 + $0x10] sm:$0xff]  }
0x16da   : > { %v3225_v45 = vpop.permute.xlu1 %3224 }
0x16db   : > { %4962 = vpow2.f32 %v3216_v44  ;;  %4597 = vmatpush3.bf16.msra.mxu0 %v3225_v45 }
0x16dc   : > { %3476 = vmatprep.subr.bf16.mxu0 %v4894_v13 }
0x16e8   : > { %v4963_v46 = vpop.eup %4962 }
0x16e9   : > { %v3218_v47 = vsel %vm2702_vm4, %v4963_v46, 0.0 }
0x16ea   : > { %3219 = vadd.xlane.f32.xlu0 %v3218_v47 }
0x1704   : > { %v3155_v48 = vpop.f32.mrf.mxu0 }
0x1705   : > { %v3161_v53 = vadd.f32 %v3155_v48, %v2988_v6  ;;  %v4142_v6 = vld [vmem:[%s6359_s2] ss:$0 sm:$0xff] }
0x1706   : > { %v4588_v12 = vpop.f32.mrf.mxu0 }
0x1708   : > { %v3158_v50 = vpop.f32.mrf.mxu0 }
0x170a   : > { %v4589_v51 = vpop.f32.mrf.mxu0 }
0x170b   : > { %v4929_v51 = vld [vmem:[#allocation26 + $0x8] sm:$0xff]  }
0x1773   : > { %v3220_v54 = vpop.xlane.xlu0 %3219 }
0x1774   : > { %4964 = vrcp.f32 %v3220_v54  ;;  %v4930_v54 = vld [vmem:[#allocation26 + $0x40] sm:$0xff]  }
0x1781   : > { %v4965_v55 = vpop.eup %4964 }
0x1782   : > { %v3222_v57 = vmul.f32 %v4965_v55, %v4963_v46  ;;  %v4931_v55 = vld [vmem:[#allocation26] sm:$0xff]  }
0x1784   : > { %v3223_v58 = vpack.c.bf16 %v3222_v57, %v3222_v57  ;;  %v3384_v57 = vld [vmem:[%s6361_s23] sm:$0x3] }
0x1786   : > { %4599 = vmatmul.mubr.msk.bf16.vlgmr.msra.gmra.mxu0 %vm2702_vm4, %v3223_v58  ;;  %v3392_v58 = vsub.s32 1, %v6127_v3 }
0x1787   : > { %3477 = vmatpush1.bf16.msra.mxu0 %v4892_v11  ;;  %3508 = vmatprep.mubr.bf16.mxu0 %v5472_v26  ;;  %v4160_v11 = vld [vmem:[%s6362_s26] ss:$0 sm:$0xff] }
0x1788   : > { %3478 = vmatprep.subr.bf16.mxu0 %v4897_v14 }
0x178b   : > { %3479 = vmatpush1.bf16.msra.mxu0 %v4895_v15 }
0x178c   : > { %3480 = vmatprep.subr.bf16.mxu0 %v4900_v21 }
0x178f   : > { %3481 = vmatpush1.bf16.msra.mxu0 %v4898_v22 }
0x1790   : > { %3482 = vmatprep.subr.bf16.mxu0 %v4903_v23 }
0x1846   : > { %v3264_v59 = vpop.f32.mrf.mxu0 }
0x1847   : > { %v3270_v60 = vpack.c.bf16 %v3264_v59, %v3264_v59  ;;  %v3389_v59 = vrot.slane %v3384_v57, %v2648_v5 }
0x1848   : > { %v4600_v61 = vpop.f32.mrf.mxu0 }
0x1849   : > { %4607 = vmatmul.mubr.msk.bf16.vlgmr.msra.gmra.mxu1 %vm1806_vm1, %v3270_v60  ;;  %v3393_v60 = vrot.slane %v3384_v57, %v3392_v58 }
0x184a   : > { %v3267_v63 = vpop.f32.mrf.mxu0  ;;  %4309 = vmatpush3.bf16.msra.mxu1 %v4917_v33 }
0x184b   : > { %4310 = vmatprep.subr.bf16.mxu1 %v4918_v34 }
0x184c   : > { %v4601_v2 = vpop.f32.mrf.mxu0 }
0x184e   : > { %4311 = vmatpush3.bf16.msra.mxu1 %v4919_v35 }
0x184f   : > { %4312 = vmatprep.subr.bf16.mxu1 %v4920_v36 }
0x1852   : > { %4313 = vmatpush3.bf16.msra.mxu1 %v4921_v37 }
0x1853   : > { %4314 = vmatprep.subr.bf16.mxu1 %v4922_v38 }
0x1856   : > { %4315 = vmatpush3.bf16.msra.mxu1 %v4923_v39 }
0x1857   : > { %4316 = vmatprep.subr.bf16.mxu1 %v4924_v40 }
0x185a   : > { %4317 = vmatpush3.bf16.msra.mxu1 %v4925_v41 }
0x185b   : > { %4318 = vmatprep.subr.bf16.mxu1 %v4926_v42 }
0x185e   : > { %4319 = vmatpush3.bf16.msra.mxu1 %v4927_v43 }
0x185f   : > { %4320 = vmatprep.subr.bf16.mxu1 %v4928_v1 }
0x1862   : > { %4321 = vmatpush3.bf16.msra.mxu1 %v4929_v51 }
0x1863   : > { %4322 = vmatprep.subr.bf16.mxu1 %v4930_v54 }
0x1866   : > { %4323 = vmatpush3.bf16.msra.mxu1 %v4931_v55 }
0x1909   : > { %v3324_v25 = vpop.f32.mrf.mxu1 }
0x190a   : > { %v3330_v0 = vadd.f32 %v3324_v25, %v3161_v53  ;;  %v4143_v53 = vld [vmem:[%s6360_s20] ss:$0 sm:$0xff] }
0x190b   : > { %v4608_v7 = vpop.f32.mrf.mxu1 }
0x190c   : > { %v3338_v56 = vadd.f32 %v4141_v4, %v3330_v0 }
0x190d   : > { %v3327_v8 = vpop.f32.mrf.mxu1 }
0x190e   : > { %v3339_v9 = vadd.f32 %v3338_v56, %v6105_v52  ;;  %v4901_v52 = vld [vmem:[#allocation24 + $0x40] ss:$8 sps:$4 sm:$0xff]  }
0x190f   : > { %v4609_v10 = vpop.f32.mrf.mxu1  ;;  %3483 = vmatpush1.bf16.msra.mxu0 %v4901_v52 }
0x1910   : > { %3342 = vadd.xlane.f32.xlu0 %v3339_v9  ;;  %3484 = vmatprep.subr.bf16.mxu0 %v4906_v62 }
0x1913   : > { %3485 = vmatpush1.bf16.msra.mxu0 %v4904_v24  ;;  %v4177_v24 = vld [vmem:[%s6363_s30] ss:$0 sm:$0xff] }
0x1914   : > { %3486 = vmatprep.subr.bf16.mxu0 %v4909_v27  ;;  %v4178_v27 = vld [vmem:[%s6364_s11] ss:$0 sm:$0xff] }
0x1917   : > { %3487 = vmatpush1.bf16.msra.mxu0 %v4907_v28 }
0x1918   : > { %3488 = vmatprep.subr.bf16.mxu0 %v4912_v29 }
0x191b   : > { %3489 = vmatpush1.bf16.msra.mxu0 %v4910_v17 }
0x191c   : > { %3490 = vmatprep.subr.bf16.mxu0 %v4915_v30 }
0x191f   : > { %3491 = vmatpush1.bf16.msra.mxu0 %v4913_v31 }
0x1999   : > { %v3343_v16 = vpop.xlane.xlu0 %3342 }
0x199a   : > { %v3344_v18 = vmul.f32 0.0078125, %v3343_v16 }
0x199c   : > { %v3345_v19 = vsub.f32 %v3339_v9, %v3344_v18 }
0x199e   : > { %v3346_v20 = vmul.f32 %v3345_v19, %v3345_v19 }
0x19a0   : > { %3347 = vadd.xlane.f32.xlu0 %v3346_v20 }
0x1a29   : > { %v3348_v44 = vpop.xlane.xlu0 %3347 }
0x1a2a   : > { %v3349_v45 = vmul.f32 0.0078125, %v3348_v44 }
0x1a2c   : > { %v3350_v46 = vadd.f32 1e-05, %v3349_v45 }
0x1a2e   : > { %4966 = vrsqrt.f32 %v3350_v46 }
0x1a3b   : > { %v4967_v47 = vpop.eup %4966 }
0x1a3c   : > { %v3352_v48 = vmul.f32 %v4967_v47, %v3345_v19 }
0x1a3e   : > { %v3359_v12 = vmul.f32 %v4142_v6, %v3352_v48 }
0x1a40   : > { %v3366_v49 = vadd.f32 %v4143_v53, %v3359_v12 }
0x1a42   : > { %v3367_v50 = vpack.c.bf16 %v3366_v49, %v3366_v49 }
0x1a44   : > { %3509 = vmatmul.mubr.bf16.vlgmr.msra.gmra.mxu0 %v3367_v50 }
0x1b04   : > { %v3510_v61 = vpop.f32.mrf.mxu0 }
0x1b05   : > { %v3511_v63 = vadd.f32 %v3510_v61, %v3389_v59 }
0x1b06   : > { %v3512_v2 = vpop.f32.mrf.mxu0 }
0x1b07   : > { %v3513_v25 = vadd.f32 %v3512_v2, %v3393_v60  ;;  %v3517_v4 = vmax.f32 %v3511_v63, 0.0 }
0x1b08   : > { %v3514_v0 = vpop.f32.mrf.mxu0 }
0x1b09   : > { %v3518_v7 = vmax.f32 %v3513_v25, 0.0  ;;  %v3519_v9 = vpack.c.bf16 %v3517_v4, %v3517_v4 }
0x1b0a   : > { %v3515_v56 = vpop.f32.mrf.mxu0 }
0x1b0b   : > { %v3520_v8 = vpack.c.bf16 %v3518_v7, %v3518_v7 }
0x1b0d   : > { %3688 = vmatprep.mubr.bf16.mxu1 %v3520_v8 }
0x1b0e   : > { %3689 = vmatmul.mubr.bf16.vlgmr.msra.gmra.mxu1 %v3519_v9 }
0x1bce   : > { %v4324_v10 = vpop.f32.mrf.mxu1 }
0x1bd0   : > { %v4325_v13 = vpop.f32.mrf.mxu1 }
0x1bd1   : > { %v4326_v14 = vadd.f32 %v4325_v13, %v4324_v10 }
0x1bd2   : > { %v4327_v3 = vpop.f32.mrf.mxu1 }
0x1bd3   : > { %v3691_v5 = vadd.f32 %v4326_v14, %v4160_v11 }
0x1bd4   : > { %v4328_v15 = vpop.f32.mrf.mxu1 }
0x1bd5   : > { %v3696_v16 = vadd.f32 %v3691_v5, %v3366_v49 }
0x1bd7   : > { %3699 = vadd.xlane.f32.xlu0 %v3696_v16 }
0x1c60   : > { %v3700_v18 = vpop.xlane.xlu0 %3699 }
0x1c61   : > { %v3701_v19 = vmul.f32 0.0078125, %v3700_v18 }
0x1c63   : > { %v3702_v20 = vsub.f32 %v3696_v16, %v3701_v19 }
0x1c65   : > { %v3703_v21 = vmul.f32 %v3702_v20, %v3702_v20 }
0x1c67   : > { %3704 = vadd.xlane.f32.xlu0 %v3703_v21 }
0x1cf0   : > { %v3705_v22 = vpop.xlane.xlu0 %3704 }
0x1cf1   : > { %v3706_v52 = vmul.f32 0.0078125, %v3705_v22 }
0x1cf3   : > { %v3707_v23 = vadd.f32 1e-05, %v3706_v52 }
0x1cf5   : > { %4968 = vrsqrt.f32 %v3707_v23 }
0x1d02   : > { %v4969_v62 = vpop.eup %4968 }
0x1d03   : > { %v3709_v26 = vmul.f32 %v4969_v62, %v3702_v20 }
0x1d05   : > { %v3716_v28 = vmul.f32 %v4177_v24, %v3709_v26 }
0x1d07   : > { %v3723_v29 = vadd.f32 %v4178_v27, %v3716_v28 }
0x1d09   : > { %3724 = vst [vmem:[%s1192_s17] sm:$0xff] %v3723_v29 }
0x1d0a   : > { %5327 = shalt.err (!%p5324_p0)
}
0x1d0b   : > { %s5328_s22 = scalar_lea.hbm %s3738_s9, 128  ;;  %s5332_s10 = scalar_lea.hbm %s6366_s8, 256 }
0x1d0c   : > { %p5329_p2 = scmp.ne.s32.totalorder %s3738_s9, %s5328_s22  ;;  %p5333_p3 = scmp.lt.s32.totalorder %s3738_s9, %s6366_s8 }
0x1d0d   : > { %p5334_p6 = scmp.lt.s32.totalorder %s5332_s10, %s5328_s22 }
0x1d0e   : > { %p5330_p5 = pnand %p5329_p2, %p6368_p11 }
0x1d0f   : > { %p5335_p7 = por %p5334_p6, %p5333_p3 }
0x1d10   : > { %p5331_p9 = pneg %p5330_p5 }
0x1d12   : > { %p5336_p4 = pnand %p5335_p7, %p5331_p9 }
0x1d14   : > { %5339 = shalt.err (!%p5336_p4)
}
0x1d15   : > { %4656 = dma.vmem_to_hbm [thread:$0]  (%p6368_p11), %s3741_s4, 128, %s3738_s9, %s3726_s14  }
0x1d16 PF: > { %s6369_s28 = sld [smem:[#allocation59_spill]] }
0x1d17   : > { %s6370_s2 = sld [smem:[#allocation65_spill]] }
0x1d18   : > { %s6371_s20 = sld [smem:[#allocation61_spill]] }
0x1d1c   : > { %s3752_s23 = sand.u32 1, %s6369_s28  }
0x1d1d   : > { %p6372_p13 = scmp.ne.s32.totalorder %s6370_s2, 0  ;;  %s3753_s26 = scalar_lea.sflag [#allocation8], %s3752_s23 }
0x1d1e   : > { %p6373_p1 = scmp.ge.s32.totalorder %s6371_s20, 2 }
0x1d20   : > { %p4700_p12 = pnand %p6373_p1, %p6372_p13 }
0x1d22   : > { %p4701_p10 = pneg %p4700_p12 }
0x1d24   : > { %5393 = dma.done.wait (%p4701_p10), %s3753_s26, 128  }
0x1d25   : > { %5395 = vsyncadd (%p4701_p10), %s3753_s26, 4294967168  ;;  %s85_s23 = sadd.s32 1, %s6371_s20   ;;  %s6374_s30 = sld [smem:[#allocation60_spill]] }
0x1d26   : > { %p82_p8 = scmp.ge.s32.totalorder %s85_s23, 4   ;;  %s6375_s18 = sld [smem:[#allocation64_spill]] }
0x1d27   : > { %s6376_s11 = sld [smem:[#allocation62_spill]]  ;;  %s6377_s15 = smov %s5402_s16 }
0x1d28   : > { %s6379_s22 = smov %s5414_s0 }
0x1d29   :  { %84 = sbr.rel (!%p82_p8) target bundleno = 70 (0x46), region = 287 }
0x1d2b   : > { %s6378_s16 = smov %s6374_s30 }
0x1d2d   : > { %s6380_s0 = smov %s6376_s11 }
0x1d2e   :  { %3758 = vsyncpa [#allocation7], 1 }
0x1d2f   :  { %3760 = vsyncpa [#allocation7 + $0x1], 1 }
0x1d30   :  { %3761 = vsyncpa [#allocation10], 1 }
0x1d31   :  { %3763 = vsyncpa [#allocation10 + $0x1], 1 }
0x1d32   :  { %3764 = vsyncpa [#allocation13], 1 }
0x1d33   :  { %3765 = vsyncpa [#allocation16], 1 }
0x1d34   :  { %3766 = vsyncpa [#allocation19], 1 }
0x1d35   :  { %3767 = vsyncpa [#allocation22], 1 }
0x1d36   :  { %3768 = vsyncpa [#allocation25], 1 }
0x1d37   :  { %3769 = vsyncpa [#allocation8], 1 }
0x1d38   :  { %3771 = vsyncpa [#allocation8 + $0x1], 1 }

</bundles_post_ra>
